<compile_context>
chip_gen: v5e
topology: v5e:2x2
jax: 0.10.0
libtpu: 0.0.40
codegen_flags: <defaults>
</compile_context>

<pallas_src>
import functools

import numpy as np
import jax
import jax.numpy as jnp
from jax.experimental import pallas as pl
from jax.experimental.pallas import tpu as pltpu

_EPS = 1e-5


# ---------------------------------------------------------------------------
# One-time host-side preparation (numpy): build the per-layer tap matrices.
#
#   Conv2d / ConvTranspose2d over square spatial maps, activations kept as 2-D
#   matrices  A[(b, h), (w, ci)]  ->  Out[(b, q), (p, co)]:
#       Out = sum_t (R_t @ A) @ G_t
#   with one tap t per kernel row (per (kernel row, input channel) for the first
#   layer, whose rows come straight from the NCHW input reshape).
# ---------------------------------------------------------------------------
def _conv_rg(weight, n, stride, pad, batch):
    """Conv2d weight (Cout,Cin,k,k), input n x n, rows=(b,h), cols=(w,ci)."""
    weight = np.asarray(weight, np.float32)
    cout, cin, k, _ = weight.shape
    m = (n + 2 * pad - k) // stride + 1
    R = np.zeros((k, batch * m, batch * n), np.float32)
    G = np.zeros((k, n * cin, m * cout), np.float32)
    for i in range(k):
        for q in range(m):
            h = stride * q + i - pad
            if 0 <= h < n:
                for b in range(batch):
                    R[i, b * m + q, b * n + h] = 1.0
        for p in range(m):
            for j in range(k):
                w = stride * p + j - pad
                if 0 <= w < n:
                    G[i, w * cin:(w + 1) * cin, p * cout:(p + 1) * cout] += weight[:, :, i, j].T
    return R, G, m


def _conv_rg_nchw_rows(weight, n, stride, pad, batch):
    """First layer: input is the raw NCHW image reshaped (free) to (B*Cin*H, W),
    i.e. rows=(b,ci,h), cols=w.  The NCHW->NHWC transpose is folded into one tap
    per (kernel row, input channel)."""
    weight = np.asarray(weight, np.float32)
    cout, cin, k, _ = weight.shape
    m = (n + 2 * pad - k) // stride + 1
    R = np.zeros((k * cin, batch * m, batch * cin * n), np.float32)
    G = np.zeros((k * cin, n, m * cout), np.float32)
    t = 0
    for i in range(k):
        for ci in range(cin):
            for q in range(m):
                h = stride * q + i - pad
                if 0 <= h < n:
                    for b in range(batch):
                        R[t, b * m + q, (b * cin + ci) * n + h] = 1.0
            for p in range(m):
                for j in range(k):
                    w = stride * p + j - pad
                    if 0 <= w < n:
                        G[t, w, p * cout:(p + 1) * cout] += weight[:, ci, i, j]
            t += 1
    return R, G, m


def _convT_rg(weight, n, stride, pad, batch):
    """ConvTranspose2d weight (Cin,Cout,k,k); out spatial m = (n-1)*s + k - 2*pad."""
    weight = np.asarray(weight, np.float32)
    cin, cout, k, _ = weight.shape
    m = (n - 1) * stride + k - 2 * pad
    R = np.zeros((k, batch * m, batch * n), np.float32)
    G = np.zeros((k, n * cin, m * cout), np.float32)
    for i in range(k):
        for h in range(n):
            q = stride * h + i - pad
            if 0 <= q < m:
                for b in range(batch):
                    R[i, b * m + q, b * n + h] = 1.0
        for w in range(n):
            for j in range(k):
                p = stride * w + j - pad
                if 0 <= p < m:
                    G[i, w * cin:(w + 1) * cin, p * cout:(p + 1) * cout] += weight[:, :, i, j]
    return R, G, m


def _bn_aux(gamma, beta, m, cout, rows):
    """BN constants for the (width, channel) column layout:
       Q averages columns over width per channel (includes 1/(rows*m)),
       gamma/beta are pre-broadcast to the column layout."""
    ncol = m * cout
    Q = np.kron(np.ones((m, m), np.float32), np.eye(cout, dtype=np.float32)) / float(rows * m)
    g_cols = np.tile(np.asarray(gamma, np.float32), m).reshape(1, ncol)
    b_cols = np.tile(np.asarray(beta, np.float32), m).reshape(1, ncol)
    return Q.astype(np.float32), g_cols, b_cols


def prepare_params(p, batch, spatial=32):
    """One-time preprocessing of PyTorch-layout params into the 31 GEMM-ready
    operands consumed by the fused Pallas kernel (nothing here runs per-forward)."""
    ops = []
    # -------- encoder --------
    r, g, n = _conv_rg_nchw_rows(p["e1"], spatial, 2, 1, batch)            # 32 -> 16
    ops += [r, g]
    r, g, n = _conv_rg(p["e2"], n, 2, 1, batch)                            # 16 -> 8
    q, gc, bc = _bn_aux(p["bn_e2_g"], p["bn_e2_b"], n, p["e2"].shape[0], batch * n)
    ops += [r, g, q, gc, bc]
    r, g, n = _conv_rg(p["e3"], n, 2, 1, batch)                            # 8 -> 4
    q, gc, bc = _bn_aux(p["bn_e3_g"], p["bn_e3_b"], n, p["e3"].shape[0], batch * n)
    ops += [r, g, q, gc, bc]
    r, g, n = _conv_rg(p["e4"], n, 1, 0, batch)                            # 4 -> 1
    ops += [r, g]
    # -------- decoder --------
    r, g, n = _convT_rg(p["d1"], n, 1, 0, batch)                           # 1 -> 4
    q, gc, bc = _bn_aux(p["bn_d1_g"], p["bn_d1_b"], n, p["d1"].shape[1], batch * n)
    ops += [r, g, q, gc, bc]
    r, g, n = _convT_rg(p["d2"], n, 2, 1, batch)                           # 4 -> 8
    q, gc, bc = _bn_aux(p["bn_d2_g"], p["bn_d2_b"], n, p["d2"].shape[1], batch * n)
    ops += [r, g, q, gc, bc]
    r, g, n = _convT_rg(p["d3"], n, 2, 1, batch)                           # 8 -> 16
    q, gc, bc = _bn_aux(p["bn_d3_g"], p["bn_d3_b"], n, p["d3"].shape[1], batch * n)
    ops += [r, g, q, gc, bc]
    r, g, n = _convT_rg(p["d4"], n, 2, 1, batch)                           # 16 -> 32
    ops += [r, g]
    assert n == spatial
    return tuple(jnp.asarray(o) for o in ops)


# ---------------------------------------------------------------------------
# the single fused Pallas kernel
# ---------------------------------------------------------------------------
def _tap_conv(a, r_ref, g_ref):
    """Whole conv layer as a handful of small 2-D MXU GEMMs: sum_t (R_t @ a) @ G_t."""
    acc = None
    for t in range(r_ref.shape[0]):
        s = jnp.dot(r_ref[t], a, preferred_element_type=jnp.float32)
        y = jnp.dot(s, g_ref[t], preferred_element_type=jnp.float32)
        acc = y if acc is None else acc + y
    return acc


def _batchnorm(y, q_ref, gam_ref, bet_ref):
    """Training-mode (biased batch statistics) BatchNorm over the 2-D layout.
    Per-channel stats = row reduction + one tiny matmul with the precomputed
    channel-averaging matrix Q; variance is two-pass (centered)."""
    mean = jnp.dot(jnp.sum(y, axis=0, keepdims=True), q_ref[...],
                   preferred_element_type=jnp.float32)
    c = y - mean
    var = jnp.dot(jnp.sum(c * c, axis=0, keepdims=True), q_ref[...],
                  preferred_element_type=jnp.float32)
    inv = jax.lax.rsqrt(var + _EPS)
    return c * (inv * gam_ref[...]) + bet_ref[...]


def _leaky_relu(y):
    return jnp.where(y > 0, y, 0.2 * y)


def _ae_kernel(x_ref,
               e1_r, e1_g,
               e2_r, e2_g, e2_q, e2_gm, e2_bt,
               e3_r, e3_g, e3_q, e3_gm, e3_bt,
               e4_r, e4_g,
               d1_r, d1_g, d1_q, d1_gm, d1_bt,
               d2_r, d2_g, d2_q, d2_gm, d2_bt,
               d3_r, d3_g, d3_q, d3_gm, d3_bt,
               d4_r, d4_g,
               o_ref):
    a = x_ref[...]                                                               # (B*2*32, 32)
    # ---- encoder ----
    a = _leaky_relu(_tap_conv(a, e1_r, e1_g))                                    # 32 -> 16
    a = _leaky_relu(_batchnorm(_tap_conv(a, e2_r, e2_g), e2_q, e2_gm, e2_bt))    # 16 -> 8
    a = _leaky_relu(_batchnorm(_tap_conv(a, e3_r, e3_g), e3_q, e3_gm, e3_bt))    # 8 -> 4
    a = _tap_conv(a, e4_r, e4_g)                                                 # 4 -> 1
    a = 1.0 / (1.0 + jnp.exp(-a))                                                # sigmoid
    # ---- decoder ----
    a = jnp.maximum(_batchnorm(_tap_conv(a, d1_r, d1_g), d1_q, d1_gm, d1_bt), 0.0)   # 1 -> 4
    a = jnp.maximum(_batchnorm(_tap_conv(a, d2_r, d2_g), d2_q, d2_gm, d2_bt), 0.0)   # 4 -> 8
    a = jnp.maximum(_batchnorm(_tap_conv(a, d3_r, d3_g), d3_q, d3_gm, d3_bt), 0.0)   # 8 -> 16
    a = jnp.maximum(_tap_conv(a, d4_r, d4_g), 0.0)                                   # 16 -> 32
    o_ref[...] = a                                                               # (B*32, 32)


@functools.partial(jax.jit, static_argnames=("spatial",))
def autoencoder_forward(x_nchw, operands, spatial=32):
    """x_nchw: (B, 2, 32, 32) f32.  operands: tuple from prepare_params(...)."""
    B, Cin, H, W = x_nchw.shape
    x2d = x_nchw.astype(jnp.float32).reshape(B * Cin * H, W)     # free reshape, no transpose
    n_in = 1 + len(operands)
    out2d = pl.pallas_call(
        _ae_kernel,
        out_shape=jax.ShapeDtypeStruct((B * spatial, spatial), jnp.float32),
        in_specs=[pl.BlockSpec(memory_space=pltpu.MemorySpace.VMEM)] * n_in,
        out_specs=pl.BlockSpec(memory_space=pltpu.MemorySpace.VMEM),
    )(x2d, *operands)
    return out2d.reshape(B, 1, spatial, spatial)                 # Cout == 1 -> free reshape


# ---------------------------------------------------------------------------
# pure-XLA reference of the PyTorch module (only for the numerical self-check)
# ---------------------------------------------------------------------------
def _ref_conv(x, w, stride, pad):
    return jax.lax.conv_general_dilated(
        x, w, window_strides=(stride, stride), padding=[(pad, pad), (pad, pad)],
        dimension_numbers=("NCHW", "OIHW", "NCHW"))


def _ref_convT(x, w, stride, pad):
    k = w.shape[2]
    w_flip = jnp.transpose(w[:, :, ::-1, ::-1], (1, 0, 2, 3))
    return jax.lax.conv_general_dilated(
        x, w_flip, window_strides=(1, 1),
        padding=[(k - 1 - pad, k - 1 - pad)] * 2, lhs_dilation=(stride, stride),
        dimension_numbers=("NCHW", "OIHW", "NCHW"))


def _ref_bn(x, gamma, beta):
    mean = jnp.mean(x, axis=(0, 2, 3), keepdims=True)
    var = jnp.mean((x - mean) ** 2, axis=(0, 2, 3), keepdims=True)
    return ((x - mean) * jax.lax.rsqrt(var + _EPS) * gamma.reshape(1, -1, 1, 1)
            + beta.reshape(1, -1, 1, 1))


def autoencoder_reference(x, p):
    lrelu = lambda v: jnp.where(v > 0, v, 0.2 * v)
    y = lrelu(_ref_conv(x, p["e1"], 2, 1))
    y = lrelu(_ref_bn(_ref_conv(y, p["e2"], 2, 1), p["bn_e2_g"], p["bn_e2_b"]))
    y = lrelu(_ref_bn(_ref_conv(y, p["e3"], 2, 1), p["bn_e3_g"], p["bn_e3_b"]))
    y = jax.nn.sigmoid(_ref_conv(y, p["e4"], 1, 0))
    y = jax.nn.relu(_ref_bn(_ref_convT(y, p["d1"], 1, 0), p["bn_d1_g"], p["bn_d1_b"]))
    y = jax.nn.relu(_ref_bn(_ref_convT(y, p["d2"], 2, 1), p["bn_d2_g"], p["bn_d2_b"]))
    y = jax.nn.relu(_ref_bn(_ref_convT(y, p["d3"], 2, 1), p["bn_d3_g"], p["bn_d3_b"]))
    y = jax.nn.relu(_ref_convT(y, p["d4"], 2, 1))
    return y


# ---------------------------------------------------------------------------
# parameter init (PyTorch layouts; BatchNorm default affine init)
# ---------------------------------------------------------------------------
def init_params(nf, key):
    keys = jax.random.split(key, 8)

    def w(k, shape):
        return jax.random.normal(k, shape, jnp.float32) * 0.05

    return {
        # encoder Conv2d weights: (Cout, Cin, 4, 4)
        "e1": w(keys[0], (nf, 2, 4, 4)),
        "e2": w(keys[1], (nf * 2, nf, 4, 4)),
        "e3": w(keys[2], (nf * 4, nf * 2, 4, 4)),
        "e4": w(keys[3], (nf * 4, nf * 4, 4, 4)),
        # decoder ConvTranspose2d weights: (Cin, Cout, 4, 4)
        "d1": w(keys[4], (nf * 4, nf * 8, 4, 4)),
        "d2": w(keys[5], (nf * 8, nf * 4, 4, 4)),
        "d3": w(keys[6], (nf * 4, nf * 2, 4, 4)),
        "d4": w(keys[7], (nf * 2, 1, 4, 4)),
        # BatchNorm affine params (gamma=1, beta=0)
        "bn_e2_g": jnp.ones((nf * 2,), jnp.float32), "bn_e2_b": jnp.zeros((nf * 2,), jnp.float32),
        "bn_e3_g": jnp.ones((nf * 4,), jnp.float32), "bn_e3_b": jnp.zeros((nf * 4,), jnp.float32),
        "bn_d1_g": jnp.ones((nf * 8,), jnp.float32), "bn_d1_b": jnp.zeros((nf * 8,), jnp.float32),
        "bn_d2_g": jnp.ones((nf * 4,), jnp.float32), "bn_d2_b": jnp.zeros((nf * 4,), jnp.float32),
        "bn_d3_g": jnp.ones((nf * 2,), jnp.float32), "bn_d3_b": jnp.zeros((nf * 2,), jnp.float32),
    }


if __name__ == "__main__":
    nf = 8
    batch = 2
    key = jax.random.PRNGKey(0)
    k_x, k_p = jax.random.split(key)

    # 32x32 spatial is required by the architecture (4x4 bottleneck -> 1x1).
    x = jax.random.normal(k_x, (batch, 2, 32, 32), jnp.float32)   # NCHW, 2 input channels
    params = init_params(nf, k_p)

    operands = prepare_params(params, batch)                      # one-time, host-side
    out = jax.block_until_ready(autoencoder_forward(x, operands))

    assert out.shape == (batch, 1, 32, 32), out.shape
    assert out.dtype == jnp.float32
    assert bool(jnp.all(jnp.isfinite(out)))
    assert bool(jnp.all(out >= 0.0))                              # final ReLU

    # numerical self-check against a pure-XLA reference of the PyTorch forward
    ref = jax.block_until_ready(autoencoder_reference(x, params))
    max_err = float(jnp.max(jnp.abs(out - ref)))
    assert jnp.allclose(out, ref, atol=2e-3, rtol=2e-3), max_err

    print("KERNEL_OK")
</pallas_src>

<mosaic_0001>
module attributes {stable_mosaic.version = 11 : i64} {
  func.func @_ae_kernel(%arg0: memref<128x32xf32, #tpu.memory_space<vmem>>, %arg1: memref<8x32x128xf32, #tpu.memory_space<vmem>>, %arg2: memref<8x32x128xf32, #tpu.memory_space<vmem>>, %arg3: memref<4x16x32xf32, #tpu.memory_space<vmem>>, %arg4: memref<4x128x128xf32, #tpu.memory_space<vmem>>, %arg5: memref<128x128xf32, #tpu.memory_space<vmem>>, %arg6: memref<1x128xf32, #tpu.memory_space<vmem>>, %arg7: memref<1x128xf32, #tpu.memory_space<vmem>>, %arg8: memref<4x8x16xf32, #tpu.memory_space<vmem>>, %arg9: memref<4x128x128xf32, #tpu.memory_space<vmem>>, %arg10: memref<128x128xf32, #tpu.memory_space<vmem>>, %arg11: memref<1x128xf32, #tpu.memory_space<vmem>>, %arg12: memref<1x128xf32, #tpu.memory_space<vmem>>, %arg13: memref<4x2x8xf32, #tpu.memory_space<vmem>>, %arg14: memref<4x128x32xf32, #tpu.memory_space<vmem>>, %arg15: memref<4x8x2xf32, #tpu.memory_space<vmem>>, %arg16: memref<4x32x256xf32, #tpu.memory_space<vmem>>, %arg17: memref<256x256xf32, #tpu.memory_space<vmem>>, %arg18: memref<1x256xf32, #tpu.memory_space<vmem>>, %arg19: memref<1x256xf32, #tpu.memory_space<vmem>>, %arg20: memref<4x16x8xf32, #tpu.memory_space<vmem>>, %arg21: memref<4x256x256xf32, #tpu.memory_space<vmem>>, %arg22: memref<256x256xf32, #tpu.memory_space<vmem>>, %arg23: memref<1x256xf32, #tpu.memory_space<vmem>>, %arg24: memref<1x256xf32, #tpu.memory_space<vmem>>, %arg25: memref<4x32x16xf32, #tpu.memory_space<vmem>>, %arg26: memref<4x256x256xf32, #tpu.memory_space<vmem>>, %arg27: memref<256x256xf32, #tpu.memory_space<vmem>>, %arg28: memref<1x256xf32, #tpu.memory_space<vmem>>, %arg29: memref<1x256xf32, #tpu.memory_space<vmem>>, %arg30: memref<4x64x32xf32, #tpu.memory_space<vmem>>, %arg31: memref<4x256x32xf32, #tpu.memory_space<vmem>>, %arg32: memref<64x32xf32, #tpu.memory_space<vmem>>) attributes {dimension_semantics = [], scalar_prefetch = 0 : i64, scratch_operands = 0 : i64, tpu.core_type = #tpu.core_type<tc>} {
    %c0 = arith.constant 0 : index
    %c0_0 = arith.constant 0 : index
    %0 = vector.load %arg0[%c0, %c0_0] : memref<128x32xf32, #tpu.memory_space<vmem>>, vector<128x32xf32>
    %c0_1 = arith.constant 0 : index
    %c0_2 = arith.constant 0 : index
    %c0_3 = arith.constant 0 : index
    %1 = vector.load %arg1[%c0_1, %c0_2, %c0_3] : memref<8x32x128xf32, #tpu.memory_space<vmem>>, vector<1x32x128xf32>
    %2 = vector.shape_cast %1 : vector<1x32x128xf32> to vector<32x128xf32>
    %cst = arith.constant dense<0.000000e+00> : vector<32x32xf32>
    %3 = tpu.matmul %2, %0, %cst {dimension_numbers = #tpu.dot_dimension_numbers<[1], [0], [0], [1], [0, 0, 1, 1], [], []>} : vector<32x128xf32>, vector<128x32xf32>, vector<32x32xf32> -> vector<32x32xf32>
    %c0_4 = arith.constant 0 : index
    %c0_5 = arith.constant 0 : index
    %c0_6 = arith.constant 0 : index
    %4 = vector.load %arg2[%c0_4, %c0_5, %c0_6] : memref<8x32x128xf32, #tpu.memory_space<vmem>>, vector<1x32x128xf32>
    %5 = vector.shape_cast %4 : vector<1x32x128xf32> to vector<32x128xf32>
    %cst_7 = arith.constant dense<0.000000e+00> : vector<32x128xf32>
    %6 = tpu.matmul %3, %5, %cst_7 {dimension_numbers = #tpu.dot_dimension_numbers<[1], [0], [0], [1], [0, 0, 1, 1], [], []>} : vector<32x32xf32>, vector<32x128xf32>, vector<32x128xf32> -> vector<32x128xf32>
    %c1 = arith.constant 1 : index
    %c0_8 = arith.constant 0 : index
    %c0_9 = arith.constant 0 : index
    %7 = vector.load %arg1[%c1, %c0_8, %c0_9] : memref<8x32x128xf32, #tpu.memory_space<vmem>>, vector<1x32x128xf32>
    %8 = vector.shape_cast %7 : vector<1x32x128xf32> to vector<32x128xf32>
    %cst_10 = arith.constant dense<0.000000e+00> : vector<32x32xf32>
    %9 = tpu.matmul %8, %0, %cst_10 {dimension_numbers = #tpu.dot_dimension_numbers<[1], [0], [0], [1], [0, 0, 1, 1], [], []>} : vector<32x128xf32>, vector<128x32xf32>, vector<32x32xf32> -> vector<32x32xf32>
    %c1_11 = arith.constant 1 : index
    %c0_12 = arith.constant 0 : index
    %c0_13 = arith.constant 0 : index
    %10 = vector.load %arg2[%c1_11, %c0_12, %c0_13] : memref<8x32x128xf32, #tpu.memory_space<vmem>>, vector<1x32x128xf32>
    %11 = vector.shape_cast %10 : vector<1x32x128xf32> to vector<32x128xf32>
    %cst_14 = arith.constant dense<0.000000e+00> : vector<32x128xf32>
    %12 = tpu.matmul %9, %11, %cst_14 {dimension_numbers = #tpu.dot_dimension_numbers<[1], [0], [0], [1], [0, 0, 1, 1], [], []>} : vector<32x32xf32>, vector<32x128xf32>, vector<32x128xf32> -> vector<32x128xf32>
    %13 = arith.addf %6, %12 : vector<32x128xf32>
    %c2 = arith.constant 2 : index
    %c0_15 = arith.constant 0 : index
    %c0_16 = arith.constant 0 : index
    %14 = vector.load %arg1[%c2, %c0_15, %c0_16] : memref<8x32x128xf32, #tpu.memory_space<vmem>>, vector<1x32x128xf32>
    %15 = vector.shape_cast %14 : vector<1x32x128xf32> to vector<32x128xf32>
    %cst_17 = arith.constant dense<0.000000e+00> : vector<32x32xf32>
    %16 = tpu.matmul %15, %0, %cst_17 {dimension_numbers = #tpu.dot_dimension_numbers<[1], [0], [0], [1], [0, 0, 1, 1], [], []>} : vector<32x128xf32>, vector<128x32xf32>, vector<32x32xf32> -> vector<32x32xf32>
    %c2_18 = arith.constant 2 : index
    %c0_19 = arith.constant 0 : index
    %c0_20 = arith.constant 0 : index
    %17 = vector.load %arg2[%c2_18, %c0_19, %c0_20] : memref<8x32x128xf32, #tpu.memory_space<vmem>>, vector<1x32x128xf32>
    %18 = vector.shape_cast %17 : vector<1x32x128xf32> to vector<32x128xf32>
    %cst_21 = arith.constant dense<0.000000e+00> : vector<32x128xf32>
    %19 = tpu.matmul %16, %18, %cst_21 {dimension_numbers = #tpu.dot_dimension_numbers<[1], [0], [0], [1], [0, 0, 1, 1], [], []>} : vector<32x32xf32>, vector<32x128xf32>, vector<32x128xf32> -> vector<32x128xf32>
    %20 = arith.addf %13, %19 : vector<32x128xf32>
    %c3 = arith.constant 3 : index
    %c0_22 = arith.constant 0 : index
    %c0_23 = arith.constant 0 : index
    %21 = vector.load %arg1[%c3, %c0_22, %c0_23] : memref<8x32x128xf32, #tpu.memory_space<vmem>>, vector<1x32x128xf32>
    %22 = vector.shape_cast %21 : vector<1x32x128xf32> to vector<32x128xf32>
    %cst_24 = arith.constant dense<0.000000e+00> : vector<32x32xf32>
    %23 = tpu.matmul %22, %0, %cst_24 {dimension_numbers = #tpu.dot_dimension_numbers<[1], [0], [0], [1], [0, 0, 1, 1], [], []>} : vector<32x128xf32>, vector<128x32xf32>, vector<32x32xf32> -> vector<32x32xf32>
    %c3_25 = arith.constant 3 : index
    %c0_26 = arith.constant 0 : index
    %c0_27 = arith.constant 0 : index
    %24 = vector.load %arg2[%c3_25, %c0_26, %c0_27] : memref<8x32x128xf32, #tpu.memory_space<vmem>>, vector<1x32x128xf32>
    %25 = vector.shape_cast %24 : vector<1x32x128xf32> to vector<32x128xf32>
    %cst_28 = arith.constant dense<0.000000e+00> : vector<32x128xf32>
    %26 = tpu.matmul %23, %25, %cst_28 {dimension_numbers = #tpu.dot_dimension_numbers<[1], [0], [0], [1], [0, 0, 1, 1], [], []>} : vector<32x32xf32>, vector<32x128xf32>, vector<32x128xf32> -> vector<32x128xf32>
    %27 = arith.addf %20, %26 : vector<32x128xf32>
    %c4 = arith.constant 4 : index
    %c0_29 = arith.constant 0 : index
    %c0_30 = arith.constant 0 : index
    %28 = vector.load %arg1[%c4, %c0_29, %c0_30] : memref<8x32x128xf32, #tpu.memory_space<vmem>>, vector<1x32x128xf32>
    %29 = vector.shape_cast %28 : vector<1x32x128xf32> to vector<32x128xf32>
    %cst_31 = arith.constant dense<0.000000e+00> : vector<32x32xf32>
    %30 = tpu.matmul %29, %0, %cst_31 {dimension_numbers = #tpu.dot_dimension_numbers<[1], [0], [0], [1], [0, 0, 1, 1], [], []>} : vector<32x128xf32>, vector<128x32xf32>, vector<32x32xf32> -> vector<32x32xf32>
    %c4_32 = arith.constant 4 : index
    %c0_33 = arith.constant 0 : index
    %c0_34 = arith.constant 0 : index
    %31 = vector.load %arg2[%c4_32, %c0_33, %c0_34] : memref<8x32x128xf32, #tpu.memory_space<vmem>>, vector<1x32x128xf32>
    %32 = vector.shape_cast %31 : vector<1x32x128xf32> to vector<32x128xf32>
    %cst_35 = arith.constant dense<0.000000e+00> : vector<32x128xf32>
    %33 = tpu.matmul %30, %32, %cst_35 {dimension_numbers = #tpu.dot_dimension_numbers<[1], [0], [0], [1], [0, 0, 1, 1], [], []>} : vector<32x32xf32>, vector<32x128xf32>, vector<32x128xf32> -> vector<32x128xf32>
    %34 = arith.addf %27, %33 : vector<32x128xf32>
    %c5 = arith.constant 5 : index
    %c0_36 = arith.constant 0 : index
    %c0_37 = arith.constant 0 : index
    %35 = vector.load %arg1[%c5, %c0_36, %c0_37] : memref<8x32x128xf32, #tpu.memory_space<vmem>>, vector<1x32x128xf32>
    %36 = vector.shape_cast %35 : vector<1x32x128xf32> to vector<32x128xf32>
    %cst_38 = arith.constant dense<0.000000e+00> : vector<32x32xf32>
    %37 = tpu.matmul %36, %0, %cst_38 {dimension_numbers = #tpu.dot_dimension_numbers<[1], [0], [0], [1], [0, 0, 1, 1], [], []>} : vector<32x128xf32>, vector<128x32xf32>, vector<32x32xf32> -> vector<32x32xf32>
    %c5_39 = arith.constant 5 : index
    %c0_40 = arith.constant 0 : index
    %c0_41 = arith.constant 0 : index
    %38 = vector.load %arg2[%c5_39, %c0_40, %c0_41] : memref<8x32x128xf32, #tpu.memory_space<vmem>>, vector<1x32x128xf32>
    %39 = vector.shape_cast %38 : vector<1x32x128xf32> to vector<32x128xf32>
    %cst_42 = arith.constant dense<0.000000e+00> : vector<32x128xf32>
    %40 = tpu.matmul %37, %39, %cst_42 {dimension_numbers = #tpu.dot_dimension_numbers<[1], [0], [0], [1], [0, 0, 1, 1], [], []>} : vector<32x32xf32>, vector<32x128xf32>, vector<32x128xf32> -> vector<32x128xf32>
    %41 = arith.addf %34, %40 : vector<32x128xf32>
    %c6 = arith.constant 6 : index
    %c0_43 = arith.constant 0 : index
    %c0_44 = arith.constant 0 : index
    %42 = vector.load %arg1[%c6, %c0_43, %c0_44] : memref<8x32x128xf32, #tpu.memory_space<vmem>>, vector<1x32x128xf32>
    %43 = vector.shape_cast %42 : vector<1x32x128xf32> to vector<32x128xf32>
    %cst_45 = arith.constant dense<0.000000e+00> : vector<32x32xf32>
    %44 = tpu.matmul %43, %0, %cst_45 {dimension_numbers = #tpu.dot_dimension_numbers<[1], [0], [0], [1], [0, 0, 1, 1], [], []>} : vector<32x128xf32>, vector<128x32xf32>, vector<32x32xf32> -> vector<32x32xf32>
    %c6_46 = arith.constant 6 : index
    %c0_47 = arith.constant 0 : index
    %c0_48 = arith.constant 0 : index
    %45 = vector.load %arg2[%c6_46, %c0_47, %c0_48] : memref<8x32x128xf32, #tpu.memory_space<vmem>>, vector<1x32x128xf32>
    %46 = vector.shape_cast %45 : vector<1x32x128xf32> to vector<32x128xf32>
    %cst_49 = arith.constant dense<0.000000e+00> : vector<32x128xf32>
    %47 = tpu.matmul %44, %46, %cst_49 {dimension_numbers = #tpu.dot_dimension_numbers<[1], [0], [0], [1], [0, 0, 1, 1], [], []>} : vector<32x32xf32>, vector<32x128xf32>, vector<32x128xf32> -> vector<32x128xf32>
    %48 = arith.addf %41, %47 : vector<32x128xf32>
    %c7 = arith.constant 7 : index
    %c0_50 = arith.constant 0 : index
    %c0_51 = arith.constant 0 : index
    %49 = vector.load %arg1[%c7, %c0_50, %c0_51] : memref<8x32x128xf32, #tpu.memory_space<vmem>>, vector<1x32x128xf32>
    %50 = vector.shape_cast %49 : vector<1x32x128xf32> to vector<32x128xf32>
    %cst_52 = arith.constant dense<0.000000e+00> : vector<32x32xf32>
    %51 = tpu.matmul %50, %0, %cst_52 {dimension_numbers = #tpu.dot_dimension_numbers<[1], [0], [0], [1], [0, 0, 1, 1], [], []>} : vector<32x128xf32>, vector<128x32xf32>, vector<32x32xf32> -> vector<32x32xf32>
    %c7_53 = arith.constant 7 : index
    %c0_54 = arith.constant 0 : index
    %c0_55 = arith.constant 0 : index
    %52 = vector.load %arg2[%c7_53, %c0_54, %c0_55] : memref<8x32x128xf32, #tpu.memory_space<vmem>>, vector<1x32x128xf32>
    %53 = vector.shape_cast %52 : vector<1x32x128xf32> to vector<32x128xf32>
    %cst_56 = arith.constant dense<0.000000e+00> : vector<32x128xf32>
    %54 = tpu.matmul %51, %53, %cst_56 {dimension_numbers = #tpu.dot_dimension_numbers<[1], [0], [0], [1], [0, 0, 1, 1], [], []>} : vector<32x32xf32>, vector<32x128xf32>, vector<32x128xf32> -> vector<32x128xf32>
    %55 = arith.addf %48, %54 : vector<32x128xf32>
    %cst_57 = arith.constant 0.000000e+00 : f32
    %56 = vector.broadcast %cst_57 : f32 to vector<32x128xf32>
    %57 = arith.cmpf ogt, %55, %56 : vector<32x128xf32>
    %cst_58 = arith.constant 2.000000e-01 : f32
    %58 = vector.broadcast %cst_58 : f32 to vector<32x128xf32>
    %59 = arith.mulf %58, %55 : vector<32x128xf32>
    %60 = arith.select %57, %55, %59 : vector<32x128xi1>, vector<32x128xf32>
    %c0_59 = arith.constant 0 : index
    %c0_60 = arith.constant 0 : index
    %c0_61 = arith.constant 0 : index
    %61 = vector.load %arg3[%c0_59, %c0_60, %c0_61] : memref<4x16x32xf32, #tpu.memory_space<vmem>>, vector<1x16x32xf32>
    %62 = vector.shape_cast %61 : vector<1x16x32xf32> to vector<16x32xf32>
    %cst_62 = arith.constant dense<0.000000e+00> : vector<16x128xf32>
    %63 = tpu.matmul %62, %60, %cst_62 {dimension_numbers = #tpu.dot_dimension_numbers<[1], [0], [0], [1], [0, 0, 1, 1], [], []>} : vector<16x32xf32>, vector<32x128xf32>, vector<16x128xf32> -> vector<16x128xf32>
    %c0_63 = arith.constant 0 : index
    %c0_64 = arith.constant 0 : index
    %c0_65 = arith.constant 0 : index
    %64 = vector.load %arg4[%c0_63, %c0_64, %c0_65] : memref<4x128x128xf32, #tpu.memory_space<vmem>>, vector<1x128x128xf32>
    %65 = vector.shape_cast %64 : vector<1x128x128xf32> to vector<128x128xf32>
    %cst_66 = arith.constant dense<0.000000e+00> : vector<16x128xf32>
    %66 = tpu.matmul %63, %65, %cst_66 {dimension_numbers = #tpu.dot_dimension_numbers<[1], [0], [0], [1], [0, 0, 1, 1], [], []>} : vector<16x128xf32>, vector<128x128xf32>, vector<16x128xf32> -> vector<16x128xf32>
    %c1_67 = arith.constant 1 : index
    %c0_68 = arith.constant 0 : index
    %c0_69 = arith.constant 0 : index
    %67 = vector.load %arg3[%c1_67, %c0_68, %c0_69] : memref<4x16x32xf32, #tpu.memory_space<vmem>>, vector<1x16x32xf32>
    %68 = vector.shape_cast %67 : vector<1x16x32xf32> to vector<16x32xf32>
    %cst_70 = arith.constant dense<0.000000e+00> : vector<16x128xf32>
    %69 = tpu.matmul %68, %60, %cst_70 {dimension_numbers = #tpu.dot_dimension_numbers<[1], [0], [0], [1], [0, 0, 1, 1], [], []>} : vector<16x32xf32>, vector<32x128xf32>, vector<16x128xf32> -> vector<16x128xf32>
    %c1_71 = arith.constant 1 : index
    %c0_72 = arith.constant 0 : index
    %c0_73 = arith.constant 0 : index
    %70 = vector.load %arg4[%c1_71, %c0_72, %c0_73] : memref<4x128x128xf32, #tpu.memory_space<vmem>>, vector<1x128x128xf32>
    %71 = vector.shape_cast %70 : vector<1x128x128xf32> to vector<128x128xf32>
    %cst_74 = arith.constant dense<0.000000e+00> : vector<16x128xf32>
    %72 = tpu.matmul %69, %71, %cst_74 {dimension_numbers = #tpu.dot_dimension_numbers<[1], [0], [0], [1], [0, 0, 1, 1], [], []>} : vector<16x128xf32>, vector<128x128xf32>, vector<16x128xf32> -> vector<16x128xf32>
    %73 = arith.addf %66, %72 : vector<16x128xf32>
    %c2_75 = arith.constant 2 : index
    %c0_76 = arith.constant 0 : index
    %c0_77 = arith.constant 0 : index
    %74 = vector.load %arg3[%c2_75, %c0_76, %c0_77] : memref<4x16x32xf32, #tpu.memory_space<vmem>>, vector<1x16x32xf32>
    %75 = vector.shape_cast %74 : vector<1x16x32xf32> to vector<16x32xf32>
    %cst_78 = arith.constant dense<0.000000e+00> : vector<16x128xf32>
    %76 = tpu.matmul %75, %60, %cst_78 {dimension_numbers = #tpu.dot_dimension_numbers<[1], [0], [0], [1], [0, 0, 1, 1], [], []>} : vector<16x32xf32>, vector<32x128xf32>, vector<16x128xf32> -> vector<16x128xf32>
    %c2_79 = arith.constant 2 : index
    %c0_80 = arith.constant 0 : index
    %c0_81 = arith.constant 0 : index
    %77 = vector.load %arg4[%c2_79, %c0_80, %c0_81] : memref<4x128x128xf32, #tpu.memory_space<vmem>>, vector<1x128x128xf32>
    %78 = vector.shape_cast %77 : vector<1x128x128xf32> to vector<128x128xf32>
    %cst_82 = arith.constant dense<0.000000e+00> : vector<16x128xf32>
    %79 = tpu.matmul %76, %78, %cst_82 {dimension_numbers = #tpu.dot_dimension_numbers<[1], [0], [0], [1], [0, 0, 1, 1], [], []>} : vector<16x128xf32>, vector<128x128xf32>, vector<16x128xf32> -> vector<16x128xf32>
    %80 = arith.addf %73, %79 : vector<16x128xf32>
    %c3_83 = arith.constant 3 : index
    %c0_84 = arith.constant 0 : index
    %c0_85 = arith.constant 0 : index
    %81 = vector.load %arg3[%c3_83, %c0_84, %c0_85] : memref<4x16x32xf32, #tpu.memory_space<vmem>>, vector<1x16x32xf32>
    %82 = vector.shape_cast %81 : vector<1x16x32xf32> to vector<16x32xf32>
    %cst_86 = arith.constant dense<0.000000e+00> : vector<16x128xf32>
    %83 = tpu.matmul %82, %60, %cst_86 {dimension_numbers = #tpu.dot_dimension_numbers<[1], [0], [0], [1], [0, 0, 1, 1], [], []>} : vector<16x32xf32>, vector<32x128xf32>, vector<16x128xf32> -> vector<16x128xf32>
    %c3_87 = arith.constant 3 : index
    %c0_88 = arith.constant 0 : index
    %c0_89 = arith.constant 0 : index
    %84 = vector.load %arg4[%c3_87, %c0_88, %c0_89] : memref<4x128x128xf32, #tpu.memory_space<vmem>>, vector<1x128x128xf32>
    %85 = vector.shape_cast %84 : vector<1x128x128xf32> to vector<128x128xf32>
    %cst_90 = arith.constant dense<0.000000e+00> : vector<16x128xf32>
    %86 = tpu.matmul %83, %85, %cst_90 {dimension_numbers = #tpu.dot_dimension_numbers<[1], [0], [0], [1], [0, 0, 1, 1], [], []>} : vector<16x128xf32>, vector<128x128xf32>, vector<16x128xf32> -> vector<16x128xf32>
    %87 = arith.addf %80, %86 : vector<16x128xf32>
    %cst_91 = arith.constant dense<0.000000e+00> : vector<128xf32>
    %88 = vector.multi_reduction <add>, %87, %cst_91 [0] : vector<16x128xf32> to vector<128xf32>
    %89 = vector.shape_cast %88 : vector<128xf32> to vector<1x128xf32>
    %c0_92 = arith.constant 0 : index
    %c0_93 = arith.constant 0 : index
    %90 = vector.load %arg5[%c0_92, %c0_93] : memref<128x128xf32, #tpu.memory_space<vmem>>, vector<128x128xf32>
    %cst_94 = arith.constant dense<0.000000e+00> : vector<1x128xf32>
    %91 = tpu.matmul %89, %90, %cst_94 {dimension_numbers = #tpu.dot_dimension_numbers<[1], [0], [0], [1], [0, 0, 1, 1], [], []>} : vector<1x128xf32>, vector<128x128xf32>, vector<1x128xf32> -> vector<1x128xf32>
    %92 = vector.broadcast %91 : vector<1x128xf32> to vector<16x128xf32>
    %93 = arith.subf %87, %92 : vector<16x128xf32>
    %94 = arith.mulf %93, %93 : vector<16x128xf32>
    %cst_95 = arith.constant dense<0.000000e+00> : vector<128xf32>
    %95 = vector.multi_reduction <add>, %94, %cst_95 [0] : vector<16x128xf32> to vector<128xf32>
    %96 = vector.shape_cast %95 : vector<128xf32> to vector<1x128xf32>
    %c0_96 = arith.constant 0 : index
    %c0_97 = arith.constant 0 : index
    %97 = vector.load %arg5[%c0_96, %c0_97] : memref<128x128xf32, #tpu.memory_space<vmem>>, vector<128x128xf32>
    %cst_98 = arith.constant dense<0.000000e+00> : vector<1x128xf32>
    %98 = tpu.matmul %96, %97, %cst_98 {dimension_numbers = #tpu.dot_dimension_numbers<[1], [0], [0], [1], [0, 0, 1, 1], [], []>} : vector<1x128xf32>, vector<128x128xf32>, vector<1x128xf32> -> vector<1x128xf32>
    %cst_99 = arith.constant 9.99999974E-6 : f32
    %99 = vector.broadcast %cst_99 : f32 to vector<1x128xf32>
    %100 = arith.addf %98, %99 : vector<1x128xf32>
    %101 = math.rsqrt %100 : vector<1x128xf32>
    %c0_100 = arith.constant 0 : index
    %c0_101 = arith.constant 0 : index
    %102 = vector.load %arg6[%c0_100, %c0_101] : memref<1x128xf32, #tpu.memory_space<vmem>>, vector<1x128xf32>
    %103 = arith.mulf %101, %102 : vector<1x128xf32>
    %104 = vector.broadcast %103 : vector<1x128xf32> to vector<16x128xf32>
    %105 = arith.mulf %93, %104 : vector<16x128xf32>
    %c0_102 = arith.constant 0 : index
    %c0_103 = arith.constant 0 : index
    %106 = vector.load %arg7[%c0_102, %c0_103] : memref<1x128xf32, #tpu.memory_space<vmem>>, vector<1x128xf32>
    %107 = vector.broadcast %106 : vector<1x128xf32> to vector<16x128xf32>
    %108 = arith.addf %105, %107 : vector<16x128xf32>
    %cst_104 = arith.constant 0.000000e+00 : f32
    %109 = vector.broadcast %cst_104 : f32 to vector<16x128xf32>
    %110 = arith.cmpf ogt, %108, %109 : vector<16x128xf32>
    %cst_105 = arith.constant 2.000000e-01 : f32
    %111 = vector.broadcast %cst_105 : f32 to vector<16x128xf32>
    %112 = arith.mulf %111, %108 : vector<16x128xf32>
    %113 = arith.select %110, %108, %112 : vector<16x128xi1>, vector<16x128xf32>
    %c0_106 = arith.constant 0 : index
    %c0_107 = arith.constant 0 : index
    %c0_108 = arith.constant 0 : index
    %114 = vector.load %arg8[%c0_106, %c0_107, %c0_108] : memref<4x8x16xf32, #tpu.memory_space<vmem>>, vector<1x8x16xf32>
    %115 = vector.shape_cast %114 : vector<1x8x16xf32> to vector<8x16xf32>
    %cst_109 = arith.constant dense<0.000000e+00> : vector<8x128xf32>
    %116 = tpu.matmul %115, %113, %cst_109 {dimension_numbers = #tpu.dot_dimension_numbers<[1], [0], [0], [1], [0, 0, 1, 1], [], []>} : vector<8x16xf32>, vector<16x128xf32>, vector<8x128xf32> -> vector<8x128xf32>
    %c0_110 = arith.constant 0 : index
    %c0_111 = arith.constant 0 : index
    %c0_112 = arith.constant 0 : index
    %117 = vector.load %arg9[%c0_110, %c0_111, %c0_112] : memref<4x128x128xf32, #tpu.memory_space<vmem>>, vector<1x128x128xf32>
    %118 = vector.shape_cast %117 : vector<1x128x128xf32> to vector<128x128xf32>
    %cst_113 = arith.constant dense<0.000000e+00> : vector<8x128xf32>
    %119 = tpu.matmul %116, %118, %cst_113 {dimension_numbers = #tpu.dot_dimension_numbers<[1], [0], [0], [1], [0, 0, 1, 1], [], []>} : vector<8x128xf32>, vector<128x128xf32>, vector<8x128xf32> -> vector<8x128xf32>
    %c1_114 = arith.constant 1 : index
    %c0_115 = arith.constant 0 : index
    %c0_116 = arith.constant 0 : index
    %120 = vector.load %arg8[%c1_114, %c0_115, %c0_116] : memref<4x8x16xf32, #tpu.memory_space<vmem>>, vector<1x8x16xf32>
    %121 = vector.shape_cast %120 : vector<1x8x16xf32> to vector<8x16xf32>
    %cst_117 = arith.constant dense<0.000000e+00> : vector<8x128xf32>
    %122 = tpu.matmul %121, %113, %cst_117 {dimension_numbers = #tpu.dot_dimension_numbers<[1], [0], [0], [1], [0, 0, 1, 1], [], []>} : vector<8x16xf32>, vector<16x128xf32>, vector<8x128xf32> -> vector<8x128xf32>
    %c1_118 = arith.constant 1 : index
    %c0_119 = arith.constant 0 : index
    %c0_120 = arith.constant 0 : index
    %123 = vector.load %arg9[%c1_118, %c0_119, %c0_120] : memref<4x128x128xf32, #tpu.memory_space<vmem>>, vector<1x128x128xf32>
    %124 = vector.shape_cast %123 : vector<1x128x128xf32> to vector<128x128xf32>
    %cst_121 = arith.constant dense<0.000000e+00> : vector<8x128xf32>
    %125 = tpu.matmul %122, %124, %cst_121 {dimension_numbers = #tpu.dot_dimension_numbers<[1], [0], [0], [1], [0, 0, 1, 1], [], []>} : vector<8x128xf32>, vector<128x128xf32>, vector<8x128xf32> -> vector<8x128xf32>
    %126 = arith.addf %119, %125 : vector<8x128xf32>
    %c2_122 = arith.constant 2 : index
    %c0_123 = arith.constant 0 : index
    %c0_124 = arith.constant 0 : index
    %127 = vector.load %arg8[%c2_122, %c0_123, %c0_124] : memref<4x8x16xf32, #tpu.memory_space<vmem>>, vector<1x8x16xf32>
    %128 = vector.shape_cast %127 : vector<1x8x16xf32> to vector<8x16xf32>
    %cst_125 = arith.constant dense<0.000000e+00> : vector<8x128xf32>
    %129 = tpu.matmul %128, %113, %cst_125 {dimension_numbers = #tpu.dot_dimension_numbers<[1], [0], [0], [1], [0, 0, 1, 1], [], []>} : vector<8x16xf32>, vector<16x128xf32>, vector<8x128xf32> -> vector<8x128xf32>
    %c2_126 = arith.constant 2 : index
    %c0_127 = arith.constant 0 : index
    %c0_128 = arith.constant 0 : index
    %130 = vector.load %arg9[%c2_126, %c0_127, %c0_128] : memref<4x128x128xf32, #tpu.memory_space<vmem>>, vector<1x128x128xf32>
    %131 = vector.shape_cast %130 : vector<1x128x128xf32> to vector<128x128xf32>
    %cst_129 = arith.constant dense<0.000000e+00> : vector<8x128xf32>
    %132 = tpu.matmul %129, %131, %cst_129 {dimension_numbers = #tpu.dot_dimension_numbers<[1], [0], [0], [1], [0, 0, 1, 1], [], []>} : vector<8x128xf32>, vector<128x128xf32>, vector<8x128xf32> -> vector<8x128xf32>
    %133 = arith.addf %126, %132 : vector<8x128xf32>
    %c3_130 = arith.constant 3 : index
    %c0_131 = arith.constant 0 : index
    %c0_132 = arith.constant 0 : index
    %134 = vector.load %arg8[%c3_130, %c0_131, %c0_132] : memref<4x8x16xf32, #tpu.memory_space<vmem>>, vector<1x8x16xf32>
    %135 = vector.shape_cast %134 : vector<1x8x16xf32> to vector<8x16xf32>
    %cst_133 = arith.constant dense<0.000000e+00> : vector<8x128xf32>
    %136 = tpu.matmul %135, %113, %cst_133 {dimension_numbers = #tpu.dot_dimension_numbers<[1], [0], [0], [1], [0, 0, 1, 1], [], []>} : vector<8x16xf32>, vector<16x128xf32>, vector<8x128xf32> -> vector<8x128xf32>
    %c3_134 = arith.constant 3 : index
    %c0_135 = arith.constant 0 : index
    %c0_136 = arith.constant 0 : index
    %137 = vector.load %arg9[%c3_134, %c0_135, %c0_136] : memref<4x128x128xf32, #tpu.memory_space<vmem>>, vector<1x128x128xf32>
    %138 = vector.shape_cast %137 : vector<1x128x128xf32> to vector<128x128xf32>
    %cst_137 = arith.constant dense<0.000000e+00> : vector<8x128xf32>
    %139 = tpu.matmul %136, %138, %cst_137 {dimension_numbers = #tpu.dot_dimension_numbers<[1], [0], [0], [1], [0, 0, 1, 1], [], []>} : vector<8x128xf32>, vector<128x128xf32>, vector<8x128xf32> -> vector<8x128xf32>
    %140 = arith.addf %133, %139 : vector<8x128xf32>
    %cst_138 = arith.constant dense<0.000000e+00> : vector<128xf32>
    %141 = vector.multi_reduction <add>, %140, %cst_138 [0] : vector<8x128xf32> to vector<128xf32>
    %142 = vector.shape_cast %141 : vector<128xf32> to vector<1x128xf32>
    %c0_139 = arith.constant 0 : index
    %c0_140 = arith.constant 0 : index
    %143 = vector.load %arg10[%c0_139, %c0_140] : memref<128x128xf32, #tpu.memory_space<vmem>>, vector<128x128xf32>
    %cst_141 = arith.constant dense<0.000000e+00> : vector<1x128xf32>
    %144 = tpu.matmul %142, %143, %cst_141 {dimension_numbers = #tpu.dot_dimension_numbers<[1], [0], [0], [1], [0, 0, 1, 1], [], []>} : vector<1x128xf32>, vector<128x128xf32>, vector<1x128xf32> -> vector<1x128xf32>
    %145 = vector.broadcast %144 : vector<1x128xf32> to vector<8x128xf32>
    %146 = arith.subf %140, %145 : vector<8x128xf32>
    %147 = arith.mulf %146, %146 : vector<8x128xf32>
    %cst_142 = arith.constant dense<0.000000e+00> : vector<128xf32>
    %148 = vector.multi_reduction <add>, %147, %cst_142 [0] : vector<8x128xf32> to vector<128xf32>
    %149 = vector.shape_cast %148 : vector<128xf32> to vector<1x128xf32>
    %c0_143 = arith.constant 0 : index
    %c0_144 = arith.constant 0 : index
    %150 = vector.load %arg10[%c0_143, %c0_144] : memref<128x128xf32, #tpu.memory_space<vmem>>, vector<128x128xf32>
    %cst_145 = arith.constant dense<0.000000e+00> : vector<1x128xf32>
    %151 = tpu.matmul %149, %150, %cst_145 {dimension_numbers = #tpu.dot_dimension_numbers<[1], [0], [0], [1], [0, 0, 1, 1], [], []>} : vector<1x128xf32>, vector<128x128xf32>, vector<1x128xf32> -> vector<1x128xf32>
    %cst_146 = arith.constant 9.99999974E-6 : f32
    %152 = vector.broadcast %cst_146 : f32 to vector<1x128xf32>
    %153 = arith.addf %151, %152 : vector<1x128xf32>
    %154 = math.rsqrt %153 : vector<1x128xf32>
    %c0_147 = arith.constant 0 : index
    %c0_148 = arith.constant 0 : index
    %155 = vector.load %arg11[%c0_147, %c0_148] : memref<1x128xf32, #tpu.memory_space<vmem>>, vector<1x128xf32>
    %156 = arith.mulf %154, %155 : vector<1x128xf32>
    %157 = vector.broadcast %156 : vector<1x128xf32> to vector<8x128xf32>
    %158 = arith.mulf %146, %157 : vector<8x128xf32>
    %c0_149 = arith.constant 0 : index
    %c0_150 = arith.constant 0 : index
    %159 = vector.load %arg12[%c0_149, %c0_150] : memref<1x128xf32, #tpu.memory_space<vmem>>, vector<1x128xf32>
    %160 = vector.broadcast %159 : vector<1x128xf32> to vector<8x128xf32>
    %161 = arith.addf %158, %160 : vector<8x128xf32>
    %cst_151 = arith.constant 0.000000e+00 : f32
    %162 = vector.broadcast %cst_151 : f32 to vector<8x128xf32>
    %163 = arith.cmpf ogt, %161, %162 : vector<8x128xf32>
    %cst_152 = arith.constant 2.000000e-01 : f32
    %164 = vector.broadcast %cst_152 : f32 to vector<8x128xf32>
    %165 = arith.mulf %164, %161 : vector<8x128xf32>
    %166 = arith.select %163, %161, %165 : vector<8x128xi1>, vector<8x128xf32>
    %c0_153 = arith.constant 0 : index
    %c0_154 = arith.constant 0 : index
    %c0_155 = arith.constant 0 : index
    %167 = vector.load %arg13[%c0_153, %c0_154, %c0_155] : memref<4x2x8xf32, #tpu.memory_space<vmem>>, vector<1x2x8xf32>
    %168 = vector.shape_cast %167 : vector<1x2x8xf32> to vector<2x8xf32>
    %cst_156 = arith.constant dense<0.000000e+00> : vector<2x128xf32>
    %169 = tpu.matmul %168, %166, %cst_156 {dimension_numbers = #tpu.dot_dimension_numbers<[1], [0], [0], [1], [0, 0, 1, 1], [], []>} : vector<2x8xf32>, vector<8x128xf32>, vector<2x128xf32> -> vector<2x128xf32>
    %c0_157 = arith.constant 0 : index
    %c0_158 = arith.constant 0 : index
    %c0_159 = arith.constant 0 : index
    %170 = vector.load %arg14[%c0_157, %c0_158, %c0_159] : memref<4x128x32xf32, #tpu.memory_space<vmem>>, vector<1x128x32xf32>
    %171 = vector.shape_cast %170 : vector<1x128x32xf32> to vector<128x32xf32>
    %cst_160 = arith.constant dense<0.000000e+00> : vector<2x32xf32>
    %172 = tpu.matmul %169, %171, %cst_160 {dimension_numbers = #tpu.dot_dimension_numbers<[1], [0], [0], [1], [0, 0, 1, 1], [], []>} : vector<2x128xf32>, vector<128x32xf32>, vector<2x32xf32> -> vector<2x32xf32>
    %c1_161 = arith.constant 1 : index
    %c0_162 = arith.constant 0 : index
    %c0_163 = arith.constant 0 : index
    %173 = vector.load %arg13[%c1_161, %c0_162, %c0_163] : memref<4x2x8xf32, #tpu.memory_space<vmem>>, vector<1x2x8xf32>
    %174 = vector.shape_cast %173 : vector<1x2x8xf32> to vector<2x8xf32>
    %cst_164 = arith.constant dense<0.000000e+00> : vector<2x128xf32>
    %175 = tpu.matmul %174, %166, %cst_164 {dimension_numbers = #tpu.dot_dimension_numbers<[1], [0], [0], [1], [0, 0, 1, 1], [], []>} : vector<2x8xf32>, vector<8x128xf32>, vector<2x128xf32> -> vector<2x128xf32>
    %c1_165 = arith.constant 1 : index
    %c0_166 = arith.constant 0 : index
    %c0_167 = arith.constant 0 : index
    %176 = vector.load %arg14[%c1_165, %c0_166, %c0_167] : memref<4x128x32xf32, #tpu.memory_space<vmem>>, vector<1x128x32xf32>
    %177 = vector.shape_cast %176 : vector<1x128x32xf32> to vector<128x32xf32>
    %cst_168 = arith.constant dense<0.000000e+00> : vector<2x32xf32>
    %178 = tpu.matmul %175, %177, %cst_168 {dimension_numbers = #tpu.dot_dimension_numbers<[1], [0], [0], [1], [0, 0, 1, 1], [], []>} : vector<2x128xf32>, vector<128x32xf32>, vector<2x32xf32> -> vector<2x32xf32>
    %179 = arith.addf %172, %178 : vector<2x32xf32>
    %c2_169 = arith.constant 2 : index
    %c0_170 = arith.constant 0 : index
    %c0_171 = arith.constant 0 : index
    %180 = vector.load %arg13[%c2_169, %c0_170, %c0_171] : memref<4x2x8xf32, #tpu.memory_space<vmem>>, vector<1x2x8xf32>
    %181 = vector.shape_cast %180 : vector<1x2x8xf32> to vector<2x8xf32>
    %cst_172 = arith.constant dense<0.000000e+00> : vector<2x128xf32>
    %182 = tpu.matmul %181, %166, %cst_172 {dimension_numbers = #tpu.dot_dimension_numbers<[1], [0], [0], [1], [0, 0, 1, 1], [], []>} : vector<2x8xf32>, vector<8x128xf32>, vector<2x128xf32> -> vector<2x128xf32>
    %c2_173 = arith.constant 2 : index
    %c0_174 = arith.constant 0 : index
    %c0_175 = arith.constant 0 : index
    %183 = vector.load %arg14[%c2_173, %c0_174, %c0_175] : memref<4x128x32xf32, #tpu.memory_space<vmem>>, vector<1x128x32xf32>
    %184 = vector.shape_cast %183 : vector<1x128x32xf32> to vector<128x32xf32>
    %cst_176 = arith.constant dense<0.000000e+00> : vector<2x32xf32>
    %185 = tpu.matmul %182, %184, %cst_176 {dimension_numbers = #tpu.dot_dimension_numbers<[1], [0], [0], [1], [0, 0, 1, 1], [], []>} : vector<2x128xf32>, vector<128x32xf32>, vector<2x32xf32> -> vector<2x32xf32>
    %186 = arith.addf %179, %185 : vector<2x32xf32>
    %c3_177 = arith.constant 3 : index
    %c0_178 = arith.constant 0 : index
    %c0_179 = arith.constant 0 : index
    %187 = vector.load %arg13[%c3_177, %c0_178, %c0_179] : memref<4x2x8xf32, #tpu.memory_space<vmem>>, vector<1x2x8xf32>
    %188 = vector.shape_cast %187 : vector<1x2x8xf32> to vector<2x8xf32>
    %cst_180 = arith.constant dense<0.000000e+00> : vector<2x128xf32>
    %189 = tpu.matmul %188, %166, %cst_180 {dimension_numbers = #tpu.dot_dimension_numbers<[1], [0], [0], [1], [0, 0, 1, 1], [], []>} : vector<2x8xf32>, vector<8x128xf32>, vector<2x128xf32> -> vector<2x128xf32>
    %c3_181 = arith.constant 3 : index
    %c0_182 = arith.constant 0 : index
    %c0_183 = arith.constant 0 : index
    %190 = vector.load %arg14[%c3_181, %c0_182, %c0_183] : memref<4x128x32xf32, #tpu.memory_space<vmem>>, vector<1x128x32xf32>
    %191 = vector.shape_cast %190 : vector<1x128x32xf32> to vector<128x32xf32>
    %cst_184 = arith.constant dense<0.000000e+00> : vector<2x32xf32>
    %192 = tpu.matmul %189, %191, %cst_184 {dimension_numbers = #tpu.dot_dimension_numbers<[1], [0], [0], [1], [0, 0, 1, 1], [], []>} : vector<2x128xf32>, vector<128x32xf32>, vector<2x32xf32> -> vector<2x32xf32>
    %193 = arith.addf %186, %192 : vector<2x32xf32>
    %cst_185 = arith.constant 0.000000e+00 : f32
    %194 = vector.broadcast %cst_185 : f32 to vector<2x32xf32>
    %195 = arith.subf %194, %193 : vector<2x32xf32>
    %196 = math.exp %195 : vector<2x32xf32>
    %cst_186 = arith.constant 1.000000e+00 : f32
    %197 = vector.broadcast %cst_186 : f32 to vector<2x32xf32>
    %198 = arith.addf %197, %196 : vector<2x32xf32>
    %cst_187 = arith.constant 1.000000e+00 : f32
    %199 = vector.broadcast %cst_187 : f32 to vector<2x32xf32>
    %200 = arith.divf %199, %198 : vector<2x32xf32>
    %c0_188 = arith.constant 0 : index
    %c0_189 = arith.constant 0 : index
    %c0_190 = arith.constant 0 : index
    %201 = vector.load %arg15[%c0_188, %c0_189, %c0_190] : memref<4x8x2xf32, #tpu.memory_space<vmem>>, vector<1x8x2xf32>
    %202 = vector.shape_cast %201 : vector<1x8x2xf32> to vector<8x2xf32>
    %cst_191 = arith.constant dense<0.000000e+00> : vector<8x32xf32>
    %203 = tpu.matmul %202, %200, %cst_191 {dimension_numbers = #tpu.dot_dimension_numbers<[1], [0], [0], [1], [0, 0, 1, 1], [], []>} : vector<8x2xf32>, vector<2x32xf32>, vector<8x32xf32> -> vector<8x32xf32>
    %c0_192 = arith.constant 0 : index
    %c0_193 = arith.constant 0 : index
    %c0_194 = arith.constant 0 : index
    %204 = vector.load %arg16[%c0_192, %c0_193, %c0_194] : memref<4x32x256xf32, #tpu.memory_space<vmem>>, vector<1x32x256xf32>
    %205 = vector.shape_cast %204 : vector<1x32x256xf32> to vector<32x256xf32>
    %cst_195 = arith.constant dense<0.000000e+00> : vector<8x256xf32>
    %206 = tpu.matmul %203, %205, %cst_195 {dimension_numbers = #tpu.dot_dimension_numbers<[1], [0], [0], [1], [0, 0, 1, 1], [], []>} : vector<8x32xf32>, vector<32x256xf32>, vector<8x256xf32> -> vector<8x256xf32>
    %c1_196 = arith.constant 1 : index
    %c0_197 = arith.constant 0 : index
    %c0_198 = arith.constant 0 : index
    %207 = vector.load %arg15[%c1_196, %c0_197, %c0_198] : memref<4x8x2xf32, #tpu.memory_space<vmem>>, vector<1x8x2xf32>
    %208 = vector.shape_cast %207 : vector<1x8x2xf32> to vector<8x2xf32>
    %cst_199 = arith.constant dense<0.000000e+00> : vector<8x32xf32>
    %209 = tpu.matmul %208, %200, %cst_199 {dimension_numbers = #tpu.dot_dimension_numbers<[1], [0], [0], [1], [0, 0, 1, 1], [], []>} : vector<8x2xf32>, vector<2x32xf32>, vector<8x32xf32> -> vector<8x32xf32>
    %c1_200 = arith.constant 1 : index
    %c0_201 = arith.constant 0 : index
    %c0_202 = arith.constant 0 : index
    %210 = vector.load %arg16[%c1_200, %c0_201, %c0_202] : memref<4x32x256xf32, #tpu.memory_space<vmem>>, vector<1x32x256xf32>
    %211 = vector.shape_cast %210 : vector<1x32x256xf32> to vector<32x256xf32>
    %cst_203 = arith.constant dense<0.000000e+00> : vector<8x256xf32>
    %212 = tpu.matmul %209, %211, %cst_203 {dimension_numbers = #tpu.dot_dimension_numbers<[1], [0], [0], [1], [0, 0, 1, 1], [], []>} : vector<8x32xf32>, vector<32x256xf32>, vector<8x256xf32> -> vector<8x256xf32>
    %213 = arith.addf %206, %212 : vector<8x256xf32>
    %c2_204 = arith.constant 2 : index
    %c0_205 = arith.constant 0 : index
    %c0_206 = arith.constant 0 : index
    %214 = vector.load %arg15[%c2_204, %c0_205, %c0_206] : memref<4x8x2xf32, #tpu.memory_space<vmem>>, vector<1x8x2xf32>
    %215 = vector.shape_cast %214 : vector<1x8x2xf32> to vector<8x2xf32>
    %cst_207 = arith.constant dense<0.000000e+00> : vector<8x32xf32>
    %216 = tpu.matmul %215, %200, %cst_207 {dimension_numbers = #tpu.dot_dimension_numbers<[1], [0], [0], [1], [0, 0, 1, 1], [], []>} : vector<8x2xf32>, vector<2x32xf32>, vector<8x32xf32> -> vector<8x32xf32>
    %c2_208 = arith.constant 2 : index
    %c0_209 = arith.constant 0 : index
    %c0_210 = arith.constant 0 : index
    %217 = vector.load %arg16[%c2_208, %c0_209, %c0_210] : memref<4x32x256xf32, #tpu.memory_space<vmem>>, vector<1x32x256xf32>
    %218 = vector.shape_cast %217 : vector<1x32x256xf32> to vector<32x256xf32>
    %cst_211 = arith.constant dense<0.000000e+00> : vector<8x256xf32>
    %219 = tpu.matmul %216, %218, %cst_211 {dimension_numbers = #tpu.dot_dimension_numbers<[1], [0], [0], [1], [0, 0, 1, 1], [], []>} : vector<8x32xf32>, vector<32x256xf32>, vector<8x256xf32> -> vector<8x256xf32>
    %220 = arith.addf %213, %219 : vector<8x256xf32>
    %c3_212 = arith.constant 3 : index
    %c0_213 = arith.constant 0 : index
    %c0_214 = arith.constant 0 : index
    %221 = vector.load %arg15[%c3_212, %c0_213, %c0_214] : memref<4x8x2xf32, #tpu.memory_space<vmem>>, vector<1x8x2xf32>
    %222 = vector.shape_cast %221 : vector<1x8x2xf32> to vector<8x2xf32>
    %cst_215 = arith.constant dense<0.000000e+00> : vector<8x32xf32>
    %223 = tpu.matmul %222, %200, %cst_215 {dimension_numbers = #tpu.dot_dimension_numbers<[1], [0], [0], [1], [0, 0, 1, 1], [], []>} : vector<8x2xf32>, vector<2x32xf32>, vector<8x32xf32> -> vector<8x32xf32>
    %c3_216 = arith.constant 3 : index
    %c0_217 = arith.constant 0 : index
    %c0_218 = arith.constant 0 : index
    %224 = vector.load %arg16[%c3_216, %c0_217, %c0_218] : memref<4x32x256xf32, #tpu.memory_space<vmem>>, vector<1x32x256xf32>
    %225 = vector.shape_cast %224 : vector<1x32x256xf32> to vector<32x256xf32>
    %cst_219 = arith.constant dense<0.000000e+00> : vector<8x256xf32>
    %226 = tpu.matmul %223, %225, %cst_219 {dimension_numbers = #tpu.dot_dimension_numbers<[1], [0], [0], [1], [0, 0, 1, 1], [], []>} : vector<8x32xf32>, vector<32x256xf32>, vector<8x256xf32> -> vector<8x256xf32>
    %227 = arith.addf %220, %226 : vector<8x256xf32>
    %cst_220 = arith.constant dense<0.000000e+00> : vector<256xf32>
    %228 = vector.multi_reduction <add>, %227, %cst_220 [0] : vector<8x256xf32> to vector<256xf32>
    %229 = vector.shape_cast %228 : vector<256xf32> to vector<1x256xf32>
    %c0_221 = arith.constant 0 : index
    %c0_222 = arith.constant 0 : index
    %230 = vector.load %arg17[%c0_221, %c0_222] : memref<256x256xf32, #tpu.memory_space<vmem>>, vector<256x256xf32>
    %cst_223 = arith.constant dense<0.000000e+00> : vector<1x256xf32>
    %231 = tpu.matmul %229, %230, %cst_223 {dimension_numbers = #tpu.dot_dimension_numbers<[1], [0], [0], [1], [0, 0, 1, 1], [], []>} : vector<1x256xf32>, vector<256x256xf32>, vector<1x256xf32> -> vector<1x256xf32>
    %232 = vector.broadcast %231 : vector<1x256xf32> to vector<8x256xf32>
    %233 = arith.subf %227, %232 : vector<8x256xf32>
    %234 = arith.mulf %233, %233 : vector<8x256xf32>
    %cst_224 = arith.constant dense<0.000000e+00> : vector<256xf32>
    %235 = vector.multi_reduction <add>, %234, %cst_224 [0] : vector<8x256xf32> to vector<256xf32>
    %236 = vector.shape_cast %235 : vector<256xf32> to vector<1x256xf32>
    %c0_225 = arith.constant 0 : index
    %c0_226 = arith.constant 0 : index
    %237 = vector.load %arg17[%c0_225, %c0_226] : memref<256x256xf32, #tpu.memory_space<vmem>>, vector<256x256xf32>
    %cst_227 = arith.constant dense<0.000000e+00> : vector<1x256xf32>
    %238 = tpu.matmul %236, %237, %cst_227 {dimension_numbers = #tpu.dot_dimension_numbers<[1], [0], [0], [1], [0, 0, 1, 1], [], []>} : vector<1x256xf32>, vector<256x256xf32>, vector<1x256xf32> -> vector<1x256xf32>
    %cst_228 = arith.constant 9.99999974E-6 : f32
    %239 = vector.broadcast %cst_228 : f32 to vector<1x256xf32>
    %240 = arith.addf %238, %239 : vector<1x256xf32>
    %241 = math.rsqrt %240 : vector<1x256xf32>
    %c0_229 = arith.constant 0 : index
    %c0_230 = arith.constant 0 : index
    %242 = vector.load %arg18[%c0_229, %c0_230] : memref<1x256xf32, #tpu.memory_space<vmem>>, vector<1x256xf32>
    %243 = arith.mulf %241, %242 : vector<1x256xf32>
    %244 = vector.broadcast %243 : vector<1x256xf32> to vector<8x256xf32>
    %245 = arith.mulf %233, %244 : vector<8x256xf32>
    %c0_231 = arith.constant 0 : index
    %c0_232 = arith.constant 0 : index
    %246 = vector.load %arg19[%c0_231, %c0_232] : memref<1x256xf32, #tpu.memory_space<vmem>>, vector<1x256xf32>
    %247 = vector.broadcast %246 : vector<1x256xf32> to vector<8x256xf32>
    %248 = arith.addf %245, %247 : vector<8x256xf32>
    %cst_233 = arith.constant 0.000000e+00 : f32
    %249 = vector.broadcast %cst_233 : f32 to vector<8x256xf32>
    %250 = arith.maximumf %248, %249 : vector<8x256xf32>
    %c0_234 = arith.constant 0 : index
    %c0_235 = arith.constant 0 : index
    %c0_236 = arith.constant 0 : index
    %251 = vector.load %arg20[%c0_234, %c0_235, %c0_236] : memref<4x16x8xf32, #tpu.memory_space<vmem>>, vector<1x16x8xf32>
    %252 = vector.shape_cast %251 : vector<1x16x8xf32> to vector<16x8xf32>
    %cst_237 = arith.constant dense<0.000000e+00> : vector<16x256xf32>
    %253 = tpu.matmul %252, %250, %cst_237 {dimension_numbers = #tpu.dot_dimension_numbers<[1], [0], [0], [1], [0, 0, 1, 1], [], []>} : vector<16x8xf32>, vector<8x256xf32>, vector<16x256xf32> -> vector<16x256xf32>
    %c0_238 = arith.constant 0 : index
    %c0_239 = arith.constant 0 : index
    %c0_240 = arith.constant 0 : index
    %254 = vector.load %arg21[%c0_238, %c0_239, %c0_240] : memref<4x256x256xf32, #tpu.memory_space<vmem>>, vector<1x256x256xf32>
    %255 = vector.shape_cast %254 : vector<1x256x256xf32> to vector<256x256xf32>
    %cst_241 = arith.constant dense<0.000000e+00> : vector<16x256xf32>
    %256 = tpu.matmul %253, %255, %cst_241 {dimension_numbers = #tpu.dot_dimension_numbers<[1], [0], [0], [1], [0, 0, 1, 1], [], []>} : vector<16x256xf32>, vector<256x256xf32>, vector<16x256xf32> -> vector<16x256xf32>
    %c1_242 = arith.constant 1 : index
    %c0_243 = arith.constant 0 : index
    %c0_244 = arith.constant 0 : index
    %257 = vector.load %arg20[%c1_242, %c0_243, %c0_244] : memref<4x16x8xf32, #tpu.memory_space<vmem>>, vector<1x16x8xf32>
    %258 = vector.shape_cast %257 : vector<1x16x8xf32> to vector<16x8xf32>
    %cst_245 = arith.constant dense<0.000000e+00> : vector<16x256xf32>
    %259 = tpu.matmul %258, %250, %cst_245 {dimension_numbers = #tpu.dot_dimension_numbers<[1], [0], [0], [1], [0, 0, 1, 1], [], []>} : vector<16x8xf32>, vector<8x256xf32>, vector<16x256xf32> -> vector<16x256xf32>
    %c1_246 = arith.constant 1 : index
    %c0_247 = arith.constant 0 : index
    %c0_248 = arith.constant 0 : index
    %260 = vector.load %arg21[%c1_246, %c0_247, %c0_248] : memref<4x256x256xf32, #tpu.memory_space<vmem>>, vector<1x256x256xf32>
    %261 = vector.shape_cast %260 : vector<1x256x256xf32> to vector<256x256xf32>
    %cst_249 = arith.constant dense<0.000000e+00> : vector<16x256xf32>
    %262 = tpu.matmul %259, %261, %cst_249 {dimension_numbers = #tpu.dot_dimension_numbers<[1], [0], [0], [1], [0, 0, 1, 1], [], []>} : vector<16x256xf32>, vector<256x256xf32>, vector<16x256xf32> -> vector<16x256xf32>
    %263 = arith.addf %256, %262 : vector<16x256xf32>
    %c2_250 = arith.constant 2 : index
    %c0_251 = arith.constant 0 : index
    %c0_252 = arith.constant 0 : index
    %264 = vector.load %arg20[%c2_250, %c0_251, %c0_252] : memref<4x16x8xf32, #tpu.memory_space<vmem>>, vector<1x16x8xf32>
    %265 = vector.shape_cast %264 : vector<1x16x8xf32> to vector<16x8xf32>
    %cst_253 = arith.constant dense<0.000000e+00> : vector<16x256xf32>
    %266 = tpu.matmul %265, %250, %cst_253 {dimension_numbers = #tpu.dot_dimension_numbers<[1], [0], [0], [1], [0, 0, 1, 1], [], []>} : vector<16x8xf32>, vector<8x256xf32>, vector<16x256xf32> -> vector<16x256xf32>
    %c2_254 = arith.constant 2 : index
    %c0_255 = arith.constant 0 : index
    %c0_256 = arith.constant 0 : index
    %267 = vector.load %arg21[%c2_254, %c0_255, %c0_256] : memref<4x256x256xf32, #tpu.memory_space<vmem>>, vector<1x256x256xf32>
    %268 = vector.shape_cast %267 : vector<1x256x256xf32> to vector<256x256xf32>
    %cst_257 = arith.constant dense<0.000000e+00> : vector<16x256xf32>
    %269 = tpu.matmul %266, %268, %cst_257 {dimension_numbers = #tpu.dot_dimension_numbers<[1], [0], [0], [1], [0, 0, 1, 1], [], []>} : vector<16x256xf32>, vector<256x256xf32>, vector<16x256xf32> -> vector<16x256xf32>
    %270 = arith.addf %263, %269 : vector<16x256xf32>
    %c3_258 = arith.constant 3 : index
    %c0_259 = arith.constant 0 : index
    %c0_260 = arith.constant 0 : index
    %271 = vector.load %arg20[%c3_258, %c0_259, %c0_260] : memref<4x16x8xf32, #tpu.memory_space<vmem>>, vector<1x16x8xf32>
    %272 = vector.shape_cast %271 : vector<1x16x8xf32> to vector<16x8xf32>
    %cst_261 = arith.constant dense<0.000000e+00> : vector<16x256xf32>
    %273 = tpu.matmul %272, %250, %cst_261 {dimension_numbers = #tpu.dot_dimension_numbers<[1], [0], [0], [1], [0, 0, 1, 1], [], []>} : vector<16x8xf32>, vector<8x256xf32>, vector<16x256xf32> -> vector<16x256xf32>
    %c3_262 = arith.constant 3 : index
    %c0_263 = arith.constant 0 : index
    %c0_264 = arith.constant 0 : index
    %274 = vector.load %arg21[%c3_262, %c0_263, %c0_264] : memref<4x256x256xf32, #tpu.memory_space<vmem>>, vector<1x256x256xf32>
    %275 = vector.shape_cast %274 : vector<1x256x256xf32> to vector<256x256xf32>
    %cst_265 = arith.constant dense<0.000000e+00> : vector<16x256xf32>
    %276 = tpu.matmul %273, %275, %cst_265 {dimension_numbers = #tpu.dot_dimension_numbers<[1], [0], [0], [1], [0, 0, 1, 1], [], []>} : vector<16x256xf32>, vector<256x256xf32>, vector<16x256xf32> -> vector<16x256xf32>
    %277 = arith.addf %270, %276 : vector<16x256xf32>
    %cst_266 = arith.constant dense<0.000000e+00> : vector<256xf32>
    %278 = vector.multi_reduction <add>, %277, %cst_266 [0] : vector<16x256xf32> to vector<256xf32>
    %279 = vector.shape_cast %278 : vector<256xf32> to vector<1x256xf32>
    %c0_267 = arith.constant 0 : index
    %c0_268 = arith.constant 0 : index
    %280 = vector.load %arg22[%c0_267, %c0_268] : memref<256x256xf32, #tpu.memory_space<vmem>>, vector<256x256xf32>
    %cst_269 = arith.constant dense<0.000000e+00> : vector<1x256xf32>
    %281 = tpu.matmul %279, %280, %cst_269 {dimension_numbers = #tpu.dot_dimension_numbers<[1], [0], [0], [1], [0, 0, 1, 1], [], []>} : vector<1x256xf32>, vector<256x256xf32>, vector<1x256xf32> -> vector<1x256xf32>
    %282 = vector.broadcast %281 : vector<1x256xf32> to vector<16x256xf32>
    %283 = arith.subf %277, %282 : vector<16x256xf32>
    %284 = arith.mulf %283, %283 : vector<16x256xf32>
    %cst_270 = arith.constant dense<0.000000e+00> : vector<256xf32>
    %285 = vector.multi_reduction <add>, %284, %cst_270 [0] : vector<16x256xf32> to vector<256xf32>
    %286 = vector.shape_cast %285 : vector<256xf32> to vector<1x256xf32>
    %c0_271 = arith.constant 0 : index
    %c0_272 = arith.constant 0 : index
    %287 = vector.load %arg22[%c0_271, %c0_272] : memref<256x256xf32, #tpu.memory_space<vmem>>, vector<256x256xf32>
    %cst_273 = arith.constant dense<0.000000e+00> : vector<1x256xf32>
    %288 = tpu.matmul %286, %287, %cst_273 {dimension_numbers = #tpu.dot_dimension_numbers<[1], [0], [0], [1], [0, 0, 1, 1], [], []>} : vector<1x256xf32>, vector<256x256xf32>, vector<1x256xf32> -> vector<1x256xf32>
    %cst_274 = arith.constant 9.99999974E-6 : f32
    %289 = vector.broadcast %cst_274 : f32 to vector<1x256xf32>
    %290 = arith.addf %288, %289 : vector<1x256xf32>
    %291 = math.rsqrt %290 : vector<1x256xf32>
    %c0_275 = arith.constant 0 : index
    %c0_276 = arith.constant 0 : index
    %292 = vector.load %arg23[%c0_275, %c0_276] : memref<1x256xf32, #tpu.memory_space<vmem>>, vector<1x256xf32>
    %293 = arith.mulf %291, %292 : vector<1x256xf32>
    %294 = vector.broadcast %293 : vector<1x256xf32> to vector<16x256xf32>
    %295 = arith.mulf %283, %294 : vector<16x256xf32>
    %c0_277 = arith.constant 0 : index
    %c0_278 = arith.constant 0 : index
    %296 = vector.load %arg24[%c0_277, %c0_278] : memref<1x256xf32, #tpu.memory_space<vmem>>, vector<1x256xf32>
    %297 = vector.broadcast %296 : vector<1x256xf32> to vector<16x256xf32>
    %298 = arith.addf %295, %297 : vector<16x256xf32>
    %cst_279 = arith.constant 0.000000e+00 : f32
    %299 = vector.broadcast %cst_279 : f32 to vector<16x256xf32>
    %300 = arith.maximumf %298, %299 : vector<16x256xf32>
    %c0_280 = arith.constant 0 : index
    %c0_281 = arith.constant 0 : index
    %c0_282 = arith.constant 0 : index
    %301 = vector.load %arg25[%c0_280, %c0_281, %c0_282] : memref<4x32x16xf32, #tpu.memory_space<vmem>>, vector<1x32x16xf32>
    %302 = vector.shape_cast %301 : vector<1x32x16xf32> to vector<32x16xf32>
    %cst_283 = arith.constant dense<0.000000e+00> : vector<32x256xf32>
    %303 = tpu.matmul %302, %300, %cst_283 {dimension_numbers = #tpu.dot_dimension_numbers<[1], [0], [0], [1], [0, 0, 1, 1], [], []>} : vector<32x16xf32>, vector<16x256xf32>, vector<32x256xf32> -> vector<32x256xf32>
    %c0_284 = arith.constant 0 : index
    %c0_285 = arith.constant 0 : index
    %c0_286 = arith.constant 0 : index
    %304 = vector.load %arg26[%c0_284, %c0_285, %c0_286] : memref<4x256x256xf32, #tpu.memory_space<vmem>>, vector<1x256x256xf32>
    %305 = vector.shape_cast %304 : vector<1x256x256xf32> to vector<256x256xf32>
    %cst_287 = arith.constant dense<0.000000e+00> : vector<32x256xf32>
    %306 = tpu.matmul %303, %305, %cst_287 {dimension_numbers = #tpu.dot_dimension_numbers<[1], [0], [0], [1], [0, 0, 1, 1], [], []>} : vector<32x256xf32>, vector<256x256xf32>, vector<32x256xf32> -> vector<32x256xf32>
    %c1_288 = arith.constant 1 : index
    %c0_289 = arith.constant 0 : index
    %c0_290 = arith.constant 0 : index
    %307 = vector.load %arg25[%c1_288, %c0_289, %c0_290] : memref<4x32x16xf32, #tpu.memory_space<vmem>>, vector<1x32x16xf32>
    %308 = vector.shape_cast %307 : vector<1x32x16xf32> to vector<32x16xf32>
    %cst_291 = arith.constant dense<0.000000e+00> : vector<32x256xf32>
    %309 = tpu.matmul %308, %300, %cst_291 {dimension_numbers = #tpu.dot_dimension_numbers<[1], [0], [0], [1], [0, 0, 1, 1], [], []>} : vector<32x16xf32>, vector<16x256xf32>, vector<32x256xf32> -> vector<32x256xf32>
    %c1_292 = arith.constant 1 : index
    %c0_293 = arith.constant 0 : index
    %c0_294 = arith.constant 0 : index
    %310 = vector.load %arg26[%c1_292, %c0_293, %c0_294] : memref<4x256x256xf32, #tpu.memory_space<vmem>>, vector<1x256x256xf32>
    %311 = vector.shape_cast %310 : vector<1x256x256xf32> to vector<256x256xf32>
    %cst_295 = arith.constant dense<0.000000e+00> : vector<32x256xf32>
    %312 = tpu.matmul %309, %311, %cst_295 {dimension_numbers = #tpu.dot_dimension_numbers<[1], [0], [0], [1], [0, 0, 1, 1], [], []>} : vector<32x256xf32>, vector<256x256xf32>, vector<32x256xf32> -> vector<32x256xf32>
    %313 = arith.addf %306, %312 : vector<32x256xf32>
    %c2_296 = arith.constant 2 : index
    %c0_297 = arith.constant 0 : index
    %c0_298 = arith.constant 0 : index
    %314 = vector.load %arg25[%c2_296, %c0_297, %c0_298] : memref<4x32x16xf32, #tpu.memory_space<vmem>>, vector<1x32x16xf32>
    %315 = vector.shape_cast %314 : vector<1x32x16xf32> to vector<32x16xf32>
    %cst_299 = arith.constant dense<0.000000e+00> : vector<32x256xf32>
    %316 = tpu.matmul %315, %300, %cst_299 {dimension_numbers = #tpu.dot_dimension_numbers<[1], [0], [0], [1], [0, 0, 1, 1], [], []>} : vector<32x16xf32>, vector<16x256xf32>, vector<32x256xf32> -> vector<32x256xf32>
    %c2_300 = arith.constant 2 : index
    %c0_301 = arith.constant 0 : index
    %c0_302 = arith.constant 0 : index
    %317 = vector.load %arg26[%c2_300, %c0_301, %c0_302] : memref<4x256x256xf32, #tpu.memory_space<vmem>>, vector<1x256x256xf32>
    %318 = vector.shape_cast %317 : vector<1x256x256xf32> to vector<256x256xf32>
    %cst_303 = arith.constant dense<0.000000e+00> : vector<32x256xf32>
    %319 = tpu.matmul %316, %318, %cst_303 {dimension_numbers = #tpu.dot_dimension_numbers<[1], [0], [0], [1], [0, 0, 1, 1], [], []>} : vector<32x256xf32>, vector<256x256xf32>, vector<32x256xf32> -> vector<32x256xf32>
    %320 = arith.addf %313, %319 : vector<32x256xf32>
    %c3_304 = arith.constant 3 : index
    %c0_305 = arith.constant 0 : index
    %c0_306 = arith.constant 0 : index
    %321 = vector.load %arg25[%c3_304, %c0_305, %c0_306] : memref<4x32x16xf32, #tpu.memory_space<vmem>>, vector<1x32x16xf32>
    %322 = vector.shape_cast %321 : vector<1x32x16xf32> to vector<32x16xf32>
    %cst_307 = arith.constant dense<0.000000e+00> : vector<32x256xf32>
    %323 = tpu.matmul %322, %300, %cst_307 {dimension_numbers = #tpu.dot_dimension_numbers<[1], [0], [0], [1], [0, 0, 1, 1], [], []>} : vector<32x16xf32>, vector<16x256xf32>, vector<32x256xf32> -> vector<32x256xf32>
    %c3_308 = arith.constant 3 : index
    %c0_309 = arith.constant 0 : index
    %c0_310 = arith.constant 0 : index
    %324 = vector.load %arg26[%c3_308, %c0_309, %c0_310] : memref<4x256x256xf32, #tpu.memory_space<vmem>>, vector<1x256x256xf32>
    %325 = vector.shape_cast %324 : vector<1x256x256xf32> to vector<256x256xf32>
    %cst_311 = arith.constant dense<0.000000e+00> : vector<32x256xf32>
    %326 = tpu.matmul %323, %325, %cst_311 {dimension_numbers = #tpu.dot_dimension_numbers<[1], [0], [0], [1], [0, 0, 1, 1], [], []>} : vector<32x256xf32>, vector<256x256xf32>, vector<32x256xf32> -> vector<32x256xf32>
    %327 = arith.addf %320, %326 : vector<32x256xf32>
    %cst_312 = arith.constant dense<0.000000e+00> : vector<256xf32>
    %328 = vector.multi_reduction <add>, %327, %cst_312 [0] : vector<32x256xf32> to vector<256xf32>
    %329 = vector.shape_cast %328 : vector<256xf32> to vector<1x256xf32>
    %c0_313 = arith.constant 0 : index
    %c0_314 = arith.constant 0 : index
    %330 = vector.load %arg27[%c0_313, %c0_314] : memref<256x256xf32, #tpu.memory_space<vmem>>, vector<256x256xf32>
    %cst_315 = arith.constant dense<0.000000e+00> : vector<1x256xf32>
    %331 = tpu.matmul %329, %330, %cst_315 {dimension_numbers = #tpu.dot_dimension_numbers<[1], [0], [0], [1], [0, 0, 1, 1], [], []>} : vector<1x256xf32>, vector<256x256xf32>, vector<1x256xf32> -> vector<1x256xf32>
    %332 = vector.broadcast %331 : vector<1x256xf32> to vector<32x256xf32>
    %333 = arith.subf %327, %332 : vector<32x256xf32>
    %334 = arith.mulf %333, %333 : vector<32x256xf32>
    %cst_316 = arith.constant dense<0.000000e+00> : vector<256xf32>
    %335 = vector.multi_reduction <add>, %334, %cst_316 [0] : vector<32x256xf32> to vector<256xf32>
    %336 = vector.shape_cast %335 : vector<256xf32> to vector<1x256xf32>
    %c0_317 = arith.constant 0 : index
    %c0_318 = arith.constant 0 : index
    %337 = vector.load %arg27[%c0_317, %c0_318] : memref<256x256xf32, #tpu.memory_space<vmem>>, vector<256x256xf32>
    %cst_319 = arith.constant dense<0.000000e+00> : vector<1x256xf32>
    %338 = tpu.matmul %336, %337, %cst_319 {dimension_numbers = #tpu.dot_dimension_numbers<[1], [0], [0], [1], [0, 0, 1, 1], [], []>} : vector<1x256xf32>, vector<256x256xf32>, vector<1x256xf32> -> vector<1x256xf32>
    %cst_320 = arith.constant 9.99999974E-6 : f32
    %339 = vector.broadcast %cst_320 : f32 to vector<1x256xf32>
    %340 = arith.addf %338, %339 : vector<1x256xf32>
    %341 = math.rsqrt %340 : vector<1x256xf32>
    %c0_321 = arith.constant 0 : index
    %c0_322 = arith.constant 0 : index
    %342 = vector.load %arg28[%c0_321, %c0_322] : memref<1x256xf32, #tpu.memory_space<vmem>>, vector<1x256xf32>
    %343 = arith.mulf %341, %342 : vector<1x256xf32>
    %344 = vector.broadcast %343 : vector<1x256xf32> to vector<32x256xf32>
    %345 = arith.mulf %333, %344 : vector<32x256xf32>
    %c0_323 = arith.constant 0 : index
    %c0_324 = arith.constant 0 : index
    %346 = vector.load %arg29[%c0_323, %c0_324] : memref<1x256xf32, #tpu.memory_space<vmem>>, vector<1x256xf32>
    %347 = vector.broadcast %346 : vector<1x256xf32> to vector<32x256xf32>
    %348 = arith.addf %345, %347 : vector<32x256xf32>
    %cst_325 = arith.constant 0.000000e+00 : f32
    %349 = vector.broadcast %cst_325 : f32 to vector<32x256xf32>
    %350 = arith.maximumf %348, %349 : vector<32x256xf32>
    %c0_326 = arith.constant 0 : index
    %c0_327 = arith.constant 0 : index
    %c0_328 = arith.constant 0 : index
    %351 = vector.load %arg30[%c0_326, %c0_327, %c0_328] : memref<4x64x32xf32, #tpu.memory_space<vmem>>, vector<1x64x32xf32>
    %352 = vector.shape_cast %351 : vector<1x64x32xf32> to vector<64x32xf32>
    %cst_329 = arith.constant dense<0.000000e+00> : vector<64x256xf32>
    %353 = tpu.matmul %352, %350, %cst_329 {dimension_numbers = #tpu.dot_dimension_numbers<[1], [0], [0], [1], [0, 0, 1, 1], [], []>} : vector<64x32xf32>, vector<32x256xf32>, vector<64x256xf32> -> vector<64x256xf32>
    %c0_330 = arith.constant 0 : index
    %c0_331 = arith.constant 0 : index
    %c0_332 = arith.constant 0 : index
    %354 = vector.load %arg31[%c0_330, %c0_331, %c0_332] : memref<4x256x32xf32, #tpu.memory_space<vmem>>, vector<1x256x32xf32>
    %355 = vector.shape_cast %354 : vector<1x256x32xf32> to vector<256x32xf32>
    %cst_333 = arith.constant dense<0.000000e+00> : vector<64x32xf32>
    %356 = tpu.matmul %353, %355, %cst_333 {dimension_numbers = #tpu.dot_dimension_numbers<[1], [0], [0], [1], [0, 0, 1, 1], [], []>} : vector<64x256xf32>, vector<256x32xf32>, vector<64x32xf32> -> vector<64x32xf32>
    %c1_334 = arith.constant 1 : index
    %c0_335 = arith.constant 0 : index
    %c0_336 = arith.constant 0 : index
    %357 = vector.load %arg30[%c1_334, %c0_335, %c0_336] : memref<4x64x32xf32, #tpu.memory_space<vmem>>, vector<1x64x32xf32>
    %358 = vector.shape_cast %357 : vector<1x64x32xf32> to vector<64x32xf32>
    %cst_337 = arith.constant dense<0.000000e+00> : vector<64x256xf32>
    %359 = tpu.matmul %358, %350, %cst_337 {dimension_numbers = #tpu.dot_dimension_numbers<[1], [0], [0], [1], [0, 0, 1, 1], [], []>} : vector<64x32xf32>, vector<32x256xf32>, vector<64x256xf32> -> vector<64x256xf32>
    %c1_338 = arith.constant 1 : index
    %c0_339 = arith.constant 0 : index
    %c0_340 = arith.constant 0 : index
    %360 = vector.load %arg31[%c1_338, %c0_339, %c0_340] : memref<4x256x32xf32, #tpu.memory_space<vmem>>, vector<1x256x32xf32>
    %361 = vector.shape_cast %360 : vector<1x256x32xf32> to vector<256x32xf32>
    %cst_341 = arith.constant dense<0.000000e+00> : vector<64x32xf32>
    %362 = tpu.matmul %359, %361, %cst_341 {dimension_numbers = #tpu.dot_dimension_numbers<[1], [0], [0], [1], [0, 0, 1, 1], [], []>} : vector<64x256xf32>, vector<256x32xf32>, vector<64x32xf32> -> vector<64x32xf32>
    %363 = arith.addf %356, %362 : vector<64x32xf32>
    %c2_342 = arith.constant 2 : index
    %c0_343 = arith.constant 0 : index
    %c0_344 = arith.constant 0 : index
    %364 = vector.load %arg30[%c2_342, %c0_343, %c0_344] : memref<4x64x32xf32, #tpu.memory_space<vmem>>, vector<1x64x32xf32>
    %365 = vector.shape_cast %364 : vector<1x64x32xf32> to vector<64x32xf32>
    %cst_345 = arith.constant dense<0.000000e+00> : vector<64x256xf32>
    %366 = tpu.matmul %365, %350, %cst_345 {dimension_numbers = #tpu.dot_dimension_numbers<[1], [0], [0], [1], [0, 0, 1, 1], [], []>} : vector<64x32xf32>, vector<32x256xf32>, vector<64x256xf32> -> vector<64x256xf32>
    %c2_346 = arith.constant 2 : index
    %c0_347 = arith.constant 0 : index
    %c0_348 = arith.constant 0 : index
    %367 = vector.load %arg31[%c2_346, %c0_347, %c0_348] : memref<4x256x32xf32, #tpu.memory_space<vmem>>, vector<1x256x32xf32>
    %368 = vector.shape_cast %367 : vector<1x256x32xf32> to vector<256x32xf32>
    %cst_349 = arith.constant dense<0.000000e+00> : vector<64x32xf32>
    %369 = tpu.matmul %366, %368, %cst_349 {dimension_numbers = #tpu.dot_dimension_numbers<[1], [0], [0], [1], [0, 0, 1, 1], [], []>} : vector<64x256xf32>, vector<256x32xf32>, vector<64x32xf32> -> vector<64x32xf32>
    %370 = arith.addf %363, %369 : vector<64x32xf32>
    %c3_350 = arith.constant 3 : index
    %c0_351 = arith.constant 0 : index
    %c0_352 = arith.constant 0 : index
    %371 = vector.load %arg30[%c3_350, %c0_351, %c0_352] : memref<4x64x32xf32, #tpu.memory_space<vmem>>, vector<1x64x32xf32>
    %372 = vector.shape_cast %371 : vector<1x64x32xf32> to vector<64x32xf32>
    %cst_353 = arith.constant dense<0.000000e+00> : vector<64x256xf32>
    %373 = tpu.matmul %372, %350, %cst_353 {dimension_numbers = #tpu.dot_dimension_numbers<[1], [0], [0], [1], [0, 0, 1, 1], [], []>} : vector<64x32xf32>, vector<32x256xf32>, vector<64x256xf32> -> vector<64x256xf32>
    %c3_354 = arith.constant 3 : index
    %c0_355 = arith.constant 0 : index
    %c0_356 = arith.constant 0 : index
    %374 = vector.load %arg31[%c3_354, %c0_355, %c0_356] : memref<4x256x32xf32, #tpu.memory_space<vmem>>, vector<1x256x32xf32>
    %375 = vector.shape_cast %374 : vector<1x256x32xf32> to vector<256x32xf32>
    %cst_357 = arith.constant dense<0.000000e+00> : vector<64x32xf32>
    %376 = tpu.matmul %373, %375, %cst_357 {dimension_numbers = #tpu.dot_dimension_numbers<[1], [0], [0], [1], [0, 0, 1, 1], [], []>} : vector<64x256xf32>, vector<256x32xf32>, vector<64x32xf32> -> vector<64x32xf32>
    %377 = arith.addf %370, %376 : vector<64x32xf32>
    %cst_358 = arith.constant 0.000000e+00 : f32
    %378 = vector.broadcast %cst_358 : f32 to vector<64x32xf32>
    %379 = arith.maximumf %377, %378 : vector<64x32xf32>
    %c0_359 = arith.constant 0 : index
    %c0_360 = arith.constant 0 : index
    %380 = vector.load %arg32[%c0_359, %c0_360] : memref<64x32xf32, #tpu.memory_space<vmem>>, vector<64x32xf32>
    tpu.vector_store %arg32[%c0_359, %c0_360], %379 {strides = array<i32>} : memref<64x32xf32, #tpu.memory_space<vmem>>, vector<64x32xf32>,
    return
  }
}

</mosaic_0001>

<bundles_post_ra>
// kernel: autoencoder_forward.1
= control target key start
LH: loop header
LB: loop body
LE: loop exit
PB: predicated region body
PF: predicated region fallthrough
CT: control target
= control target key end

     0   :  { %s6905_s6 = smov 1   ;;  %s6906_s10 = smov 2   ;;  %s9292_s0 = inlined_call_operand.smem [shape: u32[33], index: -1, kind: input, shape index: {}] }
   0x1   :  { %s6958_s5 = sld [smem:[%s9292_s0]]   ;;  %s6907_s14 = smov 3  }
   0x2   :  { %s6963_s9 = sld [smem:[%s9292_s0 + %s6905_s6]]   ;;  %s6908_s18 = smov 4  }
   0x3   :  { %s6968_s13 = sld [smem:[%s9292_s0 + %s6906_s10]]   ;;  %s6909_s22 = smov 5  }
   0x4   :  { %s6973_s17 = sld [smem:[%s9292_s0 + %s6907_s14]]   ;;  %s6910_s26 = smov 6  }
   0x5   :  { %s6978_s21 = sld [smem:[%s9292_s0 + %s6908_s18]]   ;;  %s6911_s30 = smov 7  }
   0x6   :  { %s6983_s25 = sld [smem:[%s9292_s0 + %s6909_s22]]   ;;  %s6912_s4 = smov 8  }
   0x7   :  { %s6988_s29 = sld [smem:[%s9292_s0 + %s6910_s26]]   ;;  %s6913_s10 = smov 9  }
   0x8   :  { %s6993_s3 = sld [smem:[%s9292_s0 + %s6911_s30]]   ;;  %s6914_s15 = smov 10  }
   0x9   :  { %s6998_s8 = sld [smem:[%s9292_s0 + %s6912_s4]]   ;;  %s6915_s20 = smov 11  }
   0xa   :  { %s7003_s14 = sld [smem:[%s9292_s0 + %s6913_s10]]   ;;  %s6916_s26 = smov 12  }
   0xb   :  { %s7008_s19 = sld [smem:[%s9292_s0 + %s6914_s15]]   ;;  %s6917_s1 = smov 13  }
   0xc   :  { %s7013_s24 = sld [smem:[%s9292_s0 + %s6915_s20]]   ;;  %s6918_s7 = smov 14  }
   0xd   :  { %s7018_s30 = sld [smem:[%s9292_s0 + %s6916_s26]]   ;;  %s6919_s15 = smov 15  }
   0xe   :  { %s7023_s6 = sld [smem:[%s9292_s0 + %s6917_s1]]   ;;  %s6920_s22 = smov 16  }
   0xf   :  { %9373 = sst [smem:[#allocation23_spill]] %s6998_s8  ;;  %s6921_s28 = smov 17  }
  0x10   :  { %9374 = sst [smem:[#allocation24_spill]] %s7003_s14 }
  0x11   :  { %s7028_s12 = sld [smem:[%s9292_s0 + %s6918_s7]]   ;;  %s6922_s7 = smov 18  }
  0x12   :  { %9375 = sst [smem:[#allocation25_spill]] %s7013_s24 }
  0x13   :  { %9376 = sst [smem:[#allocation26_spill]] %s7018_s30 }
  0x14   :  { %9377 = sst [smem:[#allocation27_spill]] %s7023_s6 }
  0x15   :  { %s7033_s20 = sld [smem:[%s9292_s0 + %s6919_s15]]   ;;  %s6923_s15 = smov 19  }
  0x16   :  { %s7038_s27 = sld [smem:[%s9292_s0 + %s6920_s22]]   ;;  %s6924_s22 = smov 20  }
  0x17   :  { %9378 = sst [smem:[#allocation28_spill]] %s7028_s12 }
  0x18   :  { %s7043_s4 = sld [smem:[%s9292_s0 + %s6921_s28]]   ;;  %s6925_s28 = smov 21  }
  0x19   :  { %s7048_s6 = sld [smem:[%s9292_s0 + %s6922_s7]]   ;;  %s6926_s7 = smov 22  }
  0x1a   :  { %s7058_s30 = sld [smem:[%s9292_s0 + %s6924_s22]]   ;;  %s6928_s22 = smov 24  }
  0x1b   :  { %9379 = sst [smem:[#allocation29_spill]] %s7033_s20 }
  0x1c   :  { %s7053_s20 = sld [smem:[%s9292_s0 + %s6923_s15]]   ;;  %s6927_s15 = smov 23  }
  0x1e   :  { %9380 = sst [smem:[#allocation30_spill]] %s7043_s4 }
  0x1f   :  { %9381 = sst [smem:[#allocation31_spill]] %s7048_s6 }
  0x20   :  { %9383 = sst [smem:[#allocation33_spill]] %s7058_s30 }
  0x21   :  { %s7063_s4 = sld [smem:[%s9292_s0 + %s6925_s28]]   ;;  %s6929_s28 = smov 25  }
  0x22   :  { %9382 = sst [smem:[#allocation32_spill]] %s7053_s20 }
  0x23   :  { %s7068_s6 = sld [smem:[%s9292_s0 + %s6926_s7]]   ;;  %s6930_s7 = smov 26  }
  0x24   :  { %s7073_s20 = sld [smem:[%s9292_s0 + %s6927_s15]]   ;;  %s6931_s15 = smov 27  }
  0x25   :  { %s7078_s30 = sld [smem:[%s9292_s0 + %s6928_s22]]   ;;  %s6932_s22 = smov 28  }
  0x26   :  { %s7083_s24 = sld [smem:[%s9292_s0 + %s6929_s28]]   ;;  %s6933_s28 = smov 29  }
  0x27   :  { %s7088_s12 = sld [smem:[%s9292_s0 + %s6930_s7]]   ;;  %s6934_s7 = smov 30  }
  0x28   :  { %s7108_s8 = sld [smem:[%s9292_s0 + %s6934_s7]]  }
  0x2a   :  { %9384 = sst [smem:[#allocation34_spill]] %s7073_s20 }
  0x2b   :  { %9385 = sst [smem:[#allocation35_spill]] %s7078_s30 }
  0x2c   :  { %9386 = sst [smem:[#allocation36_spill]] %s7083_s24 }
  0x2d   :  { %s7093_s20 = sld [smem:[%s9292_s0 + %s6931_s15]]   ;;  %s6935_s15 = smov 31  }
  0x2e   :  { %s7098_s30 = sld [smem:[%s9292_s0 + %s6932_s22]]   ;;  %s6936_s22 = smov 32  }
  0x2f   :  { %s7103_s24 = sld [smem:[%s9292_s0 + %s6933_s28]]  }
  0x30   :  { %s7113_s14 = sld [smem:[%s9292_s0 + %s6935_s15]]  }
  0x34   :  { %9387 = sst [smem:[#allocation37_spill]] %s7098_s30 }
  0x35   :  { %s7118_s30 = sld [smem:[%s9292_s0 + %s6936_s22]]  }
  0x36   :  { %70 = vsyncpa [#allocation3], 0 }
  0x37   :  { %71 = vsyncpa [#allocation6], 0 }
  0x38   :  { %72 = vsyncpa [#allocation9], 0 }
  0x39   :  { %73 = vsyncpa [#allocation12], 0 }
  0x3a   :  { %74 = vsyncpa [#allocation15], 0 }
  0x3b   :  { %75 = vsyncpa [#allocation4], 0  ;;  %s101_s28 = sshll.u32 %s6983_s25, 4  ;;  %s6937_s1 = smov [#allocation5]   ;;  %s102_s28 = int_to_ptr.hbm [resolvable:$true] %s101_s28 }
  0x3c   :  { %s103_s2 = sshll.u32 %s6937_s1, 4  ;;  %s145_s7 = sshll.u32 %s7038_s27, 4  ;;  %s104_s2 = int_to_ptr.vmem [resolvable:$true] %s103_s2  ;;  %s146_s7 = int_to_ptr.hbm [resolvable:$true] %s145_s7 }
  0x3d   :  { %s6677_s10 = sshra.s32 %s102_s28, 4  ;;  %s6681_s11 = scalar_lea.hbm %s6983_s25, 128  ;;  %s6678_s10 = int_to_ptr.hbm [resolvable:$true] %s6677_s10 }
  0x3e   :  { %s6679_s0 = scalar_lea.hbm %s6678_s10, 128  ;;  %p6682_p1 = scmp.lt.s32.totalorder %s6678_s10, %s6983_s25 }
  0x3f   :  { %p6680_p0 = scmp.ne.s32.totalorder %s6678_s10, %s6679_s0  ;;  %p6683_p2 = scmp.lt.s32.totalorder %s6681_s11, %s6679_s0 }
  0x41   :  { %p6684_p3 = por %p6683_p2, %p6682_p1 }
  0x43   :  { %p6685_p4 = pnand %p6684_p3, %p6680_p0 }
  0x45   :  { %6688 = shalt.err (!%p6685_p4)
}
  0x46   :  { %s6938_s15 = smov 128   ;;  %s6939_s16 = smov 8  }
  0x47   :  { %109 = dma.hbm_to_vmem [thread:$0]  %s102_s28, 2048, %s104_s2, [#allocation6], %s6938_s15, %s6938_s15, %s6939_s16  }
  0x48   :  { %s6940_s18 = smov [#allocation8]   ;;  %s6701_s23 = sshra.s32 %s146_s7, 4  ;;  %s6702_s23 = int_to_ptr.hbm [resolvable:$true] %s6701_s23 }
  0x49   :  { %s147_s22 = sshll.u32 %s6940_s18, 4  ;;  %s6703_s26 = scalar_lea.hbm %s6702_s23, 256  ;;  %s148_s22 = int_to_ptr.vmem [resolvable:$true] %s147_s22 }
  0x4a   :  { %p6704_p5 = scmp.ne.s32.totalorder %s6702_s23, %s6703_s26  ;;  %s6705_s25 = scalar_lea.hbm %s7038_s27, 256 }
  0x4b   :  { %p6706_p6 = scmp.lt.s32.totalorder %s6702_s23, %s7038_s27  ;;  %p6707_p7 = scmp.lt.s32.totalorder %s6705_s25, %s6703_s26 }
  0x4d   :  { %p6708_p8 = por %p6707_p7, %p6706_p6 }
  0x4f   :  { %p6709_p9 = pnand %p6708_p8, %p6704_p5 }
  0x51   :  { %6712 = shalt.err (!%p6709_p9)
}
  0x52   :  { %s6941_s1 = smov 256   ;;  %s6942_s28 = smov 16  }
  0x53   :  { %153 = dma.hbm_to_vmem [thread:$0]  %s146_s7, 4096, %s148_s22, [#allocation9], %s6941_s1, %s6941_s1, %s6942_s28  }
  0x54   :  { %s179_s2 = sshll.u32 %s7068_s6, 4  ;;  %s6943_s10 = smov [#allocation11]   ;;  %s180_s2 = int_to_ptr.hbm [resolvable:$true] %s179_s2 }
  0x55   :  { %s181_s0 = sshll.u32 %s6943_s10, 4  ;;  %s84_s27 = sshll.u32 %s6968_s13, 4  ;;  %s182_s0 = int_to_ptr.vmem [resolvable:$true] %s181_s0  ;;  %s85_s27 = int_to_ptr.hbm [resolvable:$true] %s84_s27 }
  0x56   :  { %s6725_s11 = sshra.s32 %s180_s2, 4  ;;  %s6729_s23 = scalar_lea.hbm %s7068_s6, 512  ;;  %s6726_s11 = int_to_ptr.hbm [resolvable:$true] %s6725_s11 }
  0x57   :  { %s6727_s18 = scalar_lea.hbm %s6726_s11, 512  ;;  %p6730_p11 = scmp.lt.s32.totalorder %s6726_s11, %s7068_s6 }
  0x58   :  { %p6728_p10 = scmp.ne.s32.totalorder %s6726_s11, %s6727_s18  ;;  %p6731_p12 = scmp.lt.s32.totalorder %s6729_s23, %s6727_s18 }
  0x5a   :  { %p6732_p13 = por %p6731_p12, %p6730_p11 }
  0x5c   :  { %p6733_p0 = pnand %p6732_p13, %p6728_p10 }
  0x5e   :  { %6736 = shalt.err (!%p6733_p0)
}
  0x5f   :  { %187 = dma.hbm_to_vmem [thread:$0]  %s180_s2, 8192, %s182_s0, [#allocation12], %s6941_s1, %s6941_s1, %s6942_s28  }
  0x60   :  { %s6944_s7 = smov [#allocation2]   ;;  %s122_s26 = sshll.u32 %s7008_s19, 4  ;;  %s7140_s26 = int_to_ptr.hbm [resolvable:$true] %s122_s26 }
  0x61   :  { %s86_s22 = sshll.u32 %s6944_s7, 4  ;;  %s6749_s25 = sshra.s32 %s85_s27, 4  ;;  %s87_s22 = int_to_ptr.vmem [resolvable:$true] %s86_s22  ;;  %s6750_s25 = int_to_ptr.hbm [resolvable:$true] %s6749_s25 }
  0x62   :  { %s6751_s6 = scalar_lea.hbm %s6750_s25, 256  ;;  %s6753_s10 = scalar_lea.hbm %s6968_s13, 256 }
  0x63   :  { %p6752_p1 = scmp.ne.s32.totalorder %s6750_s25, %s6751_s6  ;;  %p6754_p2 = scmp.lt.s32.totalorder %s6750_s25, %s6968_s13 }
  0x64   :  { %p6755_p3 = scmp.lt.s32.totalorder %s6753_s10, %s6751_s6 }
  0x66   :  { %p6756_p4 = por %p6755_p3, %p6754_p2 }
  0x68   :  { %p6757_p5 = pnand %p6756_p4, %p6752_p1 }
  0x6a   :  { %6760 = shalt.err (!%p6757_p5)
}
  0x6b   :  { %92 = dma.hbm_to_vmem [thread:$0]  %s85_s27, 4096, %s87_s22, [#allocation3], %s6938_s15, %s6938_s15, %s6939_s16  }
  0x6c   :  { %s166_s2 = sshll.u32 %s7063_s4, 4  ;;  %s6945_s0 = smov [#allocation7]   ;;  %s7148_s2 = int_to_ptr.hbm [resolvable:$true] %s166_s2 }
  0x6d   :  { %s124_s11 = sshll.u32 %s6945_s0, 4  ;;  %s6773_s18 = sshra.s32 %s7140_s26, 4  ;;  %s125_s11 = int_to_ptr.vmem [resolvable:$true] %s124_s11  ;;  %s6774_s18 = int_to_ptr.hbm [resolvable:$true] %s6773_s18 }
  0x6e   :  { %s6775_s13 = scalar_lea.hbm %s6774_s18, 128  ;;  %s6777_s23 = scalar_lea.hbm %s7008_s19, 128 }
  0x6f   :  { %p6776_p6 = scmp.ne.s32.totalorder %s6774_s18, %s6775_s13  ;;  %p6778_p7 = scmp.lt.s32.totalorder %s6774_s18, %s7008_s19 }
  0x70   :  { %p6779_p8 = scmp.lt.s32.totalorder %s6777_s23, %s6775_s13 }
  0x72   :  { %p6780_p9 = por %p6779_p8, %p6778_p7 }
  0x74   :  { %p6781_p10 = pnand %p6780_p9, %p6776_p6 }
  0x76   :  { %6784 = shalt.err (!%p6781_p10)
}
  0x77   :  { %130 = dma.hbm_to_vmem [thread:$0]  %s7140_s26, 2048, %s125_s11, [#allocation6], %s6938_s15, %s6938_s15, %s6939_s16  }
  0x78   :  { %s6946_s27 = smov [#allocation10]   ;;  %s198_s22 = sshll.u32 %s7088_s12, 4  ;;  %s7158_s22 = int_to_ptr.hbm [resolvable:$true] %s198_s22 }
  0x79   :  { %s168_s7 = sshll.u32 %s6946_s27, 4  ;;  %s6797_s19 = sshra.s32 %s7148_s2, 4  ;;  %s169_s7 = int_to_ptr.vmem [resolvable:$true] %s168_s7  ;;  %s6798_s19 = int_to_ptr.hbm [resolvable:$true] %s6797_s19 }
  0x7a   :  { %s6799_s25 = scalar_lea.hbm %s6798_s19, 2048  ;;  %s6801_s6 = scalar_lea.hbm %s7063_s4, 2048 }
  0x7b   :  { %p6800_p11 = scmp.ne.s32.totalorder %s6798_s19, %s6799_s25  ;;  %p6802_p12 = scmp.lt.s32.totalorder %s6798_s19, %s7063_s4 }
  0x7c   :  { %p6803_p13 = scmp.lt.s32.totalorder %s6801_s6, %s6799_s25 }
  0x7e   :  { %p6804_p0 = por %p6803_p13, %p6802_p12 }
  0x80   :  { %p6805_p1 = pnand %p6804_p0, %p6800_p11 }
  0x82   :  { %6808 = shalt.err (!%p6805_p1)
}
  0x83   :  { %174 = dma.hbm_to_vmem [thread:$0]  %s7148_s2, 32768, %s169_s7, [#allocation9], %s6941_s1, %s6941_s1, %s6942_s28  }
  0x84   :  { %s211_s26 = sshll.u32 %s7093_s20, 4  ;;  %s6947_s10 = smov [#allocation13]   ;;  %s7168_s26 = int_to_ptr.hbm [resolvable:$true] %s211_s26 }
  0x85   :  { %s200_s0 = sshll.u32 %s6947_s10, 4  ;;  %s6821_s4 = sshra.s32 %s7158_s22, 4  ;;  %s201_s0 = int_to_ptr.vmem [resolvable:$true] %s200_s0  ;;  %s6822_s4 = int_to_ptr.hbm [resolvable:$true] %s6821_s4 }
  0x86   :  { %s6823_s11 = scalar_lea.hbm %s6822_s4, 2048  ;;  %s6825_s18 = scalar_lea.hbm %s7088_s12, 2048 }
  0x87   :  { %p6824_p2 = scmp.ne.s32.totalorder %s6822_s4, %s6823_s11  ;;  %p6826_p3 = scmp.lt.s32.totalorder %s6822_s4, %s7088_s12 }
  0x88   :  { %p6827_p4 = scmp.lt.s32.totalorder %s6825_s18, %s6823_s11 }
  0x8a   :  { %p6828_p5 = por %p6827_p4, %p6826_p3 }
  0x8c   :  { %p6829_p6 = pnand %p6828_p5, %p6824_p2 }
  0x8e   :  { %6832 = shalt.err (!%p6829_p6)
}
  0x8f   :  { %206 = dma.hbm_to_vmem [thread:$0]  %s7158_s22, 32768, %s201_s0, [#allocation12], %s6941_s1, %s6941_s1, %s6942_s28  }
  0x90   :  { %s6948_s2 = smov [#allocation14]   ;;  %s6845_s23 = sshra.s32 %s7168_s26, 4  ;;  %s6846_s23 = int_to_ptr.hbm [resolvable:$true] %s6845_s23 }
  0x91   :  { %s213_s13 = sshll.u32 %s6948_s2, 4  ;;  %s6847_s27 = scalar_lea.hbm %s6846_s23, 512  ;;  %s214_s13 = int_to_ptr.vmem [resolvable:$true] %s213_s13 }
  0x92   :  { %p6848_p7 = scmp.ne.s32.totalorder %s6846_s23, %s6847_s27  ;;  %s6849_s12 = scalar_lea.hbm %s7093_s20, 512 }
  0x93   :  { %p6850_p8 = scmp.lt.s32.totalorder %s6846_s23, %s7093_s20  ;;  %p6851_p9 = scmp.lt.s32.totalorder %s6849_s12, %s6847_s27 }
  0x95   :  { %p6852_p10 = por %p6851_p9, %p6850_p8 }
  0x97   :  { %p6853_p11 = pnand %p6852_p10, %p6848_p7 }
  0x99   :  { %6856 = shalt.err (!%p6853_p11)
}
  0x9a   :  { %219 = dma.hbm_to_vmem [thread:$0]  %s7168_s26, 8192, %s214_s13, [#allocation15], %s6941_s1, %s6941_s1, %s6942_s28  }
  0x9b   :  { %6893 = dma.done.wait [#allocation3], 4096  }
  0x9c   :  { %6894 = vsyncadd [#allocation3], 4294963200 }
  0x9d   :  { %6895 = dma.done.wait [#allocation6], 4096  }
  0x9e   :  { %6896 = vsyncadd [#allocation6], 4294963200 }
  0x9f   :  { %6897 = dma.done.wait [#allocation9], 36864  }
  0xa0   :  { %6898 = vsyncadd [#allocation9], 4294930432 }
  0xa1   :  { %6899 = dma.done.wait [#allocation12], 40960  }
  0xa2   :  { %6900 = vsyncadd [#allocation12], 4294926336 }
  0xa3   :  { %6901 = dma.done.wait [#allocation15], 8192  }
  0xa4   :  { %6902 = vsyncadd [#allocation15], 4294959104  ;;  %v7185_v0 = vld [vmem:[%s6958_s5 + $0x78] sm:$0xff]  ;;  %v7188_v1 = vld [vmem:[%s6958_s5 + $0x70] sm:$0xff]  ;;  %vm352_vm0 = vcmask 261120   ;;  %vm1344_vm10 = vcmask 130048  }
  0xa5   :  { %280 = vmatpush.msra.mxu0 %v7185_v0  ;;  %318 = vmatpush.msra.mxu1 %v7185_v0  ;;  %v7193_v2 = vld [vmem:[%s6958_s5 + $0x68] sm:$0xff]  ;;  %v7198_v3 = vld [vmem:[%s6958_s5 + $0x60] sm:$0xff]  ;;  %v7203_v4 = vld [vmem:[%s6958_s5 + $0x58] sm:$0xff]  ;;  %vm1686_vm15 = vcmask 64512   ;;  %s9394_s20 = sld [smem:[#allocation29_spill]]  ;;  %s6885_s4 = scalar_lea.hbm %s7118_s30, 64 }
  0xa6   :  { %v7208_v5 = vld [vmem:[%s6958_s5 + $0x50] sm:$0xff]  ;;  %v7213_v6 = vld [vmem:[%s6958_s5 + $0x48] sm:$0xff]  ;;  %v7218_v7 = vld [vmem:[%s6958_s5 + $0x40] sm:$0xff]  ;;  %s9395_s1 = sld [smem:[#allocation30_spill]] }
  0xa7   :  { %281 = vmatpush.msra.mxu0 %v7188_v1  ;;  %319 = vmatpush.msra.mxu1 %v7188_v1  ;;  %v7223_v8 = vld [vmem:[%s6958_s5 + $0x38] sm:$0xff]  ;;  %v7228_v9 = vld [vmem:[%s6958_s5 + $0x30] sm:$0xff]  ;;  %v7233_v10 = vld [vmem:[%s6958_s5 + $0x28] sm:$0xff]  ;;  %s9400_s28 = sld [smem:[#allocation31_spill]] }
  0xa8   :  { %v7238_v11 = vld [vmem:[%s6958_s5 + $0x20] sm:$0xff]  ;;  %v7243_v12 = vld [vmem:[%s6958_s5 + $0x18] sm:$0xff]  ;;  %v7248_v13 = vld [vmem:[%s6958_s5 + $0x10] sm:$0xff]  ;;  %s9401_s7 = sld [smem:[#allocation32_spill]] }
  0xa9   :  { %282 = vmatpush.msra.mxu0 %v7193_v2  ;;  %320 = vmatpush.msra.mxu1 %v7193_v2  ;;  %v351_v14 = vld [vmem:[#allocation2 + $0x38] sm:$0xff]  ;;  %v350_v16 = vld [vmem:[#allocation2 + $0x30] sm:$0xff]  ;;  %v7253_v18 = vld [vmem:[%s6958_s5 + $0x8] sm:$0xff]  ;;  %s9402_s22 = sld [smem:[#allocation33_spill]] }
  0xaa   :  { %v312_v15 = vld [vmem:[#allocation2 + $0x18] sm:$0xff]  ;;  %v311_v17 = vld [vmem:[#allocation2 + $0x10] sm:$0xff]  ;;  %377 = vmatpush.msra.mxu2 %v351_v14  ;;  %v349_v19 = vld [vmem:[#allocation2 + $0x28] sm:$0xff]  ;;  %s9457_s19 = sld [smem:[#allocation34_spill]] }
  0xab   :  { %283 = vmatpush.msra.mxu0 %v7198_v3  ;;  %321 = vmatpush.msra.mxu1 %v7198_v3  ;;  %v310_v20 = vld [vmem:[#allocation2 + $0x8] sm:$0xff]  ;;  %v7258_v21 = vld [vmem:[%s6958_s5] sm:$0xff]  ;;  %v278_v26 = vld [vmem:[%s6963_s9 + $0x10] sm:$0xff]  ;;  %s9388_s5 = sld [smem:[#allocation24_spill]] }
  0xac   :  { %418 = vmatpush.msra.mxu3 %v312_v15  ;;  %378 = vmatpush.msra.mxu2 %v350_v16  ;;  %v276_v22 = vld [vmem:[%s6963_s9] sm:$0xff]  ;;  %v277_v24 = vld [vmem:[%s6963_s9 + $0x8] sm:$0xff]  ;;  %v6111_v27 = vld [vmem:[%s6963_s9 + $0x30] sm:$0xff]  ;;  %s9458_s25 = sld [smem:[#allocation35_spill]] }
  0xad   :  { %284 = vmatpush.msra.mxu0 %v7203_v4  ;;  %322 = vmatpush.msra.mxu1 %v7203_v4  ;;  %v6109_v23 = vld [vmem:[%s6963_s9 + $0x20] sm:$0xff]  ;;  %v6110_v25 = vld [vmem:[%s6963_s9 + $0x28] sm:$0xff]  ;;  %v279_v28 = vld [vmem:[%s6963_s9 + $0x18] sm:$0xff]  ;;  %s9459_s6 = sld [smem:[#allocation36_spill]] }
  0xae   :  { %419 = vmatpush.msra.mxu3 %v311_v17  ;;  %379 = vmatpush.msra.mxu2 %v349_v19  ;;  %v6112_v29 = vld [vmem:[%s6963_s9 + $0x38] sm:$0xff]  ;;  %v348_v30 = vld [vmem:[#allocation2 + $0x20] sm:$0xff]  ;;  %v6130_v39 = vld [vmem:[%s6963_s9 + $0x68] sm:$0xff]  ;;  %s9566_s26 = sld [smem:[#allocation37_spill]] }
  0xaf   :  { %285 = vmatpush.msra.mxu0 %v7208_v5  ;;  %323 = vmatpush.msra.mxu1 %v7208_v5  ;;  %v309_v31 = vld [vmem:[#allocation2] sm:$0xff]  ;;  %v6131_v42 = vld [vmem:[%s6963_s9 + $0x70] sm:$0xff]  ;;  %v6132_v44 = vld [vmem:[%s6963_s9 + $0x78] sm:$0xff] }
  0xb0   :  { %420 = vmatpush.msra.mxu3 %v310_v20  ;;  %380 = vmatpush.msra.mxu2 %v348_v30  ;;  %v6129_v36 = vld [vmem:[%s6963_s9 + $0x60] sm:$0xff]  ;;  %v6122_v45 = vld [vmem:[%s6963_s9 + $0x48] sm:$0xff]  ;;  %v6123_v47 = vld [vmem:[%s6963_s9 + $0x50] sm:$0xff] }
  0xb1   :  { %286 = vmatpush.msra.mxu0 %v7213_v6  ;;  %324 = vmatpush.msra.mxu1 %v7213_v6  ;;  %v6121_v43 = vld [vmem:[%s6963_s9 + $0x40] sm:$0xff]  ;;  %v6146_v48 = vld [vmem:[%s6963_s9 + $0xa8] sm:$0xff]  ;;  %v6124_v49 = vld [vmem:[%s6963_s9 + $0x58] sm:$0xff] }
  0xb2   :  { %421 = vmatpush.msra.mxu3 %v309_v31  ;;  %440 = vmatpush.msrb.mxu2 %v7185_v0  ;;  %v6145_v46 = vld [vmem:[%s6963_s9 + $0xa0] sm:$0xff]  ;;  %v6147_v50 = vld [vmem:[%s6963_s9 + $0xb0] sm:$0xff]  ;;  %v6148_v52 = vld [vmem:[%s6963_s9 + $0xb8] sm:$0xff] }
  0xb3   :  { %287 = vmatpush.msra.mxu0 %v7218_v7  ;;  %325 = vmatpush.msra.mxu1 %v7218_v7  ;;  %v6137_v51 = vld [vmem:[%s6963_s9 + $0x80] sm:$0xff]  ;;  %v6138_v53 = vld [vmem:[%s6963_s9 + $0x88] sm:$0xff]  ;;  %v6139_v55 = vld [vmem:[%s6963_s9 + $0x90] sm:$0xff] }
  0xb4   :  { %441 = vmatpush.msrb.mxu2 %v7188_v1  ;;  %v6161_v54 = vld [vmem:[%s6963_s9 + $0xe0] sm:$0xff]  ;;  %v6162_v56 = vld [vmem:[%s6963_s9 + $0xe8] sm:$0xff]  ;;  %v6140_v57 = vld [vmem:[%s6963_s9 + $0x98] sm:$0xff] }
  0xb5   :  { %288 = vmatpush.msra.mxu0 %v7223_v8  ;;  %326 = vmatpush.msra.mxu1 %v7223_v8  ;;  %v6163_v58 = vld [vmem:[%s6963_s9 + $0xf0] sm:$0xff]  ;;  %v6153_v59 = vld [vmem:[%s6963_s9 + $0xc0] sm:$0xff]  ;;  %v6164_v60 = vld [vmem:[%s6963_s9 + $0xf8] sm:$0xff] }
  0xb6   :  { %442 = vmatpush.msrb.mxu2 %v7193_v2  ;;  %v6154_v61 = vld [vmem:[%s6963_s9 + $0xc8] sm:$0xff]  ;;  %v6155_v62 = vld [vmem:[%s6963_s9 + $0xd0] sm:$0xff]  ;;  %v6156_v63 = vld [vmem:[%s6963_s9 + $0xd8] sm:$0xff]  ;;  %s9389_s9 = sld [smem:[#allocation23_spill]] }
  0xb7   :  { %289 = vmatpush.msra.mxu0 %v7228_v9  ;;  %327 = vmatpush.msra.mxu1 %v7228_v9  ;;  %v641_v15 = vld [vmem:[#allocation2 + $0x98] sm:$0xff]  ;;  %v640_v16 = vld [vmem:[#allocation2 + $0x90] sm:$0xff]  ;;  %v639_v17 = vld [vmem:[#allocation2 + $0x88] sm:$0xff] }
  0xb8   :  { %443 = vmatpush.msrb.mxu2 %v7198_v3  ;;  %v809_v31 = vld [vmem:[#allocation2 + $0xd8] sm:$0xff] }
  0xb9   :  { %290 = vmatpush.msra.mxu0 %v7233_v10  ;;  %328 = vmatpush.msra.mxu1 %v7233_v10 }
  0xba   :  { %444 = vmatpush.msrb.mxu2 %v7203_v4 }
  0xbb   :  { %291 = vmatpush.msra.mxu0 %v7238_v11  ;;  %329 = vmatpush.msra.mxu1 %v7238_v11 }
  0xbc   :  { %445 = vmatpush.msrb.mxu2 %v7208_v5 }
  0xbd   :  { %292 = vmatpush.msra.mxu0 %v7243_v12  ;;  %330 = vmatpush.msra.mxu1 %v7243_v12 }
  0xbe   :  { %446 = vmatpush.msrb.mxu2 %v7213_v6 }
  0xbf   :  { %293 = vmatpush.msra.mxu0 %v7248_v13  ;;  %331 = vmatpush.msra.mxu1 %v7248_v13 }
  0xc0   :  { %447 = vmatpush.msrb.mxu2 %v7218_v7 }
  0xc1   :  { %294 = vmatpush.msra.mxu0 %v7253_v18  ;;  %332 = vmatpush.msra.mxu1 %v7253_v18 }
  0xc2   :  { %448 = vmatpush.msrb.mxu2 %v7223_v8 }
  0xc3   :  { %295 = vmatpush.msra.mxu0 %v7258_v21  ;;  %333 = vmatpush.msra.mxu1 %v7258_v21 }
  0xc4   :  { %296 = vmatmul.f32.vlgmr.msra.gmra.mxu0 %v276_v22  ;;  %334 = vmatmul.f32.vlgmr.msra.gmra.mxu1 %v6109_v23  ;;  %v724_v22 = vld [vmem:[#allocation2 + $0xb0] sm:$0xff]  ;;  %v723_v23 = vld [vmem:[#allocation2 + $0xa8] sm:$0xff] }
  0xc5   :  { %524 = vmatpush.msrb.mxu0 %v7185_v0  ;;  %449 = vmatpush.msrb.mxu2 %v7228_v9 }
  0xc7   :  { %525 = vmatpush.msrb.mxu0 %v7188_v1  ;;  %450 = vmatpush.msrb.mxu2 %v7233_v10 }
  0xc9   :  { %526 = vmatpush.msrb.mxu0 %v7193_v2  ;;  %451 = vmatpush.msrb.mxu2 %v7238_v11 }
  0xcb   :  { %527 = vmatpush.msrb.mxu0 %v7198_v3  ;;  %452 = vmatpush.msrb.mxu2 %v7243_v12 }
  0xcc   :  { %299 = vmatmul.f32.gmra.mxu0 %v277_v24  ;;  %337 = vmatmul.f32.gmra.mxu1 %v6110_v25  ;;  %v722_v24 = vld [vmem:[#allocation2 + $0xa0] sm:$0xff] }
  0xcd   :  { %528 = vmatpush.msrb.mxu0 %v7203_v4  ;;  %453 = vmatpush.msrb.mxu2 %v7248_v13 }
  0xcf   :  { %529 = vmatpush.msrb.mxu0 %v7208_v5  ;;  %454 = vmatpush.msrb.mxu2 %v7253_v18 }
  0xd1   :  { %530 = vmatpush.msrb.mxu0 %v7213_v6  ;;  %455 = vmatpush.msrb.mxu2 %v7258_v21 }
  0xd3   :  { %531 = vmatpush.msrb.mxu0 %v7218_v7 }
  0xd4   :  { %302 = vmatmul.f32.gmra.mxu0 %v278_v26  ;;  %340 = vmatmul.f32.gmra.mxu1 %v6111_v27 }
  0xd5   :  { %532 = vmatpush.msrb.mxu0 %v7223_v8 }
  0xd7   :  { %533 = vmatpush.msrb.mxu0 %v7228_v9 }
  0xd9   :  { %534 = vmatpush.msrb.mxu0 %v7233_v10 }
  0xdb   :  { %535 = vmatpush.msrb.mxu0 %v7238_v11 }
  0xdc   :  { %305 = vmatmul.f32.gmra.mxu0 %v279_v28  ;;  %343 = vmatmul.f32.gmra.mxu1 %v6112_v29 }
  0xdd   :  { %536 = vmatpush.msrb.mxu0 %v7243_v12 }
  0xdf   :  { %537 = vmatpush.msrb.mxu0 %v7248_v13 }
  0xe1   :  { %538 = vmatpush.msrb.mxu0 %v7253_v18 }
  0xe3   :  { %539 = vmatpush.msrb.mxu0 %v7258_v21 }
  0xe4   :  { %540 = vmatmul.f32.vlgmr.msrb.gmra.mxu0 %v6129_v36 }
  0xe5   :  { %692 = vmatpush.msra.mxu0 %v7185_v0 }
  0xe7   :  { %693 = vmatpush.msra.mxu0 %v7188_v1 }
  0xe9   :  { %694 = vmatpush.msra.mxu0 %v7193_v2 }
  0xeb   :  { %695 = vmatpush.msra.mxu0 %v7198_v3 }
  0xec   :  { %543 = vmatmul.f32.gmra.mxu0 %v6130_v39  ;;  %v891_v39 = vld [vmem:[#allocation2 + $0xe8] sm:$0xff] }
  0xed   :  { %696 = vmatpush.msra.mxu0 %v7203_v4 }
  0xef   :  { %697 = vmatpush.msra.mxu0 %v7208_v5 }
  0xf1   :  { %698 = vmatpush.msra.mxu0 %v7213_v6 }
  0xf3   :  { %699 = vmatpush.msra.mxu0 %v7218_v7 }
  0xf4   :  { %546 = vmatmul.f32.gmra.mxu0 %v6131_v42 }
  0xf5   :  { %700 = vmatpush.msra.mxu0 %v7223_v8 }
  0xf7   :  { %701 = vmatpush.msra.mxu0 %v7228_v9 }
  0xf9   :  { %702 = vmatpush.msra.mxu0 %v7233_v10 }
  0xfb   :  { %703 = vmatpush.msra.mxu0 %v7238_v11 }
  0xfc   :  { %549 = vmatmul.f32.gmra.mxu0 %v6132_v44 }
  0xfd   :  { %704 = vmatpush.msra.mxu0 %v7243_v12 }
  0xff   :  { %705 = vmatpush.msra.mxu0 %v7248_v13 }
 0x101   :  { %706 = vmatpush.msra.mxu0 %v7253_v18 }
 0x103   :  { %707 = vmatpush.msra.mxu0 %v7258_v21 }
 0x104   :  { %708 = vmatmul.f32.vlgmr.msra.gmra.mxu0 %v6145_v46 }
 0x105   :  { %860 = vmatpush.msrb.mxu0 %v7185_v0 }
 0x107   :  { %861 = vmatpush.msrb.mxu0 %v7188_v1 }
 0x109   :  { %862 = vmatpush.msrb.mxu0 %v7193_v2 }
 0x10b   :  { %863 = vmatpush.msrb.mxu0 %v7198_v3 }
 0x10c   :  { %711 = vmatmul.f32.gmra.mxu0 %v6146_v48 }
 0x10d   :  { %864 = vmatpush.msrb.mxu0 %v7203_v4 }
 0x10f   :  { %865 = vmatpush.msrb.mxu0 %v7208_v5 }
 0x111   :  { %866 = vmatpush.msrb.mxu0 %v7213_v6 }
 0x113   :  { %867 = vmatpush.msrb.mxu0 %v7218_v7 }
 0x114   :  { %714 = vmatmul.f32.gmra.mxu0 %v6147_v50 }
 0x115   :  { %868 = vmatpush.msrb.mxu0 %v7223_v8 }
 0x117   :  { %869 = vmatpush.msrb.mxu0 %v7228_v9 }
 0x119   :  { %870 = vmatpush.msrb.mxu0 %v7233_v10 }
 0x11b   :  { %871 = vmatpush.msrb.mxu0 %v7238_v11 }
 0x11c   :  { %717 = vmatmul.f32.gmra.mxu0 %v6148_v52 }
 0x11d   :  { %872 = vmatpush.msrb.mxu0 %v7243_v12 }
 0x11f   :  { %873 = vmatpush.msrb.mxu0 %v7248_v13 }
 0x121   :  { %874 = vmatpush.msrb.mxu0 %v7253_v18 }
 0x123   :  { %875 = vmatpush.msrb.mxu0 %v7258_v21 }
 0x124   :  { %876 = vmatmul.f32.vlgmr.msrb.gmra.mxu0 %v6161_v54 }
 0x12c   :  { %879 = vmatmul.f32.gmra.mxu0 %v6162_v56 }
 0x134   :  { %882 = vmatmul.f32.gmra.mxu0 %v6163_v58 }
 0x13c   :  { %885 = vmatmul.f32.gmra.mxu0 %v6164_v60 }
 0x141   :  { %v297_v32 = vpop.f32.mrf.mxu0  ;;  %v335_v33 = vpop.f32.mrf.mxu1 }
 0x142   :  { %6113 = vmatmul.msk.f32.vlgmr.msra.gmra.mxu2 %vm352_vm0, %v335_v33  ;;  %6117 = vmatmul.msk.f32.vlgmr.msra.gmra.mxu3 %vm352_vm0, %v297_v32  ;;  %v808_v32 = vld [vmem:[#allocation2 + $0xd0] sm:$0xff]  ;;  %v807_v33 = vld [vmem:[#allocation2 + $0xc8] sm:$0xff] }
 0x143   :  { %608 = vmatpush.msra.mxu2 %v7185_v0 }
 0x145   :  { %609 = vmatpush.msra.mxu2 %v7188_v1 }
 0x147   :  { %610 = vmatpush.msra.mxu2 %v7193_v2 }
 0x149   :  { %v300_v34 = vpop.f32.mrf.mxu0  ;;  %v338_v35 = vpop.f32.mrf.mxu1  ;;  %611 = vmatpush.msra.mxu2 %v7198_v3 }
 0x14a   :  { %6114 = vmatmul.msk.f32.gmra.mxu2 %vm352_vm0, %v338_v35  ;;  %6118 = vmatmul.msk.f32.gmra.mxu3 %vm352_vm0, %v300_v34  ;;  %v806_v34 = vld [vmem:[#allocation2 + $0xc0] sm:$0xff] }
 0x14b   :  { %612 = vmatpush.msra.mxu2 %v7203_v4 }
 0x14d   :  { %613 = vmatpush.msra.mxu2 %v7208_v5 }
 0x14f   :  { %614 = vmatpush.msra.mxu2 %v7213_v6 }
 0x151   :  { %v303_v37 = vpop.f32.mrf.mxu0  ;;  %v341_v38 = vpop.f32.mrf.mxu1  ;;  %615 = vmatpush.msra.mxu2 %v7218_v7 }
 0x152   :  { %6115 = vmatmul.msk.f32.gmra.mxu2 %vm352_vm0, %v341_v38  ;;  %6119 = vmatmul.msk.f32.gmra.mxu3 %vm352_vm0, %v303_v37  ;;  %v893_v37 = vld [vmem:[#allocation2 + $0xf8] sm:$0xff]  ;;  %v892_v38 = vld [vmem:[#allocation2 + $0xf0] sm:$0xff] }
 0x153   :  { %616 = vmatpush.msra.mxu2 %v7223_v8 }
 0x155   :  { %617 = vmatpush.msra.mxu2 %v7228_v9 }
 0x157   :  { %618 = vmatpush.msra.mxu2 %v7233_v10 }
 0x159   :  { %v306_v40 = vpop.f32.mrf.mxu0  ;;  %v344_v41 = vpop.f32.mrf.mxu1  ;;  %619 = vmatpush.msra.mxu2 %v7238_v11 }
 0x15a   :  { %6116 = vmatmul.msk.f32.gmra.mxu2 %vm352_vm0, %v344_v41  ;;  %6120 = vmatmul.msk.f32.gmra.mxu3 %vm352_vm0, %v306_v40  ;;  %v890_v40 = vld [vmem:[#allocation2 + $0xe0] sm:$0xff] }
 0x15b   :  { %620 = vmatpush.msra.mxu2 %v7243_v12 }
 0x15d   :  { %621 = vmatpush.msra.mxu2 %v7248_v13 }
 0x15f   :  { %622 = vmatpush.msra.mxu2 %v7253_v18 }
 0x161   :  { %623 = vmatpush.msra.mxu2 %v7258_v21 }
 0x162   :  { %456 = vmatmul.f32.vlgmr.msrb.gmra.mxu2 %v6121_v43 }
 0x163   :  { %776 = vmatpush.msrb.mxu2 %v7185_v0  ;;  %v473_v0 = vld [vmem:[#allocation2 + $0x58] sm:$0xff] }
 0x164   :  { %498 = vmatpush.msrb.mxu3 %v473_v0 }
 0x165   :  { %777 = vmatpush.msrb.mxu2 %v7188_v1  ;;  %v472_v1 = vld [vmem:[#allocation2 + $0x50] sm:$0xff] }
 0x166   :  { %499 = vmatpush.msrb.mxu3 %v472_v1 }
 0x167   :  { %778 = vmatpush.msrb.mxu2 %v7193_v2  ;;  %v471_v2 = vld [vmem:[#allocation2 + $0x48] sm:$0xff] }
 0x168   :  { %500 = vmatpush.msrb.mxu3 %v471_v2 }
 0x169   :  { %779 = vmatpush.msrb.mxu2 %v7198_v3  ;;  %v470_v3 = vld [vmem:[#allocation2 + $0x40] sm:$0xff] }
 0x16a   :  { %459 = vmatmul.f32.gmra.mxu2 %v6122_v45  ;;  %501 = vmatpush.msrb.mxu3 %v470_v3 }
 0x16b   :  { %780 = vmatpush.msrb.mxu2 %v7203_v4 }
 0x16c   :  { %666 = vmatpush.msra.mxu3 %v641_v15 }
 0x16d   :  { %781 = vmatpush.msrb.mxu2 %v7208_v5  ;;  %v557_v5 = vld [vmem:[#allocation2 + $0x78] sm:$0xff] }
 0x16e   :  { %582 = vmatpush.msrb.mxu1 %v557_v5  ;;  %667 = vmatpush.msra.mxu3 %v640_v16 }
 0x16f   :  { %782 = vmatpush.msrb.mxu2 %v7213_v6  ;;  %v556_v6 = vld [vmem:[#allocation2 + $0x70] sm:$0xff] }
 0x170   :  { %583 = vmatpush.msrb.mxu1 %v556_v6  ;;  %668 = vmatpush.msra.mxu3 %v639_v17 }
 0x171   :  { %783 = vmatpush.msrb.mxu2 %v7218_v7  ;;  %v555_v7 = vld [vmem:[#allocation2 + $0x68] sm:$0xff] }
 0x172   :  { %462 = vmatmul.f32.gmra.mxu2 %v6123_v47  ;;  %584 = vmatpush.msrb.mxu1 %v555_v7 }
 0x173   :  { %784 = vmatpush.msrb.mxu2 %v7223_v8  ;;  %v554_v8 = vld [vmem:[#allocation2 + $0x60] sm:$0xff] }
 0x174   :  { %585 = vmatpush.msrb.mxu1 %v554_v8 }
 0x175   :  { %785 = vmatpush.msrb.mxu2 %v7228_v9 }
 0x177   :  { %786 = vmatpush.msrb.mxu2 %v7233_v10  ;;  %v541_v10 = vpop.f32.mrf.mxu0 }
 0x178   :  { %6133 = vmatmul.msk.f32.vlgmr.msrb.gmra.mxu1 %vm352_vm0, %v541_v10 }
 0x179   :  { %787 = vmatpush.msrb.mxu2 %v7238_v11 }
 0x17a   :  { %465 = vmatmul.f32.gmra.mxu2 %v6124_v49 }
 0x17b   :  { %788 = vmatpush.msrb.mxu2 %v7243_v12 }
 0x17d   :  { %789 = vmatpush.msrb.mxu2 %v7248_v13 }
 0x17f   :  { %790 = vmatpush.msrb.mxu2 %v7253_v18  ;;  %v544_v12 = vpop.f32.mrf.mxu0  ;;  %v638_v18 = vld [vmem:[#allocation2 + $0x80] sm:$0xff] }
 0x180   :  { %6134 = vmatmul.msk.f32.gmra.mxu1 %vm352_vm0, %v544_v12  ;;  %669 = vmatpush.msra.mxu3 %v638_v18 }
 0x181   :  { %791 = vmatpush.msrb.mxu2 %v7258_v21  ;;  %v725_v21 = vld [vmem:[#allocation2 + $0xb8] sm:$0xff] }
 0x182   :  { %624 = vmatmul.f32.vlgmr.msra.gmra.mxu2 %v6137_v51  ;;  %750 = vmatpush.msra.mxu1 %v725_v21 }
 0x184   :  { %751 = vmatpush.msra.mxu1 %v724_v22 }
 0x186   :  { %752 = vmatpush.msra.mxu1 %v723_v23 }
 0x187   :  { %v547_v14 = vpop.f32.mrf.mxu0 }
 0x188   :  { %6135 = vmatmul.msk.f32.gmra.mxu1 %vm352_vm0, %v547_v14 }
 0x189   :  { %753 = vmatpush.msra.mxu1 %v722_v24 }
 0x18a   :  { %627 = vmatmul.f32.gmra.mxu2 %v6138_v53 }
 0x18b   :  { %918 = vmatpush.msrb.mxu1 %v893_v37 }
 0x18d   :  { %919 = vmatpush.msrb.mxu1 %v892_v38 }
 0x18f   :  { %v550_v20 = vpop.f32.mrf.mxu0  ;;  %920 = vmatpush.msrb.mxu1 %v891_v39 }
 0x190   :  { %6136 = vmatmul.msk.f32.gmra.mxu1 %vm352_vm0, %v550_v20 }
 0x191   :  { %921 = vmatpush.msrb.mxu1 %v890_v40 }
 0x192   :  { %630 = vmatmul.f32.gmra.mxu2 %v6139_v55 }
 0x197   :  { %v709_v26 = vpop.f32.mrf.mxu0 }
 0x198   :  { %6149 = vmatmul.msk.f32.vlgmr.msra.gmra.mxu1 %vm352_vm0, %v709_v26 }
 0x19a   :  { %633 = vmatmul.f32.gmra.mxu2 %v6140_v57 }
 0x19f   :  { %v712_v28 = vpop.f32.mrf.mxu0 }
 0x1a0   :  { %6150 = vmatmul.msk.f32.gmra.mxu1 %vm352_vm0, %v712_v28 }
 0x1a2   :  { %792 = vmatmul.f32.vlgmr.msrb.gmra.mxu2 %v6153_v59 }
 0x1a7   :  { %v715_v30 = vpop.f32.mrf.mxu0 }
 0x1a8   :  { %6151 = vmatmul.msk.f32.gmra.mxu1 %vm352_vm0, %v715_v30 }
 0x1aa   :  { %795 = vmatmul.f32.gmra.mxu2 %v6154_v61 }
 0x1af   :  { %v718_v36 = vpop.f32.mrf.mxu0 }
 0x1b0   :  { %6152 = vmatmul.msk.f32.gmra.mxu1 %vm352_vm0, %v718_v36 }
 0x1b2   :  { %798 = vmatmul.f32.gmra.mxu2 %v6155_v62 }
 0x1b7   :  { %v877_v42 = vpop.f32.mrf.mxu0 }
 0x1b8   :  { %6165 = vmatmul.msk.f32.vlgmr.msrb.gmra.mxu1 %vm352_vm0, %v877_v42 }
 0x1ba   :  { %801 = vmatmul.f32.gmra.mxu2 %v6156_v63 }
 0x1bf   :  { %v880_v44 = vpop.f32.mrf.mxu0 }
 0x1c0   :  { %6166 = vmatmul.msk.f32.gmra.mxu1 %vm352_vm0, %v880_v44 }
 0x1c5   :  { %v7400_v4 = vpop.f32.mrf.mxu2  ;;  %v423_v52 = vpop.f32.mrf.mxu3 }
 0x1c7   :  { %v883_v46 = vpop.f32.mrf.mxu0 }
 0x1c8   :  { %6167 = vmatmul.msk.f32.gmra.mxu1 %vm352_vm0, %v883_v46 }
 0x1cd   :  { %v7402_v9 = vpop.f32.mrf.mxu2  ;;  %v426_v53 = vpop.f32.mrf.mxu3 }
 0x1ce   :  { %v427_v17 = vadd.f32 %v426_v53, %v7402_v9 }
 0x1cf   :  { %v886_v48 = vpop.f32.mrf.mxu0 }
 0x1d0   :  { %6168 = vmatmul.msk.f32.gmra.mxu1 %vm352_vm0, %v886_v48 }
 0x1d5   :  { %v7405_v11 = vpop.f32.mrf.mxu2  ;;  %v429_v55 = vpop.f32.mrf.mxu3 }
 0x1d6   :  { %v430_v15 = vadd.f32 %v429_v55, %v7405_v11  ;;  %v952_v55 = vld [vmem:[%s6973_s17 + $0x8] sm:$0xff] }
 0x1dd   :  { %v7408_v13 = vpop.f32.mrf.mxu2  ;;  %v432_v57 = vpop.f32.mrf.mxu3 }
 0x1de   :  { %v433_v20 = vadd.f32 %v432_v57, %v7408_v13  ;;  %v6189_v57 = vld [vmem:[%s6978_s21 + $0xf0] sm:$0xff] }
 0x1e5   :  { %v457_v19 = vpop.f32.mrf.mxu2 }
 0x1e6   :  { %6125 = vmatmul.msk.f32.vlgmr.msrb.gmra.mxu3 %vm352_vm0, %v457_v19  ;;  %v424_v19 = vadd.f32 %v423_v52, %v7400_v4  ;;  %v6171_v52 = vld [vmem:[%s6973_s17 + $0x10] sm:$0xff] }
 0x1e7   :  { %834 = vmatpush.msrb.mxu3 %v809_v31 }
 0x1e9   :  { %835 = vmatpush.msrb.mxu3 %v808_v32 }
 0x1eb   :  { %836 = vmatpush.msrb.mxu3 %v807_v33 }
 0x1ed   :  { %v460_v25 = vpop.f32.mrf.mxu2  ;;  %837 = vmatpush.msrb.mxu3 %v806_v34 }
 0x1ee   :  { %6126 = vmatmul.msk.f32.gmra.mxu3 %vm352_vm0, %v460_v25 }
 0x1f5   :  { %v463_v27 = vpop.f32.mrf.mxu2  ;;  %v587_v54 = vpop.f32.mrf.mxu1 }
 0x1f6   :  { %6127 = vmatmul.msk.f32.gmra.mxu3 %vm352_vm0, %v463_v27 }
 0x1fd   :  { %v466_v29 = vpop.f32.mrf.mxu2  ;;  %v590_v56 = vpop.f32.mrf.mxu1 }
 0x1fe   :  { %6128 = vmatmul.msk.f32.gmra.mxu3 %vm352_vm0, %v466_v29 }
 0x205   :  { %v625_v35 = vpop.f32.mrf.mxu2  ;;  %v593_v58 = vpop.f32.mrf.mxu1 }
 0x206   :  { %6141 = vmatmul.msk.f32.vlgmr.msra.gmra.mxu3 %vm352_vm0, %v625_v35 }
 0x20d   :  { %v628_v41 = vpop.f32.mrf.mxu2  ;;  %v596_v61 = vpop.f32.mrf.mxu1 }
 0x20e   :  { %6142 = vmatmul.msk.f32.gmra.mxu3 %vm352_vm0, %v628_v41 }
 0x215   :  { %v631_v43 = vpop.f32.mrf.mxu2  ;;  %v755_v63 = vpop.f32.mrf.mxu1 }
 0x216   :  { %6143 = vmatmul.msk.f32.gmra.mxu3 %vm352_vm0, %v631_v43 }
 0x21d   :  { %v634_v45 = vpop.f32.mrf.mxu2  ;;  %v758_v1 = vpop.f32.mrf.mxu1 }
 0x21e   :  { %6144 = vmatmul.msk.f32.gmra.mxu3 %vm352_vm0, %v634_v45 }
 0x225   :  { %v793_v47 = vpop.f32.mrf.mxu2  ;;  %v761_v3 = vpop.f32.mrf.mxu1 }
 0x226   :  { %6157 = vmatmul.msk.f32.vlgmr.msrb.gmra.mxu3 %vm352_vm0, %v793_v47 }
 0x22d   :  { %v796_v49 = vpop.f32.mrf.mxu2  ;;  %v764_v7 = vpop.f32.mrf.mxu1 }
 0x22e   :  { %6158 = vmatmul.msk.f32.gmra.mxu3 %vm352_vm0, %v796_v49 }
 0x235   :  { %v799_v50 = vpop.f32.mrf.mxu2  ;;  %v923_v10 = vpop.f32.mrf.mxu1 }
 0x236   :  { %6159 = vmatmul.msk.f32.gmra.mxu3 %vm352_vm0, %v799_v50 }
 0x23d   :  { %v802_v51 = vpop.f32.mrf.mxu2  ;;  %v926_v14 = vpop.f32.mrf.mxu1 }
 0x23e   :  { %6160 = vmatmul.msk.f32.gmra.mxu3 %vm352_vm0, %v802_v51  ;;  %v951_v51 = vld [vmem:[%s6973_s17] sm:$0xff] }
 0x245   :  { %v929_v25 = vpop.f32.mrf.mxu1 }
 0x24d   :  { %v932_v37 = vpop.f32.mrf.mxu1 }
 0x269   :  { %v503_v59 = vpop.f32.mrf.mxu3 }
 0x26a   :  { %v515_v22 = vadd.f32 %v503_v59, %v424_v19  ;;  %v997_v59 = vld [vmem:[%s6978_s21 + $0x78] sm:$0xff] }
 0x26b   :  { %1070 = vmatpush.msra.mxu1 %v997_v59  ;;  %v6182_v19 = vld [vmem:[%s6978_s21 + $0xb8] sm:$0xff] }
 0x26c   :  { %v599_v29 = vadd.f32 %v587_v54, %v515_v22  ;;  %v6172_v54 = vld [vmem:[%s6973_s17 + $0x18] sm:$0xff]  ;;  %v6181_v22 = vld [vmem:[%s6978_s21 + $0xb0] sm:$0xff] }
 0x271   :  { %v506_v60 = vpop.f32.mrf.mxu3 }
 0x272   :  { %v516_v21 = vadd.f32 %v506_v60, %v427_v17  ;;  %v996_v60 = vld [vmem:[%s6978_s21 + $0x70] sm:$0xff]  ;;  %v6192_v17 = vld [vmem:[%s6973_s17 + $0x28] sm:$0xff] }
 0x273   :  { %1071 = vmatpush.msra.mxu1 %v996_v60 }
 0x274   :  { %v600_v26 = vadd.f32 %v590_v56, %v516_v21  ;;  %v6190_v56 = vld [vmem:[%s6978_s21 + $0xf8] sm:$0xff]  ;;  %v990_v21 = vld [vmem:[%s6978_s21 + $0x40] sm:$0xff] }
 0x275   :  { %1047 = vmatpush.msra.mxu0 %v6190_v56  ;;  %v6218_v56 = vld [vmem:[%s6978_s21 + $0x198] sm:$0xff] }
 0x277   :  { %1048 = vmatpush.msra.mxu0 %v6189_v57  ;;  %v6217_v57 = vld [vmem:[%s6978_s21 + $0x190] sm:$0xff] }
 0x279   :  { %v509_v62 = vpop.f32.mrf.mxu3 }
 0x27a   :  { %v517_v18 = vadd.f32 %v509_v62, %v430_v15  ;;  %v6187_v62 = vld [vmem:[%s6978_s21 + $0xe0] sm:$0xff] }
 0x27b   :  { %v6183_v15 = vld [vmem:[%s6978_s21 + $0xc0] sm:$0xff] }
 0x27c   :  { %v601_v23 = vadd.f32 %v593_v58, %v517_v18  ;;  %v6188_v58 = vld [vmem:[%s6978_s21 + $0xe8] sm:$0xff] }
 0x27d   :  { %1049 = vmatpush.msra.mxu0 %v6188_v58  ;;  %v991_v18 = vld [vmem:[%s6978_s21 + $0x48] sm:$0xff] }
 0x27e   :  { %v6216_v58 = vld [vmem:[%s6978_s21 + $0x188] sm:$0xff] }
 0x27f   :  { %1050 = vmatpush.msra.mxu0 %v6187_v62 }
 0x281   :  { %v512_v0 = vpop.f32.mrf.mxu3 }
 0x282   :  { %v518_v24 = vadd.f32 %v512_v0, %v433_v20  ;;  %v6191_v0 = vld [vmem:[%s6973_s17 + $0x20] sm:$0xff]  ;;  %v6204_v20 = vld [vmem:[%s6978_s21 + $0x148] sm:$0xff] }
 0x284   :  { %v602_v30 = vadd.f32 %v596_v61, %v518_v24  ;;  %v6210_v61 = vld [vmem:[%s6978_s21 + $0x178] sm:$0xff]  ;;  %v6180_v24 = vld [vmem:[%s6978_s21 + $0xa8] sm:$0xff] }
 0x289   :  { %v671_v2 = vpop.f32.mrf.mxu3 }
 0x28a   :  { %v683_v11 = vadd.f32 %v671_v2, %v599_v29  ;;  %v6186_v2 = vld [vmem:[%s6978_s21 + $0xd8] sm:$0xff]  ;;  %v6176_v29 = vld [vmem:[%s6978_s21 + $0x88] sm:$0xff] }
 0x28b   :  { %1051 = vmatpush.msra.mxu0 %v6186_v2 }
 0x28c   :  { %v767_v35 = vadd.f32 %v755_v63, %v683_v11  ;;  %v6209_v63 = vld [vmem:[%s6978_s21 + $0x170] sm:$0xff]  ;;  %v987_v11 = vld [vmem:[%s6978_s21 + $0x28] sm:$0xff] }
 0x291   :  { %v674_v5 = vpop.f32.mrf.mxu3 }
 0x292   :  { %v684_v31 = vadd.f32 %v674_v5, %v600_v26  ;;  %v994_v5 = vld [vmem:[%s6978_s21 + $0x60] sm:$0xff]  ;;  %v6211_v26 = vld [vmem:[%s6973_s17 + $0x30] sm:$0xff] }
 0x294   :  { %v768_v9 = vadd.f32 %v758_v1, %v684_v31  ;;  %v995_v1 = vld [vmem:[%s6978_s21 + $0x68] sm:$0xff]  ;;  %v988_v31 = vld [vmem:[%s6978_s21 + $0x30] sm:$0xff] }
 0x295   :  { %1072 = vmatpush.msra.mxu1 %v995_v1 }
 0x297   :  { %1073 = vmatpush.msra.mxu1 %v994_v5  ;;  %v1263_v5 = vld [vmem:[#allocation5 + $0x78] sm:$0xff] }
 0x299   :  { %v677_v6 = vpop.f32.mrf.mxu3 }
 0x29a   :  { %v685_v27 = vadd.f32 %v677_v6, %v601_v23  ;;  %v6185_v6 = vld [vmem:[%s6978_s21 + $0xd0] sm:$0xff]  ;;  %v989_v23 = vld [vmem:[%s6978_s21 + $0x38] sm:$0xff] }
 0x29b   :  { %1052 = vmatpush.msra.mxu0 %v6185_v6  ;;  %v1262_v6 = vld [vmem:[#allocation5 + $0x70] sm:$0xff] }
 0x29c   :  { %v769_v32 = vadd.f32 %v761_v3, %v685_v27  ;;  %v6208_v3 = vld [vmem:[%s6978_s21 + $0x168] sm:$0xff]  ;;  %v6178_v27 = vld [vmem:[%s6978_s21 + $0x98] sm:$0xff] }
 0x2a1   :  { %v680_v8 = vpop.f32.mrf.mxu3 }
 0x2a2   :  { %v686_v33 = vadd.f32 %v680_v8, %v602_v30  ;;  %v993_v8 = vld [vmem:[%s6978_s21 + $0x58] sm:$0xff] }
 0x2a3   :  { %1074 = vmatpush.msra.mxu1 %v993_v8  ;;  %v6212_v30 = vld [vmem:[%s6973_s17 + $0x38] sm:$0xff]  ;;  %v1260_v8 = vld [vmem:[#allocation5 + $0x60] sm:$0xff]  ;;  %s9390_s17 = sld [smem:[#allocation28_spill]] }
 0x2a4   :  { %v770_v4 = vadd.f32 %v764_v7, %v686_v33  ;;  %v6207_v7 = vld [vmem:[%s6978_s21 + $0x160] sm:$0xff]  ;;  %v985_v33 = vld [vmem:[%s6978_s21 + $0x18] sm:$0xff] }
 0x2a9   :  { %v839_v12 = vpop.f32.mrf.mxu3 }
 0x2aa   :  { %v851_v38 = vadd.f32 %v839_v12, %v767_v35  ;;  %v6206_v12 = vld [vmem:[%s6978_s21 + $0x158] sm:$0xff]  ;;  %v6203_v35 = vld [vmem:[%s6978_s21 + $0x140] sm:$0xff] }
 0x2ac   :  { %v935_v43 = vadd.f32 %v923_v10, %v851_v38  ;;  %v6184_v10 = vld [vmem:[%s6978_s21 + $0xc8] sm:$0xff]  ;;  %v6201_v38 = vld [vmem:[%s6978_s21 + $0x130] sm:$0xff] }
 0x2ad   :  { %1053 = vmatpush.msra.mxu0 %v6184_v10  ;;  %v1259_v10 = vld [vmem:[#allocation5 + $0x58] sm:$0xff] }
 0x2ae   :  { %v943_v48 = vmul.f32 0.2, %v935_v43  ;;  %vm939_vm4 = vcmp.gt.f32.partialorder %v935_v43, 0.0 }
 0x2af   :  { %1054 = vmatpush.msra.mxu0 %v6183_v15  ;;  %v1256_v15 = vld [vmem:[#allocation5 + $0x40] sm:$0xff] }
 0x2b0   :  { %v947_v53 = vsel %vm939_vm4, %v935_v43, %v943_v48  ;;  %v6227_v43 = vld [vmem:[%s6978_s21 + $0x1e0] sm:$0xff]  ;;  %v6196_v48 = vld [vmem:[%s6978_s21 + $0x108] sm:$0xff]  ;;  %vm1958_vm4 = vcmask 1041408  }
 0x2b1   :  { %v842_v16 = vpop.f32.mrf.mxu3  ;;  %1055 = vmatpush.msra.mxu0 %v6182_v19 }
 0x2b2   :  { %v852_v36 = vadd.f32 %v842_v16, %v768_v9  ;;  %v6205_v16 = vld [vmem:[%s6978_s21 + $0x150] sm:$0xff] }
 0x2b3   :  { %1056 = vmatpush.msra.mxu0 %v6181_v22  ;;  %v984_v9 = vld [vmem:[%s6978_s21 + $0x10] sm:$0xff] }
 0x2b4   :  { %v936_v41 = vadd.f32 %v926_v14, %v852_v36  ;;  %v992_v14 = vld [vmem:[%s6978_s21 + $0x50] sm:$0xff]  ;;  %v6202_v36 = vld [vmem:[%s6978_s21 + $0x138] sm:$0xff] }
 0x2b5   :  { %1075 = vmatpush.msra.mxu1 %v992_v14  ;;  %1057 = vmatpush.msra.mxu0 %v6180_v24  ;;  %v1257_v14 = vld [vmem:[#allocation5 + $0x48] sm:$0xff]  ;;  %v1250_v22 = vld [vmem:[#allocation5 + $0x10] sm:$0xff]  ;;  %v1248_v24 = vld [vmem:[#allocation5] sm:$0xff] }
 0x2b6   :  { %v944_v46 = vmul.f32 0.2, %v936_v41  ;;  %vm940_vm3 = vcmp.gt.f32.partialorder %v936_v41, 0.0 }
 0x2b7   :  { %1076 = vmatpush.msra.mxu1 %v991_v18  ;;  %v1253_v18 = vld [vmem:[#allocation5 + $0x28] sm:$0xff] }
 0x2b8   :  { %v948_v50 = vsel %vm940_vm3, %v936_v41, %v944_v46  ;;  %v6200_v41 = vld [vmem:[%s6978_s21 + $0x128] sm:$0xff]  ;;  %v6197_v46 = vld [vmem:[%s6978_s21 + $0x110] sm:$0xff] }
 0x2b9   :  { %v845_v28 = vpop.f32.mrf.mxu3  ;;  %1077 = vmatpush.msra.mxu1 %v990_v21  ;;  %v1251_v21 = vld [vmem:[#allocation5 + $0x18] sm:$0xff] }
 0x2ba   :  { %v853_v34 = vadd.f32 %v845_v28, %v769_v32  ;;  %v6177_v28 = vld [vmem:[%s6978_s21 + $0x90] sm:$0xff]  ;;  %v986_v32 = vld [vmem:[%s6978_s21 + $0x20] sm:$0xff] }
 0x2bb   :  { %1078 = vmatpush.msra.mxu1 %v989_v23  ;;  %v1249_v23 = vld [vmem:[#allocation5 + $0x8] sm:$0xff] }
 0x2bc   :  { %v937_v39 = vadd.f32 %v929_v25, %v853_v34  ;;  %v6179_v25 = vld [vmem:[%s6978_s21 + $0xa0] sm:$0xff]  ;;  %v983_v34 = vld [vmem:[%s6978_s21 + $0x8] sm:$0xff] }
 0x2bd   :  { %1058 = vmatpush.msra.mxu0 %v6179_v25  ;;  %1079 = vmatpush.msra.mxu1 %v988_v31 }
 0x2be   :  { %v945_v44 = vmul.f32 0.2, %v937_v39  ;;  %vm941_vm2 = vcmp.gt.f32.partialorder %v937_v39, 0.0 }
 0x2bf   :  { %1059 = vmatpush.msra.mxu0 %v6178_v27  ;;  %1080 = vmatpush.msra.mxu1 %v987_v11 }
 0x2c0   :  { %v949_v49 = vsel %vm941_vm2, %v937_v39, %v945_v44  ;;  %v982_v39 = vld [vmem:[%s6978_s21] sm:$0xff]  ;;  %v6198_v44 = vld [vmem:[%s6978_s21 + $0x118] sm:$0xff] }
 0x2c1   :  { %v848_v13 = vpop.f32.mrf.mxu3  ;;  %1060 = vmatpush.msra.mxu0 %v6177_v28  ;;  %1081 = vmatpush.msra.mxu1 %v986_v32 }
 0x2c2   :  { %v854_v40 = vadd.f32 %v848_v13, %v770_v4  ;;  %v6175_v4 = vld [vmem:[%s6978_s21 + $0x80] sm:$0xff]  ;;  %v6230_v13 = vld [vmem:[%s6978_s21 + $0x1f8] sm:$0xff] }
 0x2c3   :  { %1061 = vmatpush.msra.mxu0 %v6176_v29  ;;  %1082 = vmatpush.msra.mxu1 %v985_v33 }
 0x2c4   :  { %v938_v42 = vadd.f32 %v932_v37, %v854_v40  ;;  %v6229_v37 = vld [vmem:[%s6978_s21 + $0x1f0] sm:$0xff]  ;;  %v6228_v40 = vld [vmem:[%s6978_s21 + $0x1e8] sm:$0xff] }
 0x2c5   :  { %1083 = vmatpush.msra.mxu1 %v984_v9  ;;  %1062 = vmatpush.msra.mxu0 %v6175_v4 }
 0x2c6   :  { %v946_v45 = vmul.f32 0.2, %v938_v42  ;;  %vm942_vm1 = vcmp.gt.f32.partialorder %v938_v42, 0.0 }
 0x2c7   :  { %1084 = vmatpush.msra.mxu1 %v983_v34  ;;  %1216 = vmatpush.msrb.mxu0 %v6230_v13 }
 0x2c8   :  { %v950_v47 = vsel %vm942_vm1, %v938_v42, %v946_v45  ;;  %v6199_v42 = vld [vmem:[%s6978_s21 + $0x120] sm:$0xff]  ;;  %v6226_v45 = vld [vmem:[%s6978_s21 + $0x1d8] sm:$0xff] }
 0x2c9   :  { %971 = vmatpush.msra.mxu2 %v950_v47  ;;  %1019 = vmatpush.msra.mxu3 %v950_v47 }
 0x2ca   :  { %1085 = vmatpush.msra.mxu1 %v982_v39  ;;  %1217 = vmatpush.msrb.mxu0 %v6229_v37 }
 0x2cb   :  { %972 = vmatpush.msra.mxu2 %v949_v49  ;;  %1020 = vmatpush.msra.mxu3 %v949_v49 }
 0x2cc   :  { %1218 = vmatpush.msrb.mxu0 %v6228_v40  ;;  %1264 = vmatpush.msrb.mxu1 %v1263_v5 }
 0x2cd   :  { %973 = vmatpush.msra.mxu2 %v948_v50  ;;  %1021 = vmatpush.msra.mxu3 %v948_v50 }
 0x2ce   :  { %1219 = vmatpush.msrb.mxu0 %v6227_v43  ;;  %1265 = vmatpush.msrb.mxu1 %v1262_v6 }
 0x2cf   :  { %974 = vmatpush.msra.mxu2 %v947_v53  ;;  %1022 = vmatpush.msra.mxu3 %v947_v53 }
 0x2d0   :  { %6169 = vmatmul.msk.f32.vlgmr.msra.gmra.mxu2 %vm352_vm0, %v951_v51  ;;  %6173 = vmatmul.msk.f32.vlgmr.msra.gmra.mxu3 %vm352_vm0, %v6171_v52  ;;  %v6223_v51 = vld [vmem:[%s6978_s21 + $0x1c0] sm:$0xff]  ;;  %v6222_v52 = vld [vmem:[%s6978_s21 + $0x1b8] sm:$0xff] }
 0x2d1   :  { %1114 = vmatpush.msrb.mxu2 %v950_v47  ;;  %1142 = vmatpush.msrb.mxu3 %v6210_v61  ;;  %v6215_v61 = vld [vmem:[%s6978_s21 + $0x180] sm:$0xff] }
 0x2d2   :  { %1220 = vmatpush.msrb.mxu0 %v6226_v45 }
 0x2d3   :  { %1115 = vmatpush.msrb.mxu2 %v949_v49  ;;  %1143 = vmatpush.msrb.mxu3 %v6209_v63 }
 0x2d5   :  { %1116 = vmatpush.msrb.mxu2 %v948_v50  ;;  %1144 = vmatpush.msrb.mxu3 %v6208_v3 }
 0x2d7   :  { %1117 = vmatpush.msrb.mxu2 %v947_v53  ;;  %1145 = vmatpush.msrb.mxu3 %v6207_v7  ;;  %v1261_v7 = vld [vmem:[#allocation5 + $0x68] sm:$0xff] }
 0x2d8   :  { %6174 = vmatmul.msk.f32.gmra.mxu3 %vm352_vm0, %v6172_v54  ;;  %6170 = vmatmul.msk.f32.gmra.mxu2 %vm352_vm0, %v952_v55  ;;  %v6220_v54 = vld [vmem:[%s6978_s21 + $0x1a8] sm:$0xff]  ;;  %v6219_v55 = vld [vmem:[%s6978_s21 + $0x1a0] sm:$0xff] }
 0x2d9   :  { %1188 = vmatpush.msra.mxu2 %v950_v47  ;;  %1146 = vmatpush.msrb.mxu3 %v6206_v12  ;;  %v6225_v47 = vld [vmem:[%s6978_s21 + $0x1d0] sm:$0xff] }
 0x2da   :  { %1221 = vmatpush.msrb.mxu0 %v6225_v47  ;;  %1266 = vmatpush.msrb.mxu1 %v1261_v7  ;;  %v1258_v12 = vld [vmem:[#allocation5 + $0x50] sm:$0xff] }
 0x2db   :  { %1189 = vmatpush.msra.mxu2 %v949_v49  ;;  %1147 = vmatpush.msrb.mxu3 %v6205_v16  ;;  %v6224_v49 = vld [vmem:[%s6978_s21 + $0x1c8] sm:$0xff]  ;;  %v1255_v16 = vld [vmem:[#allocation5 + $0x38] sm:$0xff] }
 0x2dc   :  { %1222 = vmatpush.msrb.mxu0 %v6224_v49  ;;  %1267 = vmatpush.msrb.mxu1 %v1260_v8 }
 0x2dd   :  { %1190 = vmatpush.msra.mxu2 %v948_v50  ;;  %1148 = vmatpush.msrb.mxu3 %v6204_v20  ;;  %v6195_v50 = vld [vmem:[%s6978_s21 + $0x100] sm:$0xff] }
 0x2de   :  { %1223 = vmatpush.msrb.mxu0 %v6223_v51  ;;  %1268 = vmatpush.msrb.mxu1 %v1259_v10  ;;  %v1252_v20 = vld [vmem:[#allocation5 + $0x20] sm:$0xff] }
 0x2df   :  { %1191 = vmatpush.msra.mxu2 %v947_v53  ;;  %1149 = vmatpush.msrb.mxu3 %v6203_v35  ;;  %v6221_v53 = vld [vmem:[%s6978_s21 + $0x1b0] sm:$0xff]  ;;  %s9391_s21 = sld [smem:[#allocation25_spill]] }
 0x2e0   :  { %6193 = vmatmul.msk.f32.vlgmr.msrb.gmra.mxu2 %vm352_vm0, %v6191_v0  ;;  %1224 = vmatpush.msrb.mxu0 %v6222_v52 }
 0x2e1   :  { %1150 = vmatpush.msrb.mxu3 %v6202_v36  ;;  %1296 = vmatpush.msrb.mxu2 %v1263_v5 }
 0x2e2   :  { %1225 = vmatpush.msrb.mxu0 %v6221_v53  ;;  %1269 = vmatpush.msrb.mxu1 %v1258_v12 }
 0x2e3   :  { %1151 = vmatpush.msrb.mxu3 %v6201_v38  ;;  %1297 = vmatpush.msrb.mxu2 %v1262_v6 }
 0x2e4   :  { %1226 = vmatpush.msrb.mxu0 %v6220_v54  ;;  %1270 = vmatpush.msrb.mxu1 %v1257_v14 }
 0x2e5   :  { %1152 = vmatpush.msrb.mxu3 %v6200_v41  ;;  %1298 = vmatpush.msrb.mxu2 %v1261_v7 }
 0x2e6   :  { %1227 = vmatpush.msrb.mxu0 %v6219_v55  ;;  %1271 = vmatpush.msrb.mxu1 %v1256_v15 }
 0x2e7   :  { %1153 = vmatpush.msrb.mxu3 %v6199_v42  ;;  %1299 = vmatpush.msrb.mxu2 %v1260_v8  ;;  %v6267_v8 = vld [vmem:[%s9388_s5 + $0x178] sm:$0xff] }
 0x2e8   :  { %6194 = vmatmul.msk.f32.gmra.mxu2 %vm352_vm0, %v6192_v17  ;;  %1228 = vmatpush.msrb.mxu0 %v6218_v56  ;;  %v1254_v17 = vld [vmem:[#allocation5 + $0x30] sm:$0xff] }
 0x2e9   :  { %1154 = vmatpush.msrb.mxu3 %v6198_v44  ;;  %1300 = vmatpush.msrb.mxu2 %v1259_v10  ;;  %v6249_v10 = vld [vmem:[%s9388_s5 + $0xf8] sm:$0xff] }
 0x2ea   :  { %1229 = vmatpush.msrb.mxu0 %v6217_v57  ;;  %1272 = vmatpush.msrb.mxu1 %v1255_v16 }
 0x2eb   :  { %1155 = vmatpush.msrb.mxu3 %v6197_v46  ;;  %1301 = vmatpush.msrb.mxu2 %v1258_v12  ;;  %v1383_v12 = vld [vmem:[%s9388_s5 + $0x78] sm:$0xff] }
 0x2ec   :  { %1230 = vmatpush.msrb.mxu0 %v6216_v58  ;;  %1273 = vmatpush.msrb.mxu1 %v1254_v17 }
 0x2ed   :  { %1156 = vmatpush.msrb.mxu3 %v6196_v48  ;;  %1302 = vmatpush.msrb.mxu2 %v1257_v14  ;;  %v6266_v14 = vld [vmem:[%s9388_s5 + $0x170] sm:$0xff] }
 0x2ee   :  { %1231 = vmatpush.msrb.mxu0 %v6215_v61  ;;  %1274 = vmatpush.msrb.mxu1 %v1253_v18 }
 0x2ef   :  { %1157 = vmatpush.msrb.mxu3 %v6195_v50  ;;  %1303 = vmatpush.msrb.mxu2 %v1256_v15  ;;  %v6248_v15 = vld [vmem:[%s9388_s5 + $0xf0] sm:$0xff] }
 0x2f0   :  { %6213 = vmatmul.msk.f32.vlgmr.msra.gmra.mxu2 %vm352_vm0, %v6211_v26  ;;  %1275 = vmatpush.msrb.mxu1 %v1252_v20 }
 0x2f1   :  { %1304 = vmatpush.msrb.mxu2 %v1255_v16  ;;  %v1382_v16 = vld [vmem:[%s9388_s5 + $0x70] sm:$0xff] }
 0x2f2   :  { %1276 = vmatpush.msrb.mxu1 %v1251_v21 }
 0x2f3   :  { %1305 = vmatpush.msrb.mxu2 %v1254_v17 }
 0x2f4   :  { %1277 = vmatpush.msrb.mxu1 %v1250_v22 }
 0x2f5   :  { %1306 = vmatpush.msrb.mxu2 %v1253_v18 }
 0x2f6   :  { %1278 = vmatpush.msrb.mxu1 %v1249_v23 }
 0x2f7   :  { %1307 = vmatpush.msrb.mxu2 %v1252_v20  ;;  %v6247_v20 = vld [vmem:[%s9388_s5 + $0xe8] sm:$0xff] }
 0x2f8   :  { %6214 = vmatmul.msk.f32.gmra.mxu2 %vm352_vm0, %v6212_v30  ;;  %1279 = vmatpush.msrb.mxu1 %v1248_v24 }
 0x2f9   :  { %1308 = vmatpush.msrb.mxu2 %v1251_v21  ;;  %v1381_v21 = vld [vmem:[%s9388_s5 + $0x68] sm:$0xff] }
 0x2fb   :  { %1309 = vmatpush.msrb.mxu2 %v1250_v22 }
 0x2fd   :  { %1310 = vmatpush.msrb.mxu2 %v1249_v23  ;;  %v6264_v23 = vld [vmem:[%s9388_s5 + $0x160] sm:$0xff] }
 0x2ff   :  { %1311 = vmatpush.msrb.mxu2 %v1248_v24  ;;  %v1343_v24 = vld [vmem:[%s9389_s9] sm:$0xff] }
 0x301   :  { %1508 = vmatpush.msra.mxu2 %v6267_v8  ;;  %v6253_v8 = vld [vmem:[%s9388_s5 + $0x108] sm:$0xff] }
 0x303   :  { %1509 = vmatpush.msra.mxu2 %v6266_v14  ;;  %v6274_v14 = vld [vmem:[%s9388_s5 + $0x1a0] sm:$0xff] }
 0x353   :  { %v976_v59 = vpop.f32.mrf.mxu2  ;;  %v1024_v60 = vpop.f32.mrf.mxu3 }
 0x354   :  { %1063 = vmatmul.f32.vlgmr.msra.gmra.mxu0 %v1024_v60  ;;  %1086 = vmatmul.f32.vlgmr.msra.gmra.mxu1 %v976_v59 }
 0x355   :  { %1426 = vmatpush.msra.mxu0 %v6249_v10  ;;  %1446 = vmatpush.msra.mxu1 %v1383_v12  ;;  %v6275_v10 = vld [vmem:[%s9388_s5 + $0x1a8] sm:$0xff]  ;;  %v6252_v12 = vld [vmem:[%s9388_s5 + $0x100] sm:$0xff] }
 0x357   :  { %1427 = vmatpush.msra.mxu0 %v6248_v15  ;;  %1447 = vmatpush.msra.mxu1 %v1382_v16  ;;  %v6273_v15 = vld [vmem:[%s9388_s5 + $0x198] sm:$0xff]  ;;  %v6272_v16 = vld [vmem:[%s9388_s5 + $0x190] sm:$0xff] }
 0x359   :  { %1428 = vmatpush.msra.mxu0 %v6247_v20  ;;  %1448 = vmatpush.msra.mxu1 %v1381_v21  ;;  %v1612_v20 = vld [vmem:[#allocation7 + $0x70] sm:$0xff] }
 0x35b   :  { %v1027_v62 = vpop.f32.mrf.mxu3  ;;  %v979_v63 = vpop.f32.mrf.mxu2 }
 0x35c   :  { %1066 = vmatmul.f32.gmra.mxu0 %v1027_v62  ;;  %1089 = vmatmul.f32.gmra.mxu1 %v979_v63  ;;  %v1326_v62 = vld [vmem:[%s6988_s29] sm:$0x1]  ;;  %s9392_s29 = sld [smem:[#allocation26_spill]] }
 0x363   :  { %v1119_v0 = vpop.f32.mrf.mxu2 }
 0x364   :  { %1158 = vmatmul.f32.vlgmr.msrb.gmra.mxu3 %v1119_v0 }
 0x36b   :  { %v1122_v1 = vpop.f32.mrf.mxu2 }
 0x36c   :  { %1161 = vmatmul.f32.gmra.mxu3 %v1122_v1 }
 0x373   :  { %v1193_v2 = vpop.f32.mrf.mxu2 }
 0x374   :  { %1232 = vmatmul.f32.vlgmr.msrb.gmra.mxu0 %v1193_v2  ;;  %v6655_v2 = vld [vmem:[%s6993_s3] ss:$0 sm:$0xff]  ;;  %s9393_s3 = sld [smem:[#allocation27_spill]] }
 0x37b   :  { %v1196_v3 = vpop.f32.mrf.mxu2 }
 0x37c   :  { %1235 = vmatmul.f32.gmra.mxu0 %v1196_v3 }
 0x3d1   :  { %v1064_v19 = vpop.f32.mrf.mxu0  ;;  %v1087_v25 = vpop.f32.mrf.mxu1 }
 0x3d2   :  { %v1088_v31 = vadd.f32 %v1087_v25, %v1064_v19  ;;  %v6265_v19 = vld [vmem:[%s9388_s5 + $0x168] sm:$0xff]  ;;  %v6246_v25 = vld [vmem:[%s9388_s5 + $0xe0] sm:$0xff] }
 0x3d3   :  { %1510 = vmatpush.msra.mxu2 %v6265_v19  ;;  %1429 = vmatpush.msra.mxu0 %v6246_v25  ;;  %v1613_v19 = vld [vmem:[#allocation7 + $0x78] sm:$0xff]  ;;  %v1611_v25 = vld [vmem:[#allocation7 + $0x68] sm:$0xff] }
 0x3d5   :  { %1511 = vmatpush.msra.mxu2 %v6264_v23 }
 0x3d9   :  { %v1067_v26 = vpop.f32.mrf.mxu0  ;;  %v1090_v29 = vpop.f32.mrf.mxu1 }
 0x3da   :  { %v1091_v11 = vadd.f32 %v1090_v29, %v1067_v26  ;;  %v6245_v29 = vld [vmem:[%s9388_s5 + $0xd8] sm:$0xff] }
 0x3db   :  { %1430 = vmatpush.msra.mxu0 %v6245_v29  ;;  %v1607_v29 = vld [vmem:[#allocation7 + $0x48] sm:$0xff] }
 0x3e7   :  { %v1159_v27 = vpop.f32.mrf.mxu3 }
 0x3e8   :  { %v1165_v32 = vadd.f32 %v1159_v27, %v1088_v31  ;;  %v1380_v27 = vld [vmem:[%s9388_s5 + $0x60] sm:$0xff]  ;;  %v6262_v31 = vld [vmem:[%s9388_s5 + $0x150] sm:$0xff] }
 0x3e9   :  { %1449 = vmatpush.msra.mxu1 %v1380_v27  ;;  %v1609_v27 = vld [vmem:[#allocation7 + $0x58] sm:$0xff] }
 0x3ef   :  { %v1162_v30 = vpop.f32.mrf.mxu3 }
 0x3f0   :  { %v1166_v33 = vadd.f32 %v1162_v30, %v1091_v11  ;;  %v1379_v30 = vld [vmem:[%s9388_s5 + $0x58] sm:$0xff]  ;;  %v6244_v11 = vld [vmem:[%s9388_s5 + $0xd0] sm:$0xff] }
 0x3f1   :  { %v1233_v28 = vpop.f32.mrf.mxu0  ;;  %1450 = vmatpush.msra.mxu1 %v1379_v30  ;;  %1431 = vmatpush.msra.mxu0 %v6244_v11  ;;  %v1606_v30 = vld [vmem:[#allocation7 + $0x40] sm:$0xff]  ;;  %v1604_v11 = vld [vmem:[#allocation7 + $0x30] sm:$0xff] }
 0x3f2   :  { %v1239_v34 = vadd.f32 %v1233_v28, %v1165_v32  ;;  %v6263_v28 = vld [vmem:[%s9388_s5 + $0x158] sm:$0xff]  ;;  %v1378_v32 = vld [vmem:[%s9388_s5 + $0x50] sm:$0xff] }
 0x3f3   :  { %1512 = vmatpush.msra.mxu2 %v6263_v28  ;;  %1451 = vmatpush.msra.mxu1 %v1378_v32  ;;  %v1608_v28 = vld [vmem:[#allocation7 + $0x50] sm:$0xff]  ;;  %v1603_v32 = vld [vmem:[#allocation7 + $0x28] sm:$0xff] }
 0x3f5   :  { %1513 = vmatpush.msra.mxu2 %v6262_v31  ;;  %v1605_v31 = vld [vmem:[#allocation7 + $0x38] sm:$0xff] }
 0x3f9   :  { %v1236_v9 = vpop.f32.mrf.mxu0 }
 0x3fa   :  { %v1240_v35 = vadd.f32 %v1236_v9, %v1166_v33  ;;  %v6261_v33 = vld [vmem:[%s9388_s5 + $0x148] sm:$0xff] }
 0x3fb   :  { %v6232_v9 = vld [vmem:[%s9389_s9 + $0x8] sm:$0xff]  ;;  %1514 = vmatpush.msra.mxu2 %v6261_v33  ;;  %v1602_v33 = vld [vmem:[#allocation7 + $0x20] sm:$0xff] }
 0x3fc   :  { %v1241_v4 = vadd.f32 %v1240_v35, %v1239_v34 }
 0x3fe   :  { %v1242_v36 = vrot.slane %v1241_v4, 4 }
 0x400   :  { %v1243_v13 = vadd.f32 %v1242_v36, %v1241_v4  ;;  %v6284_v4 = vld [vmem:[%s9388_s5 + $0x1f0] sm:$0xff]  ;;  %v6283_v36 = vld [vmem:[%s9388_s5 + $0x1e8] sm:$0xff] }
 0x402   :  { %v1244_v37 = vrot.slane %v1243_v13, 2 }
 0x404   :  { %v1245_v38 = vadd.f32 %v1244_v37, %v1243_v13  ;;  %v6268_v13 = vld [vmem:[%s9389_s9 + $0x18] sm:$0xff]  ;;  %v1377_v37 = vld [vmem:[%s9388_s5 + $0x48] sm:$0xff] }
 0x405   :  { %1452 = vmatpush.msra.mxu1 %v1377_v37 }
 0x406   :  { %v1246_v39 = vrot.slane %v1245_v38, 1 }
 0x408   :  { %v1247_v40 = vadd.f32 %v1246_v39, %v1245_v38  ;;  %v1376_v38 = vld [vmem:[%s9388_s5 + $0x40] sm:$0xff]  ;;  %v1375_v39 = vld [vmem:[%s9388_s5 + $0x38] sm:$0xff] }
 0x409   :  { %1453 = vmatpush.msra.mxu1 %v1376_v38 }
 0x40a   :  { %1280 = vmatmul.f32.vlgmr.msrb.gmra.mxu1 %v1247_v40  ;;  %v1374_v40 = vld [vmem:[%s9388_s5 + $0x30] sm:$0xff] }
 0x40b   :  { %1454 = vmatpush.msra.mxu1 %v1375_v39 }
 0x40d   :  { %1455 = vmatpush.msra.mxu1 %v1374_v40 }
 0x487   :  { %v1281_v41 = vpop.f32.mrf.mxu1 }
 0x488   :  { %v1284_v42 = vperm.slane %v1281_v41, 0  ;;  %v6243_v41 = vld [vmem:[%s9388_s5 + $0xc8] sm:$0xff] }
 0x489   :  { %1432 = vmatpush.msra.mxu0 %v6243_v41 }
 0x48a   :  { %v1285_v43 = vsub.f32 %v1239_v34, %v1284_v42  ;;  %v1286_v44 = vsub.f32 %v1240_v35, %v1284_v42  ;;  %v6250_v34 = vld [vmem:[%s9389_s9 + $0x10] sm:$0xff]  ;;  %v6285_v35 = vld [vmem:[%s9388_s5 + $0x1f8] sm:$0xff]  ;;  %v1373_v42 = vld [vmem:[%s9388_s5 + $0x28] sm:$0xff] }
 0x48b   :  { %1456 = vmatpush.msra.mxu1 %v1373_v42 }
 0x48c   :  { %v1287_v45 = vmul.f32 %v1285_v43, %v1285_v43  ;;  %v1288_v46 = vmul.f32 %v1286_v44, %v1286_v44 }
 0x48e   :  { %v1289_v47 = vadd.f32 %v1288_v46, %v1287_v45  ;;  %v6241_v45 = vld [vmem:[%s9388_s5 + $0xb8] sm:$0xff] }
 0x48f   :  { %v1371_v46 = vld [vmem:[%s9388_s5 + $0x18] sm:$0xff] }
 0x490   :  { %v1290_v48 = vrot.slane %v1289_v47, 4 }
 0x492   :  { %v1291_v49 = vadd.f32 %v1290_v48, %v1289_v47  ;;  %v6240_v47 = vld [vmem:[%s9388_s5 + $0xb0] sm:$0xff] }
 0x493   :  { %v1370_v48 = vld [vmem:[%s9388_s5 + $0x10] sm:$0xff] }
 0x494   :  { %v1292_v50 = vrot.slane %v1291_v49, 2 }
 0x496   :  { %v1293_v51 = vadd.f32 %v1292_v50, %v1291_v49  ;;  %v6239_v49 = vld [vmem:[%s9388_s5 + $0xa8] sm:$0xff] }
 0x497   :  { %v1369_v50 = vld [vmem:[%s9388_s5 + $0x8] sm:$0xff] }
 0x498   :  { %v1294_v52 = vrot.slane %v1293_v51, 1 }
 0x49a   :  { %v1295_v53 = vadd.f32 %v1294_v52, %v1293_v51  ;;  %v6260_v51 = vld [vmem:[%s9388_s5 + $0x140] sm:$0xff] }
 0x49b   :  { %v6282_v52 = vld [vmem:[%s9388_s5 + $0x1e0] sm:$0xff]  ;;  %1515 = vmatpush.msra.mxu2 %v6260_v51 }
 0x49c   :  { %1312 = vmatmul.f32.vlgmr.msrb.gmra.mxu2 %v1295_v53  ;;  %v6259_v53 = vld [vmem:[%s9388_s5 + $0x138] sm:$0xff] }
 0x49d   :  { %1516 = vmatpush.msra.mxu2 %v6259_v53 }
 0x51f   :  { %v1313_v54 = vpop.f32.mrf.mxu2 }
 0x520   :  { %v1314_v55 = vadd.f32 1e-05, %v1313_v54  ;;  %v6281_v54 = vld [vmem:[%s9388_s5 + $0x1d8] sm:$0xff] }
 0x522   :  { %6657 = vrsqrt.f32 %v1314_v55  ;;  %vm1322_vm6 = vweird.f32 %v1314_v55 }
 0x528   :  { %v6658_v56 = vpop.eup %6657 }
 0x529   :  { %v1317_v57 = vmul.f32 %v6658_v56, %v1314_v55  ;;  %vm1323_vm5 = vweird.f32 %v6658_v56  ;;  %v6258_v55 = vld [vmem:[%s9388_s5 + $0x130] sm:$0xff] }
 0x52a   :  { %vm1324_vm7 = vmor %vm1322_vm6, %vm1323_vm5  ;;  %1517 = vmatpush.msra.mxu2 %v6258_v55  ;;  %vm1954_vm6 = vcmask 15360  }
 0x52b   :  { %v1318_v58 = vmul.f32 %v6658_v56, %v1317_v57  ;;  %v6238_v57 = vld [vmem:[%s9388_s5 + $0xa0] sm:$0xff] }
 0x52d   :  { %v1319_v59 = vmul.f32 0.5, %v1318_v58  ;;  %v6237_v58 = vld [vmem:[%s9388_s5 + $0x98] sm:$0xff] }
 0x52f   :  { %v1320_v60 = vsub.f32 1.5, %v1319_v59  ;;  %v1368_v59 = vld [vmem:[%s9388_s5] sm:$0xff] }
 0x531   :  { %v1321_v61 = vmul.f32 %v6658_v56, %v1320_v60  ;;  %v6257_v60 = vld [vmem:[%s9388_s5 + $0x128] sm:$0xff] }
 0x532   :  { %1518 = vmatpush.msra.mxu2 %v6257_v60 }
 0x533   :  { %v1325_v63 = vsel %vm1324_vm7, %v6658_v56, %v1321_v61  ;;  %v6280_v56 = vld [vmem:[%s9388_s5 + $0x1d0] sm:$0xff]  ;;  %v6279_v61 = vld [vmem:[%s9388_s5 + $0x1c8] sm:$0xff] }
 0x534   :  { %v1327_v0 = vmul.f32 %v1326_v62, %v1325_v63  ;;  %v6236_v62 = vld [vmem:[%s9388_s5 + $0x90] sm:$0xff]  ;;  %v6235_v63 = vld [vmem:[%s9388_s5 + $0x88] sm:$0xff] }
 0x536   :  { %v1328_v1 = vperm.slane %v1327_v0, 0  ;;  %v6256_v0 = vld [vmem:[%s9388_s5 + $0x120] sm:$0xff] }
 0x537   :  { %1519 = vmatpush.msra.mxu2 %v6256_v0 }
 0x538   :  { %v1330_v3 = vmul.f32 %v1328_v1, %v1286_v44  ;;  %v1329_v5 = vmul.f32 %v1328_v1, %v1285_v43  ;;  %v6242_v43 = vld [vmem:[%s9388_s5 + $0xc0] sm:$0xff] }
 0x539   :  { %v1372_v44 = vld [vmem:[%s9388_s5 + $0x20] sm:$0xff]  ;;  %1433 = vmatpush.msra.mxu0 %v6242_v43 }
 0x53a   :  { %v1336_v6 = vadd.f32 %v6655_v2, %v1330_v3  ;;  %v1335_v7 = vadd.f32 %v6655_v2, %v1329_v5  ;;  %1457 = vmatpush.msra.mxu1 %v1372_v44  ;;  %v6278_v1 = vld [vmem:[%s9388_s5 + $0x1c0] sm:$0xff]  ;;  %v6255_v2 = vld [vmem:[%s9388_s5 + $0x118] sm:$0xff]  ;;  %v6254_v5 = vld [vmem:[%s9388_s5 + $0x110] sm:$0xff] }
 0x53b   :  { %1434 = vmatpush.msra.mxu0 %v6241_v45  ;;  %v6277_v3 = vld [vmem:[%s9388_s5 + $0x1b8] sm:$0xff]  ;;  %1520 = vmatpush.msra.mxu2 %v6255_v2 }
 0x53c   :  { %vm1338_vm8 = vcmp.gt.f32.partialorder %v1336_v6, 0.0  ;;  %v1340_v17 = vmul.f32 0.2, %v1336_v6  ;;  %v1339_v18 = vmul.f32 0.2, %v1335_v7  ;;  %vm1337_vm9 = vcmp.gt.f32.partialorder %v1335_v7, 0.0  ;;  %1458 = vmatpush.msra.mxu1 %v1371_v46 }
 0x53d   :  { %1435 = vmatpush.msra.mxu0 %v6240_v47  ;;  %1521 = vmatpush.msra.mxu2 %v6254_v5  ;;  %v6322_v2 = vld [vmem:[%s9390_s17 + $0x178] sm:$0xff]  ;;  %v6301_v5 = vld [vmem:[%s9390_s17 + $0xe0] sm:$0xff] }
 0x53e   :  { %v1342_v22 = vsel %vm1338_vm8, %v1336_v6, %v1340_v17  ;;  %v1341_v26 = vsel %vm1337_vm9, %v1335_v7, %v1339_v18  ;;  %1459 = vmatpush.msra.mxu1 %v1370_v48  ;;  %v6276_v6 = vld [vmem:[%s9388_s5 + $0x1b0] sm:$0xff]  ;;  %v6234_v7 = vld [vmem:[%s9388_s5 + $0x80] sm:$0xff]  ;;  %v6271_v17 = vld [vmem:[%s9388_s5 + $0x188] sm:$0xff] }
 0x53f   :  { %1362 = vmatpush.msra.mxu3 %v1342_v22  ;;  %1436 = vmatpush.msra.mxu0 %v6239_v49  ;;  %v6270_v18 = vld [vmem:[%s9388_s5 + $0x180] sm:$0xff] }
 0x540   :  { %1460 = vmatpush.msra.mxu1 %v1369_v50  ;;  %1522 = vmatpush.msra.mxu2 %v6253_v8  ;;  %v6300_v8 = vld [vmem:[%s9390_s17 + $0xd8] sm:$0xff] }
 0x541   :  { %1363 = vmatpush.msra.mxu3 %v1341_v26  ;;  %1437 = vmatpush.msra.mxu0 %v6238_v57 }
 0x542   :  { %6231 = vmatmul.msk.f32.vlgmr.msra.gmra.mxu3 %vm1344_vm10, %v1343_v24  ;;  %1461 = vmatpush.msra.mxu1 %v1368_v59 }
 0x543   :  { %1403 = vmatpush.msrb.mxu3 %v1342_v22  ;;  %1438 = vmatpush.msra.mxu0 %v6237_v58 }
 0x544   :  { %1523 = vmatpush.msra.mxu2 %v6252_v12  ;;  %1643 = vmatpush.msrb.mxu1 %v1613_v19 }
 0x545   :  { %1404 = vmatpush.msrb.mxu3 %v1341_v26  ;;  %1439 = vmatpush.msra.mxu0 %v6236_v62  ;;  %v6304_v62 = vld [vmem:[%s9390_s17 + $0xf8] sm:$0xff] }
 0x546   :  { %1644 = vmatpush.msrb.mxu1 %v1612_v20 }
 0x547   :  { %1485 = vmatpush.msra.mxu3 %v1342_v22  ;;  %1440 = vmatpush.msra.mxu0 %v6235_v63  ;;  %v6303_v63 = vld [vmem:[%s9390_s17 + $0xf0] sm:$0xff] }
 0x548   :  { %1645 = vmatpush.msrb.mxu1 %v1611_v25 }
 0x549   :  { %1486 = vmatpush.msra.mxu3 %v1341_v26  ;;  %1441 = vmatpush.msra.mxu0 %v6234_v7 }
 0x54a   :  { %6233 = vmatmul.msk.f32.vlgmr.msrb.gmra.mxu3 %vm1344_vm10, %v6232_v9  ;;  %v1601_v9 = vld [vmem:[#allocation7 + $0x18] sm:$0xff] }
 0x54b   :  { %1548 = vmatpush.msrb.mxu3 %v1342_v22  ;;  %1614 = vmatpush.msrb.mxu0 %v1613_v19  ;;  %v6318_v19 = vld [vmem:[%s9390_s17 + $0x158] sm:$0xff] }
 0x54d   :  { %1549 = vmatpush.msrb.mxu3 %v1341_v26  ;;  %1615 = vmatpush.msrb.mxu0 %v1612_v20  ;;  %v1610_v26 = vld [vmem:[#allocation7 + $0x60] sm:$0xff] }
 0x54e   :  { %1646 = vmatpush.msrb.mxu1 %v1610_v26 }
 0x54f   :  { %1616 = vmatpush.msrb.mxu0 %v1611_v25  ;;  %v6296_v25 = vld [vmem:[%s9390_s17 + $0xb8] sm:$0xff] }
 0x550   :  { %1647 = vmatpush.msrb.mxu1 %v1609_v27 }
 0x551   :  { %1617 = vmatpush.msrb.mxu0 %v1610_v26  ;;  %v6316_v26 = vld [vmem:[%s9390_s17 + $0x148] sm:$0xff] }
 0x552   :  { %6251 = vmatmul.msk.f32.vlgmr.msra.gmra.mxu3 %vm1344_vm10, %v6250_v34  ;;  %1648 = vmatpush.msrb.mxu1 %v1608_v28  ;;  %v1600_v34 = vld [vmem:[#allocation7 + $0x10] sm:$0xff] }
 0x553   :  { %1571 = vmatpush.msra.mxu3 %v6285_v35  ;;  %1618 = vmatpush.msrb.mxu0 %v1609_v27  ;;  %v1599_v35 = vld [vmem:[#allocation7 + $0x8] sm:$0xff] }
 0x554   :  { %1649 = vmatpush.msrb.mxu1 %v1607_v29 }
 0x555   :  { %1572 = vmatpush.msra.mxu3 %v6284_v4  ;;  %1619 = vmatpush.msrb.mxu0 %v1608_v28  ;;  %v1598_v4 = vld [vmem:[#allocation7] sm:$0xff]  ;;  %v6295_v28 = vld [vmem:[%s9390_s17 + $0xb0] sm:$0xff] }
 0x556   :  { %1650 = vmatpush.msrb.mxu1 %v1606_v30 }
 0x557   :  { %1573 = vmatpush.msra.mxu3 %v6283_v36  ;;  %1620 = vmatpush.msrb.mxu0 %v1607_v29 }
 0x558   :  { %1651 = vmatpush.msrb.mxu1 %v1605_v31 }
 0x559   :  { %1574 = vmatpush.msra.mxu3 %v6282_v52  ;;  %1621 = vmatpush.msrb.mxu0 %v1606_v30  ;;  %v6294_v30 = vld [vmem:[%s9390_s17 + $0xa8] sm:$0xff] }
 0x55a   :  { %6269 = vmatmul.msk.f32.vlgmr.msrb.gmra.mxu3 %vm1344_vm10, %v6268_v13  ;;  %1652 = vmatpush.msrb.mxu1 %v1604_v11 }
 0x55b   :  { %1575 = vmatpush.msra.mxu3 %v6281_v54  ;;  %1622 = vmatpush.msrb.mxu0 %v1605_v31 }
 0x55c   :  { %1653 = vmatpush.msrb.mxu1 %v1603_v32 }
 0x55d   :  { %1576 = vmatpush.msra.mxu3 %v6280_v56  ;;  %1623 = vmatpush.msrb.mxu0 %v1604_v11  ;;  %v1685_v11 = vld [vmem:[%s9393_s3] sm:$0x3] }
 0x55e   :  { %1654 = vmatpush.msrb.mxu1 %v1602_v33 }
 0x55f   :  { %1577 = vmatpush.msra.mxu3 %v6279_v61  ;;  %1624 = vmatpush.msrb.mxu0 %v1603_v32 }
 0x560   :  { %1655 = vmatpush.msrb.mxu1 %v1601_v9 }
 0x561   :  { %1578 = vmatpush.msra.mxu3 %v6278_v1  ;;  %1625 = vmatpush.msrb.mxu0 %v1602_v33  ;;  %v6302_v1 = vld [vmem:[%s9390_s17 + $0xe8] sm:$0xff]  ;;  %v6305_v33 = vld [vmem:[%s9393_s3 + $0x4] sm:$0x3] }
 0x562   :  { %1656 = vmatpush.msrb.mxu1 %v1600_v34 }
 0x563   :  { %1579 = vmatpush.msra.mxu3 %v6277_v3  ;;  %1626 = vmatpush.msrb.mxu0 %v1601_v9  ;;  %v1725_v9 = vld [vmem:[%s9390_s17 + $0x78] sm:$0xff] }
 0x564   :  { %1657 = vmatpush.msrb.mxu1 %v1599_v35 }
 0x565   :  { %1580 = vmatpush.msra.mxu3 %v6276_v6  ;;  %1627 = vmatpush.msrb.mxu0 %v1600_v34  ;;  %v6321_v6 = vld [vmem:[%s9390_s17 + $0x170] sm:$0xff]  ;;  %v6340_v34 = vld [vmem:[%s9390_s17 + $0x1f8] sm:$0xff] }
 0x566   :  { %1658 = vmatpush.msrb.mxu1 %v1598_v4 }
 0x567   :  { %1581 = vmatpush.msra.mxu3 %v6275_v10  ;;  %1628 = vmatpush.msrb.mxu0 %v1599_v35  ;;  %v6320_v10 = vld [vmem:[%s9390_s17 + $0x168] sm:$0xff]  ;;  %v1724_v35 = vld [vmem:[%s9390_s17 + $0x70] sm:$0xff] }
 0x569   :  { %1582 = vmatpush.msra.mxu3 %v6274_v14  ;;  %1629 = vmatpush.msrb.mxu0 %v1598_v4  ;;  %v1673_v14 = vld [vmem:[%s9391_s21] sm:$0x1]  ;;  %v6339_v4 = vld [vmem:[%s9390_s17 + $0x1f0] sm:$0xff] }
 0x56b   :  { %1583 = vmatpush.msra.mxu3 %v6273_v15  ;;  %v6299_v15 = vld [vmem:[%s9390_s17 + $0xd0] sm:$0xff] }
 0x56d   :  { %1584 = vmatpush.msra.mxu3 %v6272_v16  ;;  %v6319_v16 = vld [vmem:[%s9390_s17 + $0x160] sm:$0xff] }
 0x56f   :  { %1585 = vmatpush.msra.mxu3 %v6271_v17 }
 0x571   :  { %1586 = vmatpush.msra.mxu3 %v6270_v18  ;;  %v6298_v18 = vld [vmem:[%s9390_s17 + $0xc8] sm:$0xff] }
 0x573   :  { %1768 = vmatpush.msrb.mxu3 %v6304_v62  ;;  %v6332_v62 = vld [vmem:[%s9390_s17 + $0x1b8] sm:$0xff] }
 0x575   :  { %1769 = vmatpush.msrb.mxu3 %v6303_v63  ;;  %v6312_v63 = vld [vmem:[%s9390_s17 + $0x128] sm:$0xff] }
 0x577   :  { %1770 = vmatpush.msrb.mxu3 %v6302_v1  ;;  %v6311_v1 = vld [vmem:[%s9390_s17 + $0x120] sm:$0xff] }
 0x579   :  { %1771 = vmatpush.msrb.mxu3 %v6301_v5  ;;  %v6310_v5 = vld [vmem:[%s9390_s17 + $0x118] sm:$0xff] }
 0x57b   :  { %1772 = vmatpush.msrb.mxu3 %v6300_v8  ;;  %v6330_v8 = vld [vmem:[%s9390_s17 + $0x1a8] sm:$0xff] }
 0x57d   :  { %1773 = vmatpush.msrb.mxu3 %v6299_v15  ;;  %v6307_v15 = vld [vmem:[%s9390_s17 + $0x100] sm:$0xff] }
 0x57f   :  { %1774 = vmatpush.msrb.mxu3 %v6298_v18  ;;  %v6325_v18 = vld [vmem:[%s9390_s17 + $0x180] sm:$0xff] }
 0x5c5   :  { %v1365_v21 = vpop.f32.mrf.mxu3 }
 0x5c6   :  { %1462 = vmatmul.f32.vlgmr.msra.gmra.mxu1 %v1365_v21  ;;  %v6297_v21 = vld [vmem:[%s9390_s17 + $0xc0] sm:$0xff] }
 0x5c7   :  { %1850 = vmatpush.msra.mxu1 %v6322_v2  ;;  %1775 = vmatpush.msrb.mxu3 %v6297_v21  ;;  %v6290_v2 = vld [vmem:[%s9390_s17 + $0x88] sm:$0xff] }
 0x5c9   :  { %1851 = vmatpush.msra.mxu1 %v6321_v6  ;;  %1776 = vmatpush.msrb.mxu3 %v6296_v25  ;;  %v6309_v6 = vld [vmem:[%s9390_s17 + $0x110] sm:$0xff]  ;;  %v2019_v25 = vld [vmem:[#allocation8 + $0x58] sm:$0xff] }
 0x5cb   :  { %1852 = vmatpush.msra.mxu1 %v6320_v10  ;;  %1777 = vmatpush.msrb.mxu3 %v6295_v28  ;;  %v6329_v10 = vld [vmem:[%s9390_s17 + $0x1a0] sm:$0xff] }
 0x5cd   :  { %v1406_v22 = vpop.f32.mrf.mxu3  ;;  %1853 = vmatpush.msra.mxu1 %v6319_v16  ;;  %1778 = vmatpush.msrb.mxu3 %v6294_v30  ;;  %v6327_v16 = vld [vmem:[%s9390_s17 + $0x190] sm:$0xff] }
 0x5ce   :  { %1442 = vmatmul.f32.vlgmr.msra.gmra.mxu0 %v1406_v22  ;;  %v6317_v22 = vld [vmem:[%s9390_s17 + $0x150] sm:$0xff] }
 0x5cf   :  { %1854 = vmatpush.msra.mxu1 %v6318_v19 }
 0x5d1   :  { %1855 = vmatpush.msra.mxu1 %v6317_v22 }
 0x5d3   :  { %1856 = vmatpush.msra.mxu1 %v6316_v26  ;;  %v2017_v26 = vld [vmem:[#allocation8 + $0x48] sm:$0xff] }
 0x5d5   :  { %v1488_v23 = vpop.f32.mrf.mxu3 }
 0x5d6   :  { %1524 = vmatmul.f32.vlgmr.msra.gmra.mxu2 %v1488_v23 }
 0x5dd   :  { %v1551_v24 = vpop.f32.mrf.mxu3 }
 0x5de   :  { %1587 = vmatmul.f32.vlgmr.msra.gmra.mxu3 %v1551_v24  ;;  %v6656_v24 = vld [vmem:[%s9392_s29] ss:$0 sm:$0xff] }
 0x643   :  { %v1463_v13 = vpop.f32.mrf.mxu1 }
 0x64b   :  { %v1443_v36 = vpop.f32.mrf.mxu0 }
 0x64c   :  { %v1464_v38 = vadd.f32 %v1463_v13, %v1443_v36  ;;  %v1723_v36 = vld [vmem:[%s9390_s17 + $0x68] sm:$0xff] }
 0x64d   :  { %v6338_v13 = vld [vmem:[%s9390_s17 + $0x1e8] sm:$0xff] }
 0x659   :  { %v1525_v37 = vpop.f32.mrf.mxu2 }
 0x65a   :  { %v1528_v39 = vadd.f32 %v1525_v37, %v1464_v38  ;;  %v6287_v37 = vld [vmem:[%s9393_s3 + $0x2] sm:$0x3] }
 0x65b   :  { %v6337_v38 = vld [vmem:[%s9390_s17 + $0x1e0] sm:$0xff] }
 0x661   :  { %v1588_v40 = vpop.f32.mrf.mxu3 }
 0x662   :  { %v1591_v41 = vadd.f32 %v1588_v40, %v1528_v39  ;;  %v6323_v39 = vld [vmem:[%s9393_s3 + $0x6] sm:$0x3] }
 0x663   :  { %v1722_v40 = vld [vmem:[%s9390_s17 + $0x60] sm:$0xff] }
 0x664   :  { %v1592_v42 = vrot.slane %v1591_v41, 4 }
 0x666   :  { %v1593_v43 = vadd.f32 %v1592_v42, %v1591_v41  ;;  %v1721_v42 = vld [vmem:[%s9390_s17 + $0x58] sm:$0xff] }
 0x668   :  { %v1594_v44 = vrot.slane %v1593_v43, 2 }
 0x66a   :  { %v1595_v45 = vadd.f32 %v1594_v44, %v1593_v43  ;;  %v6335_v43 = vld [vmem:[%s9390_s17 + $0x1d0] sm:$0xff] }
 0x66b   :  { %v1720_v44 = vld [vmem:[%s9390_s17 + $0x50] sm:$0xff] }
 0x66c   :  { %v1596_v46 = vrot.slane %v1595_v45, 1 }
 0x66e   :  { %v1597_v47 = vadd.f32 %v1596_v46, %v1595_v45  ;;  %v1719_v45 = vld [vmem:[%s9390_s17 + $0x48] sm:$0xff]  ;;  %v1718_v46 = vld [vmem:[%s9390_s17 + $0x40] sm:$0xff] }
 0x670   :  { %1630 = vmatmul.f32.vlgmr.msrb.gmra.mxu0 %v1597_v47  ;;  %v1717_v47 = vld [vmem:[%s9390_s17 + $0x38] sm:$0xff] }
 0x6ed   :  { %v1631_v48 = vpop.f32.mrf.mxu0 }
 0x6ee   :  { %v1634_v49 = vperm.slane %v1631_v48, 0  ;;  %v1716_v48 = vld [vmem:[%s9390_s17 + $0x30] sm:$0xff] }
 0x6f0   :  { %v1635_v50 = vsub.f32 %v1591_v41, %v1634_v49  ;;  %v6336_v41 = vld [vmem:[%s9390_s17 + $0x1d8] sm:$0xff]  ;;  %v1715_v49 = vld [vmem:[%s9390_s17 + $0x28] sm:$0xff] }
 0x6f2   :  { %v1636_v51 = vmul.f32 %v1635_v50, %v1635_v50 }
 0x6f4   :  { %v1637_v52 = vrot.slane %v1636_v51, 4 }
 0x6f6   :  { %v1638_v53 = vadd.f32 %v1637_v52, %v1636_v51  ;;  %v6315_v51 = vld [vmem:[%s9390_s17 + $0x140] sm:$0xff]  ;;  %v1713_v52 = vld [vmem:[%s9390_s17 + $0x18] sm:$0xff] }
 0x6f7   :  { %1857 = vmatpush.msra.mxu1 %v6315_v51  ;;  %v1984_v51 = vld [vmem:[#allocation8 + $0x10] sm:$0xff] }
 0x6f8   :  { %v1639_v54 = vrot.slane %v1638_v53, 2 }
 0x6fa   :  { %v1640_v55 = vadd.f32 %v1639_v54, %v1638_v53  ;;  %v6314_v53 = vld [vmem:[%s9390_s17 + $0x138] sm:$0xff]  ;;  %v1712_v54 = vld [vmem:[%s9390_s17 + $0x10] sm:$0xff] }
 0x6fb   :  { %1858 = vmatpush.msra.mxu1 %v6314_v53  ;;  %v1982_v53 = vld [vmem:[#allocation8] sm:$0xff] }
 0x6fc   :  { %v1641_v56 = vrot.slane %v1640_v55, 1 }
 0x6fe   :  { %v1642_v57 = vadd.f32 %v1641_v56, %v1640_v55  ;;  %v6313_v55 = vld [vmem:[%s9390_s17 + $0x130] sm:$0xff]  ;;  %v1711_v56 = vld [vmem:[%s9390_s17 + $0x8] sm:$0xff] }
 0x6ff   :  { %1859 = vmatpush.msra.mxu1 %v6313_v55  ;;  %v1987_v55 = vld [vmem:[#allocation8 + $0x28] sm:$0xff] }
 0x700   :  { %1659 = vmatmul.f32.vlgmr.msrb.gmra.mxu1 %v1642_v57  ;;  %v6293_v57 = vld [vmem:[%s9390_s17 + $0xa0] sm:$0xff] }
 0x701   :  { %1779 = vmatpush.msrb.mxu3 %v6293_v57  ;;  %1860 = vmatpush.msra.mxu1 %v6312_v63  ;;  %v1983_v57 = vld [vmem:[#allocation8 + $0x8] sm:$0xff]  ;;  %v2143_v63 = vld [vmem:[#allocation8 + $0xb8] sm:$0xff] }
 0x703   :  { %1861 = vmatpush.msra.mxu1 %v6311_v1  ;;  %v2141_v1 = vld [vmem:[#allocation8 + $0xa8] sm:$0xff] }
 0x705   :  { %1862 = vmatpush.msra.mxu1 %v6310_v5  ;;  %v2136_v5 = vld [vmem:[#allocation8 + $0x80] sm:$0xff] }
 0x707   :  { %1863 = vmatpush.msra.mxu1 %v6309_v6  ;;  %v2137_v6 = vld [vmem:[#allocation8 + $0x88] sm:$0xff] }
 0x77d   :  { %v1660_v58 = vpop.f32.mrf.mxu1 }
 0x77e   :  { %v1661_v59 = vadd.f32 1e-05, %v1660_v58  ;;  %v6334_v58 = vld [vmem:[%s9390_s17 + $0x1c8] sm:$0xff] }
 0x780   :  { %6659 = vrsqrt.f32 %v1661_v59  ;;  %vm1669_vm12 = vweird.f32 %v1661_v59 }
 0x786   :  { %v6660_v60 = vpop.eup %6659 }
 0x787   :  { %v1664_v61 = vmul.f32 %v6660_v60, %v1661_v59  ;;  %vm1670_vm11 = vweird.f32 %v6660_v60  ;;  %v6292_v59 = vld [vmem:[%s9390_s17 + $0x98] sm:$0xff] }
 0x788   :  { %vm1671_vm13 = vmor %vm1669_vm12, %vm1670_vm11  ;;  %1780 = vmatpush.msrb.mxu3 %v6292_v59 }
 0x789   :  { %v1665_v0 = vmul.f32 %v6660_v60, %v1664_v61  ;;  %v6291_v61 = vld [vmem:[%s9390_s17 + $0x90] sm:$0xff] }
 0x78a   :  { %1781 = vmatpush.msrb.mxu3 %v6291_v61  ;;  %v6350_v61 = vld [vmem:[%s9394_s20 + $0x10] sm:$0xff] }
 0x78b   :  { %v1666_v3 = vmul.f32 0.5, %v1665_v0  ;;  %v1710_v0 = vld [vmem:[%s9390_s17] sm:$0xff] }
 0x78c   :  { %1782 = vmatpush.msrb.mxu3 %v6290_v2  ;;  %v2138_v2 = vld [vmem:[#allocation8 + $0x90] sm:$0xff] }
 0x78d   :  { %v1667_v7 = vsub.f32 1.5, %v1666_v3  ;;  %v6331_v3 = vld [vmem:[%s9390_s17 + $0x1b0] sm:$0xff] }
 0x78f   :  { %v1668_v12 = vmul.f32 %v6660_v60, %v1667_v7  ;;  %v6289_v7 = vld [vmem:[%s9390_s17 + $0x80] sm:$0xff] }
 0x790   :  { %1783 = vmatpush.msrb.mxu3 %v6289_v7  ;;  %v2221_v7 = vld [vmem:[#allocation8 + $0xf0] sm:$0xff] }
 0x791   :  { %v1672_v17 = vsel %vm1671_vm13, %v6660_v60, %v1668_v12  ;;  %v6333_v60 = vld [vmem:[%s9390_s17 + $0x1c0] sm:$0xff]  ;;  %v6308_v12 = vld [vmem:[%s9390_s17 + $0x108] sm:$0xff] }
 0x792   :  { %v1674_v20 = vmul.f32 %v1673_v14, %v1672_v17  ;;  %v6328_v14 = vld [vmem:[%s9390_s17 + $0x198] sm:$0xff]  ;;  %1864 = vmatpush.msra.mxu1 %v6308_v12  ;;  %v6326_v17 = vld [vmem:[%s9390_s17 + $0x188] sm:$0xff] }
 0x793   :  { %v2220_v12 = vld [vmem:[#allocation8 + $0xe8] sm:$0xff] }
 0x794   :  { %v1675_v23 = vperm.slane %v1674_v20, 0  ;;  %1865 = vmatpush.msra.mxu1 %v6307_v15  ;;  %v2218_v15 = vld [vmem:[#allocation8 + $0xd8] sm:$0xff] }
 0x796   :  { %v1676_v27 = vmul.f32 %v1675_v23, %v1635_v50  ;;  %v1714_v50 = vld [vmem:[%s9390_s17 + $0x20] sm:$0xff]  ;;  %v2023_v23 = vld [vmem:[#allocation8 + $0x78] sm:$0xff] }
 0x797   :  { %2059 = vmatpush.msrb.mxu1 %v2023_v23  ;;  %v7692_v23 = vld [vmem:[%s9395_s1 + $0xd0] sm:$0xff] }
 0x798   :  { %v1681_v29 = vadd.f32 %v6656_v24, %v1676_v27  ;;  %v2021_v24 = vld [vmem:[#allocation8 + $0x68] sm:$0xff] }
 0x799   :  { %2060 = vmatpush.msrb.mxu1 %v2021_v24  ;;  %v7695_v24 = vld [vmem:[%s9395_s1 + $0xd8] sm:$0xff] }
 0x79a   :  { %vm1682_vm14 = vcmp.gt.f32.partialorder %v1681_v29, 0.0  ;;  %v1683_v31 = vmul.f32 0.2, %v1681_v29 }
 0x79b   :  { %2061 = vmatpush.msrb.mxu1 %v2019_v25  ;;  %v7698_v25 = vld [vmem:[%s9395_s1 + $0x1f0] sm:$0xff] }
 0x79c   :  { %v1684_v32 = vsel %vm1682_vm14, %v1681_v29, %v1683_v31 }
 0x79d   :  { %1705 = vmatpush.msrb.mxu2 %v1684_v32  ;;  %1828 = vmatpush.msra.mxu0 %v1684_v32 }
 0x79e   :  { %6286 = vmatmul.msk.f32.vlgmr.msrb.gmra.mxu2 %vm1686_vm15, %v1685_v11  ;;  %6306 = vmatmul.msk.f32.vlgmr.msra.gmra.mxu0 %vm1686_vm15, %v6305_v33 }
 0x79f   :  { %1891 = vmatpush.msrb.mxu0 %v1684_v32  ;;  %1746 = vmatpush.msra.mxu2 %v1684_v32 }
 0x7a0   :  { %2062 = vmatpush.msrb.mxu1 %v2017_v26  ;;  %v7703_v26 = vld [vmem:[%s9395_s1 + $0x1e0] sm:$0xff] }
 0x7a1   :  { %1788 = vmatpush.msrb.mxu2 %v1725_v9  ;;  %1913 = vmatpush.msra.mxu0 %v6340_v34 }
 0x7a3   :  { %1789 = vmatpush.msrb.mxu2 %v1724_v35  ;;  %1914 = vmatpush.msra.mxu0 %v6339_v4 }
 0x7a5   :  { %1790 = vmatpush.msrb.mxu2 %v1723_v36  ;;  %1915 = vmatpush.msra.mxu0 %v6338_v13 }
 0x7a6   :  { %6288 = vmatmul.msk.f32.vlgmr.msra.gmra.mxu2 %vm1686_vm15, %v6287_v37  ;;  %6324 = vmatmul.msk.f32.vlgmr.msrb.gmra.mxu0 %vm1686_vm15, %v6323_v39 }
 0x7a7   :  { %1916 = vmatpush.msra.mxu0 %v6337_v38  ;;  %1791 = vmatpush.msrb.mxu2 %v1722_v40 }
 0x7a9   :  { %1917 = vmatpush.msra.mxu0 %v6336_v41  ;;  %1792 = vmatpush.msrb.mxu2 %v1721_v42 }
 0x7ab   :  { %1918 = vmatpush.msra.mxu0 %v6335_v43  ;;  %1793 = vmatpush.msrb.mxu2 %v1720_v44  ;;  %v6343_v44 = vld [vmem:[%s9394_s20 + $0x8] sm:$0xff] }
 0x7ad   :  { %1794 = vmatpush.msrb.mxu2 %v1719_v45  ;;  %1919 = vmatpush.msra.mxu0 %v6334_v58  ;;  %v1953_v45 = vld [vmem:[%s9394_s20] sm:$0xff]  ;;  %v6355_v58 = vld [vmem:[%s9394_s20 + $0x18] sm:$0xff] }
 0x7af   :  { %1795 = vmatpush.msrb.mxu2 %v1718_v46  ;;  %1920 = vmatpush.msra.mxu0 %v6333_v60  ;;  %v2022_v46 = vld [vmem:[#allocation8 + $0x70] sm:$0xff] }
 0x7b1   :  { %1796 = vmatpush.msrb.mxu2 %v1717_v47  ;;  %1921 = vmatpush.msra.mxu0 %v6332_v62  ;;  %v1988_v47 = vld [vmem:[#allocation8 + $0x30] sm:$0xff] }
 0x7b2   :  { %v2142_v62 = vld [vmem:[#allocation8 + $0xb0] sm:$0xff] }
 0x7b3   :  { %1797 = vmatpush.msrb.mxu2 %v1716_v48  ;;  %1922 = vmatpush.msra.mxu0 %v6331_v3  ;;  %v2020_v48 = vld [vmem:[#allocation8 + $0x60] sm:$0xff]  ;;  %v2139_v3 = vld [vmem:[#allocation8 + $0x98] sm:$0xff] }
 0x7b5   :  { %1798 = vmatpush.msrb.mxu2 %v1715_v49  ;;  %1923 = vmatpush.msra.mxu0 %v6330_v8  ;;  %v1986_v49 = vld [vmem:[#allocation8 + $0x20] sm:$0xff]  ;;  %v2222_v8 = vld [vmem:[#allocation8 + $0xf8] sm:$0xff] }
 0x7b7   :  { %1799 = vmatpush.msrb.mxu2 %v1714_v50  ;;  %1924 = vmatpush.msra.mxu0 %v6329_v10  ;;  %v2018_v50 = vld [vmem:[#allocation8 + $0x50] sm:$0xff]  ;;  %v2219_v10 = vld [vmem:[#allocation8 + $0xe0] sm:$0xff] }
 0x7b9   :  { %1800 = vmatpush.msrb.mxu2 %v1713_v52  ;;  %1925 = vmatpush.msra.mxu0 %v6328_v14  ;;  %v2016_v52 = vld [vmem:[#allocation8 + $0x40] sm:$0xff]  ;;  %v2217_v14 = vld [vmem:[#allocation8 + $0xd0] sm:$0xff] }
 0x7bb   :  { %1801 = vmatpush.msrb.mxu2 %v1712_v54  ;;  %1926 = vmatpush.msra.mxu0 %v6327_v16  ;;  %v1989_v54 = vld [vmem:[#allocation8 + $0x38] sm:$0xff]  ;;  %v2215_v16 = vld [vmem:[#allocation8 + $0xc0] sm:$0xff] }
 0x7bd   :  { %1802 = vmatpush.msrb.mxu2 %v1711_v56  ;;  %1927 = vmatpush.msra.mxu0 %v6326_v17  ;;  %v1985_v56 = vld [vmem:[#allocation8 + $0x18] sm:$0xff]  ;;  %v2216_v17 = vld [vmem:[#allocation8 + $0xc8] sm:$0xff] }
 0x7bf   :  { %1803 = vmatpush.msrb.mxu2 %v1710_v0  ;;  %1928 = vmatpush.msra.mxu0 %v6325_v18  ;;  %v2140_v0 = vld [vmem:[#allocation8 + $0xa0] sm:$0xff] }
 0x81b   :  { %v1830_v19 = vpop.f32.mrf.mxu0 }
 0x81c   :  { %1866 = vmatmul.f32.vlgmr.msra.gmra.mxu1 %v1830_v19  ;;  %v7678_v19 = vld [vmem:[%s9395_s1 + $0xf0] sm:$0xff] }
 0x821   :  { %v1707_v20 = vpop.f32.mrf.mxu2 }
 0x822   :  { %1804 = vmatmul.f32.vlgmr.msrb.gmra.mxu2 %v1707_v20  ;;  %v7681_v20 = vld [vmem:[%s9395_s1 + $0xf8] sm:$0xff] }
 0x823   :  { %v1893_v21 = vpop.f32.mrf.mxu0 }
 0x824   :  { %1929 = vmatmul.f32.vlgmr.msra.gmra.mxu0 %v1893_v21  ;;  %v7684_v21 = vld [vmem:[%s9395_s1 + $0xe0] sm:$0xff] }
 0x829   :  { %v1748_v22 = vpop.f32.mrf.mxu2 }
 0x82a   :  { %1784 = vmatmul.f32.vlgmr.msrb.gmra.mxu3 %v1748_v22  ;;  %v7689_v22 = vld [vmem:[%s9395_s1 + $0xe8] sm:$0xff] }
 0x899   :  { %v1867_v30 = vpop.f32.mrf.mxu1 }
 0x8a1   :  { %v1930_v31 = vpop.f32.mrf.mxu0 }
 0x8a5   :  { %v1805_v28 = vpop.f32.mrf.mxu2 }
 0x8ad   :  { %v1785_v27 = vpop.f32.mrf.mxu3 }
 0x8ae   :  { %v1806_v29 = vadd.f32 %v1805_v28, %v1785_v27  ;;  %v7706_v27 = vld [vmem:[%s9395_s1 + $0xc0] sm:$0xff]  ;;  %v7710_v28 = vld [vmem:[%s9395_s1 + $0xc8] sm:$0xff] }
 0x8b0   :  { %v1870_v11 = vadd.f32 %v1867_v30, %v1806_v29  ;;  %v7715_v29 = vld [vmem:[%s9395_s1 + $0x1d0] sm:$0xff] }
 0x8b1   :  { %v7718_v30 = vld [vmem:[%s9395_s1 + $0xb0] sm:$0xff] }
 0x8b2   :  { %v1933_v32 = vadd.f32 %v1930_v31, %v1870_v11  ;;  %v7722_v31 = vld [vmem:[%s9395_s1 + $0xb8] sm:$0xff]  ;;  %v7727_v11 = vld [vmem:[%s9395_s1 + $0x1c0] sm:$0xff] }
 0x8b4   :  { %v1934_v33 = vsub.f32 0.0, %v1933_v32  ;;  %v7730_v32 = vld [vmem:[%s9395_s1 + $0xa0] sm:$0xff] }
 0x8b6   :  { %v1935_v9 = vmul.f32 1.442695, %v1934_v33  ;;  %v7734_v33 = vld [vmem:[%s9395_s1 + $0xa8] sm:$0xff] }
 0x8b8   :  { %6661 = vpow2.f32 %v1935_v9  ;;  %v7739_v9 = vld [vmem:[%s9395_s1 + $0x90] sm:$0xff] }
 0x8be   :  { %v6662_v34 = vpop.eup %6661 }
 0x8bf   :  { %v1937_v35 = vadd.f32 1.0, %v6662_v34  ;;  %v7743_v34 = vld [vmem:[%s9395_s1 + $0x98] sm:$0xff] }
 0x8c1   :  { %6663 = vrcp.f32 %v1937_v35  ;;  %v1949_v37 = vand.u32 2147483648, %v1937_v35  ;;  %v1947_v39 = vand.u32 2147483647, %v1937_v35  ;;  %vm1943_vm2 = vweird.f32 %v1937_v35 }
 0x8c3   :  { %v1950_v41 = vor.u32 1.1754944e-38, %v1949_v37  ;;  %vm1948_vm5 = vcmp.eq.f32.partialorder %v1947_v39, 8.507059e+37  ;;  %v7761_v37 = vld [vmem:[%s9395_s1 + $0x1d8] sm:$0xff]  ;;  %v7771_v39 = vld [vmem:[%s9395_s1 + $0x80] sm:$0xff] }
 0x8c7   :  { %v6664_v4 = vpop.eup %6663 }
 0x8c8   :  { %v1939_v36 = vmul.f32 %v6664_v4, %v1937_v35  ;;  %vm1944_vm1 = vweird.f32 %v6664_v4 }
 0x8c9   :  { %vm1945_vm3 = vmor %vm1943_vm2, %vm1944_vm1 }
 0x8ca   :  { %v1940_v13 = vsub.f32 1.0, %v1939_v36 }
 0x8cc   :  { %v1941_v38 = vmul.f32 %v6664_v4, %v1940_v13  ;;  %v7757_v13 = vld [vmem:[%s9395_s1 + $0x1e8] sm:$0xff] }
 0x8ce   :  { %v1942_v40 = vadd.f32 %v6664_v4, %v1941_v38  ;;  %v7765_v38 = vld [vmem:[%s9395_s1 + $0x1c8] sm:$0xff] }
 0x8d0   :  { %v1946_v42 = vsel %vm1945_vm3, %v6664_v4, %v1942_v40  ;;  %v7752_v4 = vld [vmem:[%s9395_s1 + $0x1f8] sm:$0xff]  ;;  %v7774_v40 = vld [vmem:[%s9395_s1 + $0x1b0] sm:$0xff] }
 0x8d1   :  { %v1951_v43 = vsel %vm1948_vm5, %v1950_v41, %v1946_v42  ;;  %v7777_v41 = vld [vmem:[%s9395_s1 + $0x88] sm:$0xff]  ;;  %v7782_v42 = vld [vmem:[%s9395_s1 + $0x1b8] sm:$0xff] }
 0x8d2   :  { %6341 = vmatpush.msk.msra.mxu3 %vm1958_vm4, %v1951_v43  ;;  %6344 = vmatpush.msk.msra.mxu2 %vm1958_vm4, %v1951_v43 }
 0x8d3   :  { %6351 = vmatpush.msk.msra.mxu1 %vm1958_vm4, %v1951_v43  ;;  %6356 = vmatpush.msk.msrb.mxu0 %vm1958_vm4, %v1951_v43  ;;  %v7787_v43 = vld [vmem:[%s9395_s1 + $0x70] sm:$0xff] }
 0x8d4   :  { %6345 = vmatmul.msk.f32.vlgmr.msra.gmra.mxu2 %vm1954_vm6, %v6343_v44  ;;  %6342 = vmatmul.msk.f32.vlgmr.msra.gmra.mxu3 %vm1954_vm6, %v1953_v45  ;;  %v7790_v44 = vld [vmem:[%s9395_s1 + $0x1a0] sm:$0xff]  ;;  %v7793_v45 = vld [vmem:[%s9395_s1 + $0x78] sm:$0xff] }
 0x8d5   :  { %2039 = vmatpush.msrb.mxu3 %v2022_v46  ;;  %2082 = vmatpush.msrb.mxu2 %v1988_v47  ;;  %v7798_v46 = vld [vmem:[%s9395_s1 + $0x1a8] sm:$0xff]  ;;  %v7803_v47 = vld [vmem:[%s9395_s1 + $0x60] sm:$0xff] }
 0x8d6   :  { %6357 = vmatmul.msk.f32.vlgmr.msrb.gmra.mxu0 %vm1954_vm6, %v6355_v58  ;;  %v7846_v58 = vld [vmem:[%s9395_s1 + $0x178] sm:$0xff] }
 0x8d7   :  { %2040 = vmatpush.msrb.mxu3 %v2020_v48  ;;  %2083 = vmatpush.msrb.mxu2 %v1986_v49  ;;  %v7806_v48 = vld [vmem:[%s9395_s1 + $0x190] sm:$0xff]  ;;  %v7809_v49 = vld [vmem:[%s9395_s1 + $0x68] sm:$0xff] }
 0x8d8   :  { %2364 = vmatpush.msra.mxu0 %v7698_v25 }
 0x8d9   :  { %2041 = vmatpush.msrb.mxu3 %v2018_v50  ;;  %2084 = vmatpush.msrb.mxu2 %v1984_v51  ;;  %v7814_v50 = vld [vmem:[%s9395_s1 + $0x198] sm:$0xff]  ;;  %v7819_v51 = vld [vmem:[%s9395_s1 + $0x50] sm:$0xff] }
 0x8da   :  { %2365 = vmatpush.msra.mxu0 %v7703_v26 }
 0x8db   :  { %2042 = vmatpush.msrb.mxu3 %v2016_v52  ;;  %2085 = vmatpush.msrb.mxu2 %v1982_v53  ;;  %v7822_v52 = vld [vmem:[%s9395_s1 + $0x180] sm:$0xff]  ;;  %v7825_v53 = vld [vmem:[%s9395_s1 + $0x58] sm:$0xff] }
 0x8dc   :  { %2366 = vmatpush.msra.mxu0 %v7715_v29 }
 0x8dd   :  { %2102 = vmatpush.msra.mxu3 %v1989_v54  ;;  %2159 = vmatpush.msra.mxu2 %v2142_v62  ;;  %v7830_v54 = vld [vmem:[%s9395_s1 + $0x188] sm:$0xff] }
 0x8de   :  { %2367 = vmatpush.msra.mxu0 %v7727_v11  ;;  %v7862_v62 = vld [vmem:[%s9395_s1 + $0x168] sm:$0xff] }
 0x8df   :  { %2103 = vmatpush.msra.mxu3 %v1987_v55  ;;  %2160 = vmatpush.msra.mxu2 %v2140_v0  ;;  %v7835_v55 = vld [vmem:[%s9395_s1 + $0x40] sm:$0xff]  ;;  %v7870_v0 = vld [vmem:[%s9395_s1 + $0x150] sm:$0xff] }
 0x8e0   :  { %2368 = vmatpush.msra.mxu0 %v7774_v40 }
 0x8e1   :  { %2104 = vmatpush.msra.mxu3 %v1985_v56  ;;  %2161 = vmatpush.msra.mxu2 %v2138_v2  ;;  %v7838_v56 = vld [vmem:[%s9395_s1 + $0x170] sm:$0xff]  ;;  %v7878_v2 = vld [vmem:[%s9395_s1 + $0x158] sm:$0xff] }
 0x8e2   :  { %2369 = vmatpush.msra.mxu0 %v7790_v44 }
 0x8e3   :  { %2105 = vmatpush.msra.mxu3 %v1983_v57  ;;  %2162 = vmatpush.msra.mxu2 %v2136_v5  ;;  %v7841_v57 = vld [vmem:[%s9395_s1 + $0x48] sm:$0xff]  ;;  %v7886_v5 = vld [vmem:[%s9395_s1 + $0x140] sm:$0xff] }
 0x8e4   :  { %2370 = vmatpush.msra.mxu0 %v7806_v48 }
 0x8e6   :  { %2371 = vmatpush.msra.mxu0 %v7822_v52 }
 0x8e8   :  { %2372 = vmatpush.msra.mxu0 %v7838_v56 }
 0x953   :  { %v2211_v18 = vpop.f32.mrf.mxu0 }
 0x957   :  { %v2012_v59 = vpop.f32.mrf.mxu2  ;;  %v1979_v60 = vpop.f32.mrf.mxu3 }
 0x958   :  { %6347 = vmatmul.msk.f32.vlgmr.msrb.gmra.mxu1 %vm352_vm0, %v2012_v59  ;;  %6346 = vmatmul.msk.f32.vlgmr.msrb.gmra.mxu3 %vm352_vm0, %v2012_v59  ;;  %v7851_v59 = vld [vmem:[%s9395_s1 + $0x30] sm:$0xff] }
 0x959   :  { %6348 = vmatmul.msk.f32.vlgmr.msrb.gmra.mxu2 %vm352_vm0, %v1979_v60  ;;  %2179 = vmatpush.msrb.mxu3 %v2143_v63  ;;  %v7867_v63 = vld [vmem:[%s9395_s1 + $0x20] sm:$0xff] }
 0x95a   :  { %2238 = vmatpush.msrb.mxu1 %v2221_v7  ;;  %2258 = vmatpush.msrb.mxu2 %v2222_v8  ;;  %v7894_v7 = vld [vmem:[%s9395_s1 + $0x148] sm:$0xff]  ;;  %v7899_v8 = vld [vmem:[%s9395_s1] sm:$0xff] }
 0x95b   :  { %2180 = vmatpush.msrb.mxu3 %v2141_v1  ;;  %v7873_v1 = vld [vmem:[%s9395_s1 + $0x28] sm:$0xff] }
 0x95c   :  { %2239 = vmatpush.msrb.mxu1 %v2219_v10  ;;  %2259 = vmatpush.msrb.mxu2 %v2220_v12  ;;  %v7902_v10 = vld [vmem:[%s9395_s1 + $0x130] sm:$0xff]  ;;  %v7905_v12 = vld [vmem:[%s9395_s1 + $0x8] sm:$0xff] }
 0x95d   :  { %2181 = vmatpush.msrb.mxu3 %v2139_v3  ;;  %v7883_v3 = vld [vmem:[%s9395_s1 + $0x10] sm:$0xff]  ;;  %9396 = vst [vmem:[#allocation38_spill] sm:$0xff] %v7905_v12 }
 0x95e   :  { %2240 = vmatpush.msrb.mxu1 %v2217_v14  ;;  %2260 = vmatpush.msrb.mxu2 %v2218_v15  ;;  %v7910_v14 = vld [vmem:[%s9395_s1 + $0x138] sm:$0xff] }
 0x95f   :  { %2182 = vmatpush.msrb.mxu3 %v2137_v6  ;;  %v7889_v6 = vld [vmem:[%s9395_s1 + $0x18] sm:$0xff]  ;;  %9397 = vst [vmem:[#allocation39_spill] sm:$0xff] %v7910_v14 }
 0x960   :  { %6352 = vmatmul.msk.f32.vlgmr.msra.gmra.mxu1 %vm1954_vm6, %v6350_v61  ;;  %6349 = vmatmul.msk.f32.vlgmr.msra.gmra.mxu3 %vm352_vm0, %v1979_v60  ;;  %v7854_v60 = vld [vmem:[%s9395_s1 + $0x160] sm:$0xff]  ;;  %v7857_v61 = vld [vmem:[%s9395_s1 + $0x38] sm:$0xff] }
 0x961   :  { %2241 = vmatpush.msrb.mxu1 %v2215_v16  ;;  %2261 = vmatpush.msrb.mxu2 %v2216_v17  ;;  %v7915_v16 = vld [vmem:[%s9395_s1 + $0x120] sm:$0xff]  ;;  %v7918_v17 = vld [vmem:[%s9395_s1 + $0x128] sm:$0xff] }
 0x962   :  { %2344 = vmatpush.msra.mxu3 %v7678_v19  ;;  %2373 = vmatpush.msra.mxu0 %v7854_v60 }
 0x963   :  { %2384 = vmatpush.msra.mxu1 %v7681_v20 }
 0x964   :  { %2345 = vmatpush.msra.mxu3 %v7684_v21  ;;  %2374 = vmatpush.msra.mxu0 %v7870_v0 }
 0x965   :  { %2385 = vmatpush.msra.mxu1 %v7689_v22 }
 0x966   :  { %2346 = vmatpush.msra.mxu3 %v7692_v23  ;;  %2375 = vmatpush.msra.mxu0 %v7886_v5 }
 0x967   :  { %2386 = vmatpush.msra.mxu1 %v7695_v24 }
 0x968   :  { %6358 = vmatmul.msk.f32.vlgmr.msrb.gmra.mxu1 %vm352_vm0, %v2211_v18  ;;  %2347 = vmatpush.msra.mxu3 %v7706_v27 }
 0x969   :  { %2387 = vmatpush.msra.mxu1 %v7710_v28  ;;  %2376 = vmatpush.msra.mxu0 %v7902_v10 }
 0x96a   :  { %2348 = vmatpush.msra.mxu3 %v7718_v30 }
 0x96b   :  { %2388 = vmatpush.msra.mxu1 %v7722_v31  ;;  %2377 = vmatpush.msra.mxu0 %v7915_v16 }
 0x96c   :  { %2349 = vmatpush.msra.mxu3 %v7730_v32 }
 0x96d   :  { %2389 = vmatpush.msra.mxu1 %v7734_v33 }
 0x96e   :  { %2350 = vmatpush.msra.mxu3 %v7739_v9 }
 0x96f   :  { %2390 = vmatpush.msra.mxu1 %v7743_v34 }
 0x970   :  { %2351 = vmatpush.msra.mxu3 %v7771_v39 }
 0x971   :  { %2391 = vmatpush.msra.mxu1 %v7777_v41 }
 0x972   :  { %2352 = vmatpush.msra.mxu3 %v7787_v43 }
 0x973   :  { %2392 = vmatpush.msra.mxu1 %v7793_v45 }
 0x974   :  { %2353 = vmatpush.msra.mxu3 %v7803_v47 }
 0x975   :  { %2393 = vmatpush.msra.mxu1 %v7809_v49 }
 0x976   :  { %2354 = vmatpush.msra.mxu3 %v7819_v51 }
 0x977   :  { %2394 = vmatpush.msra.mxu1 %v7825_v53 }
 0x978   :  { %2355 = vmatpush.msra.mxu3 %v7835_v55 }
 0x979   :  { %2395 = vmatpush.msra.mxu1 %v7841_v57 }
 0x97a   :  { %2356 = vmatpush.msra.mxu3 %v7851_v59 }
 0x97b   :  { %2396 = vmatpush.msra.mxu1 %v7857_v61 }
 0x97c   :  { %2357 = vmatpush.msra.mxu3 %v7867_v63 }
 0x97d   :  { %2397 = vmatpush.msra.mxu1 %v7873_v1 }
 0x97e   :  { %2358 = vmatpush.msra.mxu3 %v7883_v3 }
 0x97f   :  { %2398 = vmatpush.msra.mxu1 %v7889_v6 }
 0x980   :  { %2359 = vmatpush.msra.mxu3 %v7899_v8 }
 0x981   :  { %2399 = vmatpush.msra.mxu1 %v7905_v12  ;;  %v7932_v12 = vld [vmem:[%s9395_s1 + $0x100] sm:$0xff] }
 0x983   :  { %2482 = vmatpush.msrb.mxu1 %v7681_v20 }
 0x985   :  { %2483 = vmatpush.msrb.mxu1 %v7689_v22 }
 0x987   :  { %2484 = vmatpush.msrb.mxu1 %v7695_v24 }
 0x989   :  { %2485 = vmatpush.msrb.mxu1 %v7710_v28 }
 0x98b   :  { %2486 = vmatpush.msrb.mxu1 %v7722_v31 }
 0x98d   :  { %2487 = vmatpush.msrb.mxu1 %v7734_v33 }
 0x98f   :  { %2488 = vmatpush.msrb.mxu1 %v7743_v34 }
 0x991   :  { %2489 = vmatpush.msrb.mxu1 %v7777_v41 }
 0x993   :  { %2490 = vmatpush.msrb.mxu1 %v7793_v45 }
 0x995   :  { %2491 = vmatpush.msrb.mxu1 %v7809_v49 }
 0x997   :  { %2492 = vmatpush.msrb.mxu1 %v7825_v53 }
 0x999   :  { %2493 = vmatpush.msrb.mxu1 %v7841_v57 }
 0x99b   :  { %2494 = vmatpush.msrb.mxu1 %v7857_v61 }
 0x99d   :  { %2495 = vmatpush.msrb.mxu1 %v7873_v1 }
 0x99f   :  { %2496 = vmatpush.msrb.mxu1 %v7889_v6 }
 0x9d5   :  { %v7749_v35 = vpop.f32.mrf.mxu1 }
 0x9db   :  { %v2044_v15 = vpop.f32.mrf.mxu3 }
 0x9dd   :  { %v2132_v36 = vpop.f32.mrf.mxu1 }
 0x9de   :  { %6353 = vmatmul.msk.f32.vlgmr.msra.gmra.mxu2 %vm352_vm0, %v2132_v36  ;;  %6354 = vmatmul.msk.f32.vlgmr.msrb.gmra.mxu3 %vm352_vm0, %v2132_v36  ;;  %v7927_v36 = vld [vmem:[%s9395_s1 + $0x118] sm:$0xff] }
 0x9df   :  { %2404 = vmatpush.msra.mxu2 %v7752_v4  ;;  %2442 = vmatpush.msrb.mxu3 %v7678_v19  ;;  %v2087_v19 = vpop.f32.mrf.mxu2 }
 0x9e1   :  { %2405 = vmatpush.msra.mxu2 %v7757_v13  ;;  %2443 = vmatpush.msrb.mxu3 %v7684_v21  ;;  %v2088_v21 = vadd.f32 %v2087_v19, %v2044_v15 }
 0x9e3   :  { %2406 = vmatpush.msra.mxu2 %v7761_v37  ;;  %2444 = vmatpush.msrb.mxu3 %v7692_v23  ;;  %v2107_v20 = vpop.f32.mrf.mxu3 }
 0x9e5   :  { %2407 = vmatpush.msra.mxu2 %v7765_v38  ;;  %2445 = vmatpush.msrb.mxu3 %v7706_v27  ;;  %v2243_v23 = vpop.f32.mrf.mxu1  ;;  %v2108_v27 = vadd.f32 %v2107_v20, %v7749_v35 }
 0x9e6   :  { %6359 = vmatmul.msk.f32.vlgmr.msrb.gmra.mxu2 %vm352_vm0, %v2211_v18  ;;  %v7924_v18 = vld [vmem:[%s9395_s1 + $0x110] sm:$0xff] }
 0x9e7   :  { %2408 = vmatpush.msra.mxu2 %v7782_v42  ;;  %2378 = vmatpush.msra.mxu0 %v7924_v18 }
 0x9e8   :  { %2446 = vmatpush.msrb.mxu3 %v7718_v30 }
 0x9e9   :  { %2409 = vmatpush.msra.mxu2 %v7798_v46  ;;  %2379 = vmatpush.msra.mxu0 %v7932_v12 }
 0x9ea   :  { %2447 = vmatpush.msrb.mxu3 %v7730_v32 }
 0x9eb   :  { %2410 = vmatpush.msra.mxu2 %v7814_v50  ;;  %2462 = vmatpush.msrb.mxu0 %v7698_v25 }
 0x9ec   :  { %2448 = vmatpush.msrb.mxu3 %v7739_v9 }
 0x9ed   :  { %2411 = vmatpush.msra.mxu2 %v7830_v54  ;;  %2463 = vmatpush.msrb.mxu0 %v7703_v26 }
 0x9ee   :  { %2449 = vmatpush.msrb.mxu3 %v7771_v39  ;;  %v9398_v39 = vld [vmem:[#allocation38_spill] sm:$0xff] }
 0x9ef   :  { %2412 = vmatpush.msra.mxu2 %v7846_v58  ;;  %2464 = vmatpush.msrb.mxu0 %v7715_v29 }
 0x9f0   :  { %2450 = vmatpush.msrb.mxu3 %v7787_v43  ;;  %2497 = vmatpush.msrb.mxu1 %v9398_v39  ;;  %v2564_v39 = vld [vmem:[%s9402_s22] sm:$0xff] }
 0x9f1   :  { %2413 = vmatpush.msra.mxu2 %v7862_v62  ;;  %2465 = vmatpush.msrb.mxu0 %v7727_v11 }
 0x9f2   :  { %2451 = vmatpush.msrb.mxu3 %v7803_v47 }
 0x9f3   :  { %2414 = vmatpush.msra.mxu2 %v7878_v2  ;;  %2466 = vmatpush.msrb.mxu0 %v7774_v40  ;;  %v9399_v40 = vld [vmem:[#allocation39_spill] sm:$0xff] }
 0x9f4   :  { %2452 = vmatpush.msrb.mxu3 %v7819_v51 }
 0x9f5   :  { %2415 = vmatpush.msra.mxu2 %v7894_v7  ;;  %2467 = vmatpush.msrb.mxu0 %v7790_v44 }
 0x9f6   :  { %2453 = vmatpush.msrb.mxu3 %v7835_v55 }
 0x9f7   :  { %2416 = vmatpush.msra.mxu2 %v7910_v14  ;;  %v7935_v14 = vld [vmem:[%s9395_s1 + $0x108] sm:$0xff]  ;;  %2468 = vmatpush.msrb.mxu0 %v7806_v48 }
 0x9f8   :  { %2454 = vmatpush.msrb.mxu3 %v7851_v59 }
 0x9f9   :  { %2417 = vmatpush.msra.mxu2 %v7918_v17  ;;  %2469 = vmatpush.msrb.mxu0 %v7822_v52 }
 0x9fa   :  { %2455 = vmatpush.msrb.mxu3 %v7867_v63 }
 0x9fb   :  { %2418 = vmatpush.msra.mxu2 %v7927_v36  ;;  %2470 = vmatpush.msrb.mxu0 %v7838_v56 }
 0x9fc   :  { %2456 = vmatpush.msrb.mxu3 %v7883_v3 }
 0x9fd   :  { %2419 = vmatpush.msra.mxu2 %v7935_v14  ;;  %2471 = vmatpush.msrb.mxu0 %v7854_v60 }
 0x9fe   :  { %2457 = vmatpush.msrb.mxu3 %v7899_v8 }
 0x9ff   :  { %2502 = vmatpush.msrb.mxu2 %v7752_v4  ;;  %2472 = vmatpush.msrb.mxu0 %v7870_v0 }
 0xa01   :  { %2503 = vmatpush.msrb.mxu2 %v7757_v13  ;;  %2473 = vmatpush.msrb.mxu0 %v7886_v5 }
 0xa03   :  { %2504 = vmatpush.msrb.mxu2 %v7761_v37  ;;  %2474 = vmatpush.msrb.mxu0 %v7902_v10 }
 0xa05   :  { %2505 = vmatpush.msrb.mxu2 %v7765_v38  ;;  %2475 = vmatpush.msrb.mxu0 %v7915_v16 }
 0xa07   :  { %2506 = vmatpush.msrb.mxu2 %v7782_v42  ;;  %2476 = vmatpush.msrb.mxu0 %v7924_v18 }
 0xa09   :  { %2507 = vmatpush.msrb.mxu2 %v7798_v46  ;;  %2477 = vmatpush.msrb.mxu0 %v7932_v12 }
 0xa0b   :  { %2508 = vmatpush.msrb.mxu2 %v7814_v50 }
 0xa0d   :  { %2509 = vmatpush.msrb.mxu2 %v7830_v54 }
 0xa0f   :  { %2510 = vmatpush.msrb.mxu2 %v7846_v58 }
 0xa11   :  { %2511 = vmatpush.msrb.mxu2 %v7862_v62 }
 0xa13   :  { %2512 = vmatpush.msrb.mxu2 %v7878_v2 }
 0xa15   :  { %2513 = vmatpush.msrb.mxu2 %v7894_v7 }
 0xa17   :  { %2514 = vmatpush.msrb.mxu2 %v9399_v40  ;;  %v2768_v40 = vld [vmem:[#allocation10 + $0x2f0] sm:$0xff] }
 0xa19   :  { %2515 = vmatpush.msrb.mxu2 %v7918_v17 }
 0xa1b   :  { %2516 = vmatpush.msrb.mxu2 %v7927_v36  ;;  %v2542_v36 = vld [vmem:[%s9400_s28] sm:$0x3] }
 0xa1d   :  { %2517 = vmatpush.msrb.mxu2 %v7935_v14 }
 0xa61   :  { %v2164_v22 = vpop.f32.mrf.mxu2  ;;  %v2184_v26 = vpop.f32.mrf.mxu3 }
 0xa62   :  { %v2187_v24 = vadd.f32 %v2164_v22, %v2088_v21  ;;  %v2188_v29 = vadd.f32 %v2184_v26, %v2108_v27  ;;  %v2544_v22 = vperm.slane %v2542_v36, 0  ;;  %v2554_v27 = vld [vmem:[%s9401_s7] sm:$0x3] }
 0xa64   :  { %v7964_v25 = vadd.f32 %v2243_v23, %v2187_v24 }
 0xa66   :  { %v2268_v28 = vrot.slane %v7964_v25, 4 }
 0xa68   :  { %v2269_v30 = vadd.f32 %v2268_v28, %v7964_v25 }
 0xa69   :  { %v2263_v31 = vpop.f32.mrf.mxu2 }
 0xa6a   :  { %v2270_v11 = vrot.slane %v2269_v30, 2  ;;  %v2267_v32 = vadd.f32 %v2263_v31, %v2188_v29  ;;  %v2545_v29 = vperm.slane %v2542_v36, 1  ;;  %v2749_v36 = vld [vmem:[#allocation10 + $0x258] sm:$0xff] }
 0xa6c   :  { %v2271_v33 = vadd.f32 %v2270_v11, %v2269_v30  ;;  %v2274_v9 = vrot.slane %v2267_v32, 4  ;;  %v2556_v11 = vperm.slane %v2554_v27, 0 }
 0xa6e   :  { %v2272_v34 = vrot.slane %v2271_v33, 1  ;;  %v2275_v35 = vadd.f32 %v2274_v9, %v2267_v32 }
 0xa70   :  { %v2273_v4 = vadd.f32 %v2272_v34, %v2271_v33  ;;  %v2276_v13 = vrot.slane %v2275_v35, 2 }
 0xa72   :  { %v2277_v37 = vadd.f32 %v2276_v13, %v2275_v35  ;;  %2360 = vmatmul.f32.vlgmr.msra.gmra.mxu3 %v2273_v4  ;;  %2400 = vmatmul.f32.vlgmr.msra.gmra.mxu1 %v2273_v4  ;;  %v2557_v4 = vperm.slane %v2554_v27, 1  ;;  %v2782_v27 = vld [vmem:[#allocation10 + $0x360] sm:$0xff] }
 0xa74   :  { %v2278_v38 = vrot.slane %v2277_v37, 1 }
 0xa76   :  { %v2279_v41 = vadd.f32 %v2278_v38, %v2277_v37  ;;  %v6364_v37 = vld [vmem:[%s9402_s22 + $0x10] sm:$0xff] }
 0xa78   :  { %2380 = vmatmul.f32.vlgmr.msra.gmra.mxu0 %v2279_v41  ;;  %2420 = vmatmul.f32.vlgmr.msra.gmra.mxu2 %v2279_v41  ;;  %v2769_v41 = vld [vmem:[#allocation10 + $0x2f8] sm:$0xff] }
 0xaef   :  { %v2401_v47 = vpop.f32.mrf.mxu1 }
 0xaf5   :  { %v2361_v42 = vpop.f32.mrf.mxu3  ;;  %v2381_v43 = vpop.f32.mrf.mxu0 }
 0xaf6   :  { %v2382_v44 = vadd.f32 %v2381_v43, %v2361_v42 }
 0xaf8   :  { %v2424_v45 = vperm.slane %v2382_v44, 0  ;;  %v2766_v44 = vld [vmem:[#allocation10 + $0x2e0] sm:$0xff] }
 0xafa   :  { %v2426_v46 = vsub.f32 %v7964_v25, %v2424_v45  ;;  %v2767_v45 = vld [vmem:[#allocation10 + $0x2e8] sm:$0xff] }
 0xafb   :  { %v2421_v48 = vpop.f32.mrf.mxu2 }
 0xafc   :  { %v2428_v49 = vmul.f32 %v2426_v46, %v2426_v46  ;;  %v2422_v50 = vadd.f32 %v2421_v48, %v2401_v47  ;;  %v2801_v47 = vld [vmem:[#allocation10 + $0x3f8] sm:$0xff]  ;;  %v2764_v48 = vld [vmem:[#allocation10 + $0x2d0] sm:$0xff] }
 0xafe   :  { %v2430_v51 = vrot.slane %v2428_v49, 4  ;;  %v2425_v52 = vperm.slane %v2422_v50, 0  ;;  %v6365_v50 = vld [vmem:[%s9402_s22 + $0x18] sm:$0xff] }
 0xb00   :  { %v2431_v53 = vadd.f32 %v2430_v51, %v2428_v49  ;;  %v2427_v54 = vsub.f32 %v2267_v32, %v2425_v52  ;;  %v2765_v49 = vld [vmem:[#allocation10 + $0x2d8] sm:$0xff]  ;;  %v2565_v51 = vld [vmem:[%s9402_s22 + $0x8] sm:$0xff]  ;;  %v2762_v52 = vld [vmem:[#allocation10 + $0x2c0] sm:$0xff] }
 0xb02   :  { %v2432_v55 = vrot.slane %v2431_v53, 2  ;;  %v2429_v56 = vmul.f32 %v2427_v54, %v2427_v54 }
 0xb04   :  { %v2433_v57 = vadd.f32 %v2432_v55, %v2431_v53  ;;  %v2436_v58 = vrot.slane %v2429_v56, 4  ;;  %v2763_v53 = vld [vmem:[#allocation10 + $0x2c8] sm:$0xff] }
 0xb05   :  { %v2799_v55 = vld [vmem:[#allocation10 + $0x3e8] sm:$0xff] }
 0xb06   :  { %v2434_v59 = vrot.slane %v2433_v57, 1  ;;  %v2437_v60 = vadd.f32 %v2436_v58, %v2429_v56  ;;  %v2760_v56 = vld [vmem:[#allocation10 + $0x2b0] sm:$0xff]  ;;  %v2758_v58 = vld [vmem:[#allocation10 + $0x2a0] sm:$0xff] }
 0xb08   :  { %v2438_v61 = vrot.slane %v2437_v60, 2  ;;  %v2435_v62 = vadd.f32 %v2434_v59, %v2433_v57  ;;  %v2761_v57 = vld [vmem:[#allocation10 + $0x2b8] sm:$0xff]  ;;  %v2759_v59 = vld [vmem:[#allocation10 + $0x2a8] sm:$0xff] }
 0xb0a   :  { %v2439_v63 = vadd.f32 %v2438_v61, %v2437_v60  ;;  %2458 = vmatmul.f32.vlgmr.msrb.gmra.mxu3 %v2435_v62  ;;  %2498 = vmatmul.f32.vlgmr.msrb.gmra.mxu1 %v2435_v62  ;;  %v2796_v60 = vld [vmem:[#allocation10 + $0x3d0] sm:$0xff]  ;;  %v2797_v61 = vld [vmem:[#allocation10 + $0x3d8] sm:$0xff] }
 0xb0b   :  { %v2756_v62 = vld [vmem:[#allocation10 + $0x290] sm:$0xff] }
 0xb0c   :  { %v2440_v0 = vrot.slane %v2439_v63, 1 }
 0xb0e   :  { %v2441_v1 = vadd.f32 %v2440_v0, %v2439_v63  ;;  %v2757_v63 = vld [vmem:[#allocation10 + $0x298] sm:$0xff]  ;;  %v2794_v0 = vld [vmem:[#allocation10 + $0x3c0] sm:$0xff] }
 0xb10   :  { %2478 = vmatmul.f32.vlgmr.msrb.gmra.mxu0 %v2441_v1  ;;  %2518 = vmatmul.f32.vlgmr.msrb.gmra.mxu2 %v2441_v1  ;;  %v2795_v1 = vld [vmem:[#allocation10 + $0x3c8] sm:$0xff] }
 0xb87   :  { %v2499_v5 = vpop.f32.mrf.mxu1 }
 0xb88   :  { %v2500_v8 = vadd.f32 1e-05, %v2499_v5  ;;  %v2792_v5 = vld [vmem:[#allocation10 + $0x3b0] sm:$0xff] }
 0xb8d   :  { %v2459_v2 = vpop.f32.mrf.mxu3  ;;  %v2479_v6 = vpop.f32.mrf.mxu0 }
 0xb8e   :  { %v2460_v3 = vadd.f32 1e-05, %v2459_v2  ;;  %v2754_v2 = vld [vmem:[#allocation10 + $0x280] sm:$0xff] }
 0xb90   :  { %v2480_v7 = vadd.f32 %v2479_v6, %v2460_v3  ;;  %v2755_v3 = vld [vmem:[#allocation10 + $0x288] sm:$0xff]  ;;  %v2793_v6 = vld [vmem:[#allocation10 + $0x3b8] sm:$0xff] }
 0xb92   :  { %6665 = vrsqrt.f32 %v2480_v7  ;;  %vm2528_vm8 = vweird.f32 %v2480_v7 }
 0xb93   :  { %v2519_v10 = vpop.f32.mrf.mxu2 }
 0xb94   :  { %v2520_v12 = vadd.f32 %v2519_v10, %v2500_v8  ;;  %v2753_v8 = vld [vmem:[#allocation10 + $0x278] sm:$0xff]  ;;  %v2790_v10 = vld [vmem:[#allocation10 + $0x3a0] sm:$0xff] }
 0xb96   :  { %6667 = vrsqrt.f32 %v2520_v12  ;;  %vm2538_vm12 = vweird.f32 %v2520_v12 }
 0xb98   :  { %v6666_v14 = vpop.eup %6665 }
 0xb99   :  { %v2523_v15 = vmul.f32 %v6666_v14, %v2480_v7  ;;  %vm2529_vm7 = vweird.f32 %v6666_v14  ;;  %v2752_v7 = vld [vmem:[#allocation10 + $0x270] sm:$0xff] }
 0xb9a   :  { %vm2530_vm9 = vmor %vm2528_vm8, %vm2529_vm7 }
 0xb9b   :  { %v2524_v16 = vmul.f32 %v6666_v14, %v2523_v15  ;;  %v2751_v15 = vld [vmem:[#allocation10 + $0x268] sm:$0xff] }
 0xb9c   :  { %v6668_v17 = vpop.eup %6667 }
 0xb9d   :  { %v2525_v18 = vmul.f32 0.5, %v2524_v16  ;;  %v2533_v19 = vmul.f32 %v6668_v17, %v2520_v12  ;;  %vm2539_vm11 = vweird.f32 %v6668_v17  ;;  %v2791_v12 = vld [vmem:[#allocation10 + $0x3a8] sm:$0xff]  ;;  %v2788_v16 = vld [vmem:[#allocation10 + $0x390] sm:$0xff] }
 0xb9e   :  { %vm2540_vm13 = vmor %vm2538_vm12, %vm2539_vm11 }
 0xb9f   :  { %v2526_v20 = vsub.f32 1.5, %v2525_v18  ;;  %v2534_v21 = vmul.f32 %v6668_v17, %v2533_v19  ;;  %v2748_v18 = vld [vmem:[#allocation10 + $0x250] sm:$0xff]  ;;  %v2786_v19 = vld [vmem:[#allocation10 + $0x380] sm:$0xff] }
 0xba1   :  { %v2527_v23 = vmul.f32 %v6666_v14, %v2526_v20  ;;  %v2535_v24 = vmul.f32 0.5, %v2534_v21  ;;  %v2787_v20 = vld [vmem:[#allocation10 + $0x388] sm:$0xff]  ;;  %v2746_v21 = vld [vmem:[#allocation10 + $0x240] sm:$0xff] }
 0xba3   :  { %v2531_v25 = vsel %vm2530_vm9, %v6666_v14, %v2527_v23  ;;  %v2536_v26 = vsub.f32 1.5, %v2535_v24  ;;  %v2750_v14 = vld [vmem:[#allocation10 + $0x260] sm:$0xff]  ;;  %v2784_v23 = vld [vmem:[#allocation10 + $0x370] sm:$0xff]  ;;  %v2785_v24 = vld [vmem:[#allocation10 + $0x378] sm:$0xff] }
 0xba4   :  { %v2548_v28 = vmul.f32 %v2544_v22, %v2531_v25  ;;  %v2747_v22 = vld [vmem:[#allocation10 + $0x248] sm:$0xff]  ;;  %v2744_v25 = vld [vmem:[#allocation10 + $0x230] sm:$0xff] }
 0xba5   :  { %v2537_v30 = vmul.f32 %v6668_v17, %v2536_v26  ;;  %v2745_v26 = vld [vmem:[#allocation10 + $0x238] sm:$0xff] }
 0xba6   :  { %v2550_v31 = vperm.slane %v2548_v28, 0  ;;  %v2783_v28 = vld [vmem:[#allocation10 + $0x368] sm:$0xff] }
 0xba7   :  { %v2541_v32 = vsel %vm2540_vm13, %v6668_v17, %v2537_v30  ;;  %v2789_v17 = vld [vmem:[#allocation10 + $0x398] sm:$0xff]  ;;  %v2743_v30 = vld [vmem:[#allocation10 + $0x228] sm:$0xff] }
 0xba8   :  { %v2549_v33 = vmul.f32 %v2545_v29, %v2541_v32  ;;  %v2552_v9 = vmul.f32 %v2550_v31, %v2426_v46  ;;  %v2800_v46 = vld [vmem:[#allocation10 + $0x3f0] sm:$0xff]  ;;  %v2742_v29 = vld [vmem:[#allocation10 + $0x220] sm:$0xff] }
 0xba9   :  { %v2780_v31 = vld [vmem:[#allocation10 + $0x350] sm:$0xff] }
 0xbaa   :  { %v2551_v34 = vperm.slane %v2549_v33, 0  ;;  %v2560_v35 = vadd.f32 %v2556_v11, %v2552_v9  ;;  %v2781_v11 = vld [vmem:[#allocation10 + $0x358] sm:$0xff]  ;;  %v2740_v32 = vld [vmem:[#allocation10 + $0x210] sm:$0xff]  ;;  %v2778_v9 = vld [vmem:[#allocation10 + $0x340] sm:$0xff] }
 0xbab   :  { %v2741_v33 = vld [vmem:[#allocation10 + $0x218] sm:$0xff] }
 0xbac   :  { %v8010_v13 = vmax.f32 %v2560_v35, 0.0  ;;  %v2553_v38 = vmul.f32 %v2551_v34, %v2427_v54  ;;  %v2798_v54 = vld [vmem:[#allocation10 + $0x3e0] sm:$0xff]  ;;  %v2779_v34 = vld [vmem:[#allocation10 + $0x348] sm:$0xff] }
 0xbad   :  { %v2738_v35 = vld [vmem:[#allocation10 + $0x200] sm:$0xff] }
 0xbae   :  { %2587 = vmatpush.msra.mxu3 %v8010_v13  ;;  %2706 = vmatpush.msra.mxu1 %v8010_v13  ;;  %v2561_v42 = vadd.f32 %v2557_v4, %v2553_v38  ;;  %v2739_v4 = vld [vmem:[#allocation10 + $0x208] sm:$0xff]  ;;  %v2649_v38 = vld [vmem:[#allocation10 + $0xf8] sm:$0xff] }
 0xbaf   :  { %6366 = vmatmul.msk.f32.vlgmr.msra.gmra.mxu1 %vm1686_vm15, %v6364_v37  ;;  %6360 = vmatmul.msk.f32.vlgmr.msra.gmra.mxu3 %vm1686_vm15, %v2564_v39 }
 0xbb0   :  { %v8018_v43 = vmax.f32 %v2561_v42, 0.0  ;;  %2802 = vmatpush.msrb.mxu3 %v2768_v40  ;;  %2848 = vmatpush.msrb.mxu1 %v2769_v41  ;;  %v2777_v40 = vld [vmem:[#allocation10 + $0x338] sm:$0xff]  ;;  %v2646_v41 = vld [vmem:[#allocation10 + $0xe0] sm:$0xff]  ;;  %v2647_v42 = vld [vmem:[#allocation10 + $0xe8] sm:$0xff] }
 0xbb2   :  { %2610 = vmatpush.msra.mxu0 %v8018_v43  ;;  %2729 = vmatpush.msra.mxu2 %v8018_v43 }
 0xbb3   :  { %6368 = vmatmul.msk.f32.vlgmr.msra.gmra.mxu2 %vm1686_vm15, %v6364_v37  ;;  %6362 = vmatmul.msk.f32.vlgmr.msra.gmra.mxu0 %vm1686_vm15, %v2564_v39  ;;  %v2648_v37 = vld [vmem:[#allocation10 + $0xf0] sm:$0xff] }
 0xbb4   :  { %2803 = vmatpush.msrb.mxu3 %v2766_v44  ;;  %2849 = vmatpush.msrb.mxu1 %v2767_v45  ;;  %v2776_v39 = vld [vmem:[#allocation10 + $0x330] sm:$0xff]  ;;  %v2774_v44 = vld [vmem:[#allocation10 + $0x320] sm:$0xff]  ;;  %v2775_v45 = vld [vmem:[#allocation10 + $0x328] sm:$0xff] }
 0xbb5   :  { %2825 = vmatpush.msrb.mxu0 %v2800_v46  ;;  %2871 = vmatpush.msrb.mxu2 %v2801_v47  ;;  %v2644_v46 = vld [vmem:[#allocation10 + $0xd0] sm:$0xff]  ;;  %v2645_v47 = vld [vmem:[#allocation10 + $0xd8] sm:$0xff] }
 0xbb6   :  { %2804 = vmatpush.msrb.mxu3 %v2764_v48  ;;  %2850 = vmatpush.msrb.mxu1 %v2765_v49  ;;  %v2772_v48 = vld [vmem:[#allocation10 + $0x310] sm:$0xff]  ;;  %v2773_v49 = vld [vmem:[#allocation10 + $0x318] sm:$0xff] }
 0xbb7   :  { %6367 = vmatmul.msk.f32.gmra.mxu1 %vm1686_vm15, %v6365_v50  ;;  %6361 = vmatmul.msk.f32.gmra.mxu3 %vm1686_vm15, %v2565_v51 }
 0xbb8   :  { %2805 = vmatpush.msrb.mxu3 %v2762_v52  ;;  %2851 = vmatpush.msrb.mxu1 %v2763_v53  ;;  %v2770_v52 = vld [vmem:[#allocation10 + $0x300] sm:$0xff]  ;;  %v2771_v53 = vld [vmem:[#allocation10 + $0x308] sm:$0xff] }
 0xbb9   :  { %2826 = vmatpush.msrb.mxu0 %v2798_v54  ;;  %2872 = vmatpush.msrb.mxu2 %v2799_v55  ;;  %v2640_v54 = vld [vmem:[#allocation10 + $0xb0] sm:$0xff]  ;;  %v2641_v55 = vld [vmem:[#allocation10 + $0xb8] sm:$0xff] }
 0xbba   :  { %2806 = vmatpush.msrb.mxu3 %v2760_v56  ;;  %2852 = vmatpush.msrb.mxu1 %v2761_v57  ;;  %v2680_v56 = vld [vmem:[#allocation10 + $0x1f0] sm:$0xff]  ;;  %v2681_v57 = vld [vmem:[#allocation10 + $0x1f8] sm:$0xff] }
 0xbbb   :  { %6369 = vmatmul.msk.f32.gmra.mxu2 %vm1686_vm15, %v6365_v50  ;;  %6363 = vmatmul.msk.f32.gmra.mxu0 %vm1686_vm15, %v2565_v51  ;;  %v2642_v50 = vld [vmem:[#allocation10 + $0xc0] sm:$0xff]  ;;  %v2643_v51 = vld [vmem:[#allocation10 + $0xc8] sm:$0xff] }
 0xbbc   :  { %2807 = vmatpush.msrb.mxu3 %v2758_v58  ;;  %2853 = vmatpush.msrb.mxu1 %v2759_v59  ;;  %v2638_v58 = vld [vmem:[#allocation10 + $0xa0] sm:$0xff]  ;;  %v2639_v59 = vld [vmem:[#allocation10 + $0xa8] sm:$0xff] }
 0xbbd   :  { %2827 = vmatpush.msrb.mxu0 %v2796_v60  ;;  %2873 = vmatpush.msrb.mxu2 %v2797_v61  ;;  %v2678_v60 = vld [vmem:[#allocation10 + $0x1e0] sm:$0xff]  ;;  %v2679_v61 = vld [vmem:[#allocation10 + $0x1e8] sm:$0xff] }
 0xbbe   :  { %2808 = vmatpush.msrb.mxu3 %v2756_v62  ;;  %2854 = vmatpush.msrb.mxu1 %v2757_v63  ;;  %v2636_v62 = vld [vmem:[#allocation10 + $0x90] sm:$0xff]  ;;  %v2637_v63 = vld [vmem:[#allocation10 + $0x98] sm:$0xff] }
 0xbbf   :  { %2828 = vmatpush.msrb.mxu0 %v2794_v0  ;;  %2874 = vmatpush.msrb.mxu2 %v2795_v1  ;;  %v2676_v0 = vld [vmem:[#allocation10 + $0x1d0] sm:$0xff]  ;;  %v2677_v1 = vld [vmem:[#allocation10 + $0x1d8] sm:$0xff] }
 0xbc0   :  { %2809 = vmatpush.msrb.mxu3 %v2754_v2  ;;  %2855 = vmatpush.msrb.mxu1 %v2755_v3  ;;  %v2634_v2 = vld [vmem:[#allocation10 + $0x80] sm:$0xff]  ;;  %v2635_v3 = vld [vmem:[#allocation10 + $0x88] sm:$0xff] }
 0xbc1   :  { %2829 = vmatpush.msrb.mxu0 %v2792_v5  ;;  %2875 = vmatpush.msrb.mxu2 %v2793_v6  ;;  %v2674_v5 = vld [vmem:[#allocation10 + $0x1c0] sm:$0xff]  ;;  %v2675_v6 = vld [vmem:[#allocation10 + $0x1c8] sm:$0xff] }
 0xbc2   :  { %2810 = vmatpush.msrb.mxu3 %v2752_v7  ;;  %2856 = vmatpush.msrb.mxu1 %v2753_v8  ;;  %v2632_v7 = vld [vmem:[#allocation10 + $0x70] sm:$0xff]  ;;  %v2633_v8 = vld [vmem:[#allocation10 + $0x78] sm:$0xff] }
 0xbc3   :  { %2830 = vmatpush.msrb.mxu0 %v2790_v10  ;;  %2876 = vmatpush.msrb.mxu2 %v2791_v12  ;;  %v2672_v10 = vld [vmem:[#allocation10 + $0x1b0] sm:$0xff]  ;;  %v2673_v12 = vld [vmem:[#allocation10 + $0x1b8] sm:$0xff] }
 0xbc4   :  { %2811 = vmatpush.msrb.mxu3 %v2750_v14  ;;  %2857 = vmatpush.msrb.mxu1 %v2751_v15  ;;  %v2630_v14 = vld [vmem:[#allocation10 + $0x60] sm:$0xff]  ;;  %v2631_v15 = vld [vmem:[#allocation10 + $0x68] sm:$0xff] }
 0xbc5   :  { %2831 = vmatpush.msrb.mxu0 %v2788_v16  ;;  %2877 = vmatpush.msrb.mxu2 %v2789_v17  ;;  %v2670_v16 = vld [vmem:[#allocation10 + $0x1a0] sm:$0xff]  ;;  %v2671_v17 = vld [vmem:[#allocation10 + $0x1a8] sm:$0xff] }
 0xbc6   :  { %2812 = vmatpush.msrb.mxu3 %v2748_v18  ;;  %2858 = vmatpush.msrb.mxu1 %v2749_v36  ;;  %v2628_v18 = vld [vmem:[#allocation10 + $0x50] sm:$0xff]  ;;  %v2629_v36 = vld [vmem:[#allocation10 + $0x58] sm:$0xff] }
 0xbc7   :  { %2832 = vmatpush.msrb.mxu0 %v2786_v19  ;;  %2878 = vmatpush.msrb.mxu2 %v2787_v20  ;;  %v2668_v19 = vld [vmem:[#allocation10 + $0x190] sm:$0xff]  ;;  %v2669_v20 = vld [vmem:[#allocation10 + $0x198] sm:$0xff] }
 0xbc8   :  { %2813 = vmatpush.msrb.mxu3 %v2746_v21  ;;  %2859 = vmatpush.msrb.mxu1 %v2747_v22  ;;  %v2626_v21 = vld [vmem:[#allocation10 + $0x40] sm:$0xff]  ;;  %v2627_v22 = vld [vmem:[#allocation10 + $0x48] sm:$0xff] }
 0xbc9   :  { %2833 = vmatpush.msrb.mxu0 %v2784_v23  ;;  %2879 = vmatpush.msrb.mxu2 %v2785_v24  ;;  %v2666_v23 = vld [vmem:[#allocation10 + $0x180] sm:$0xff]  ;;  %v2667_v24 = vld [vmem:[#allocation10 + $0x188] sm:$0xff] }
 0xbca   :  { %2814 = vmatpush.msrb.mxu3 %v2744_v25  ;;  %2860 = vmatpush.msrb.mxu1 %v2745_v26  ;;  %v2624_v25 = vld [vmem:[#allocation10 + $0x30] sm:$0xff]  ;;  %v2625_v26 = vld [vmem:[#allocation10 + $0x38] sm:$0xff] }
 0xbcb   :  { %2834 = vmatpush.msrb.mxu0 %v2782_v27  ;;  %2880 = vmatpush.msrb.mxu2 %v2783_v28  ;;  %v2664_v27 = vld [vmem:[#allocation10 + $0x170] sm:$0xff]  ;;  %v2665_v28 = vld [vmem:[#allocation10 + $0x178] sm:$0xff] }
 0xbcc   :  { %2815 = vmatpush.msrb.mxu3 %v2742_v29  ;;  %2861 = vmatpush.msrb.mxu1 %v2743_v30  ;;  %v2622_v29 = vld [vmem:[#allocation10 + $0x20] sm:$0xff]  ;;  %v2623_v30 = vld [vmem:[#allocation10 + $0x28] sm:$0xff] }
 0xbcd   :  { %2835 = vmatpush.msrb.mxu0 %v2780_v31  ;;  %2881 = vmatpush.msrb.mxu2 %v2781_v11  ;;  %v2662_v31 = vld [vmem:[#allocation10 + $0x160] sm:$0xff]  ;;  %v2663_v11 = vld [vmem:[#allocation10 + $0x168] sm:$0xff] }
 0xbce   :  { %2816 = vmatpush.msrb.mxu3 %v2740_v32  ;;  %2862 = vmatpush.msrb.mxu1 %v2741_v33  ;;  %v2620_v32 = vld [vmem:[#allocation10 + $0x10] sm:$0xff]  ;;  %v2621_v33 = vld [vmem:[#allocation10 + $0x18] sm:$0xff] }
 0xbcf   :  { %2836 = vmatpush.msrb.mxu0 %v2778_v9  ;;  %2882 = vmatpush.msrb.mxu2 %v2779_v34  ;;  %v2618_v9 = vld [vmem:[#allocation10] sm:$0xff]  ;;  %v2660_v34 = vld [vmem:[#allocation10 + $0x150] sm:$0xff] }
 0xbd0   :  { %2817 = vmatpush.msrb.mxu3 %v2738_v35  ;;  %2863 = vmatpush.msrb.mxu1 %v2739_v4  ;;  %v2619_v35 = vld [vmem:[#allocation10 + $0x8] sm:$0xff]  ;;  %v2661_v4 = vld [vmem:[#allocation10 + $0x158] sm:$0xff] }
 0xbd1   :  { %2837 = vmatpush.msrb.mxu0 %v2776_v39  ;;  %2883 = vmatpush.msrb.mxu2 %v2777_v40  ;;  %v2656_v39 = vld [vmem:[#allocation10 + $0x130] sm:$0xff]  ;;  %v2657_v40 = vld [vmem:[#allocation10 + $0x138] sm:$0xff] }
 0xbd2   :  { %2894 = vmatpush.msra.mxu3 %v2648_v37  ;;  %2940 = vmatpush.msra.mxu1 %v2649_v38  ;;  %v2658_v37 = vld [vmem:[#allocation10 + $0x140] sm:$0xff]  ;;  %v2659_v38 = vld [vmem:[#allocation10 + $0x148] sm:$0xff] }
 0xbd3   :  { %2838 = vmatpush.msrb.mxu0 %v2774_v44  ;;  %2884 = vmatpush.msrb.mxu2 %v2775_v45  ;;  %v2652_v44 = vld [vmem:[#allocation10 + $0x110] sm:$0xff]  ;;  %v2653_v45 = vld [vmem:[#allocation10 + $0x118] sm:$0xff] }
 0xbd4   :  { %2895 = vmatpush.msra.mxu3 %v2646_v41  ;;  %2941 = vmatpush.msra.mxu1 %v2647_v42  ;;  %v2654_v41 = vld [vmem:[#allocation10 + $0x120] sm:$0xff]  ;;  %v2655_v42 = vld [vmem:[#allocation10 + $0x128] sm:$0xff] }
 0xbd5   :  { %2839 = vmatpush.msrb.mxu0 %v2772_v48  ;;  %2885 = vmatpush.msrb.mxu2 %v2773_v49  ;;  %v3072_v48 = vld [vmem:[#allocation10 + $0x4f0] sm:$0xff] }
 0xbd6   :  { %2896 = vmatpush.msra.mxu3 %v2644_v46  ;;  %2942 = vmatpush.msra.mxu1 %v2645_v47  ;;  %v2650_v46 = vld [vmem:[#allocation10 + $0x100] sm:$0xff]  ;;  %v2651_v47 = vld [vmem:[#allocation10 + $0x108] sm:$0xff] }
 0xbd7   :  { %2840 = vmatpush.msrb.mxu0 %v2770_v52  ;;  %2886 = vmatpush.msrb.mxu2 %v2771_v53  ;;  %v3066_v52 = vld [vmem:[#allocation10 + $0x4c0] sm:$0xff]  ;;  %v3064_v53 = vld [vmem:[#allocation10 + $0x4b0] sm:$0xff] }
 0xbd8   :  { %2897 = vmatpush.msra.mxu3 %v2642_v50  ;;  %2943 = vmatpush.msra.mxu1 %v2643_v51  ;;  %v3070_v50 = vld [vmem:[#allocation10 + $0x4e0] sm:$0xff]  ;;  %v3068_v51 = vld [vmem:[#allocation10 + $0x4d0] sm:$0xff] }
 0xbd9   :  { %2917 = vmatpush.msra.mxu0 %v2680_v56  ;;  %2963 = vmatpush.msra.mxu2 %v2681_v57  ;;  %v3104_v57 = vld [vmem:[#allocation10 + $0x5f0] sm:$0xff] }
 0xbda   :  { %2898 = vmatpush.msra.mxu3 %v2640_v54  ;;  %2944 = vmatpush.msra.mxu1 %v2641_v55  ;;  %v3062_v55 = vld [vmem:[#allocation10 + $0x4a0] sm:$0xff] }
 0xbdb   :  { %2918 = vmatpush.msra.mxu0 %v2678_v60  ;;  %2964 = vmatpush.msra.mxu2 %v2679_v61  ;;  %v3058_v61 = vld [vmem:[#allocation10 + $0x480] sm:$0xff] }
 0xbdc   :  { %2899 = vmatpush.msra.mxu3 %v2638_v58  ;;  %2945 = vmatpush.msra.mxu1 %v2639_v59  ;;  %v3060_v58 = vld [vmem:[#allocation10 + $0x490] sm:$0xff]  ;;  %v3102_v59 = vld [vmem:[#allocation10 + $0x5e0] sm:$0xff] }
 0xbdd   :  { %2919 = vmatpush.msra.mxu0 %v2676_v0  ;;  %2965 = vmatpush.msra.mxu2 %v2677_v1  ;;  %v3098_v0 = vld [vmem:[#allocation10 + $0x5c0] sm:$0xff] }
 0xbde   :  { %2900 = vmatpush.msra.mxu3 %v2636_v62  ;;  %2946 = vmatpush.msra.mxu1 %v2637_v63  ;;  %v3100_v62 = vld [vmem:[#allocation10 + $0x5d0] sm:$0xff]  ;;  %v3054_v1 = vld [vmem:[#allocation10 + $0x460] sm:$0xff] }
 0xbdf   :  { %2920 = vmatpush.msra.mxu0 %v2674_v5  ;;  %2966 = vmatpush.msra.mxu2 %v2675_v6  ;;  %v3056_v63 = vld [vmem:[#allocation10 + $0x470] sm:$0xff]  ;;  %v3094_v6 = vld [vmem:[#allocation10 + $0x5a0] sm:$0xff] }
 0xbe0   :  { %2901 = vmatpush.msra.mxu3 %v2634_v2  ;;  %2947 = vmatpush.msra.mxu1 %v2635_v3  ;;  %v3096_v3 = vld [vmem:[#allocation10 + $0x5b0] sm:$0xff] }
 0xbe1   :  { %2921 = vmatpush.msra.mxu0 %v2672_v10  ;;  %2967 = vmatpush.msra.mxu2 %v2673_v12  ;;  %v3052_v5 = vld [vmem:[#allocation10 + $0x450] sm:$0xff] }
 0xbe2   :  { %2902 = vmatpush.msra.mxu3 %v2632_v7  ;;  %2948 = vmatpush.msra.mxu1 %v2633_v8  ;;  %v3050_v7 = vld [vmem:[#allocation10 + $0x440] sm:$0xff]  ;;  %v3092_v8 = vld [vmem:[#allocation10 + $0x590] sm:$0xff] }
 0xbe3   :  { %2922 = vmatpush.msra.mxu0 %v2670_v16  ;;  %2968 = vmatpush.msra.mxu2 %v2671_v17  ;;  %v3046_v16 = vld [vmem:[#allocation10 + $0x420] sm:$0xff]  ;;  %v3088_v17 = vld [vmem:[#allocation10 + $0x570] sm:$0xff] }
 0xbe4   :  { %2903 = vmatpush.msra.mxu3 %v2630_v14  ;;  %2949 = vmatpush.msra.mxu1 %v2631_v15  ;;  %v3048_v14 = vld [vmem:[#allocation10 + $0x430] sm:$0xff]  ;;  %v3090_v15 = vld [vmem:[#allocation10 + $0x580] sm:$0xff] }
 0xbe5   :  { %2923 = vmatpush.msra.mxu0 %v2668_v19  ;;  %2969 = vmatpush.msra.mxu2 %v2669_v20  ;;  %v3042_v19 = vld [vmem:[#allocation10 + $0x400] sm:$0xff]  ;;  %v3084_v20 = vld [vmem:[#allocation10 + $0x550] sm:$0xff] }
 0xbe6   :  { %2904 = vmatpush.msra.mxu3 %v2628_v18  ;;  %2950 = vmatpush.msra.mxu1 %v2629_v36  ;;  %v3044_v18 = vld [vmem:[#allocation10 + $0x410] sm:$0xff]  ;;  %v3086_v36 = vld [vmem:[#allocation10 + $0x560] sm:$0xff] }
 0xbe7   :  { %2924 = vmatpush.msra.mxu0 %v2666_v23  ;;  %2970 = vmatpush.msra.mxu2 %v2667_v24  ;;  %v3080_v24 = vld [vmem:[#allocation10 + $0x530] sm:$0xff] }
 0xbe8   :  { %2905 = vmatpush.msra.mxu3 %v2626_v21  ;;  %2951 = vmatpush.msra.mxu1 %v2627_v22  ;;  %v6370_v21 = vld [vmem:[%s9402_s22 + $0x20] sm:$0xff] }
 0xbe9   :  { %2925 = vmatpush.msra.mxu0 %v2664_v27  ;;  %2971 = vmatpush.msra.mxu2 %v2665_v28  ;;  %v3082_v22 = vld [vmem:[#allocation10 + $0x540] sm:$0xff]  ;;  %v6371_v27 = vld [vmem:[%s9402_s22 + $0x28] sm:$0xff] }
 0xbea   :  { %2906 = vmatpush.msra.mxu3 %v2624_v25  ;;  %2952 = vmatpush.msra.mxu1 %v2625_v26  ;;  %v3078_v25 = vld [vmem:[#allocation10 + $0x520] sm:$0xff]  ;;  %v3076_v26 = vld [vmem:[#allocation10 + $0x510] sm:$0xff] }
 0xbeb   :  { %2926 = vmatpush.msra.mxu0 %v2662_v31  ;;  %2972 = vmatpush.msra.mxu2 %v2663_v11  ;;  %v3074_v28 = vld [vmem:[#allocation10 + $0x500] sm:$0xff]  ;;  %v3105_v31 = vld [vmem:[#allocation10 + $0x5f8] sm:$0xff]  ;;  %v3067_v11 = vld [vmem:[#allocation10 + $0x4c8] sm:$0xff] }
 0xbec   :  { %2907 = vmatpush.msra.mxu3 %v2622_v29  ;;  %2953 = vmatpush.msra.mxu1 %v2623_v30  ;;  %v3071_v29 = vld [vmem:[#allocation10 + $0x4e8] sm:$0xff]  ;;  %v3069_v30 = vld [vmem:[#allocation10 + $0x4d8] sm:$0xff] }
 0xbed   :  { %2927 = vmatpush.msra.mxu0 %v2660_v34  ;;  %2973 = vmatpush.msra.mxu2 %v2661_v4  ;;  %v3063_v34 = vld [vmem:[#allocation10 + $0x4a8] sm:$0xff]  ;;  %v3097_v4 = vld [vmem:[#allocation10 + $0x5b8] sm:$0xff] }
 0xbee   :  { %2908 = vmatpush.msra.mxu3 %v2620_v32  ;;  %2954 = vmatpush.msra.mxu1 %v2621_v33  ;;  %v3103_v32 = vld [vmem:[#allocation10 + $0x5e8] sm:$0xff]  ;;  %v3065_v33 = vld [vmem:[#allocation10 + $0x4b8] sm:$0xff] }
 0xbef   :  { %2928 = vmatpush.msra.mxu0 %v2658_v37  ;;  %2974 = vmatpush.msra.mxu2 %v2659_v38  ;;  %v3059_v37 = vld [vmem:[#allocation10 + $0x488] sm:$0xff]  ;;  %v3057_v38 = vld [vmem:[#allocation10 + $0x478] sm:$0xff] }
 0xbf0   :  { %2909 = vmatpush.msra.mxu3 %v2618_v9  ;;  %2955 = vmatpush.msra.mxu1 %v2619_v35  ;;  %v3101_v9 = vld [vmem:[#allocation10 + $0x5d8] sm:$0xff]  ;;  %v3099_v35 = vld [vmem:[#allocation10 + $0x5c8] sm:$0xff] }
 0xbf1   :  { %2929 = vmatpush.msra.mxu0 %v2656_v39  ;;  %2975 = vmatpush.msra.mxu2 %v2657_v40  ;;  %v3095_v39 = vld [vmem:[#allocation10 + $0x5a8] sm:$0xff]  ;;  %v3093_v40 = vld [vmem:[#allocation10 + $0x598] sm:$0xff] }
 0xbf3   :  { %2930 = vmatpush.msra.mxu0 %v2654_v41  ;;  %2976 = vmatpush.msra.mxu2 %v2655_v42  ;;  %v3055_v41 = vld [vmem:[#allocation10 + $0x468] sm:$0xff]  ;;  %v3053_v42 = vld [vmem:[#allocation10 + $0x458] sm:$0xff] }
 0xbf5   :  { %2931 = vmatpush.msra.mxu0 %v2652_v44  ;;  %2977 = vmatpush.msra.mxu2 %v2653_v45  ;;  %v3091_v44 = vld [vmem:[#allocation10 + $0x588] sm:$0xff]  ;;  %v3089_v45 = vld [vmem:[#allocation10 + $0x578] sm:$0xff] }
 0xbf7   :  { %2932 = vmatpush.msra.mxu0 %v2650_v46  ;;  %2978 = vmatpush.msra.mxu2 %v2651_v47  ;;  %v3051_v46 = vld [vmem:[#allocation10 + $0x448] sm:$0xff]  ;;  %v3049_v47 = vld [vmem:[#allocation10 + $0x438] sm:$0xff] }
 0xc2c   :  { %v2708_v49 = vpop.f32.mrf.mxu1 }
 0xc2d   :  { %2818 = vmatmul.f32.vlgmr.msrb.gmra.mxu3 %v2708_v49  ;;  %2864 = vmatmul.f32.vlgmr.msrb.gmra.mxu1 %v2708_v49  ;;  %v3085_v49 = vld [vmem:[#allocation10 + $0x558] sm:$0xff] }
 0xc2e   :  { %3010 = vmatpush.msrb.mxu3 %v8010_v13  ;;  %3106 = vmatpush.msrb.mxu1 %v3072_v48  ;;  %v3087_v48 = vld [vmem:[#allocation10 + $0x568] sm:$0xff] }
 0xc30   :  { %3107 = vmatpush.msrb.mxu1 %v3070_v50  ;;  %v2612_v12 = vpop.f32.mrf.mxu0  ;;  %v3047_v50 = vld [vmem:[#allocation10 + $0x428] sm:$0xff] }
 0xc32   :  { %3108 = vmatpush.msrb.mxu1 %v3068_v51  ;;  %v2589_v60 = vpop.f32.mrf.mxu3  ;;  %v3045_v51 = vld [vmem:[#allocation10 + $0x418] sm:$0xff] }
 0xc34   :  { %3109 = vmatpush.msrb.mxu1 %v3066_v52  ;;  %v2711_v54 = vpop.f32.mrf.mxu1  ;;  %v3083_v52 = vld [vmem:[#allocation10 + $0x548] sm:$0xff] }
 0xc35   :  { %2821 = vmatmul.f32.gmra.mxu3 %v2711_v54  ;;  %2867 = vmatmul.f32.gmra.mxu1 %v2711_v54 }
 0xc36   :  { %3110 = vmatpush.msrb.mxu1 %v3064_v53  ;;  %v2731_v56 = vpop.f32.mrf.mxu2  ;;  %v3081_v53 = vld [vmem:[#allocation10 + $0x538] sm:$0xff] }
 0xc37   :  { %2841 = vmatmul.f32.vlgmr.msrb.gmra.mxu0 %v2731_v56  ;;  %2887 = vmatmul.f32.vlgmr.msrb.gmra.mxu2 %v2731_v56  ;;  %v3079_v56 = vld [vmem:[#allocation10 + $0x528] sm:$0xff] }
 0xc38   :  { %3033 = vmatpush.msrb.mxu0 %v8018_v43  ;;  %3111 = vmatpush.msrb.mxu1 %v3062_v55  ;;  %v2615_v23 = vpop.f32.mrf.mxu0  ;;  %v3043_v55 = vld [vmem:[#allocation10 + $0x408] sm:$0xff] }
 0xc39   :  { %3129 = vmatpush.msrb.mxu2 %v3104_v57  ;;  %v3077_v57 = vld [vmem:[#allocation10 + $0x518] sm:$0xff] }
 0xc3a   :  { %3112 = vmatpush.msrb.mxu1 %v3060_v58  ;;  %v2592_v10 = vpop.f32.mrf.mxu3 }
 0xc3b   :  { %3130 = vmatpush.msrb.mxu2 %v3102_v59  ;;  %v3075_v59 = vld [vmem:[#allocation10 + $0x508] sm:$0xff] }
 0xc3c   :  { %3113 = vmatpush.msrb.mxu1 %v3058_v61 }
 0xc3d   :  { %3131 = vmatpush.msrb.mxu2 %v3100_v62  ;;  %2910 = vmatmul.f32.vlgmr.msra.gmra.mxu3 %v2589_v60 }
 0xc3e   :  { %3114 = vmatpush.msrb.mxu1 %v3056_v63  ;;  %v2734_v2 = vpop.f32.mrf.mxu2 }
 0xc3f   :  { %3132 = vmatpush.msrb.mxu2 %v3098_v0  ;;  %2844 = vmatmul.f32.gmra.mxu0 %v2734_v2 }
 0xc40   :  { %3115 = vmatpush.msrb.mxu1 %v3054_v1  ;;  %2890 = vmatmul.f32.gmra.mxu2 %v2734_v2  ;;  %v3288_v2 = vld [vmem:[#allocation10 + $0x6f0] sm:$0xff] }
 0xc41   :  { %3133 = vmatpush.msrb.mxu2 %v3096_v3  ;;  %2956 = vmatmul.f32.vlgmr.msra.gmra.mxu1 %v2589_v60  ;;  %v3286_v3 = vld [vmem:[#allocation10 + $0x6e0] sm:$0xff] }
 0xc42   :  { %3116 = vmatpush.msrb.mxu1 %v3052_v5  ;;  %v3320_v5 = vld [vmem:[#allocation10 + $0x7f0] sm:$0xff] }
 0xc43   :  { %3134 = vmatpush.msrb.mxu2 %v3094_v6  ;;  %v3318_v6 = vld [vmem:[#allocation10 + $0x7e0] sm:$0xff] }
 0xc44   :  { %3117 = vmatpush.msrb.mxu1 %v3050_v7  ;;  %v3284_v7 = vld [vmem:[#allocation10 + $0x6d0] sm:$0xff] }
 0xc45   :  { %3135 = vmatpush.msrb.mxu2 %v3092_v8  ;;  %2913 = vmatmul.f32.gmra.mxu3 %v2592_v10  ;;  %v3316_v8 = vld [vmem:[#allocation10 + $0x7d0] sm:$0xff] }
 0xc46   :  { %3118 = vmatpush.msrb.mxu1 %v3048_v14  ;;  %v3282_v14 = vld [vmem:[#allocation10 + $0x6c0] sm:$0xff] }
 0xc47   :  { %3136 = vmatpush.msrb.mxu2 %v3090_v15  ;;  %2933 = vmatmul.f32.vlgmr.msra.gmra.mxu0 %v2612_v12  ;;  %v3321_v15 = vld [vmem:[#allocation10 + $0x7f8] sm:$0xff] }
 0xc48   :  { %3119 = vmatpush.msrb.mxu1 %v3046_v16  ;;  %2979 = vmatmul.f32.vlgmr.msra.gmra.mxu2 %v2612_v12  ;;  %v3289_v12 = vld [vmem:[#allocation10 + $0x6f8] sm:$0xff] }
 0xc49   :  { %3137 = vmatpush.msrb.mxu2 %v3088_v17  ;;  %2959 = vmatmul.f32.gmra.mxu1 %v2592_v10  ;;  %v3314_v17 = vld [vmem:[#allocation10 + $0x7c0] sm:$0xff] }
 0xc4a   :  { %3120 = vmatpush.msrb.mxu1 %v3044_v18  ;;  %3175 = vmatpush.msra.mxu0 %v3105_v31  ;;  %v3280_v18 = vld [vmem:[#allocation10 + $0x6b0] sm:$0xff] }
 0xc4b   :  { %3138 = vmatpush.msrb.mxu2 %v3086_v36  ;;  %v3319_v36 = vld [vmem:[#allocation10 + $0x7e8] sm:$0xff] }
 0xc4c   :  { %3121 = vmatpush.msrb.mxu1 %v3042_v19  ;;  %3176 = vmatpush.msra.mxu0 %v3103_v32  ;;  %v3278_v19 = vld [vmem:[#allocation10 + $0x6a0] sm:$0xff]  ;;  %v3285_v32 = vld [vmem:[#allocation10 + $0x6d8] sm:$0xff] }
 0xc4d   :  { %3139 = vmatpush.msrb.mxu2 %v3084_v20  ;;  %6372 = vmatmul.msk.f32.vlgmr.msrb.gmra.mxu3 %vm1686_vm15, %v6370_v21  ;;  %v3317_v20 = vld [vmem:[#allocation10 + $0x7d8] sm:$0xff] }
 0xc4e   :  { %3226 = vmatpush.msra.mxu1 %v8010_v13  ;;  %v3073_v13 = vld [vmem:[#allocation10 + $0x4f8] sm:$0xff]  ;;  %3177 = vmatpush.msra.mxu0 %v3101_v9  ;;  %v3310_v9 = vld [vmem:[#allocation10 + $0x7a0] sm:$0xff] }
 0xc4f   :  { %3140 = vmatpush.msrb.mxu2 %v3082_v22  ;;  %2936 = vmatmul.f32.gmra.mxu0 %v2615_v23  ;;  %v3276_v22 = vld [vmem:[#allocation10 + $0x690] sm:$0xff] }
 0xc50   :  { %2982 = vmatmul.f32.gmra.mxu2 %v2615_v23  ;;  %3152 = vmatpush.msra.mxu3 %v3073_v13  ;;  %v3315_v23 = vld [vmem:[#allocation10 + $0x7c8] sm:$0xff]  ;;  %v3312_v13 = vld [vmem:[#allocation10 + $0x7b0] sm:$0xff] }
 0xc51   :  { %3141 = vmatpush.msrb.mxu2 %v3080_v24  ;;  %3178 = vmatpush.msra.mxu0 %v3099_v35  ;;  %v3270_v35 = vld [vmem:[#allocation10 + $0x660] sm:$0xff] }
 0xc52   :  { %3153 = vmatpush.msra.mxu3 %v3071_v29  ;;  %v3287_v29 = vld [vmem:[#allocation10 + $0x6e8] sm:$0xff] }
 0xc53   :  { %3142 = vmatpush.msrb.mxu2 %v3078_v25  ;;  %3179 = vmatpush.msra.mxu0 %v3097_v4  ;;  %v6376_v25 = vld [vmem:[%s9402_s22 + $0x30] sm:$0xff] }
 0xc54   :  { %3154 = vmatpush.msra.mxu3 %v3069_v30  ;;  %v3313_v30 = vld [vmem:[#allocation10 + $0x7b8] sm:$0xff]  ;;  %v3308_v4 = vld [vmem:[#allocation10 + $0x790] sm:$0xff] }
 0xc55   :  { %3143 = vmatpush.msrb.mxu2 %v3076_v26  ;;  %6373 = vmatmul.msk.f32.gmra.mxu3 %vm1686_vm15, %v6371_v27  ;;  %v6377_v26 = vld [vmem:[%s9402_s22 + $0x38] sm:$0xff] }
 0xc56   :  { %3155 = vmatpush.msra.mxu3 %v3067_v11  ;;  %3180 = vmatpush.msra.mxu0 %v3095_v39  ;;  %v3268_v39 = vld [vmem:[#allocation10 + $0x650] sm:$0xff] }
 0xc57   :  { %3144 = vmatpush.msrb.mxu2 %v3074_v28  ;;  %6374 = vmatmul.msk.f32.vlgmr.msrb.gmra.mxu0 %vm1686_vm15, %v6370_v21  ;;  %v3274_v28 = vld [vmem:[#allocation10 + $0x680] sm:$0xff] }
 0xc58   :  { %3156 = vmatpush.msra.mxu3 %v3065_v33  ;;  %3181 = vmatpush.msra.mxu0 %v3093_v40  ;;  %v3272_v33 = vld [vmem:[#allocation10 + $0x670] sm:$0xff]  ;;  %v3306_v40 = vld [vmem:[#allocation10 + $0x780] sm:$0xff] }
 0xc59   :  { %3249 = vmatpush.msra.mxu2 %v8018_v43  ;;  %v3061_v43 = vld [vmem:[#allocation10 + $0x498] sm:$0xff] }
 0xc5a   :  { %3157 = vmatpush.msra.mxu3 %v3063_v34  ;;  %3182 = vmatpush.msra.mxu0 %v3091_v44  ;;  %v3311_v34 = vld [vmem:[#allocation10 + $0x7a8] sm:$0xff]  ;;  %v3266_v44 = vld [vmem:[#allocation10 + $0x640] sm:$0xff] }
 0xc5c   :  { %3158 = vmatpush.msra.mxu3 %v3061_v43  ;;  %3183 = vmatpush.msra.mxu0 %v3089_v45  ;;  %v3283_v43 = vld [vmem:[#allocation10 + $0x6c8] sm:$0xff]  ;;  %v3304_v45 = vld [vmem:[#allocation10 + $0x770] sm:$0xff] }
 0xc5e   :  { %3159 = vmatpush.msra.mxu3 %v3059_v37  ;;  %3184 = vmatpush.msra.mxu0 %v3087_v48  ;;  %v3309_v37 = vld [vmem:[#allocation10 + $0x798] sm:$0xff] }
 0xc5f   :  { %6375 = vmatmul.msk.f32.gmra.mxu0 %vm1686_vm15, %v6371_v27  ;;  %v3277_v48 = vld [vmem:[#allocation10 + $0x698] sm:$0xff] }
 0xc60   :  { %3160 = vmatpush.msra.mxu3 %v3057_v38  ;;  %3185 = vmatpush.msra.mxu0 %v3085_v49  ;;  %v3281_v38 = vld [vmem:[#allocation10 + $0x6b8] sm:$0xff] }
 0xc62   :  { %3161 = vmatpush.msra.mxu3 %v3055_v41  ;;  %3186 = vmatpush.msra.mxu0 %v3083_v52  ;;  %v3307_v41 = vld [vmem:[#allocation10 + $0x788] sm:$0xff] }
 0xc63   :  { %v3303_v52 = vld [vmem:[#allocation10 + $0x768] sm:$0xff] }
 0xc64   :  { %3162 = vmatpush.msra.mxu3 %v3053_v42  ;;  %3187 = vmatpush.msra.mxu0 %v3081_v53  ;;  %v3279_v42 = vld [vmem:[#allocation10 + $0x6a8] sm:$0xff] }
 0xc65   :  { %v3275_v53 = vld [vmem:[#allocation10 + $0x688] sm:$0xff] }
 0xc66   :  { %3163 = vmatpush.msra.mxu3 %v3051_v46  ;;  %3188 = vmatpush.msra.mxu0 %v3079_v56  ;;  %v3305_v46 = vld [vmem:[#allocation10 + $0x778] sm:$0xff]  ;;  %v3300_v56 = vld [vmem:[#allocation10 + $0x750] sm:$0xff] }
 0xc68   :  { %3164 = vmatpush.msra.mxu3 %v3049_v47  ;;  %3189 = vmatpush.msra.mxu0 %v3077_v57  ;;  %v3301_v57 = vld [vmem:[#allocation10 + $0x758] sm:$0xff] }
 0xc6a   :  { %3165 = vmatpush.msra.mxu3 %v3047_v50  ;;  %3190 = vmatpush.msra.mxu0 %v3075_v59  ;;  %v3264_v50 = vld [vmem:[#allocation10 + $0x630] sm:$0xff]  ;;  %v3273_v59 = vld [vmem:[#allocation10 + $0x678] sm:$0xff] }
 0xc6c   :  { %3166 = vmatpush.msra.mxu3 %v3045_v51  ;;  %3345 = vmatpush.msrb.mxu0 %v3320_v5  ;;  %v3302_v51 = vld [vmem:[#allocation10 + $0x760] sm:$0xff]  ;;  %v3299_v5 = vld [vmem:[#allocation10 + $0x748] sm:$0xff] }
 0xc6e   :  { %3167 = vmatpush.msra.mxu3 %v3043_v55  ;;  %3346 = vmatpush.msrb.mxu0 %v3318_v6  ;;  %v3262_v55 = vld [vmem:[#allocation10 + $0x620] sm:$0xff]  ;;  %v3271_v6 = vld [vmem:[#allocation10 + $0x668] sm:$0xff] }
 0xc70   :  { %3322 = vmatpush.msrb.mxu3 %v3288_v2  ;;  %3347 = vmatpush.msrb.mxu0 %v3316_v8  ;;  %v3260_v2 = vld [vmem:[#allocation10 + $0x610] sm:$0xff] }
 0xc71   :  { %v3296_v8 = vld [vmem:[#allocation10 + $0x730] sm:$0xff] }
 0xc72   :  { %3323 = vmatpush.msrb.mxu3 %v3286_v3  ;;  %3348 = vmatpush.msrb.mxu0 %v3314_v17  ;;  %v3298_v3 = vld [vmem:[#allocation10 + $0x740] sm:$0xff]  ;;  %v3267_v17 = vld [vmem:[#allocation10 + $0x648] sm:$0xff] }
 0xc74   :  { %3324 = vmatpush.msrb.mxu3 %v3284_v7  ;;  %3349 = vmatpush.msrb.mxu0 %v3312_v13  ;;  %v3258_v7 = vld [vmem:[#allocation10 + $0x600] sm:$0xff]  ;;  %v8080_v13 = vld [vmem:[#allocation11 + $0xf0] sm:$0xff] }
 0xc76   :  { %3325 = vmatpush.msrb.mxu3 %v3282_v14  ;;  %3350 = vmatpush.msrb.mxu0 %v3310_v9  ;;  %v3269_v14 = vld [vmem:[#allocation10 + $0x658] sm:$0xff] }
 0xc78   :  { %3326 = vmatpush.msrb.mxu3 %v3280_v18  ;;  %3351 = vmatpush.msrb.mxu0 %v3308_v4 }
 0xc7a   :  { %3327 = vmatpush.msrb.mxu3 %v3278_v19  ;;  %3352 = vmatpush.msrb.mxu0 %v3306_v40  ;;  %v8104_v40 = vld [vmem:[#allocation11 + $0xc0] sm:$0xff] }
 0xc7c   :  { %3328 = vmatpush.msrb.mxu3 %v3276_v22  ;;  %3353 = vmatpush.msrb.mxu0 %v3304_v45  ;;  %v3291_v22 = vld [vmem:[#allocation10 + $0x708] sm:$0xff]  ;;  %v8114_v45 = vld [vmem:[#allocation11 + $0xb0] sm:$0xff] }
 0xc7e   :  { %3329 = vmatpush.msrb.mxu3 %v3274_v28  ;;  %3354 = vmatpush.msrb.mxu0 %v3302_v51  ;;  %v8128_v51 = vld [vmem:[#allocation11 + $0xa0] sm:$0xff] }
 0xc80   :  { %3330 = vmatpush.msrb.mxu3 %v3272_v33  ;;  %3355 = vmatpush.msrb.mxu0 %v3300_v56  ;;  %v8140_v56 = vld [vmem:[#allocation11 + $0x90] sm:$0xff] }
 0xc82   :  { %3331 = vmatpush.msrb.mxu3 %v3270_v35  ;;  %3356 = vmatpush.msrb.mxu0 %v3298_v3 }
 0xc84   :  { %3332 = vmatpush.msrb.mxu3 %v3268_v39  ;;  %3357 = vmatpush.msrb.mxu0 %v3296_v8  ;;  %v8100_v39 = vld [vmem:[#allocation11 + $0xd8] sm:$0xff] }
 0xc85   :  { %v8162_v8 = vld [vmem:[#allocation11 + $0x1b8] sm:$0xff] }
 0xc86   :  { %3333 = vmatpush.msrb.mxu3 %v3266_v44  ;;  %v8112_v44 = vld [vmem:[#allocation11 + $0x1f8] sm:$0xff] }
 0xc88   :  { %3334 = vmatpush.msrb.mxu3 %v3264_v50  ;;  %v8122_v50 = vld [vmem:[#allocation11 + $0x1e8] sm:$0xff] }
 0xc8a   :  { %3335 = vmatpush.msrb.mxu3 %v3262_v55  ;;  %v8136_v55 = vld [vmem:[#allocation11 + $0x1d8] sm:$0xff] }
 0xc8c   :  { %3336 = vmatpush.msrb.mxu3 %v3260_v2  ;;  %v8148_v2 = vld [vmem:[#allocation11 + $0x1c8] sm:$0xff] }
 0xc8e   :  { %3337 = vmatpush.msrb.mxu3 %v3258_v7  ;;  %v8158_v7 = vld [vmem:[#allocation11 + $0x88] sm:$0xff] }
 0xcaa   :  { %v8062_v27 = vpop.f32.mrf.mxu1 }
 0xcb0   :  { %v8040_v54 = vpop.f32.mrf.mxu3 }
 0xcb2   :  { %v8066_v11 = vpop.f32.mrf.mxu1 }
 0xcb4   :  { %v8042_v58 = vpop.f32.mrf.mxu0 }
 0xcb8   :  { %v8044_v60 = vpop.f32.mrf.mxu3 }
 0xcba   :  { %v8064_v31 = vpop.f32.mrf.mxu2 }
 0xcbc   :  { %v8046_v61 = vpop.f32.mrf.mxu0 }
 0xcbe   :  { %v8070_v49 = vpop.f32.mrf.mxu1 }
 0xcc0   :  { %v8048_v62 = vpop.f32.mrf.mxu3 }
 0xcc3   :  { %v8068_v47 = vpop.f32.mrf.mxu2 }
 0xcc4   :  { %v8050_v63 = vpop.f32.mrf.mxu0 }
 0xcc6   :  { %v8074_v19 = vpop.f32.mrf.mxu1 }
 0xcc8   :  { %v8052_v0 = vpop.f32.mrf.mxu3 }
 0xccb   :  { %v8072_v18 = vpop.f32.mrf.mxu2 }
 0xccc   :  { %v8054_v1 = vpop.f32.mrf.mxu0 }
 0xcd0   :  { %v3012_v10 = vpop.f32.mrf.mxu3 }
 0xcd1   :  { %3168 = vmatmul.f32.vlgmr.msra.gmra.mxu3 %v3012_v10  ;;  %3122 = vmatmul.f32.vlgmr.msrb.gmra.mxu1 %v3012_v10  ;;  %v3297_v10 = vld [vmem:[#allocation10 + $0x738] sm:$0xff] }
 0xcd2   :  { %3368 = vmatpush.msrb.mxu1 %v3289_v12  ;;  %v3294_v12 = vld [vmem:[#allocation10 + $0x720] sm:$0xff]  ;;  %3496 = vmatpush.msra.mxu3 %v8080_v13 }
 0xcd3   :  { %3358 = vmatpush.msrb.mxu0 %v3294_v12  ;;  %v8078_v28 = vpop.f32.mrf.mxu2  ;;  %v8168_v12 = vld [vmem:[#allocation11 + $0x1a0] sm:$0xff] }
 0xcd4   :  { %v3035_v16 = vpop.f32.mrf.mxu0  ;;  %3369 = vmatpush.msrb.mxu1 %v3287_v29  ;;  %v8082_v29 = vld [vmem:[#allocation11 + $0xf8] sm:$0xff] }
 0xcd5   :  { %3145 = vmatmul.f32.vlgmr.msrb.gmra.mxu2 %v3035_v16  ;;  %3191 = vmatmul.f32.vlgmr.msra.gmra.mxu0 %v3035_v16  ;;  %v3292_v16 = vld [vmem:[#allocation10 + $0x710] sm:$0xff] }
 0xcd6   :  { %3391 = vmatpush.msrb.mxu2 %v3321_v15  ;;  %3370 = vmatpush.msrb.mxu1 %v3285_v32  ;;  %v3295_v15 = vld [vmem:[#allocation10 + $0x728] sm:$0xff] }
 0xcd7   :  { %3359 = vmatpush.msrb.mxu0 %v3292_v16  ;;  %v8088_v32 = vld [vmem:[#allocation11 + $0xe8] sm:$0xff] }
 0xcd8   :  { %3392 = vmatpush.msrb.mxu2 %v3319_v36  ;;  %v3015_v21 = vpop.f32.mrf.mxu3  ;;  %3371 = vmatpush.msrb.mxu1 %v3283_v43  ;;  %v3293_v36 = vld [vmem:[#allocation10 + $0x718] sm:$0xff]  ;;  %v8176_v16 = vld [vmem:[#allocation11 + $0x1a8] sm:$0xff] }
 0xcd9   :  { %3171 = vmatmul.f32.gmra.mxu3 %v3015_v21  ;;  %3125 = vmatmul.f32.gmra.mxu1 %v3015_v21  ;;  %v3290_v21 = vld [vmem:[#allocation10 + $0x700] sm:$0xff] }
 0xcda   :  { %3393 = vmatpush.msrb.mxu2 %v3317_v20  ;;  %3372 = vmatpush.msrb.mxu1 %v3281_v38  ;;  %v3265_v20 = vld [vmem:[#allocation10 + $0x638] sm:$0xff]  ;;  %v8098_v38 = vld [vmem:[#allocation11 + $0xd0] sm:$0xff] }
 0xcdb   :  { %3360 = vmatpush.msrb.mxu0 %v3290_v21  ;;  %v8188_v21 = vld [vmem:[#allocation11 + $0x198] sm:$0xff] }
 0xcdc   :  { %v3038_v24 = vpop.f32.mrf.mxu0  ;;  %3394 = vmatpush.msrb.mxu2 %v3315_v23  ;;  %3373 = vmatpush.msrb.mxu1 %v3279_v42  ;;  %v3263_v23 = vld [vmem:[#allocation10 + $0x628] sm:$0xff]  ;;  %9404 = vst [vmem:[#allocation39_spill] sm:$0xff] %v8188_v21 }
 0xcdd   :  { %3148 = vmatmul.f32.gmra.mxu2 %v3038_v24  ;;  %3194 = vmatmul.f32.gmra.mxu0 %v3038_v24  ;;  %v3261_v24 = vld [vmem:[#allocation10 + $0x618] sm:$0xff]  ;;  %v8108_v42 = vld [vmem:[#allocation11 + $0xc8] sm:$0xff] }
 0xcde   :  { %3395 = vmatpush.msrb.mxu2 %v3313_v30  ;;  %3374 = vmatpush.msrb.mxu1 %v3277_v48  ;;  %v8084_v30 = vld [vmem:[#allocation11 + $0xe0] sm:$0xff]  ;;  %v8120_v48 = vld [vmem:[#allocation11 + $0xb8] sm:$0xff] }
 0xcdf   :  { %3497 = vmatpush.msra.mxu3 %v8084_v30 }
 0xce0   :  { %3396 = vmatpush.msrb.mxu2 %v3311_v34  ;;  %3375 = vmatpush.msrb.mxu1 %v3275_v53  ;;  %v8132_v53 = vld [vmem:[#allocation11 + $0xa8] sm:$0xff] }
 0xce1   :  { %6378 = vmatmul.msk.f32.vlgmr.msra.gmra.mxu1 %vm1686_vm15, %v6376_v25  ;;  %3498 = vmatpush.msra.mxu3 %v8098_v38 }
 0xce2   :  { %3397 = vmatpush.msrb.mxu2 %v3309_v37  ;;  %3376 = vmatpush.msrb.mxu1 %v3273_v59  ;;  %v8144_v59 = vld [vmem:[#allocation11 + $0x98] sm:$0xff] }
 0xce3   :  { %3499 = vmatpush.msra.mxu3 %v8104_v40 }
 0xce4   :  { %3398 = vmatpush.msrb.mxu2 %v3307_v41  ;;  %3377 = vmatpush.msrb.mxu1 %v3271_v6  ;;  %v8106_v41 = vld [vmem:[#allocation11 + $0x1f0] sm:$0xff] }
 0xce5   :  { %6380 = vmatmul.msk.f32.vlgmr.msra.gmra.mxu2 %vm1686_vm15, %v6376_v25  ;;  %v3259_v25 = vld [vmem:[#allocation10 + $0x608] sm:$0xff]  ;;  %3516 = vmatpush.msra.mxu0 %v8106_v41  ;;  %v8156_v6 = vld [vmem:[#allocation11 + $0x1b0] sm:$0xff] }
 0xce6   :  { %3399 = vmatpush.msrb.mxu2 %v3305_v46  ;;  %3378 = vmatpush.msrb.mxu1 %v3269_v14  ;;  %v8116_v46 = vld [vmem:[#allocation11 + $0x1e0] sm:$0xff]  ;;  %v8170_v14 = vld [vmem:[#allocation11 + $0x78] sm:$0xff] }
 0xce7   :  { %3500 = vmatpush.msra.mxu3 %v8114_v45  ;;  %3517 = vmatpush.msra.mxu0 %v8116_v46 }
 0xce8   :  { %3400 = vmatpush.msrb.mxu2 %v3303_v52  ;;  %3379 = vmatpush.msrb.mxu1 %v3267_v17  ;;  %v8130_v52 = vld [vmem:[#allocation11 + $0x1d0] sm:$0xff]  ;;  %v8180_v17 = vld [vmem:[#allocation11 + $0x60] sm:$0xff] }
 0xce9   :  { %6379 = vmatmul.msk.f32.gmra.mxu1 %vm1686_vm15, %v6377_v26  ;;  %3501 = vmatpush.msra.mxu3 %v8128_v51 }
 0xcea   :  { %3401 = vmatpush.msrb.mxu2 %v3301_v57  ;;  %3380 = vmatpush.msrb.mxu1 %v3265_v20  ;;  %v8142_v57 = vld [vmem:[#allocation11 + $0x1c0] sm:$0xff]  ;;  %v8184_v20 = vld [vmem:[#allocation11 + $0x68] sm:$0xff] }
 0xceb   :  { %3518 = vmatpush.msra.mxu0 %v8130_v52  ;;  %3502 = vmatpush.msra.mxu3 %v8140_v56  ;;  %9403 = vst [vmem:[#allocation38_spill] sm:$0xff] %v8184_v20 }
 0xcec   :  { %3402 = vmatpush.msrb.mxu2 %v3299_v5  ;;  %3381 = vmatpush.msrb.mxu1 %v3263_v23  ;;  %v8154_v5 = vld [vmem:[#allocation11 + $0x80] sm:$0xff] }
 0xced   :  { %6381 = vmatmul.msk.f32.gmra.mxu2 %vm1686_vm15, %v6377_v26  ;;  %3519 = vmatpush.msra.mxu0 %v8142_v57  ;;  %v8194_v23 = vld [vmem:[#allocation11 + $0x180] sm:$0xff] }
 0xcee   :  { %3403 = vmatpush.msrb.mxu2 %v3297_v10  ;;  %3382 = vmatpush.msrb.mxu1 %v3261_v24  ;;  %v8166_v10 = vld [vmem:[#allocation11 + $0x70] sm:$0xff]  ;;  %9406 = vst [vmem:[#allocation41_spill] sm:$0xff] %v8194_v23  ;;  %v8196_v24 = vld [vmem:[#allocation11 + $0x58] sm:$0xff] }
 0xcef   :  { %3503 = vmatpush.msra.mxu3 %v8154_v5  ;;  %3520 = vmatpush.msra.mxu0 %v8156_v6  ;;  %9407 = vst [vmem:[#allocation42_spill] sm:$0xff] %v8196_v24 }
 0xcf0   :  { %3404 = vmatpush.msrb.mxu2 %v3295_v15  ;;  %3383 = vmatpush.msrb.mxu1 %v3259_v25  ;;  %v8200_v25 = vld [vmem:[#allocation11 + $0x188] sm:$0xff] }
 0xcf1   :  { %3504 = vmatpush.msra.mxu3 %v8166_v10  ;;  %3521 = vmatpush.msra.mxu0 %v8168_v12  ;;  %9408 = vst [vmem:[#allocation43_spill] sm:$0xff] %v8200_v25 }
 0xcf2   :  { %3405 = vmatpush.msrb.mxu2 %v3293_v36  ;;  %3536 = vmatpush.msra.mxu1 %v8082_v29  ;;  %v8182_v36 = vld [vmem:[#allocation11 + $0x190] sm:$0xff] }
 0xcf3   :  { %3505 = vmatpush.msra.mxu3 %v8180_v17  ;;  %3522 = vmatpush.msra.mxu0 %v8182_v36 }
 0xcf4   :  { %3406 = vmatpush.msrb.mxu2 %v3291_v22  ;;  %3537 = vmatpush.msra.mxu1 %v8088_v32  ;;  %v8192_v22 = vld [vmem:[#allocation11 + $0x50] sm:$0xff] }
 0xcf5   :  { %9405 = vst [vmem:[#allocation40_spill] sm:$0xff] %v8192_v22  ;;  %3506 = vmatpush.msra.mxu3 %v8192_v22  ;;  %3523 = vmatpush.msra.mxu0 %v8194_v23  ;;  %v8222_v23 = vld [vmem:[#allocation11 + $0x38] sm:$0xff] }
 0xcf6   :  { %3538 = vmatpush.msra.mxu1 %v8100_v39  ;;  %3556 = vmatpush.msra.mxu2 %v8112_v44  ;;  %9415 = vst [vmem:[#allocation50_spill] sm:$0xff] %v8222_v23 }
 0xcf8   :  { %3539 = vmatpush.msra.mxu1 %v8108_v42  ;;  %3557 = vmatpush.msra.mxu2 %v8122_v50 }
 0xcfa   :  { %3540 = vmatpush.msra.mxu1 %v8120_v48  ;;  %3558 = vmatpush.msra.mxu2 %v8136_v55 }
 0xcfc   :  { %3541 = vmatpush.msra.mxu1 %v8132_v53  ;;  %3559 = vmatpush.msra.mxu2 %v8148_v2 }
 0xcfe   :  { %3542 = vmatpush.msra.mxu1 %v8144_v59  ;;  %3560 = vmatpush.msra.mxu2 %v8162_v8 }
 0xd00   :  { %3543 = vmatpush.msra.mxu1 %v8158_v7  ;;  %3561 = vmatpush.msra.mxu2 %v8176_v16 }
 0xd02   :  { %3544 = vmatpush.msra.mxu1 %v8170_v14  ;;  %3562 = vmatpush.msra.mxu2 %v8188_v21 }
 0xd04   :  { %3545 = vmatpush.msra.mxu1 %v8184_v20  ;;  %3563 = vmatpush.msra.mxu2 %v8200_v25  ;;  %v8220_v25 = vld [vmem:[#allocation11 + $0x160] sm:$0xff]  ;;  %v8252_v20 = vld [vmem:[#allocation11 + $0x148] sm:$0xff] }
 0xd05   :  { %9414 = vst [vmem:[#allocation49_spill] sm:$0xff] %v8220_v25 }
 0xd06   :  { %3546 = vmatpush.msra.mxu1 %v8196_v24  ;;  %v8218_v24 = vld [vmem:[#allocation11 + $0x30] sm:$0xff]  ;;  %9424 = vst [vmem:[#allocation59_spill] sm:$0xff] %v8252_v20 }
 0xd07   :  { %9413 = vst [vmem:[#allocation48_spill] sm:$0xff] %v8218_v24 }
 0xd4e   :  { %v8076_v26 = vpop.f32.mrf.mxu1 }
 0xd52   :  { %v8172_v15 = vpop.f32.mrf.mxu0 }
 0xd54   :  { %v8150_v3 = vpop.f32.mrf.mxu3 }
 0xd56   :  { %v8092_v33 = vpop.f32.mrf.mxu1 }
 0xd58   :  { %v8094_v9 = vpop.f32.mrf.mxu2 }
 0xd5a   :  { %v8236_v21 = vpop.f32.mrf.mxu0 }
 0xd5c   :  { %v8214_v22 = vpop.f32.mrf.mxu3 }
 0xd5e   :  { %v3228_v34 = vpop.f32.mrf.mxu1 }
 0xd5f   :  { %3338 = vmatmul.f32.vlgmr.msrb.gmra.mxu3 %v3228_v34  ;;  %3384 = vmatmul.f32.vlgmr.msrb.gmra.mxu1 %v3228_v34  ;;  %v8204_v34 = vld [vmem:[#allocation11 + $0x40] sm:$0xff] }
 0xd60   :  { %v8096_v43 = vpop.f32.mrf.mxu2  ;;  %9409 = vst [vmem:[#allocation44_spill] sm:$0xff] %v8204_v34  ;;  %3507 = vmatpush.msra.mxu3 %v8204_v34  ;;  %v8226_v34 = vld [vmem:[#allocation11 + $0x168] sm:$0xff] }
 0xd61   :  { %9416 = vst [vmem:[#allocation51_spill] sm:$0xff] %v8226_v34 }
 0xd62   :  { %3508 = vmatpush.msra.mxu3 %v8218_v24  ;;  %v8240_v24 = vld [vmem:[#allocation11 + $0x158] sm:$0xff] }
 0xd63   :  { %9420 = vst [vmem:[#allocation55_spill] sm:$0xff] %v8240_v24 }
 0xd66   :  { %v3231_v35 = vpop.f32.mrf.mxu1 }
 0xd67   :  { %3341 = vmatmul.f32.gmra.mxu3 %v3231_v35  ;;  %3387 = vmatmul.f32.gmra.mxu1 %v3231_v35  ;;  %v8206_v35 = vld [vmem:[#allocation11 + $0x170] sm:$0xff] }
 0xd68   :  { %v3251_v4 = vpop.f32.mrf.mxu2  ;;  %9410 = vst [vmem:[#allocation45_spill] sm:$0xff] %v8206_v35  ;;  %3524 = vmatpush.msra.mxu0 %v8206_v35  ;;  %v8230_v35 = vld [vmem:[#allocation11 + $0x20] sm:$0xff] }
 0xd69   :  { %3361 = vmatmul.f32.vlgmr.msrb.gmra.mxu0 %v3251_v4  ;;  %3407 = vmatmul.f32.vlgmr.msrb.gmra.mxu2 %v3251_v4  ;;  %v8208_v4 = vld [vmem:[#allocation11 + $0x48] sm:$0xff]  ;;  %9417 = vst [vmem:[#allocation52_spill] sm:$0xff] %v8230_v35 }
 0xd6a   :  { %9411 = vst [vmem:[#allocation46_spill] sm:$0xff] %v8208_v4  ;;  %3547 = vmatpush.msra.mxu1 %v8208_v4  ;;  %3525 = vmatpush.msra.mxu0 %v8220_v25  ;;  %v8232_v4 = vld [vmem:[#allocation11 + $0x150] sm:$0xff]  ;;  %v8248_v25 = vld [vmem:[#allocation11 + $0x18] sm:$0xff] }
 0xd6b   :  { %9418 = vst [vmem:[#allocation53_spill] sm:$0xff] %v8232_v4  ;;  %3509 = vmatpush.msra.mxu3 %v8230_v35  ;;  %v8264_v35 = vld [vmem:[#allocation11 + $0x138] sm:$0xff] }
 0xd6c   :  { %3548 = vmatpush.msra.mxu1 %v8222_v23  ;;  %3526 = vmatpush.msra.mxu0 %v8232_v4  ;;  %v8244_v23 = vld [vmem:[#allocation11 + $0x10] sm:$0xff]  ;;  %9423 = vst [vmem:[#allocation58_spill] sm:$0xff] %v8248_v25  ;;  %v8256_v4 = vld [vmem:[#allocation11] sm:$0xff] }
 0xd6d   :  { %9421 = vst [vmem:[#allocation56_spill] sm:$0xff] %v8244_v23  ;;  %3510 = vmatpush.msra.mxu3 %v8244_v23 }
 0xd6e   :  { %9425 = vst [vmem:[#allocation60_spill] sm:$0xff] %v8256_v4 }
 0xd6f   :  { %3511 = vmatpush.msra.mxu3 %v8256_v4  ;;  %9428 = vst [vmem:[#allocation63_spill] sm:$0xff] %v8264_v35  ;;  %v8275_v4 = vld [vmem:[#allocation11 + $0x110] sm:$0xff] }
 0xd70   :  { %v3254_v37 = vpop.f32.mrf.mxu2  ;;  %9429 = vst [vmem:[#allocation64_spill] sm:$0xff] %v8275_v4 }
 0xd71   :  { %3364 = vmatmul.f32.gmra.mxu0 %v3254_v37  ;;  %3410 = vmatmul.f32.gmra.mxu2 %v3254_v37  ;;  %v8212_v37 = vld [vmem:[#allocation11 + $0x178] sm:$0xff] }
 0xd72   :  { %9412 = vst [vmem:[#allocation47_spill] sm:$0xff] %v8212_v37  ;;  %3564 = vmatpush.msra.mxu2 %v8212_v37  ;;  %v8234_v37 = vld [vmem:[#allocation11 + $0x28] sm:$0xff]  ;;  %3600 = vmatpush.msrb.mxu3 %v8080_v13  ;;  %v2843_v13 = vadd.f32 %v8042_v58, %v8040_v54  ;;  %v3147_v58 = vadd.f32 %v8094_v9, %v8076_v26 }
 0xd73   :  { %9419 = vst [vmem:[#allocation54_spill] sm:$0xff] %v8234_v37  ;;  %3549 = vmatpush.msra.mxu1 %v8234_v37  ;;  %v8258_v37 = vld [vmem:[#allocation11 + $0x130] sm:$0xff] }
 0xd74   :  { %3565 = vmatpush.msra.mxu2 %v8226_v34  ;;  %v8246_v34 = vld [vmem:[#allocation11 + $0x140] sm:$0xff]  ;;  %9426 = vst [vmem:[#allocation61_spill] sm:$0xff] %v8258_v37  ;;  %3601 = vmatpush.msrb.mxu3 %v8084_v30  ;;  %v2912_v30 = vadd.f32 %v8048_v62, %v2843_v13 }
 0xd75   :  { %9422 = vst [vmem:[#allocation57_spill] sm:$0xff] %v8246_v34  ;;  %3527 = vmatpush.msra.mxu0 %v8246_v34  ;;  %3550 = vmatpush.msra.mxu1 %v8248_v25  ;;  %v8268_v25 = vld [vmem:[#allocation11 + $0x120] sm:$0xff] }
 0xd76   :  { %3566 = vmatpush.msra.mxu2 %v8240_v24  ;;  %v8260_v24 = vld [vmem:[#allocation11 + $0x8] sm:$0xff]  ;;  %v8279_v34 = vld [vmem:[#allocation11 + $0x100] sm:$0xff]  ;;  %3602 = vmatpush.msrb.mxu3 %v8098_v38 }
 0xd77   :  { %9427 = vst [vmem:[#allocation62_spill] sm:$0xff] %v8260_v24  ;;  %3528 = vmatpush.msra.mxu0 %v8258_v37  ;;  %3551 = vmatpush.msra.mxu1 %v8260_v24  ;;  %v8277_v37 = vld [vmem:[#allocation11 + $0x118] sm:$0xff] }
 0xd78   :  { %3567 = vmatpush.msra.mxu2 %v8252_v20  ;;  %v8270_v20 = vld [vmem:[#allocation11 + $0x128] sm:$0xff]  ;;  %3603 = vmatpush.msrb.mxu3 %v8104_v40 }
 0xd79   :  { %3529 = vmatpush.msra.mxu0 %v8268_v25  ;;  %3640 = vmatpush.msrb.mxu1 %v8082_v29  ;;  %v2846_v29 = vadd.f32 %v8046_v61, %v8044_v60  ;;  %v2889_v60 = vadd.f32 %v8064_v31, %v8062_v27  ;;  %v2892_v61 = vadd.f32 %v8068_v47, %v8066_v11 }
 0xd7a   :  { %3568 = vmatpush.msra.mxu2 %v8264_v35  ;;  %v8283_v35 = vld [vmem:[#allocation11 + $0x108] sm:$0xff]  ;;  %3604 = vmatpush.msrb.mxu3 %v8114_v45  ;;  %v3193_v47 = vadd.f32 %v8172_v15, %v8150_v3  ;;  %v9434_v3 = vld [vmem:[#allocation42_spill] sm:$0xff]  ;;  %v9440_v15 = vld [vmem:[#allocation48_spill] sm:$0xff] }
 0xd7b   :  { %3530 = vmatpush.msra.mxu0 %v8275_v4  ;;  %3641 = vmatpush.msrb.mxu1 %v8088_v32  ;;  %v2915_v54 = vadd.f32 %v8052_v0, %v2846_v29  ;;  %v3150_v32 = vadd.f32 %v8096_v43, %v8092_v33  ;;  %v2935_v0 = vadd.f32 %v8050_v63, %v2912_v30  ;;  %v9446_v29 = vld [vmem:[#allocation54_spill] sm:$0xff]  ;;  %v9447_v30 = vld [vmem:[#allocation55_spill] sm:$0xff] }
 0xd7c   :  { %3569 = vmatpush.msra.mxu2 %v8270_v20  ;;  %3605 = vmatpush.msrb.mxu3 %v8128_v51  ;;  %v2958_v63 = vadd.f32 %v8070_v49, %v2889_v60  ;;  %v3196_v43 = vadd.f32 %v8236_v21, %v8214_v22  ;;  %v9442_v21 = vld [vmem:[#allocation50_spill] sm:$0xff]  ;;  %v9443_v22 = vld [vmem:[#allocation51_spill] sm:$0xff] }
 0xd7d   :  { %3531 = vmatpush.msra.mxu0 %v8279_v34  ;;  %3642 = vmatpush.msrb.mxu1 %v8100_v39  ;;  %v2938_v26 = vadd.f32 %v8054_v1, %v2915_v54  ;;  %v3198_v27 = vadd.f32 %v3147_v58, %v2935_v0  ;;  %v2961_v1 = vadd.f32 %v8074_v19, %v2892_v61  ;;  %v9448_v54 = vld [vmem:[#allocation56_spill] sm:$0xff]  ;;  %v9449_v58 = vld [vmem:[#allocation57_spill] sm:$0xff]  ;;  %v9450_v60 = vld [vmem:[#allocation58_spill] sm:$0xff] }
 0xd7e   :  { %3570 = vmatpush.msra.mxu2 %v8277_v37  ;;  %3606 = vmatpush.msrb.mxu3 %v8140_v56  ;;  %v2981_v49 = vadd.f32 %v8072_v18, %v2958_v63  ;;  %v9432_v56 = vld [vmem:[#allocation40_spill] sm:$0xff]  ;;  %v9451_v61 = vld [vmem:[#allocation59_spill] sm:$0xff]  ;;  %v9453_v0 = vld [vmem:[#allocation61_spill] sm:$0xff] }
 0xd7f   :  { %3620 = vmatpush.msrb.mxu0 %v8106_v41  ;;  %3643 = vmatpush.msrb.mxu1 %v8108_v42  ;;  %v3200_v31 = vadd.f32 %v3150_v32, %v2938_v26  ;;  %v2984_v19 = vadd.f32 %v8078_v28, %v2961_v1  ;;  %v9454_v26 = vld [vmem:[#allocation62_spill] sm:$0xff] }
 0xd80   :  { %3571 = vmatpush.msra.mxu2 %v8283_v35  ;;  %3607 = vmatpush.msrb.mxu3 %v8154_v5  ;;  %v3199_v18 = vadd.f32 %v3193_v47, %v2981_v49  ;;  %v9435_v5 = vld [vmem:[#allocation43_spill] sm:$0xff] }
 0xd81   :  { %3621 = vmatpush.msrb.mxu0 %v8116_v46  ;;  %3644 = vmatpush.msrb.mxu1 %v8120_v48  ;;  %v3201_v46 = vadd.f32 %v3196_v43, %v2984_v19 }
 0xd82   :  { %3660 = vmatpush.msrb.mxu2 %v8112_v44  ;;  %3608 = vmatpush.msrb.mxu3 %v8166_v10 }
 0xd83   :  { %3622 = vmatpush.msrb.mxu0 %v8130_v52  ;;  %3645 = vmatpush.msrb.mxu1 %v8132_v53  ;;  %v9430_v53 = vld [vmem:[#allocation38_spill] sm:$0xff] }
 0xd84   :  { %3661 = vmatpush.msrb.mxu2 %v8122_v50  ;;  %3609 = vmatpush.msrb.mxu3 %v8180_v17 }
 0xd85   :  { %3623 = vmatpush.msrb.mxu0 %v8142_v57  ;;  %3646 = vmatpush.msrb.mxu1 %v8144_v59  ;;  %v9433_v57 = vld [vmem:[#allocation41_spill] sm:$0xff] }
 0xd86   :  { %3662 = vmatpush.msrb.mxu2 %v8136_v55  ;;  %v9431_v55 = vld [vmem:[#allocation39_spill] sm:$0xff]  ;;  %3610 = vmatpush.msrb.mxu3 %v9432_v56 }
 0xd87   :  { %3624 = vmatpush.msrb.mxu0 %v8156_v6  ;;  %3647 = vmatpush.msrb.mxu1 %v8158_v7  ;;  %v9436_v6 = vld [vmem:[#allocation44_spill] sm:$0xff]  ;;  %v9437_v7 = vld [vmem:[#allocation45_spill] sm:$0xff] }
 0xd88   :  { %3663 = vmatpush.msrb.mxu2 %v8148_v2  ;;  %3611 = vmatpush.msrb.mxu3 %v9436_v6 }
 0xd89   :  { %3625 = vmatpush.msrb.mxu0 %v8168_v12  ;;  %3648 = vmatpush.msrb.mxu1 %v8170_v14  ;;  %v9438_v12 = vld [vmem:[#allocation46_spill] sm:$0xff]  ;;  %v9439_v14 = vld [vmem:[#allocation47_spill] sm:$0xff] }
 0xd8a   :  { %3664 = vmatpush.msrb.mxu2 %v8162_v8  ;;  %3612 = vmatpush.msrb.mxu3 %v9440_v15 }
 0xd8b   :  { %3626 = vmatpush.msrb.mxu0 %v8182_v36  ;;  %3649 = vmatpush.msrb.mxu1 %v9430_v53 }
 0xd8c   :  { %3665 = vmatpush.msrb.mxu2 %v8176_v16  ;;  %v9441_v16 = vld [vmem:[#allocation49_spill] sm:$0xff] }
 0xd8d   :  { %3627 = vmatpush.msrb.mxu0 %v9433_v57  ;;  %3650 = vmatpush.msrb.mxu1 %v9434_v3 }
 0xd8e   :  { %3666 = vmatpush.msrb.mxu2 %v9431_v55 }
 0xd8f   :  { %3628 = vmatpush.msrb.mxu0 %v9437_v7  ;;  %3651 = vmatpush.msrb.mxu1 %v9438_v12 }
 0xd90   :  { %3667 = vmatpush.msrb.mxu2 %v9435_v5 }
 0xd91   :  { %3629 = vmatpush.msrb.mxu0 %v9441_v16  ;;  %3652 = vmatpush.msrb.mxu1 %v9442_v21 }
 0xd92   :  { %3668 = vmatpush.msrb.mxu2 %v9439_v14 }
 0xd93   :  { %3653 = vmatpush.msrb.mxu1 %v9446_v29 }
 0xd94   :  { %3669 = vmatpush.msrb.mxu2 %v9443_v22 }
 0xd95   :  { %3654 = vmatpush.msrb.mxu1 %v9450_v60 }
 0xd96   :  { %3670 = vmatpush.msrb.mxu2 %v9447_v30 }
 0xd97   :  { %3655 = vmatpush.msrb.mxu1 %v9454_v26 }
 0xd98   :  { %3671 = vmatpush.msrb.mxu2 %v9451_v61 }
 0xddc   :  { %v3385_v4 = vpop.f32.mrf.mxu1 }
 0xde2   :  { %v3339_v23 = vpop.f32.mrf.mxu3 }
 0xde4   :  { %v3388_v44 = vpop.f32.mrf.mxu1 }
 0xde6   :  { %v3362_v24 = vpop.f32.mrf.mxu0 }
 0xde7   :  { %v3363_v33 = vadd.f32 %v3362_v24, %v3339_v23  ;;  %v9444_v23 = vld [vmem:[#allocation52_spill] sm:$0xff]  ;;  %v9445_v24 = vld [vmem:[#allocation53_spill] sm:$0xff] }
 0xde8   :  { %3613 = vmatpush.msrb.mxu3 %v9444_v23  ;;  %3630 = vmatpush.msrb.mxu0 %v9445_v24 }
 0xde9   :  { %v8328_v39 = vadd.f32 %v3363_v33, %v3198_v27  ;;  %v9455_v33 = vld [vmem:[#allocation63_spill] sm:$0xff]  ;;  %v9456_v27 = vld [vmem:[#allocation64_spill] sm:$0xff] }
 0xdea   :  { %v3342_v38 = vpop.f32.mrf.mxu3  ;;  %3614 = vmatpush.msrb.mxu3 %v9448_v54  ;;  %3631 = vmatpush.msrb.mxu0 %v9449_v58  ;;  %v3714_v54 = vld [vmem:[%s9458_s25] sm:$0x3] }
 0xdeb   :  { %3672 = vmatpush.msrb.mxu2 %v9455_v33 }
 0xdec   :  { %v3408_v62 = vpop.f32.mrf.mxu2  ;;  %3632 = vmatpush.msrb.mxu0 %v9453_v0 }
 0xded   :  { %v3409_v41 = vadd.f32 %v3408_v62, %v3385_v4  ;;  %3673 = vmatpush.msrb.mxu2 %v8270_v20 }
 0xdee   :  { %v3365_v9 = vpop.f32.mrf.mxu0  ;;  %3633 = vmatpush.msrb.mxu0 %v8268_v25 }
 0xdef   :  { %v3366_v11 = vadd.f32 %v3365_v9, %v3342_v38  ;;  %v8348_v28 = vadd.f32 %v3409_v41, %v3199_v18  ;;  %v9452_v38 = vld [vmem:[#allocation60_spill] sm:$0xff]  ;;  %3674 = vmatpush.msrb.mxu2 %v8277_v37 }
 0xdf0   :  { %3615 = vmatpush.msrb.mxu3 %v9452_v38  ;;  %3634 = vmatpush.msrb.mxu0 %v9456_v27 }
 0xdf1   :  { %v8330_v40 = vadd.f32 %v3366_v11, %v3200_v31  ;;  %3675 = vmatpush.msrb.mxu2 %v8283_v35 }
 0xdf2   :  { %3635 = vmatpush.msrb.mxu0 %v8279_v34 }
 0xdf3   :  { %v3418_v42 = vadd.f32 %v8330_v40, %v8328_v39 }
 0xdf4   :  { %v3411_v45 = vpop.f32.mrf.mxu2 }
 0xdf5   :  { %v3419_v48 = vrot.slane %v3418_v42, 4  ;;  %v3412_v50 = vadd.f32 %v3411_v45, %v3388_v44 }
 0xdf7   :  { %v3420_v51 = vadd.f32 %v3419_v48, %v3418_v42  ;;  %v8350_v52 = vadd.f32 %v3412_v50, %v3201_v46 }
 0xdf9   :  { %v3421_v59 = vrot.slane %v3420_v51, 2  ;;  %v3425_v2 = vadd.f32 %v8350_v52, %v8348_v28 }
 0xdfb   :  { %v3422_v8 = vadd.f32 %v3421_v59, %v3420_v51  ;;  %v3426_v10 = vrot.slane %v3425_v2, 4 }
 0xdfd   :  { %v3423_v17 = vrot.slane %v3422_v8, 1  ;;  %v3427_v36 = vadd.f32 %v3426_v10, %v3425_v2 }
 0xdff   :  { %v3424_v4 = vadd.f32 %v3423_v17, %v3422_v8  ;;  %v3428_v13 = vrot.slane %v3427_v36, 2 }
 0xe01   :  { %v3429_v32 = vadd.f32 %v3428_v13, %v3427_v36  ;;  %3512 = vmatmul.f32.vlgmr.msra.gmra.mxu3 %v3424_v4  ;;  %3552 = vmatmul.f32.vlgmr.msra.gmra.mxu1 %v3424_v4  ;;  %v3700_v36 = vld [vmem:[%s9457_s19] sm:$0x3] }
 0xe02   :  { %v3702_v24 = vperm.slane %v3700_v36, 0 }
 0xe03   :  { %v3430_v62 = vrot.slane %v3429_v32, 1 }
 0xe05   :  { %v3431_v9 = vadd.f32 %v3430_v62, %v3429_v32  ;;  %v3703_v32 = vperm.slane %v3700_v36, 1  ;;  %v3716_v62 = vperm.slane %v3714_v54, 0  ;;  %v3996_v36 = vld [vmem:[#allocation13 + $0x3b0] sm:$0xff] }
 0xe07   :  { %3532 = vmatmul.f32.vlgmr.msra.gmra.mxu0 %v3431_v9  ;;  %3572 = vmatmul.f32.vlgmr.msra.gmra.mxu2 %v3431_v9 }
 0xe7e   :  { %v3553_v20 = vpop.f32.mrf.mxu1 }
 0xe84   :  { %v3513_v31 = vpop.f32.mrf.mxu3  ;;  %v3533_v11 = vpop.f32.mrf.mxu0 }
 0xe85   :  { %v3534_v63 = vadd.f32 %v3533_v11, %v3513_v31  ;;  %v3717_v11 = vperm.slane %v3714_v54, 1  ;;  %v3950_v54 = vld [vmem:[#allocation13 + $0x240] sm:$0xff] }
 0xe87   :  { %v3576_v1 = vperm.slane %v3534_v63, 0 }
 0xe89   :  { %v8387_v47 = vsub.f32 %v8328_v39, %v3576_v1  ;;  %v8390_v25 = vsub.f32 %v8330_v40, %v3576_v1 }
 0xe8a   :  { %v3573_v43 = vpop.f32.mrf.mxu2 }
 0xe8b   :  { %v3582_v49 = vmul.f32 %v8387_v47, %v8387_v47  ;;  %v3584_v34 = vmul.f32 %v8390_v25, %v8390_v25  ;;  %v3574_v37 = vadd.f32 %v3573_v43, %v3553_v20 }
 0xe8d   :  { %v3586_v35 = vadd.f32 %v3584_v34, %v3582_v49  ;;  %v3577_v19 = vperm.slane %v3574_v37, 0  ;;  %v6390_v49 = vld [vmem:[%s9459_s6 + $0x20] sm:$0xff] }
 0xe8f   :  { %v3587_v41 = vrot.slane %v3586_v35, 4  ;;  %v8397_v42 = vsub.f32 %v8348_v28, %v3577_v19  ;;  %v8400_v39 = vsub.f32 %v8350_v52, %v3577_v19  ;;  %v3973_v19 = vld [vmem:[#allocation13 + $0x2f8] sm:$0xff] }
 0xe91   :  { %v3588_v40 = vadd.f32 %v3587_v41, %v3586_v35  ;;  %v3583_v44 = vmul.f32 %v8397_v42, %v8397_v42  ;;  %v3585_v45 = vmul.f32 %v8400_v39, %v8400_v39  ;;  %v3972_v35 = vld [vmem:[#allocation13 + $0x2f0] sm:$0xff] }
 0xe93   :  { %v3589_v18 = vrot.slane %v3588_v40, 2  ;;  %v3593_v46 = vadd.f32 %v3585_v45, %v3583_v44  ;;  %v4005_v44 = vld [vmem:[#allocation13 + $0x3f8] sm:$0xff]  ;;  %v3968_v45 = vld [vmem:[#allocation13 + $0x2d0] sm:$0xff] }
 0xe95   :  { %v3590_v48 = vadd.f32 %v3589_v18, %v3588_v40  ;;  %v3594_v50 = vrot.slane %v3593_v46, 4  ;;  %v4004_v40 = vld [vmem:[#allocation13 + $0x3f0] sm:$0xff]  ;;  %v3969_v18 = vld [vmem:[#allocation13 + $0x2d8] sm:$0xff] }
 0xe97   :  { %v3595_v51 = vadd.f32 %v3594_v50, %v3593_v46  ;;  %v3591_v53 = vrot.slane %v3590_v48, 1  ;;  %v6391_v46 = vld [vmem:[%s9459_s6 + $0x28] sm:$0xff]  ;;  %v3966_v50 = vld [vmem:[#allocation13 + $0x2c0] sm:$0xff] }
 0xe99   :  { %v3596_v55 = vrot.slane %v3595_v51, 2  ;;  %v3592_v56 = vadd.f32 %v3591_v53, %v3590_v48  ;;  %v3729_v48 = vld [vmem:[%s9459_s6 + $0x8] sm:$0xff]  ;;  %v4002_v53 = vld [vmem:[#allocation13 + $0x3e0] sm:$0xff] }
 0xe9b   :  { %v3597_v28 = vadd.f32 %v3596_v55, %v3595_v51  ;;  %3616 = vmatmul.f32.vlgmr.msrb.gmra.mxu3 %v3592_v56  ;;  %3656 = vmatmul.f32.vlgmr.msrb.gmra.mxu1 %v3592_v56  ;;  %v3967_v51 = vld [vmem:[#allocation13 + $0x2c8] sm:$0xff]  ;;  %v3964_v56 = vld [vmem:[#allocation13 + $0x2b0] sm:$0xff] }
 0xe9c   :  { %v4003_v55 = vld [vmem:[#allocation13 + $0x3e8] sm:$0xff] }
 0xe9d   :  { %v3598_v52 = vrot.slane %v3597_v28, 1 }
 0xe9f   :  { %v3599_v57 = vadd.f32 %v3598_v52, %v3597_v28  ;;  %v3965_v28 = vld [vmem:[#allocation13 + $0x2b8] sm:$0xff]  ;;  %v3962_v52 = vld [vmem:[#allocation13 + $0x2a0] sm:$0xff] }
 0xea1   :  { %3636 = vmatmul.f32.vlgmr.msrb.gmra.mxu0 %v3599_v57  ;;  %3676 = vmatmul.f32.vlgmr.msrb.gmra.mxu2 %v3599_v57  ;;  %v3963_v57 = vld [vmem:[#allocation13 + $0x2a8] sm:$0xff] }
 0xf18   :  { %v3657_v3 = vpop.f32.mrf.mxu1 }
 0xf19   :  { %v3658_v7 = vadd.f32 1e-05, %v3657_v3  ;;  %v3960_v3 = vld [vmem:[#allocation13 + $0x290] sm:$0xff] }
 0xf1e   :  { %v3617_v59 = vpop.f32.mrf.mxu3  ;;  %v3637_v5 = vpop.f32.mrf.mxu0 }
 0xf1f   :  { %v3618_v2 = vadd.f32 1e-05, %v3617_v59  ;;  %v4000_v59 = vld [vmem:[#allocation13 + $0x3d0] sm:$0xff] }
 0xf21   :  { %v3638_v6 = vadd.f32 %v3637_v5, %v3618_v2  ;;  %v4001_v2 = vld [vmem:[#allocation13 + $0x3d8] sm:$0xff] }
 0xf22   :  { %v3961_v5 = vld [vmem:[#allocation13 + $0x298] sm:$0xff] }
 0xf23   :  { %6669 = vrsqrt.f32 %v3638_v6  ;;  %vm3686_vm15 = vweird.f32 %v3638_v6 }
 0xf24   :  { %v3677_v8 = vpop.f32.mrf.mxu2 }
 0xf25   :  { %v3678_v10 = vadd.f32 %v3677_v8, %v3658_v7  ;;  %v3730_v7 = vld [vmem:[%s9459_s6 + $0x10] sm:$0xff]  ;;  %v3958_v8 = vld [vmem:[#allocation13 + $0x280] sm:$0xff] }
 0xf27   :  { %6671 = vrsqrt.f32 %v3678_v10  ;;  %vm3696_vm3 = vweird.f32 %v3678_v10 }
 0xf29   :  { %v6670_v12 = vpop.eup %6669 }
 0xf2a   :  { %v3681_v14 = vmul.f32 %v6670_v12, %v3638_v6  ;;  %vm3687_vm14 = vweird.f32 %v6670_v12  ;;  %v6392_v6 = vld [vmem:[%s9459_s6 + $0x30] sm:$0xff] }
 0xf2b   :  { %vm3688_vm1 = vmor %vm3686_vm15, %vm3687_vm14 }
 0xf2c   :  { %v3682_v15 = vmul.f32 %v6670_v12, %v3681_v14  ;;  %v3999_v14 = vld [vmem:[#allocation13 + $0x3c8] sm:$0xff] }
 0xf2d   :  { %v6672_v16 = vpop.eup %6671 }
 0xf2e   :  { %v3683_v17 = vmul.f32 0.5, %v3682_v15  ;;  %v3691_v21 = vmul.f32 %v6672_v16, %v3678_v10  ;;  %vm3697_vm2 = vweird.f32 %v6672_v16  ;;  %v3959_v10 = vld [vmem:[#allocation13 + $0x288] sm:$0xff]  ;;  %v3956_v15 = vld [vmem:[#allocation13 + $0x270] sm:$0xff] }
 0xf2f   :  { %vm3698_vm4 = vmor %vm3696_vm3, %vm3697_vm2 }
 0xf30   :  { %v3684_v22 = vsub.f32 1.5, %v3683_v17  ;;  %v3692_v23 = vmul.f32 %v6672_v16, %v3691_v21  ;;  %v3954_v17 = vld [vmem:[#allocation13 + $0x260] sm:$0xff]  ;;  %v3955_v21 = vld [vmem:[#allocation13 + $0x268] sm:$0xff] }
 0xf32   :  { %v3685_v4 = vmul.f32 %v6670_v12, %v3684_v22  ;;  %v3693_v13 = vmul.f32 0.5, %v3692_v23  ;;  %v3997_v22 = vld [vmem:[#allocation13 + $0x3b8] sm:$0xff]  ;;  %v3952_v23 = vld [vmem:[#allocation13 + $0x250] sm:$0xff] }
 0xf34   :  { %v3689_v29 = vsel %vm3688_vm1, %v6670_v12, %v3685_v4  ;;  %v3694_v30 = vsub.f32 1.5, %v3693_v13  ;;  %v3998_v12 = vld [vmem:[#allocation13 + $0x3c0] sm:$0xff]  ;;  %v6393_v4 = vld [vmem:[%s9459_s6 + $0x38] sm:$0xff] }
 0xf35   :  { %v3706_v58 = vmul.f32 %v3702_v24, %v3689_v29  ;;  %v3994_v24 = vld [vmem:[#allocation13 + $0x3a0] sm:$0xff]  ;;  %v3731_v13 = vld [vmem:[%s9459_s6 + $0x18] sm:$0xff] }
 0xf36   :  { %v3695_v60 = vmul.f32 %v6672_v16, %v3694_v30  ;;  %v3953_v29 = vld [vmem:[#allocation13 + $0x258] sm:$0xff]  ;;  %v3995_v30 = vld [vmem:[#allocation13 + $0x3a8] sm:$0xff] }
 0xf37   :  { %v3708_v61 = vperm.slane %v3706_v58, 0  ;;  %v3992_v58 = vld [vmem:[#allocation13 + $0x390] sm:$0xff] }
 0xf38   :  { %v3699_v38 = vsel %vm3698_vm4, %v6672_v16, %v3695_v60  ;;  %v3957_v16 = vld [vmem:[#allocation13 + $0x278] sm:$0xff] }
 0xf39   :  { %v3707_v0 = vmul.f32 %v3703_v32, %v3699_v38  ;;  %v3712_v26 = vmul.f32 %v3708_v61, %v8390_v25  ;;  %v3710_v33 = vmul.f32 %v3708_v61, %v8387_v47  ;;  %v3728_v47 = vld [vmem:[%s9459_s6] sm:$0xff]  ;;  %v3951_v32 = vld [vmem:[#allocation13 + $0x248] sm:$0xff]  ;;  %v3993_v60 = vld [vmem:[#allocation13 + $0x398] sm:$0xff] }
 0xf3a   :  { %v3948_v61 = vld [vmem:[#allocation13 + $0x230] sm:$0xff]  ;;  %v3949_v38 = vld [vmem:[#allocation13 + $0x238] sm:$0xff] }
 0xf3b   :  { %v3709_v9 = vperm.slane %v3707_v0, 0  ;;  %v3722_v27 = vadd.f32 %v3716_v62, %v3712_v26  ;;  %v3720_v31 = vadd.f32 %v3716_v62, %v3710_v33  ;;  %v3990_v62 = vld [vmem:[#allocation13 + $0x380] sm:$0xff]  ;;  %v3991_v0 = vld [vmem:[#allocation13 + $0x388] sm:$0xff]  ;;  %v3988_v33 = vld [vmem:[#allocation13 + $0x370] sm:$0xff] }
 0xf3c   :  { %v3946_v26 = vld [vmem:[#allocation13 + $0x220] sm:$0xff] }
 0xf3d   :  { %v8410_v63 = vmax.f32 %v3722_v27, 0.0  ;;  %v3713_v1 = vmul.f32 %v3709_v9, %v8400_v39  ;;  %v3711_v20 = vmul.f32 %v3709_v9, %v8397_v42  ;;  %v8416_v43 = vmax.f32 %v3720_v31, 0.0  ;;  %v3970_v42 = vld [vmem:[#allocation13 + $0x2e0] sm:$0xff]  ;;  %v3971_v39 = vld [vmem:[#allocation13 + $0x2e8] sm:$0xff]  ;;  %v3989_v27 = vld [vmem:[#allocation13 + $0x378] sm:$0xff] }
 0xf3e   :  { %v3947_v9 = vld [vmem:[#allocation13 + $0x228] sm:$0xff]  ;;  %v3944_v31 = vld [vmem:[#allocation13 + $0x210] sm:$0xff] }
 0xf3f   :  { %3758 = vmatpush.msra.mxu3 %v8410_v63  ;;  %3897 = vmatpush.msra.mxu1 %v8410_v63  ;;  %v3723_v25 = vadd.f32 %v3717_v11, %v3713_v1  ;;  %v3721_v34 = vadd.f32 %v3717_v11, %v3711_v20  ;;  %v3986_v11 = vld [vmem:[#allocation13 + $0x360] sm:$0xff]  ;;  %v3945_v1 = vld [vmem:[#allocation13 + $0x218] sm:$0xff]  ;;  %v3987_v20 = vld [vmem:[#allocation13 + $0x368] sm:$0xff] }
 0xf41   :  { %3759 = vmatpush.msra.mxu3 %v8416_v43  ;;  %3898 = vmatpush.msra.mxu1 %v8416_v43  ;;  %v8422_v37 = vmax.f32 %v3723_v25, 0.0  ;;  %v8428_v41 = vmax.f32 %v3721_v34, 0.0  ;;  %v3984_v25 = vld [vmem:[#allocation13 + $0x350] sm:$0xff]  ;;  %v3943_v34 = vld [vmem:[#allocation13 + $0x208] sm:$0xff] }
 0xf42   :  { %6394 = vmatmul.msk.f32.vlgmr.msra.gmra.mxu1 %vm1344_vm10, %v6390_v49  ;;  %6382 = vmatmul.msk.f32.vlgmr.msra.gmra.mxu3 %vm1344_vm10, %v3728_v47 }
 0xf43   :  { %3787 = vmatpush.msra.mxu0 %v8422_v37  ;;  %3926 = vmatpush.msra.mxu2 %v8422_v37 }
 0xf44   :  { %4006 = vmatpush.msrb.mxu3 %v3972_v35  ;;  %4064 = vmatpush.msrb.mxu1 %v3973_v19  ;;  %v3832_v35 = vld [vmem:[#allocation13 + $0xf0] sm:$0xff]  ;;  %v3982_v19 = vld [vmem:[#allocation13 + $0x340] sm:$0xff] }
 0xf45   :  { %3788 = vmatpush.msra.mxu0 %v8428_v41  ;;  %3927 = vmatpush.msra.mxu2 %v8428_v41 }
 0xf46   :  { %6398 = vmatmul.msk.f32.vlgmr.msra.gmra.mxu2 %vm1344_vm10, %v6390_v49  ;;  %6386 = vmatmul.msk.f32.vlgmr.msra.gmra.mxu0 %vm1344_vm10, %v3728_v47  ;;  %v3942_v49 = vld [vmem:[#allocation13 + $0x200] sm:$0xff]  ;;  %v3985_v47 = vld [vmem:[#allocation13 + $0x358] sm:$0xff] }
 0xf47   :  { %4007 = vmatpush.msrb.mxu3 %v3970_v42  ;;  %4065 = vmatpush.msrb.mxu1 %v3971_v39  ;;  %v3833_v42 = vld [vmem:[#allocation13 + $0xf8] sm:$0xff]  ;;  %v3983_v39 = vld [vmem:[#allocation13 + $0x348] sm:$0xff] }
 0xf48   :  { %4035 = vmatpush.msrb.mxu0 %v4004_v40  ;;  %4093 = vmatpush.msrb.mxu2 %v4005_v44  ;;  %v3830_v40 = vld [vmem:[#allocation13 + $0xe0] sm:$0xff]  ;;  %v3980_v44 = vld [vmem:[#allocation13 + $0x330] sm:$0xff] }
 0xf49   :  { %4008 = vmatpush.msrb.mxu3 %v3968_v45  ;;  %4066 = vmatpush.msrb.mxu1 %v3969_v18  ;;  %v3831_v45 = vld [vmem:[#allocation13 + $0xe8] sm:$0xff]  ;;  %v3981_v18 = vld [vmem:[#allocation13 + $0x338] sm:$0xff] }
 0xf4a   :  { %6395 = vmatmul.msk.f32.gmra.mxu1 %vm1344_vm10, %v6391_v46  ;;  %6383 = vmatmul.msk.f32.gmra.mxu3 %vm1344_vm10, %v3729_v48 }
 0xf4b   :  { %4009 = vmatpush.msrb.mxu3 %v3966_v50  ;;  %4067 = vmatpush.msrb.mxu1 %v3967_v51  ;;  %v3829_v50 = vld [vmem:[#allocation13 + $0xd8] sm:$0xff]  ;;  %v3979_v51 = vld [vmem:[#allocation13 + $0x328] sm:$0xff] }
 0xf4c   :  { %4036 = vmatpush.msrb.mxu0 %v4002_v53  ;;  %4094 = vmatpush.msrb.mxu2 %v4003_v55  ;;  %v3826_v53 = vld [vmem:[#allocation13 + $0xc0] sm:$0xff]  ;;  %v3976_v55 = vld [vmem:[#allocation13 + $0x310] sm:$0xff] }
 0xf4d   :  { %4010 = vmatpush.msrb.mxu3 %v3964_v56  ;;  %4068 = vmatpush.msrb.mxu1 %v3965_v28  ;;  %v3827_v56 = vld [vmem:[#allocation13 + $0xc8] sm:$0xff]  ;;  %v3977_v28 = vld [vmem:[#allocation13 + $0x318] sm:$0xff] }
 0xf4e   :  { %6399 = vmatmul.msk.f32.gmra.mxu2 %vm1344_vm10, %v6391_v46  ;;  %6387 = vmatmul.msk.f32.gmra.mxu0 %vm1344_vm10, %v3729_v48  ;;  %v3828_v46 = vld [vmem:[#allocation13 + $0xd0] sm:$0xff]  ;;  %v3978_v48 = vld [vmem:[#allocation13 + $0x320] sm:$0xff] }
 0xf4f   :  { %4011 = vmatpush.msrb.mxu3 %v3962_v52  ;;  %4069 = vmatpush.msrb.mxu1 %v3963_v57  ;;  %v3824_v52 = vld [vmem:[#allocation13 + $0xb0] sm:$0xff]  ;;  %v3974_v57 = vld [vmem:[#allocation13 + $0x300] sm:$0xff] }
 0xf50   :  { %4037 = vmatpush.msrb.mxu0 %v4000_v59  ;;  %4095 = vmatpush.msrb.mxu2 %v4001_v2  ;;  %v3825_v59 = vld [vmem:[#allocation13 + $0xb8] sm:$0xff]  ;;  %v3975_v2 = vld [vmem:[#allocation13 + $0x308] sm:$0xff] }
 0xf51   :  { %4012 = vmatpush.msrb.mxu3 %v3960_v3  ;;  %4070 = vmatpush.msrb.mxu1 %v3961_v5  ;;  %v3822_v3 = vld [vmem:[#allocation13 + $0xa0] sm:$0xff]  ;;  %v3864_v5 = vld [vmem:[#allocation13 + $0x1f0] sm:$0xff] }
 0xf52   :  { %6396 = vmatmul.msk.f32.gmra.mxu1 %vm1344_vm10, %v6392_v6  ;;  %6384 = vmatmul.msk.f32.gmra.mxu3 %vm1344_vm10, %v3730_v7 }
 0xf53   :  { %4013 = vmatpush.msrb.mxu3 %v3958_v8  ;;  %4071 = vmatpush.msrb.mxu1 %v3959_v10  ;;  %v3820_v8 = vld [vmem:[#allocation13 + $0x90] sm:$0xff]  ;;  %v3862_v10 = vld [vmem:[#allocation13 + $0x1e0] sm:$0xff] }
 0xf54   :  { %4038 = vmatpush.msrb.mxu0 %v3998_v12  ;;  %4096 = vmatpush.msrb.mxu2 %v3999_v14  ;;  %v3821_v12 = vld [vmem:[#allocation13 + $0x98] sm:$0xff]  ;;  %v3863_v14 = vld [vmem:[#allocation13 + $0x1e8] sm:$0xff] }
 0xf55   :  { %4014 = vmatpush.msrb.mxu3 %v3956_v15  ;;  %4072 = vmatpush.msrb.mxu1 %v3957_v16  ;;  %v3818_v15 = vld [vmem:[#allocation13 + $0x80] sm:$0xff]  ;;  %v3860_v16 = vld [vmem:[#allocation13 + $0x1d0] sm:$0xff] }
 0xf56   :  { %6400 = vmatmul.msk.f32.gmra.mxu2 %vm1344_vm10, %v6392_v6  ;;  %6388 = vmatmul.msk.f32.gmra.mxu0 %vm1344_vm10, %v3730_v7  ;;  %v3823_v6 = vld [vmem:[#allocation13 + $0xa8] sm:$0xff]  ;;  %v3865_v7 = vld [vmem:[#allocation13 + $0x1f8] sm:$0xff] }
 0xf57   :  { %4015 = vmatpush.msrb.mxu3 %v3954_v17  ;;  %4039 = vmatpush.msrb.mxu0 %v3996_v36  ;;  %v3819_v17 = vld [vmem:[#allocation13 + $0x88] sm:$0xff]  ;;  %v3861_v36 = vld [vmem:[#allocation13 + $0x1d8] sm:$0xff] }
 0xf58   :  { %4073 = vmatpush.msrb.mxu1 %v3955_v21  ;;  %4097 = vmatpush.msrb.mxu2 %v3997_v22  ;;  %v3816_v21 = vld [vmem:[#allocation13 + $0x70] sm:$0xff]  ;;  %v3858_v22 = vld [vmem:[#allocation13 + $0x1c0] sm:$0xff] }
 0xf59   :  { %4016 = vmatpush.msrb.mxu3 %v3952_v23  ;;  %4040 = vmatpush.msrb.mxu0 %v3994_v24  ;;  %v3817_v23 = vld [vmem:[#allocation13 + $0x78] sm:$0xff]  ;;  %v3859_v24 = vld [vmem:[#allocation13 + $0x1c8] sm:$0xff] }
 0xf5a   :  { %6397 = vmatmul.msk.f32.gmra.mxu1 %vm1344_vm10, %v6393_v4  ;;  %6385 = vmatmul.msk.f32.gmra.mxu3 %vm1344_vm10, %v3731_v13 }
 0xf5b   :  { %4074 = vmatpush.msrb.mxu1 %v3953_v29  ;;  %4098 = vmatpush.msrb.mxu2 %v3995_v30  ;;  %v3815_v29 = vld [vmem:[#allocation13 + $0x68] sm:$0xff]  ;;  %v3857_v30 = vld [vmem:[#allocation13 + $0x1b8] sm:$0xff] }
 0xf5c   :  { %4017 = vmatpush.msrb.mxu3 %v3950_v54  ;;  %4041 = vmatpush.msrb.mxu0 %v3992_v58  ;;  %v3812_v54 = vld [vmem:[#allocation13 + $0x50] sm:$0xff]  ;;  %v3854_v58 = vld [vmem:[#allocation13 + $0x1a0] sm:$0xff] }
 0xf5d   :  { %4075 = vmatpush.msrb.mxu1 %v3951_v32  ;;  %4099 = vmatpush.msrb.mxu2 %v3993_v60  ;;  %v3813_v32 = vld [vmem:[#allocation13 + $0x58] sm:$0xff]  ;;  %v3855_v60 = vld [vmem:[#allocation13 + $0x1a8] sm:$0xff] }
 0xf5e   :  { %6401 = vmatmul.msk.f32.gmra.mxu2 %vm1344_vm10, %v6393_v4  ;;  %6389 = vmatmul.msk.f32.gmra.mxu0 %vm1344_vm10, %v3731_v13  ;;  %v3814_v4 = vld [vmem:[#allocation13 + $0x60] sm:$0xff]  ;;  %v3856_v13 = vld [vmem:[#allocation13 + $0x1b0] sm:$0xff] }
 0xf5f   :  { %4018 = vmatpush.msrb.mxu3 %v3948_v61  ;;  %4042 = vmatpush.msrb.mxu0 %v3990_v62  ;;  %v3810_v61 = vld [vmem:[#allocation13 + $0x40] sm:$0xff]  ;;  %v3852_v62 = vld [vmem:[#allocation13 + $0x190] sm:$0xff] }
 0xf60   :  { %4076 = vmatpush.msrb.mxu1 %v3949_v38  ;;  %4100 = vmatpush.msrb.mxu2 %v3991_v0  ;;  %v3811_v38 = vld [vmem:[#allocation13 + $0x48] sm:$0xff]  ;;  %v3853_v0 = vld [vmem:[#allocation13 + $0x198] sm:$0xff] }
 0xf61   :  { %4019 = vmatpush.msrb.mxu3 %v3946_v26  ;;  %4043 = vmatpush.msrb.mxu0 %v3988_v33  ;;  %v3808_v26 = vld [vmem:[#allocation13 + $0x30] sm:$0xff]  ;;  %v3850_v33 = vld [vmem:[#allocation13 + $0x180] sm:$0xff] }
 0xf62   :  { %4077 = vmatpush.msrb.mxu1 %v3947_v9  ;;  %4101 = vmatpush.msrb.mxu2 %v3989_v27  ;;  %v3809_v9 = vld [vmem:[#allocation13 + $0x38] sm:$0xff]  ;;  %v3851_v27 = vld [vmem:[#allocation13 + $0x188] sm:$0xff] }
 0xf63   :  { %4020 = vmatpush.msrb.mxu3 %v3944_v31  ;;  %4044 = vmatpush.msrb.mxu0 %v3986_v11  ;;  %v3806_v31 = vld [vmem:[#allocation13 + $0x20] sm:$0xff]  ;;  %v3848_v11 = vld [vmem:[#allocation13 + $0x170] sm:$0xff] }
 0xf64   :  { %4078 = vmatpush.msrb.mxu1 %v3945_v1  ;;  %4102 = vmatpush.msrb.mxu2 %v3987_v20  ;;  %v3807_v1 = vld [vmem:[#allocation13 + $0x28] sm:$0xff]  ;;  %v3849_v20 = vld [vmem:[#allocation13 + $0x178] sm:$0xff] }
 0xf65   :  { %4021 = vmatpush.msrb.mxu3 %v3942_v49  ;;  %4045 = vmatpush.msrb.mxu0 %v3984_v25  ;;  %v3804_v49 = vld [vmem:[#allocation13 + $0x10] sm:$0xff]  ;;  %v3846_v25 = vld [vmem:[#allocation13 + $0x160] sm:$0xff] }
 0xf66   :  { %4079 = vmatpush.msrb.mxu1 %v3943_v34  ;;  %4103 = vmatpush.msrb.mxu2 %v3985_v47  ;;  %v3805_v34 = vld [vmem:[#allocation13 + $0x18] sm:$0xff]  ;;  %v3847_v47 = vld [vmem:[#allocation13 + $0x168] sm:$0xff] }
 0xf67   :  { %4122 = vmatpush.msra.mxu3 %v3832_v35  ;;  %4046 = vmatpush.msrb.mxu0 %v3982_v19  ;;  %v3802_v35 = vld [vmem:[#allocation13] sm:$0xff]  ;;  %v3844_v19 = vld [vmem:[#allocation13 + $0x150] sm:$0xff] }
 0xf68   :  { %4180 = vmatpush.msra.mxu1 %v3833_v42  ;;  %4104 = vmatpush.msrb.mxu2 %v3983_v39  ;;  %v3803_v42 = vld [vmem:[#allocation13 + $0x8] sm:$0xff]  ;;  %v3845_v39 = vld [vmem:[#allocation13 + $0x158] sm:$0xff] }
 0xf69   :  { %4123 = vmatpush.msra.mxu3 %v3830_v40  ;;  %4047 = vmatpush.msrb.mxu0 %v3980_v44  ;;  %v3842_v40 = vld [vmem:[#allocation13 + $0x140] sm:$0xff]  ;;  %v3843_v44 = vld [vmem:[#allocation13 + $0x148] sm:$0xff] }
 0xf6a   :  { %4181 = vmatpush.msra.mxu1 %v3831_v45  ;;  %4105 = vmatpush.msrb.mxu2 %v3981_v18  ;;  %v3840_v45 = vld [vmem:[#allocation13 + $0x130] sm:$0xff]  ;;  %v3841_v18 = vld [vmem:[#allocation13 + $0x138] sm:$0xff] }
 0xf6b   :  { %4124 = vmatpush.msra.mxu3 %v3828_v46  ;;  %4048 = vmatpush.msrb.mxu0 %v3978_v48  ;;  %v3838_v46 = vld [vmem:[#allocation13 + $0x120] sm:$0xff]  ;;  %v3839_v48 = vld [vmem:[#allocation13 + $0x128] sm:$0xff] }
 0xf6c   :  { %4182 = vmatpush.msra.mxu1 %v3829_v50  ;;  %4106 = vmatpush.msrb.mxu2 %v3979_v51  ;;  %v3836_v50 = vld [vmem:[#allocation13 + $0x110] sm:$0xff]  ;;  %v3837_v51 = vld [vmem:[#allocation13 + $0x118] sm:$0xff] }
 0xf6d   :  { %4125 = vmatpush.msra.mxu3 %v3826_v53  ;;  %4049 = vmatpush.msrb.mxu0 %v3976_v55  ;;  %v3834_v53 = vld [vmem:[#allocation13 + $0x100] sm:$0xff]  ;;  %v3835_v55 = vld [vmem:[#allocation13 + $0x108] sm:$0xff] }
 0xf6e   :  { %4183 = vmatpush.msra.mxu1 %v3827_v56  ;;  %4107 = vmatpush.msrb.mxu2 %v3977_v28  ;;  %v4344_v56 = vld [vmem:[#allocation13 + $0x4f0] sm:$0xff] }
 0xf6f   :  { %4126 = vmatpush.msra.mxu3 %v3824_v52  ;;  %4050 = vmatpush.msrb.mxu0 %v3974_v57  ;;  %v4342_v52 = vld [vmem:[#allocation13 + $0x4e0] sm:$0xff]  ;;  %v4340_v57 = vld [vmem:[#allocation13 + $0x4d0] sm:$0xff] }
 0xf70   :  { %4184 = vmatpush.msra.mxu1 %v3825_v59  ;;  %4108 = vmatpush.msrb.mxu2 %v3975_v2  ;;  %v4338_v59 = vld [vmem:[#allocation13 + $0x4c0] sm:$0xff]  ;;  %v4336_v2 = vld [vmem:[#allocation13 + $0x4b0] sm:$0xff] }
 0xf71   :  { %4127 = vmatpush.msra.mxu3 %v3822_v3  ;;  %4151 = vmatpush.msra.mxu0 %v3864_v5  ;;  %v4334_v5 = vld [vmem:[#allocation13 + $0x4a0] sm:$0xff] }
 0xf72   :  { %4185 = vmatpush.msra.mxu1 %v3823_v6  ;;  %4209 = vmatpush.msra.mxu2 %v3865_v7  ;;  %v4376_v7 = vld [vmem:[#allocation13 + $0x5f0] sm:$0xff] }
 0xf73   :  { %4128 = vmatpush.msra.mxu3 %v3820_v8  ;;  %4152 = vmatpush.msra.mxu0 %v3862_v10  ;;  %v4332_v8 = vld [vmem:[#allocation13 + $0x490] sm:$0xff]  ;;  %v4374_v10 = vld [vmem:[#allocation13 + $0x5e0] sm:$0xff] }
 0xf74   :  { %4186 = vmatpush.msra.mxu1 %v3821_v12  ;;  %4210 = vmatpush.msra.mxu2 %v3863_v14  ;;  %v4330_v12 = vld [vmem:[#allocation13 + $0x480] sm:$0xff]  ;;  %v4372_v14 = vld [vmem:[#allocation13 + $0x5d0] sm:$0xff] }
 0xf75   :  { %4129 = vmatpush.msra.mxu3 %v3818_v15  ;;  %4153 = vmatpush.msra.mxu0 %v3860_v16  ;;  %v4328_v16 = vld [vmem:[#allocation13 + $0x470] sm:$0xff] }
 0xf76   :  { %4187 = vmatpush.msra.mxu1 %v3819_v17  ;;  %4211 = vmatpush.msra.mxu2 %v3861_v36  ;;  %v4370_v17 = vld [vmem:[#allocation13 + $0x5c0] sm:$0xff] }
 0xf77   :  { %4130 = vmatpush.msra.mxu3 %v3816_v21  ;;  %4154 = vmatpush.msra.mxu0 %v3858_v22  ;;  %v4326_v21 = vld [vmem:[#allocation13 + $0x460] sm:$0xff]  ;;  %v4368_v22 = vld [vmem:[#allocation13 + $0x5b0] sm:$0xff] }
 0xf78   :  { %4188 = vmatpush.msra.mxu1 %v3817_v23  ;;  %4212 = vmatpush.msra.mxu2 %v3859_v24  ;;  %v4324_v23 = vld [vmem:[#allocation13 + $0x450] sm:$0xff]  ;;  %v4366_v24 = vld [vmem:[#allocation13 + $0x5a0] sm:$0xff] }
 0xf79   :  { %4131 = vmatpush.msra.mxu3 %v3814_v4  ;;  %4155 = vmatpush.msra.mxu0 %v3856_v13  ;;  %v4322_v4 = vld [vmem:[#allocation13 + $0x440] sm:$0xff]  ;;  %v4364_v13 = vld [vmem:[#allocation13 + $0x590] sm:$0xff] }
 0xf7a   :  { %4189 = vmatpush.msra.mxu1 %v3815_v29  ;;  %4213 = vmatpush.msra.mxu2 %v3857_v30  ;;  %v4320_v30 = vld [vmem:[#allocation13 + $0x430] sm:$0xff] }
 0xf7b   :  { %4132 = vmatpush.msra.mxu3 %v3812_v54  ;;  %4156 = vmatpush.msra.mxu0 %v3854_v58  ;;  %v4362_v54 = vld [vmem:[#allocation13 + $0x580] sm:$0xff] }
 0xf7c   :  { %4190 = vmatpush.msra.mxu1 %v3813_v32  ;;  %4214 = vmatpush.msra.mxu2 %v3855_v60  ;;  %v4318_v60 = vld [vmem:[#allocation13 + $0x420] sm:$0xff] }
 0xf7d   :  { %4133 = vmatpush.msra.mxu3 %v3810_v61  ;;  %4157 = vmatpush.msra.mxu0 %v3852_v62  ;;  %v4360_v61 = vld [vmem:[#allocation13 + $0x570] sm:$0xff] }
 0xf7e   :  { %4191 = vmatpush.msra.mxu1 %v3811_v38  ;;  %4215 = vmatpush.msra.mxu2 %v3853_v0  ;;  %v4316_v62 = vld [vmem:[#allocation13 + $0x410] sm:$0xff]  ;;  %v4358_v38 = vld [vmem:[#allocation13 + $0x560] sm:$0xff] }
 0xf7f   :  { %4134 = vmatpush.msra.mxu3 %v3808_v26  ;;  %4158 = vmatpush.msra.mxu0 %v3850_v33  ;;  %v4314_v0 = vld [vmem:[#allocation13 + $0x400] sm:$0xff]  ;;  %v4356_v26 = vld [vmem:[#allocation13 + $0x550] sm:$0xff] }
 0xf80   :  { %4192 = vmatpush.msra.mxu1 %v3809_v9  ;;  %4216 = vmatpush.msra.mxu2 %v3851_v27  ;;  %v4354_v33 = vld [vmem:[#allocation13 + $0x540] sm:$0xff]  ;;  %v4352_v27 = vld [vmem:[#allocation13 + $0x530] sm:$0xff] }
 0xf81   :  { %4135 = vmatpush.msra.mxu3 %v3806_v31  ;;  %4159 = vmatpush.msra.mxu0 %v3848_v11 }
 0xf82   :  { %4193 = vmatpush.msra.mxu1 %v3807_v1  ;;  %4217 = vmatpush.msra.mxu2 %v3849_v20  ;;  %v4350_v1 = vld [vmem:[#allocation13 + $0x520] sm:$0xff]  ;;  %v4348_v20 = vld [vmem:[#allocation13 + $0x510] sm:$0xff] }
 0xf83   :  { %4136 = vmatpush.msra.mxu3 %v3804_v49  ;;  %4160 = vmatpush.msra.mxu0 %v3846_v25  ;;  %v4346_v49 = vld [vmem:[#allocation13 + $0x500] sm:$0xff] }
 0xf84   :  { %4194 = vmatpush.msra.mxu1 %v3805_v34  ;;  %4218 = vmatpush.msra.mxu2 %v3847_v47  ;;  %v6402_v47 = vld [vmem:[%s9459_s6 + $0x40] sm:$0xff] }
 0xf85   :  { %4137 = vmatpush.msra.mxu3 %v3802_v35  ;;  %4161 = vmatpush.msra.mxu0 %v3844_v19  ;;  %v6405_v19 = vld [vmem:[%s9459_s6 + $0x58] sm:$0xff] }
 0xf86   :  { %4195 = vmatpush.msra.mxu1 %v3803_v42  ;;  %4219 = vmatpush.msra.mxu2 %v3845_v39  ;;  %v4345_v39 = vld [vmem:[#allocation13 + $0x4f8] sm:$0xff] }
 0xf87   :  { %4162 = vmatpush.msra.mxu0 %v3842_v40 }
 0xf88   :  { %4220 = vmatpush.msra.mxu2 %v3843_v44  ;;  %v4343_v44 = vld [vmem:[#allocation13 + $0x4e8] sm:$0xff] }
 0xf89   :  { %4163 = vmatpush.msra.mxu0 %v3840_v45  ;;  %v4341_v45 = vld [vmem:[#allocation13 + $0x4d8] sm:$0xff] }
 0xf8a   :  { %4221 = vmatpush.msra.mxu2 %v3841_v18  ;;  %v4377_v18 = vld [vmem:[#allocation13 + $0x5f8] sm:$0xff] }
 0xf8b   :  { %4164 = vmatpush.msra.mxu0 %v3838_v46 }
 0xf8c   :  { %4222 = vmatpush.msra.mxu2 %v3839_v48  ;;  %v4339_v48 = vld [vmem:[#allocation13 + $0x4c8] sm:$0xff] }
 0xf8d   :  { %4165 = vmatpush.msra.mxu0 %v3836_v50  ;;  %v4375_v50 = vld [vmem:[#allocation13 + $0x5e8] sm:$0xff] }
 0xf8e   :  { %4223 = vmatpush.msra.mxu2 %v3837_v51  ;;  %v4337_v51 = vld [vmem:[#allocation13 + $0x4b8] sm:$0xff] }
 0xf8f   :  { %4166 = vmatpush.msra.mxu0 %v3834_v53  ;;  %v4373_v53 = vld [vmem:[#allocation13 + $0x5d8] sm:$0xff] }
 0xf90   :  { %4224 = vmatpush.msra.mxu2 %v3835_v55 }
 0xfbf   :  { %v3900_v28 = vpop.f32.mrf.mxu1 }
 0xfc0   :  { %4022 = vmatmul.f32.vlgmr.msrb.gmra.mxu3 %v3900_v28  ;;  %4080 = vmatmul.f32.vlgmr.msrb.gmra.mxu1 %v3900_v28  ;;  %v4371_v28 = vld [vmem:[#allocation13 + $0x5c8] sm:$0xff] }
 0xfc1   :  { %4269 = vmatpush.msrb.mxu3 %v8410_v63  ;;  %4378 = vmatpush.msrb.mxu1 %v4344_v56  ;;  %v4335_v56 = vld [vmem:[#allocation13 + $0x4a8] sm:$0xff] }
 0xfc3   :  { %4270 = vmatpush.msrb.mxu3 %v8416_v43  ;;  %4379 = vmatpush.msrb.mxu1 %v4342_v52  ;;  %v3790_v11 = vpop.f32.mrf.mxu0  ;;  %v4333_v52 = vld [vmem:[#allocation13 + $0x498] sm:$0xff] }
 0xfc5   :  { %4380 = vmatpush.msrb.mxu1 %v4340_v57  ;;  %v3761_v58 = vpop.f32.mrf.mxu3  ;;  %v4369_v57 = vld [vmem:[#allocation13 + $0x5b8] sm:$0xff] }
 0xfc7   :  { %v3903_v3 = vpop.f32.mrf.mxu1  ;;  %4381 = vmatpush.msrb.mxu1 %v4338_v59 }
 0xfc8   :  { %4025 = vmatmul.f32.gmra.mxu3 %v3903_v3  ;;  %4083 = vmatmul.f32.gmra.mxu1 %v3903_v3  ;;  %v4367_v3 = vld [vmem:[#allocation13 + $0x5a8] sm:$0xff] }
 0xfc9   :  { %v3929_v6 = vpop.f32.mrf.mxu2  ;;  %4382 = vmatpush.msrb.mxu1 %v4336_v2  ;;  %v4331_v2 = vld [vmem:[#allocation13 + $0x488] sm:$0xff] }
 0xfca   :  { %4051 = vmatmul.f32.vlgmr.msrb.gmra.mxu0 %v3929_v6  ;;  %4109 = vmatmul.f32.vlgmr.msrb.gmra.mxu2 %v3929_v6  ;;  %v4365_v6 = vld [vmem:[#allocation13 + $0x598] sm:$0xff] }
 0xfcb   :  { %4298 = vmatpush.msrb.mxu0 %v8422_v37  ;;  %4383 = vmatpush.msrb.mxu1 %v4334_v5  ;;  %v3793_v25 = vpop.f32.mrf.mxu0  ;;  %v4329_v5 = vld [vmem:[#allocation13 + $0x478] sm:$0xff] }
 0xfcc   :  { %4407 = vmatpush.msrb.mxu2 %v4376_v7 }
 0xfcd   :  { %4299 = vmatpush.msrb.mxu0 %v8428_v41  ;;  %4384 = vmatpush.msrb.mxu1 %v4332_v8  ;;  %v3764_v31 = vpop.f32.mrf.mxu3  ;;  %v4327_v8 = vld [vmem:[#allocation13 + $0x468] sm:$0xff] }
 0xfce   :  { %4408 = vmatpush.msrb.mxu2 %v4374_v10  ;;  %v4363_v10 = vld [vmem:[#allocation13 + $0x588] sm:$0xff] }
 0xfcf   :  { %v3906_v15 = vpop.f32.mrf.mxu1  ;;  %4385 = vmatpush.msrb.mxu1 %v4330_v12  ;;  %v4325_v12 = vld [vmem:[#allocation13 + $0x458] sm:$0xff] }
 0xfd0   :  { %4409 = vmatpush.msrb.mxu2 %v4372_v14  ;;  %4028 = vmatmul.f32.gmra.mxu3 %v3906_v15  ;;  %v4361_v14 = vld [vmem:[#allocation13 + $0x578] sm:$0xff] }
 0xfd1   :  { %4086 = vmatmul.f32.gmra.mxu1 %v3906_v15  ;;  %v3932_v36 = vpop.f32.mrf.mxu2 }
 0xfd2   :  { %4386 = vmatpush.msrb.mxu1 %v4328_v16  ;;  %4410 = vmatpush.msrb.mxu2 %v4370_v17  ;;  %v4323_v16 = vld [vmem:[#allocation13 + $0x448] sm:$0xff] }
 0xfd3   :  { %4054 = vmatmul.f32.gmra.mxu0 %v3932_v36  ;;  %4112 = vmatmul.f32.gmra.mxu2 %v3932_v36  ;;  %v3796_v34 = vpop.f32.mrf.mxu0  ;;  %v4359_v17 = vld [vmem:[#allocation13 + $0x568] sm:$0xff]  ;;  %v4321_v36 = vld [vmem:[#allocation13 + $0x438] sm:$0xff] }
 0xfd4   :  { %4387 = vmatpush.msrb.mxu1 %v4326_v21  ;;  %4411 = vmatpush.msrb.mxu2 %v4368_v22  ;;  %v4357_v21 = vld [vmem:[#allocation13 + $0x558] sm:$0xff] }
 0xfd6   :  { %4388 = vmatpush.msrb.mxu1 %v4324_v23  ;;  %4412 = vmatpush.msrb.mxu2 %v4366_v24  ;;  %v4319_v23 = vld [vmem:[#allocation13 + $0x428] sm:$0xff] }
 0xfd7   :  { %v3909_v29 = vpop.f32.mrf.mxu1  ;;  %v4355_v24 = vld [vmem:[#allocation13 + $0x548] sm:$0xff] }
 0xfd8   :  { %4389 = vmatpush.msrb.mxu1 %v4322_v4  ;;  %4413 = vmatpush.msrb.mxu2 %v4364_v13  ;;  %v4317_v4 = vld [vmem:[#allocation13 + $0x418] sm:$0xff] }
 0xfd9   :  { %4031 = vmatmul.f32.gmra.mxu3 %v3909_v29  ;;  %4089 = vmatmul.f32.gmra.mxu1 %v3909_v29  ;;  %v3935_v32 = vpop.f32.mrf.mxu2  ;;  %v4353_v13 = vld [vmem:[#allocation13 + $0x538] sm:$0xff] }
 0xfda   :  { %4390 = vmatpush.msrb.mxu1 %v4320_v30  ;;  %4414 = vmatpush.msrb.mxu2 %v4362_v54  ;;  %v4315_v30 = vld [vmem:[#allocation13 + $0x408] sm:$0xff] }
 0xfdb   :  { %4057 = vmatmul.f32.gmra.mxu0 %v3935_v32  ;;  %4115 = vmatmul.f32.gmra.mxu2 %v3935_v32  ;;  %v3799_v35 = vpop.f32.mrf.mxu0  ;;  %v4351_v54 = vld [vmem:[#allocation13 + $0x528] sm:$0xff] }
 0xfdc   :  { %4391 = vmatpush.msrb.mxu1 %v4318_v60  ;;  %4415 = vmatpush.msrb.mxu2 %v4360_v61  ;;  %v4347_v60 = vld [vmem:[#allocation13 + $0x508] sm:$0xff] }
 0xfde   :  { %4392 = vmatpush.msrb.mxu1 %v4316_v62  ;;  %4416 = vmatpush.msrb.mxu2 %v4358_v38 }
 0xfe0   :  { %4393 = vmatpush.msrb.mxu1 %v4314_v0  ;;  %4417 = vmatpush.msrb.mxu2 %v4356_v26 }
 0xfe1   :  { %4138 = vmatmul.f32.vlgmr.msra.gmra.mxu3 %v3761_v58  ;;  %4196 = vmatmul.f32.vlgmr.msra.gmra.mxu1 %v3761_v58  ;;  %v3938_v9 = vpop.f32.mrf.mxu2  ;;  %v4349_v58 = vld [vmem:[#allocation13 + $0x518] sm:$0xff] }
 0xfe2   :  { %4533 = vmatpush.msra.mxu1 %v8410_v63  ;;  %4418 = vmatpush.msrb.mxu2 %v4354_v33  ;;  %v3767_v63 = vpop.f32.mrf.mxu3 }
 0xfe3   :  { %4060 = vmatmul.f32.gmra.mxu0 %v3938_v9  ;;  %4118 = vmatmul.f32.gmra.mxu2 %v3938_v9 }
 0xfe4   :  { %4534 = vmatpush.msra.mxu1 %v8416_v43  ;;  %4419 = vmatpush.msrb.mxu2 %v4352_v27 }
 0xfe5   :  { %4436 = vmatpush.msra.mxu3 %v4345_v39 }
 0xfe6   :  { %4420 = vmatpush.msrb.mxu2 %v4350_v1 }
 0xfe7   :  { %4437 = vmatpush.msra.mxu3 %v4343_v44 }
 0xfe8   :  { %4421 = vmatpush.msrb.mxu2 %v4348_v20 }
 0xfe9   :  { %4141 = vmatmul.f32.gmra.mxu3 %v3764_v31  ;;  %4199 = vmatmul.f32.gmra.mxu1 %v3764_v31 }
 0xfea   :  { %4422 = vmatpush.msrb.mxu2 %v4346_v49  ;;  %v3770_v43 = vpop.f32.mrf.mxu3  ;;  %4438 = vmatpush.msra.mxu3 %v4341_v45 }
 0xfeb   :  { %4167 = vmatmul.f32.vlgmr.msra.gmra.mxu0 %v3790_v11  ;;  %4225 = vmatmul.f32.vlgmr.msra.gmra.mxu2 %v3790_v11 }
 0xfec   :  { %4562 = vmatpush.msra.mxu2 %v8422_v37  ;;  %v6403_v37 = vld [vmem:[%s9459_s6 + $0x48] sm:$0xff]  ;;  %4465 = vmatpush.msra.mxu0 %v4377_v18 }
 0xfed   :  { %4439 = vmatpush.msra.mxu3 %v4339_v48 }
 0xfee   :  { %4563 = vmatpush.msra.mxu2 %v8428_v41  ;;  %v6404_v41 = vld [vmem:[%s9459_s6 + $0x50] sm:$0xff]  ;;  %4466 = vmatpush.msra.mxu0 %v4375_v50 }
 0xfef   :  { %4440 = vmatpush.msra.mxu3 %v4337_v51 }
 0xff0   :  { %4467 = vmatpush.msra.mxu0 %v4373_v53  ;;  %v4608_v53 = vld [vmem:[#allocation13 + $0x6f0] sm:$0xff] }
 0xff1   :  { %4144 = vmatmul.f32.gmra.mxu3 %v3767_v63  ;;  %4202 = vmatmul.f32.gmra.mxu1 %v3767_v63 }
 0xff2   :  { %4441 = vmatpush.msra.mxu3 %v4335_v56  ;;  %4468 = vmatpush.msra.mxu0 %v4371_v28  ;;  %v4606_v56 = vld [vmem:[#allocation13 + $0x6e0] sm:$0xff]  ;;  %v4604_v28 = vld [vmem:[#allocation13 + $0x6d0] sm:$0xff] }
 0xff3   :  { %4170 = vmatmul.f32.gmra.mxu0 %v3793_v25  ;;  %4228 = vmatmul.f32.gmra.mxu2 %v3793_v25  ;;  %v6414_v25 = vld [vmem:[%s9459_s6 + $0x60] sm:$0xff] }
 0xff4   :  { %4442 = vmatpush.msra.mxu3 %v4333_v52  ;;  %4469 = vmatpush.msra.mxu0 %v4369_v57  ;;  %v4602_v52 = vld [vmem:[#allocation13 + $0x6c0] sm:$0xff]  ;;  %v4640_v57 = vld [vmem:[#allocation13 + $0x7f0] sm:$0xff] }
 0xff6   :  { %4443 = vmatpush.msra.mxu3 %v4331_v2  ;;  %4470 = vmatpush.msra.mxu0 %v4367_v3  ;;  %v4641_v2 = vld [vmem:[#allocation13 + $0x7f8] sm:$0xff] }
 0xff8   :  { %4444 = vmatpush.msra.mxu3 %v4329_v5  ;;  %4471 = vmatpush.msra.mxu0 %v4365_v6  ;;  %v4600_v6 = vld [vmem:[#allocation13 + $0x6b0] sm:$0xff] }
 0xff9   :  { %4147 = vmatmul.f32.gmra.mxu3 %v3770_v43  ;;  %4205 = vmatmul.f32.gmra.mxu1 %v3770_v43  ;;  %v6415_v43 = vld [vmem:[%s9459_s6 + $0x68] sm:$0xff] }
 0xffa   :  { %4445 = vmatpush.msra.mxu3 %v4327_v8  ;;  %4472 = vmatpush.msra.mxu0 %v4363_v10  ;;  %v4638_v8 = vld [vmem:[#allocation13 + $0x7e0] sm:$0xff]  ;;  %v4639_v10 = vld [vmem:[#allocation13 + $0x7e8] sm:$0xff] }
 0xffb   :  { %4173 = vmatmul.f32.gmra.mxu0 %v3796_v34  ;;  %4231 = vmatmul.f32.gmra.mxu2 %v3796_v34  ;;  %v6416_v34 = vld [vmem:[%s9459_s6 + $0x70] sm:$0xff] }
 0xffc   :  { %4446 = vmatpush.msra.mxu3 %v4325_v12  ;;  %4473 = vmatpush.msra.mxu0 %v4361_v14  ;;  %v4598_v12 = vld [vmem:[#allocation13 + $0x6a0] sm:$0xff]  ;;  %v4636_v14 = vld [vmem:[#allocation13 + $0x7d0] sm:$0xff] }
 0xffe   :  { %4447 = vmatpush.msra.mxu3 %v4323_v16  ;;  %4474 = vmatpush.msra.mxu0 %v4359_v17  ;;  %v4637_v16 = vld [vmem:[#allocation13 + $0x7d8] sm:$0xff] }
 0xfff   :  { %v4609_v17 = vld [vmem:[#allocation13 + $0x6f8] sm:$0xff] }
0x1000   :  { %4448 = vmatpush.msra.mxu3 %v4321_v36  ;;  %4475 = vmatpush.msra.mxu0 %v4357_v21  ;;  %v4596_v36 = vld [vmem:[#allocation13 + $0x690] sm:$0xff]  ;;  %v4634_v21 = vld [vmem:[#allocation13 + $0x7c0] sm:$0xff] }
0x1001   :  { %6406 = vmatmul.msk.f32.vlgmr.msrb.gmra.mxu3 %vm1344_vm10, %v6402_v47 }
0x1002   :  { %4449 = vmatpush.msra.mxu3 %v4319_v23  ;;  %4476 = vmatpush.msra.mxu0 %v4355_v24  ;;  %v4635_v23 = vld [vmem:[#allocation13 + $0x7c8] sm:$0xff] }
0x1003   :  { %4176 = vmatmul.f32.gmra.mxu0 %v3799_v35  ;;  %4234 = vmatmul.f32.gmra.mxu2 %v3799_v35  ;;  %v6417_v35 = vld [vmem:[%s9459_s6 + $0x78] sm:$0xff]  ;;  %v4607_v24 = vld [vmem:[#allocation13 + $0x6e8] sm:$0xff] }
0x1004   :  { %4450 = vmatpush.msra.mxu3 %v4317_v4  ;;  %4477 = vmatpush.msra.mxu0 %v4353_v13  ;;  %v4594_v4 = vld [vmem:[#allocation13 + $0x680] sm:$0xff]  ;;  %v4632_v13 = vld [vmem:[#allocation13 + $0x7b0] sm:$0xff] }
0x1006   :  { %4451 = vmatpush.msra.mxu3 %v4315_v30  ;;  %4478 = vmatpush.msra.mxu0 %v4351_v54  ;;  %v4633_v30 = vld [vmem:[#allocation13 + $0x7b8] sm:$0xff] }
0x1007   :  { %v4605_v54 = vld [vmem:[#allocation13 + $0x6d8] sm:$0xff] }
0x1008   :  { %4479 = vmatpush.msra.mxu0 %v4349_v58  ;;  %4642 = vmatpush.msrb.mxu3 %v4608_v53  ;;  %v4592_v58 = vld [vmem:[#allocation13 + $0x670] sm:$0xff]  ;;  %v4586_v53 = vld [vmem:[#allocation13 + $0x640] sm:$0xff] }
0x1009   :  { %6407 = vmatmul.msk.f32.gmra.mxu3 %vm1344_vm10, %v6403_v37 }
0x100a   :  { %4480 = vmatpush.msra.mxu0 %v4347_v60  ;;  %4643 = vmatpush.msrb.mxu3 %v4606_v56  ;;  %v4630_v60 = vld [vmem:[#allocation13 + $0x7a0] sm:$0xff]  ;;  %v4624_v56 = vld [vmem:[#allocation13 + $0x770] sm:$0xff] }
0x100b   :  { %6410 = vmatmul.msk.f32.vlgmr.msrb.gmra.mxu0 %vm1344_vm10, %v6402_v47 }
0x100c   :  { %4644 = vmatpush.msrb.mxu3 %v4604_v28  ;;  %4671 = vmatpush.msrb.mxu0 %v4640_v57  ;;  %v4625_v28 = vld [vmem:[#allocation13 + $0x778] sm:$0xff]  ;;  %v4584_v57 = vld [vmem:[#allocation13 + $0x630] sm:$0xff] }
0x100e   :  { %4645 = vmatpush.msrb.mxu3 %v4602_v52  ;;  %4672 = vmatpush.msrb.mxu0 %v4638_v8  ;;  %v4597_v52 = vld [vmem:[#allocation13 + $0x698] sm:$0xff]  ;;  %v4595_v8 = vld [vmem:[#allocation13 + $0x688] sm:$0xff] }
0x1010   :  { %4646 = vmatpush.msrb.mxu3 %v4600_v6  ;;  %4673 = vmatpush.msrb.mxu0 %v4636_v14  ;;  %v4623_v6 = vld [vmem:[#allocation13 + $0x768] sm:$0xff]  ;;  %v4620_v14 = vld [vmem:[#allocation13 + $0x750] sm:$0xff] }
0x1011   :  { %6408 = vmatmul.msk.f32.gmra.mxu3 %vm1344_vm10, %v6404_v41 }
0x1012   :  { %4647 = vmatpush.msrb.mxu3 %v4598_v12  ;;  %4674 = vmatpush.msrb.mxu0 %v4634_v21  ;;  %v4582_v12 = vld [vmem:[#allocation13 + $0x620] sm:$0xff]  ;;  %v4580_v21 = vld [vmem:[#allocation13 + $0x610] sm:$0xff] }
0x1013   :  { %6411 = vmatmul.msk.f32.gmra.mxu0 %vm1344_vm10, %v6403_v37 }
0x1014   :  { %4648 = vmatpush.msrb.mxu3 %v4596_v36  ;;  %4675 = vmatpush.msrb.mxu0 %v4632_v13  ;;  %v4578_v13 = vld [vmem:[#allocation13 + $0x600] sm:$0xff] }
0x1016   :  { %4649 = vmatpush.msrb.mxu3 %v4594_v4  ;;  %4676 = vmatpush.msrb.mxu0 %v4630_v60  ;;  %v4591_v4 = vld [vmem:[#allocation13 + $0x668] sm:$0xff]  ;;  %v4589_v60 = vld [vmem:[#allocation13 + $0x658] sm:$0xff] }
0x1018   :  { %4650 = vmatpush.msrb.mxu3 %v4592_v58  ;;  %v4614_v58 = vld [vmem:[#allocation13 + $0x720] sm:$0xff] }
0x1019   :  { %6409 = vmatmul.msk.f32.gmra.mxu3 %vm1344_vm10, %v6405_v19 }
0x101b   :  { %6412 = vmatmul.msk.f32.gmra.mxu0 %vm1344_vm10, %v6404_v41 }
0x1023   :  { %6413 = vmatmul.msk.f32.gmra.mxu0 %vm1344_vm10, %v6405_v19 }
0x103d   :  { %v8511_v47 = vpop.f32.mrf.mxu1 }
0x1043   :  { %v8472_v42 = vpop.f32.mrf.mxu3 }
0x1045   :  { %v8517_v37 = vpop.f32.mrf.mxu1 }
0x1047   :  { %v8474_v40 = vpop.f32.mrf.mxu0 }
0x104b   :  { %v8476_v46 = vpop.f32.mrf.mxu3 }
0x104d   :  { %v8519_v41 = vpop.f32.mrf.mxu2 }
0x104e   :  { %v8522_v19 = vpop.f32.mrf.mxu1 }
0x1050   :  { %v8478_v55 = vpop.f32.mrf.mxu0 }
0x1053   :  { %v8480_v59 = vpop.f32.mrf.mxu3 }
0x1056   :  { %v8524_v39 = vpop.f32.mrf.mxu2  ;;  %v8526_v44 = vpop.f32.mrf.mxu1 }
0x1058   :  { %v8482_v7 = vpop.f32.mrf.mxu0 }
0x105c   :  { %v8484_v15 = vpop.f32.mrf.mxu3 }
0x105e   :  { %v8528_v45 = vpop.f32.mrf.mxu2  ;;  %v8532_v48 = vpop.f32.mrf.mxu1 }
0x1060   :  { %v8486_v22 = vpop.f32.mrf.mxu0 }
0x1064   :  { %v8488_v29 = vpop.f32.mrf.mxu3 }
0x1066   :  { %v8530_v18 = vpop.f32.mrf.mxu2  ;;  %v8534_v50 = vpop.f32.mrf.mxu1 }
0x1068   :  { %v8490_v32 = vpop.f32.mrf.mxu0 }
0x106c   :  { %v8492_v61 = vpop.f32.mrf.mxu3 }
0x106e   :  { %v8536_v51 = vpop.f32.mrf.mxu2  ;;  %v8538_v3 = vpop.f32.mrf.mxu1 }
0x1070   :  { %v8494_v62 = vpop.f32.mrf.mxu0 }
0x1074   :  { %v8496_v38 = vpop.f32.mrf.mxu3 }
0x1076   :  { %v8540_v5 = vpop.f32.mrf.mxu2 }
0x1078   :  { %v8498_v0 = vpop.f32.mrf.mxu0 }
0x107c   :  { %v8500_v26 = vpop.f32.mrf.mxu3 }
0x1080   :  { %v8502_v33 = vpop.f32.mrf.mxu0 }
0x1081   :  { %9460 = vst [vmem:[#allocation38_spill] sm:$0xff] %v8502_v33 }
0x1084   :  { %v4272_v9 = vpop.f32.mrf.mxu3 }
0x1085   :  { %4452 = vmatmul.f32.vlgmr.msra.gmra.mxu3 %v4272_v9  ;;  %4394 = vmatmul.f32.vlgmr.msrb.gmra.mxu1 %v4272_v9  ;;  %v4631_v9 = vld [vmem:[#allocation13 + $0x7a8] sm:$0xff] }
0x1086   :  { %4700 = vmatpush.msrb.mxu1 %v4609_v17  ;;  %v4593_v17 = vld [vmem:[#allocation13 + $0x678] sm:$0xff] }
0x1088   :  { %v4301_v27 = vpop.f32.mrf.mxu0  ;;  %4701 = vmatpush.msrb.mxu1 %v4607_v24  ;;  %v4619_v24 = vld [vmem:[#allocation13 + $0x748] sm:$0xff] }
0x1089   :  { %4423 = vmatmul.f32.vlgmr.msrb.gmra.mxu2 %v4301_v27  ;;  %4481 = vmatmul.f32.vlgmr.msra.gmra.mxu0 %v4301_v27  ;;  %v4603_v27 = vld [vmem:[#allocation13 + $0x6c8] sm:$0xff] }
0x108a   :  { %4729 = vmatpush.msrb.mxu2 %v4641_v2  ;;  %4702 = vmatpush.msrb.mxu1 %v4605_v54  ;;  %v4622_v2 = vld [vmem:[#allocation13 + $0x760] sm:$0xff]  ;;  %v4617_v54 = vld [vmem:[#allocation13 + $0x738] sm:$0xff] }
0x108c   :  { %v4275_v31 = vpop.f32.mrf.mxu3  ;;  %4730 = vmatpush.msrb.mxu2 %v4639_v10  ;;  %4703 = vmatpush.msrb.mxu1 %v4603_v27  ;;  %v4612_v27 = vld [vmem:[#allocation13 + $0x710] sm:$0xff] }
0x108d   :  { %4455 = vmatmul.f32.gmra.mxu3 %v4275_v31  ;;  %4397 = vmatmul.f32.gmra.mxu1 %v4275_v31  ;;  %v8542_v31 = vpop.f32.mrf.mxu1 }
0x108e   :  { %4731 = vmatpush.msrb.mxu2 %v4637_v16  ;;  %v4621_v16 = vld [vmem:[#allocation13 + $0x758] sm:$0xff] }
0x1090   :  { %v4304_v11 = vpop.f32.mrf.mxu0  ;;  %4732 = vmatpush.msrb.mxu2 %v4635_v23  ;;  %v4618_v23 = vld [vmem:[#allocation13 + $0x740] sm:$0xff] }
0x1091   :  { %4426 = vmatmul.f32.gmra.mxu2 %v4304_v11  ;;  %4484 = vmatmul.f32.gmra.mxu0 %v4304_v11  ;;  %v8544_v11 = vpop.f32.mrf.mxu2 }
0x1092   :  { %4733 = vmatpush.msrb.mxu2 %v4633_v30  ;;  %v4616_v30 = vld [vmem:[#allocation13 + $0x730] sm:$0xff] }
0x1094   :  { %v4278_v1 = vpop.f32.mrf.mxu3  ;;  %4734 = vmatpush.msrb.mxu2 %v4631_v9  ;;  %v4615_v9 = vld [vmem:[#allocation13 + $0x728] sm:$0xff] }
0x1095   :  { %4458 = vmatmul.f32.gmra.mxu3 %v4278_v1  ;;  %4400 = vmatmul.f32.gmra.mxu1 %v4278_v1  ;;  %v4590_v1 = vld [vmem:[#allocation13 + $0x660] sm:$0xff] }
0x1096   :  { %4651 = vmatpush.msrb.mxu3 %v4590_v1  ;;  %v4587_v1 = vld [vmem:[#allocation13 + $0x648] sm:$0xff] }
0x1098   :  { %v4307_v20 = vpop.f32.mrf.mxu0 }
0x1099   :  { %4429 = vmatmul.f32.gmra.mxu2 %v4307_v20  ;;  %4487 = vmatmul.f32.gmra.mxu0 %v4307_v20  ;;  %v4628_v20 = vld [vmem:[#allocation13 + $0x790] sm:$0xff]  ;;  %v8548_v36 = vpop.f32.mrf.mxu2 }
0x109a   :  { %4677 = vmatpush.msrb.mxu0 %v4628_v20  ;;  %9461 = vst [vmem:[#allocation39_spill] sm:$0xff] %v8548_v36  ;;  %v4613_v20 = vld [vmem:[#allocation13 + $0x718] sm:$0xff] }
0x109b   :  { %v8628_v36 = vld [vmem:[#allocation14 + $0x1d8] sm:$0xff] }
0x109c   :  { %v4281_v49 = vpop.f32.mrf.mxu3  ;;  %9473 = vst [vmem:[#allocation51_spill] sm:$0xff] %v8628_v36 }
0x109d   :  { %4461 = vmatmul.f32.gmra.mxu3 %v4281_v49  ;;  %4403 = vmatmul.f32.gmra.mxu1 %v4281_v49  ;;  %v4629_v49 = vld [vmem:[#allocation13 + $0x798] sm:$0xff] }
0x109e   :  { %4735 = vmatpush.msrb.mxu2 %v4629_v49 }
0x10a0   :  { %v4310_v63 = vpop.f32.mrf.mxu0 }
0x10a1   :  { %4432 = vmatmul.f32.gmra.mxu2 %v4310_v63  ;;  %4490 = vmatmul.f32.gmra.mxu0 %v4310_v63  ;;  %v4601_v63 = vld [vmem:[#allocation13 + $0x6b8] sm:$0xff] }
0x10a2   :  { %4704 = vmatpush.msrb.mxu1 %v4601_v63  ;;  %v4585_v63 = vld [vmem:[#allocation13 + $0x638] sm:$0xff] }
0x10a5   :  { %6418 = vmatmul.msk.f32.vlgmr.msra.gmra.mxu1 %vm1344_vm10, %v6414_v25 }
0x10a9   :  { %6422 = vmatmul.msk.f32.vlgmr.msra.gmra.mxu2 %vm1344_vm10, %v6414_v25  ;;  %v4588_v25 = vld [vmem:[#allocation13 + $0x650] sm:$0xff] }
0x10aa   :  { %4652 = vmatpush.msrb.mxu3 %v4588_v25 }
0x10ac   :  { %4653 = vmatpush.msrb.mxu3 %v4586_v53  ;;  %v4581_v53 = vld [vmem:[#allocation13 + $0x618] sm:$0xff] }
0x10ad   :  { %6419 = vmatmul.msk.f32.gmra.mxu1 %vm1344_vm10, %v6415_v43 }
0x10ae   :  { %4654 = vmatpush.msrb.mxu3 %v4584_v57 }
0x10b0   :  { %4655 = vmatpush.msrb.mxu3 %v4582_v12 }
0x10b1   :  { %6423 = vmatmul.msk.f32.gmra.mxu2 %vm1344_vm10, %v6415_v43  ;;  %v4626_v43 = vld [vmem:[#allocation13 + $0x780] sm:$0xff] }
0x10b2   :  { %4678 = vmatpush.msrb.mxu0 %v4626_v43  ;;  %4656 = vmatpush.msrb.mxu3 %v4580_v21  ;;  %v4610_v43 = vld [vmem:[#allocation13 + $0x700] sm:$0xff] }
0x10b4   :  { %4679 = vmatpush.msrb.mxu0 %v4624_v56  ;;  %4657 = vmatpush.msrb.mxu3 %v4578_v13  ;;  %v4579_v56 = vld [vmem:[#allocation13 + $0x608] sm:$0xff] }
0x10b5   :  { %6420 = vmatmul.msk.f32.gmra.mxu1 %vm1344_vm10, %v6416_v34 }
0x10b6   :  { %4680 = vmatpush.msrb.mxu0 %v4622_v2 }
0x10b8   :  { %4681 = vmatpush.msrb.mxu0 %v4620_v14 }
0x10b9   :  { %6424 = vmatmul.msk.f32.gmra.mxu2 %vm1344_vm10, %v6416_v34  ;;  %v4627_v34 = vld [vmem:[#allocation13 + $0x788] sm:$0xff] }
0x10ba   :  { %4736 = vmatpush.msrb.mxu2 %v4627_v34  ;;  %4682 = vmatpush.msrb.mxu0 %v4618_v23  ;;  %v4611_v34 = vld [vmem:[#allocation13 + $0x708] sm:$0xff] }
0x10bc   :  { %4737 = vmatpush.msrb.mxu2 %v4625_v28  ;;  %4683 = vmatpush.msrb.mxu0 %v4616_v30 }
0x10bd   :  { %6421 = vmatmul.msk.f32.gmra.mxu1 %vm1344_vm10, %v6417_v35 }
0x10be   :  { %4738 = vmatpush.msrb.mxu2 %v4623_v6  ;;  %4684 = vmatpush.msrb.mxu0 %v4614_v58 }
0x10c0   :  { %4739 = vmatpush.msrb.mxu2 %v4621_v16  ;;  %4685 = vmatpush.msrb.mxu0 %v4612_v27 }
0x10c1   :  { %6425 = vmatmul.msk.f32.gmra.mxu2 %vm1344_vm10, %v6417_v35  ;;  %v4599_v35 = vld [vmem:[#allocation13 + $0x6a8] sm:$0xff] }
0x10c2   :  { %4705 = vmatpush.msrb.mxu1 %v4599_v35  ;;  %4740 = vmatpush.msrb.mxu2 %v4619_v24  ;;  %v4583_v35 = vld [vmem:[#allocation13 + $0x628] sm:$0xff] }
0x10c3   :  { %4686 = vmatpush.msrb.mxu0 %v4610_v43  ;;  %v8590_v43 = vld [vmem:[#allocation14 + $0xd8] sm:$0xff] }
0x10c4   :  { %4706 = vmatpush.msrb.mxu1 %v4597_v52  ;;  %4741 = vmatpush.msrb.mxu2 %v4617_v54 }
0x10c6   :  { %4707 = vmatpush.msrb.mxu1 %v4595_v8  ;;  %4742 = vmatpush.msrb.mxu2 %v4615_v9  ;;  %v8576_v9 = vld [vmem:[#allocation14 + $0xf8] sm:$0xff] }
0x10c8   :  { %4708 = vmatpush.msrb.mxu1 %v4593_v17  ;;  %4743 = vmatpush.msrb.mxu2 %v4613_v20  ;;  %v8584_v20 = vld [vmem:[#allocation14 + $0xe8] sm:$0xff] }
0x10ca   :  { %4709 = vmatpush.msrb.mxu1 %v4591_v4  ;;  %4744 = vmatpush.msrb.mxu2 %v4611_v34  ;;  %v8594_v34 = vld [vmem:[#allocation14 + $0xc0] sm:$0xff] }
0x10cc   :  { %4710 = vmatpush.msrb.mxu1 %v4589_v60  ;;  %v8574_v60 = vld [vmem:[#allocation14 + $0xf0] sm:$0xff] }
0x10cd   :  { %4848 = vmatpush.msra.mxu3 %v8574_v60 }
0x10ce   :  { %4711 = vmatpush.msrb.mxu1 %v4587_v1  ;;  %v8582_v1 = vld [vmem:[#allocation14 + $0xe0] sm:$0xff] }
0x10cf   :  { %4849 = vmatpush.msra.mxu3 %v8582_v1 }
0x10d0   :  { %4712 = vmatpush.msrb.mxu1 %v4585_v63  ;;  %v8588_v63 = vld [vmem:[#allocation14 + $0xd0] sm:$0xff] }
0x10d1   :  { %4850 = vmatpush.msra.mxu3 %v8588_v63 }
0x10d2   :  { %4713 = vmatpush.msrb.mxu1 %v4583_v35  ;;  %v8596_v35 = vld [vmem:[#allocation14 + $0x1f0] sm:$0xff] }
0x10d3   :  { %4851 = vmatpush.msra.mxu3 %v8594_v34  ;;  %4868 = vmatpush.msra.mxu0 %v8596_v35 }
0x10d4   :  { %4714 = vmatpush.msrb.mxu1 %v4581_v53  ;;  %v8598_v53 = vld [vmem:[#allocation14 + $0xc8] sm:$0xff] }
0x10d6   :  { %4715 = vmatpush.msrb.mxu1 %v4579_v56  ;;  %v8602_v56 = vld [vmem:[#allocation14 + $0x1f8] sm:$0xff] }
0x10d7   :  { %4908 = vmatpush.msra.mxu2 %v8602_v56 }
0x10d8   :  { %4888 = vmatpush.msra.mxu1 %v8576_v9 }
0x10da   :  { %4889 = vmatpush.msra.mxu1 %v8584_v20 }
0x10dc   :  { %4890 = vmatpush.msra.mxu1 %v8590_v43 }
0x10de   :  { %4891 = vmatpush.msra.mxu1 %v8598_v53 }
0x1102   :  { %v8546_v10 = vpop.f32.mrf.mxu1 }
0x1106   :  { %v8566_v13 = vpop.f32.mrf.mxu0 }
0x1107   :  { %9463 = vst [vmem:[#allocation41_spill] sm:$0xff] %v8566_v13  ;;  %v8692_v13 = vld [vmem:[#allocation14 + $0x58] sm:$0xff] }
0x1108   :  { %v8564_v4 = vpop.f32.mrf.mxu3  ;;  %9494 = vst [vmem:[#allocation72_spill] sm:$0xff] %v8692_v13 }
0x1109   :  { %9462 = vst [vmem:[#allocation40_spill] sm:$0xff] %v8564_v4  ;;  %v8732_v4 = vld [vmem:[#allocation14 + $0x28] sm:$0xff] }
0x110a   :  { %v8550_v49 = vpop.f32.mrf.mxu1  ;;  %9507 = vst [vmem:[#allocation85_spill] sm:$0xff] %v8732_v4 }
0x110c   :  { %v8552_v25 = vpop.f32.mrf.mxu2 }
0x110e   :  { %v8570_v54 = vpop.f32.mrf.mxu0 }
0x1110   :  { %v8568_v30 = vpop.f32.mrf.mxu3 }
0x1112   :  { %v8554_v28 = vpop.f32.mrf.mxu1 }
0x1114   :  { %v8556_v52 = vpop.f32.mrf.mxu2 }
0x1116   :  { %v8580_v27 = vpop.f32.mrf.mxu0 }
0x1117   :  { %9465 = vst [vmem:[#allocation43_spill] sm:$0xff] %v8580_v27  ;;  %v8638_v27 = vld [vmem:[#allocation14 + $0x98] sm:$0xff] }
0x1118   :  { %v8572_v58 = vpop.f32.mrf.mxu3  ;;  %9477 = vst [vmem:[#allocation55_spill] sm:$0xff] %v8638_v27 }
0x1119   :  { %9464 = vst [vmem:[#allocation42_spill] sm:$0xff] %v8572_v58  ;;  %v8680_v58 = vld [vmem:[#allocation14 + $0x198] sm:$0xff] }
0x111a   :  { %v8558_v57 = vpop.f32.mrf.mxu1  ;;  %9490 = vst [vmem:[#allocation68_spill] sm:$0xff] %v8680_v58 }
0x111c   :  { %v8560_v2 = vpop.f32.mrf.mxu2 }
0x1122   :  { %v4536_v6 = vpop.f32.mrf.mxu1 }
0x1123   :  { %4658 = vmatmul.f32.vlgmr.msrb.gmra.mxu3 %v4536_v6  ;;  %4716 = vmatmul.f32.vlgmr.msrb.gmra.mxu1 %v4536_v6  ;;  %v8604_v6 = vpop.f32.mrf.mxu3 }
0x1124   :  { %v8562_v8 = vpop.f32.mrf.mxu2  ;;  %9466 = vst [vmem:[#allocation44_spill] sm:$0xff] %v8604_v6  ;;  %v8630_v6 = vpop.f32.mrf.mxu0 }
0x1125   :  { %9474 = vst [vmem:[#allocation52_spill] sm:$0xff] %v8630_v6  ;;  %v8646_v6 = vld [vmem:[#allocation14 + $0x80] sm:$0xff] }
0x1126   :  { %9479 = vst [vmem:[#allocation57_spill] sm:$0xff] %v8646_v6 }
0x112a   :  { %v4539_v12 = vpop.f32.mrf.mxu1 }
0x112b   :  { %4661 = vmatmul.f32.gmra.mxu3 %v4539_v12  ;;  %4719 = vmatmul.f32.gmra.mxu1 %v4539_v12  ;;  %v8608_v12 = vld [vmem:[#allocation14 + $0xb0] sm:$0xff] }
0x112c   :  { %v4565_v14 = vpop.f32.mrf.mxu2  ;;  %4852 = vmatpush.msra.mxu3 %v8608_v12 }
0x112d   :  { %4687 = vmatmul.f32.vlgmr.msrb.gmra.mxu0 %v4565_v14  ;;  %4745 = vmatmul.f32.vlgmr.msrb.gmra.mxu2 %v4565_v14  ;;  %v8610_v14 = vld [vmem:[#allocation14 + $0x1e0] sm:$0xff] }
0x112e   :  { %9467 = vst [vmem:[#allocation45_spill] sm:$0xff] %v8610_v14  ;;  %4869 = vmatpush.msra.mxu0 %v8610_v14  ;;  %v8760_v14 = vld [vmem:[#allocation14 + $0x8] sm:$0xff] }
0x1132   :  { %v4542_v16 = vpop.f32.mrf.mxu1 }
0x1133   :  { %4664 = vmatmul.f32.gmra.mxu3 %v4542_v16  ;;  %4722 = vmatmul.f32.gmra.mxu1 %v4542_v16  ;;  %v8612_v16 = vld [vmem:[#allocation14 + $0xb8] sm:$0xff] }
0x1134   :  { %v4568_v17 = vpop.f32.mrf.mxu2  ;;  %9468 = vst [vmem:[#allocation46_spill] sm:$0xff] %v8612_v16  ;;  %4892 = vmatpush.msra.mxu1 %v8612_v16  ;;  %v8634_v16 = vld [vmem:[#allocation14 + $0x90] sm:$0xff] }
0x1135   :  { %4690 = vmatmul.f32.gmra.mxu0 %v4568_v17  ;;  %4748 = vmatmul.f32.gmra.mxu2 %v4568_v17  ;;  %v8616_v17 = vld [vmem:[#allocation14 + $0x1e8] sm:$0xff]  ;;  %9475 = vst [vmem:[#allocation53_spill] sm:$0xff] %v8634_v16 }
0x1136   :  { %9469 = vst [vmem:[#allocation47_spill] sm:$0xff] %v8616_v17  ;;  %4909 = vmatpush.msra.mxu2 %v8616_v17  ;;  %v8636_v17 = vld [vmem:[#allocation14 + $0x1c0] sm:$0xff] }
0x1137   :  { %9476 = vst [vmem:[#allocation54_spill] sm:$0xff] %v8636_v17 }
0x1138   :  { %4910 = vmatpush.msra.mxu2 %v8628_v36  ;;  %v8650_v36 = vld [vmem:[#allocation14 + $0x88] sm:$0xff] }
0x1139   :  { %9481 = vst [vmem:[#allocation59_spill] sm:$0xff] %v8650_v36 }
0x113a   :  { %v4545_v21 = vpop.f32.mrf.mxu1 }
0x113b   :  { %4667 = vmatmul.f32.gmra.mxu3 %v4545_v21  ;;  %4725 = vmatmul.f32.gmra.mxu1 %v4545_v21  ;;  %v8620_v21 = vld [vmem:[#allocation14 + $0xa0] sm:$0xff] }
0x113c   :  { %v4571_v23 = vpop.f32.mrf.mxu2  ;;  %9470 = vst [vmem:[#allocation48_spill] sm:$0xff] %v8620_v21  ;;  %4853 = vmatpush.msra.mxu3 %v8620_v21  ;;  %v8642_v21 = vld [vmem:[#allocation14 + $0x1c8] sm:$0xff] }
0x113d   :  { %4693 = vmatmul.f32.gmra.mxu0 %v4571_v23  ;;  %4751 = vmatmul.f32.gmra.mxu2 %v4571_v23  ;;  %v8622_v23 = vld [vmem:[#allocation14 + $0x1d0] sm:$0xff]  ;;  %9478 = vst [vmem:[#allocation56_spill] sm:$0xff] %v8642_v21 }
0x113e   :  { %9471 = vst [vmem:[#allocation49_spill] sm:$0xff] %v8622_v23  ;;  %4870 = vmatpush.msra.mxu0 %v8622_v23  ;;  %4854 = vmatpush.msra.mxu3 %v8634_v16  ;;  %v8654_v23 = vld [vmem:[#allocation14 + $0x1b8] sm:$0xff] }
0x113f   :  { %4911 = vmatpush.msra.mxu2 %v8642_v21  ;;  %9482 = vst [vmem:[#allocation60_spill] sm:$0xff] %v8654_v23  ;;  %v8662_v21 = vld [vmem:[#allocation14 + $0x1a0] sm:$0xff] }
0x1140   :  { %4871 = vmatpush.msra.mxu0 %v8636_v17  ;;  %4855 = vmatpush.msra.mxu3 %v8646_v6  ;;  %9484 = vst [vmem:[#allocation62_spill] sm:$0xff] %v8662_v21  ;;  %v8664_v17 = vld [vmem:[#allocation14 + $0x78] sm:$0xff]  ;;  %v8668_v6 = vld [vmem:[#allocation14 + $0x1a8] sm:$0xff] }
0x1141   :  { %4912 = vmatpush.msra.mxu2 %v8654_v23  ;;  %9485 = vst [vmem:[#allocation63_spill] sm:$0xff] %v8664_v17  ;;  %v8676_v23 = vld [vmem:[#allocation14 + $0x68] sm:$0xff] }
0x1142   :  { %9486 = vst [vmem:[#allocation64_spill] sm:$0xff] %v8668_v6 }
0x1143   :  { %4913 = vmatpush.msra.mxu2 %v8668_v6  ;;  %9489 = vst [vmem:[#allocation67_spill] sm:$0xff] %v8676_v23  ;;  %v8688_v6 = vld [vmem:[#allocation14 + $0x50] sm:$0xff] }
0x1144   :  { %v4574_v24 = vpop.f32.mrf.mxu2  ;;  %9492 = vst [vmem:[#allocation70_spill] sm:$0xff] %v8688_v6 }
0x1145   :  { %4696 = vmatmul.f32.gmra.mxu0 %v4574_v24  ;;  %4754 = vmatmul.f32.gmra.mxu2 %v4574_v24  ;;  %v8624_v24 = vld [vmem:[#allocation14 + $0xa8] sm:$0xff] }
0x1146   :  { %9472 = vst [vmem:[#allocation50_spill] sm:$0xff] %v8624_v24  ;;  %4893 = vmatpush.msra.mxu1 %v8624_v24  ;;  %v8648_v24 = vld [vmem:[#allocation14 + $0x1b0] sm:$0xff]  ;;  %4914 = vmatpush.msra.mxu2 %v8680_v58  ;;  %v8704_v58 = vld [vmem:[#allocation14 + $0x48] sm:$0xff] }
0x1147   :  { %9480 = vst [vmem:[#allocation58_spill] sm:$0xff] %v8648_v24  ;;  %4872 = vmatpush.msra.mxu0 %v8648_v24  ;;  %v8672_v24 = vld [vmem:[#allocation14 + $0x60] sm:$0xff] }
0x1148   :  { %4894 = vmatpush.msra.mxu1 %v8638_v27  ;;  %v8660_v27 = vld [vmem:[#allocation14 + $0x70] sm:$0xff]  ;;  %9487 = vst [vmem:[#allocation65_spill] sm:$0xff] %v8672_v24 }
0x1149   :  { %9483 = vst [vmem:[#allocation61_spill] sm:$0xff] %v8660_v27  ;;  %4856 = vmatpush.msra.mxu3 %v8660_v27  ;;  %4873 = vmatpush.msra.mxu0 %v8662_v21 }
0x114a   :  { %4895 = vmatpush.msra.mxu1 %v8650_v36  ;;  %v8674_v36 = vld [vmem:[#allocation14 + $0x190] sm:$0xff]  ;;  %9498 = vst [vmem:[#allocation76_spill] sm:$0xff] %v8704_v58 }
0x114b   :  { %9488 = vst [vmem:[#allocation66_spill] sm:$0xff] %v8674_v36  ;;  %4857 = vmatpush.msra.mxu3 %v8672_v24  ;;  %4874 = vmatpush.msra.mxu0 %v8674_v36  ;;  %v8696_v36 = vld [vmem:[#allocation14 + $0x188] sm:$0xff]  ;;  %v8700_v24 = vld [vmem:[#allocation14 + $0x40] sm:$0xff] }
0x114c   :  { %4896 = vmatpush.msra.mxu1 %v8664_v17  ;;  %v8690_v17 = vld [vmem:[#allocation14 + $0x180] sm:$0xff]  ;;  %9495 = vst [vmem:[#allocation73_spill] sm:$0xff] %v8696_v36  ;;  %4915 = vmatpush.msra.mxu2 %v8696_v36 }
0x114d   :  { %9493 = vst [vmem:[#allocation71_spill] sm:$0xff] %v8690_v17  ;;  %4858 = vmatpush.msra.mxu3 %v8688_v6  ;;  %4875 = vmatpush.msra.mxu0 %v8690_v17  ;;  %v8716_v36 = vld [vmem:[#allocation14 + $0x160] sm:$0xff]  ;;  %v8718_v17 = vld [vmem:[#allocation14 + $0x38] sm:$0xff] }
0x114e   :  { %4897 = vmatpush.msra.mxu1 %v8676_v23  ;;  %9496 = vst [vmem:[#allocation74_spill] sm:$0xff] %v8700_v24  ;;  %v8702_v23 = vld [vmem:[#allocation14 + $0x170] sm:$0xff] }
0x114f   :  { %9497 = vst [vmem:[#allocation75_spill] sm:$0xff] %v8702_v23  ;;  %4859 = vmatpush.msra.mxu3 %v8700_v24  ;;  %4876 = vmatpush.msra.mxu0 %v8702_v23  ;;  %v8722_v24 = vld [vmem:[#allocation14 + $0x168] sm:$0xff] }
0x1150   :  { %4898 = vmatpush.msra.mxu1 %v8692_v13  ;;  %v8714_v13 = vld [vmem:[#allocation14 + $0x30] sm:$0xff]  ;;  %9501 = vst [vmem:[#allocation79_spill] sm:$0xff] %v8716_v36 }
0x1151   :  { %9500 = vst [vmem:[#allocation78_spill] sm:$0xff] %v8714_v13  ;;  %4860 = vmatpush.msra.mxu3 %v8714_v13  ;;  %4877 = vmatpush.msra.mxu0 %v8716_v36  ;;  %v8736_v13 = vld [vmem:[#allocation14 + $0x158] sm:$0xff] }
0x1152   :  { %4899 = vmatpush.msra.mxu1 %v8704_v58  ;;  %9502 = vst [vmem:[#allocation80_spill] sm:$0xff] %v8718_v17  ;;  %v8728_v58 = vld [vmem:[#allocation14 + $0x20] sm:$0xff] }
0x1153   :  { %9503 = vst [vmem:[#allocation81_spill] sm:$0xff] %v8722_v24  ;;  %4861 = vmatpush.msra.mxu3 %v8728_v58 }
0x1154   :  { %4900 = vmatpush.msra.mxu1 %v8718_v17  ;;  %9505 = vst [vmem:[#allocation83_spill] sm:$0xff] %v8728_v58  ;;  %v8740_v17 = vld [vmem:[#allocation14 + $0x10] sm:$0xff]  ;;  %v8748_v58 = vld [vmem:[#allocation14 + $0x148] sm:$0xff] }
0x1155   :  { %9508 = vst [vmem:[#allocation86_spill] sm:$0xff] %v8736_v13  ;;  %4862 = vmatpush.msra.mxu3 %v8740_v17 }
0x1156   :  { %4901 = vmatpush.msra.mxu1 %v8732_v4  ;;  %9509 = vst [vmem:[#allocation87_spill] sm:$0xff] %v8740_v17  ;;  %v8758_v4 = vld [vmem:[#allocation14 + $0x130] sm:$0xff]  ;;  %v4056_v17 = vadd.f32 %v8478_v55, %v8476_v46  ;;  %v8779_v46 = vld [vmem:[#allocation14 + $0x120] sm:$0xff]  ;;  %v8781_v55 = vld [vmem:[#allocation14 + $0x128] sm:$0xff] }
0x1157   :  { %9512 = vst [vmem:[#allocation90_spill] sm:$0xff] %v8748_v58 }
0x11a0   :  { %v8684_v21 = vpop.f32.mrf.mxu1 }
0x11a1   :  { %9491 = vst [vmem:[#allocation69_spill] sm:$0xff] %v8684_v21  ;;  %v8708_v21 = vld [vmem:[#allocation14 + $0x178] sm:$0xff] }
0x11a2   :  { %9499 = vst [vmem:[#allocation77_spill] sm:$0xff] %v8708_v21  ;;  %4916 = vmatpush.msra.mxu2 %v8708_v21  ;;  %v8730_v21 = vld [vmem:[#allocation14 + $0x150] sm:$0xff] }
0x11a3   :  { %9506 = vst [vmem:[#allocation84_spill] sm:$0xff] %v8730_v21  ;;  %4878 = vmatpush.msra.mxu0 %v8730_v21  ;;  %v4053_v21 = vadd.f32 %v8474_v40, %v8472_v42  ;;  %v4114_v42 = vadd.f32 %v8524_v39, %v8517_v37  ;;  %v8770_v40 = vld [vmem:[#allocation14 + $0x138] sm:$0xff]  ;;  %v4062_v37 = vadd.f32 %v8486_v22, %v8484_v15 }
0x11a4   :  { %4917 = vmatpush.msra.mxu2 %v8722_v24  ;;  %v8742_v24 = vld [vmem:[#allocation14 + $0x140] sm:$0xff]  ;;  %v8796_v15 = vld [vmem:[#allocation14 + $0x118] sm:$0xff] }
0x11a5   :  { %9510 = vst [vmem:[#allocation88_spill] sm:$0xff] %v8742_v24  ;;  %4879 = vmatpush.msra.mxu0 %v8742_v24  ;;  %v4111_v24 = vadd.f32 %v8519_v41, %v8511_v47  ;;  %v4140_v47 = vadd.f32 %v8488_v29, %v4053_v21  ;;  %v4201_v39 = vadd.f32 %v8534_v50, %v4114_v42  ;;  %v8794_v21 = vld [vmem:[#allocation14 + $0x110] sm:$0xff] }
0x11a6   :  { %v8656_v16 = vpop.f32.mrf.mxu3  ;;  %4918 = vmatpush.msra.mxu2 %v8736_v13  ;;  %v8756_v13 = vld [vmem:[#allocation14] sm:$0xff] }
0x11a7   :  { %4863 = vmatpush.msra.mxu3 %v8756_v13  ;;  %4880 = vmatpush.msra.mxu0 %v8758_v4  ;;  %v4169_v29 = vadd.f32 %v8490_v32, %v4140_v47  ;;  %v4428_v32 = vadd.f32 %v8556_v52, %v8550_v49  ;;  %v4431_v49 = vadd.f32 %v8560_v2, %v8554_v28 }
0x11a8   :  { %v8752_v33 = vpop.f32.mrf.mxu1  ;;  %4919 = vmatpush.msra.mxu2 %v8748_v58  ;;  %v4059_v58 = vadd.f32 %v8482_v7, %v8480_v59  ;;  %v4120_v59 = vadd.f32 %v8530_v18, %v8526_v44  ;;  %v4198_v7 = vadd.f32 %v8532_v48, %v4111_v24  ;;  %v8806_v18 = vld [vmem:[#allocation14 + $0x108] sm:$0xff]  ;;  %v9523_v42 = vld [vmem:[#allocation69_spill] sm:$0xff] }
0x11a9   :  { %4881 = vmatpush.msra.mxu0 %v8779_v46  ;;  %4964 = vmatpush.msrb.mxu3 %v8574_v60  ;;  %v4230_v60 = vadd.f32 %v8540_v5, %v4201_v39  ;;  %v9527_v39 = vld [vmem:[#allocation53_spill] sm:$0xff] }
0x11aa   :  { %v8682_v27 = vpop.f32.mrf.mxu0  ;;  %4920 = vmatpush.msra.mxu2 %v8770_v40  ;;  %v4227_v22 = vadd.f32 %v8536_v51, %v4198_v7  ;;  %v4146_v50 = vadd.f32 %v8496_v38, %v4059_v58  ;;  %v4149_v38 = vadd.f32 %v8500_v26, %v4062_v37  ;;  %v4207_v5 = vadd.f32 %v8542_v31, %v4120_v59  ;;  %v9525_v59 = vld [vmem:[#allocation50_spill] sm:$0xff]  ;;  %v9526_v7 = vld [vmem:[#allocation51_spill] sm:$0xff] }
0x11ab   :  { %4882 = vmatpush.msra.mxu0 %v8794_v21  ;;  %4965 = vmatpush.msrb.mxu3 %v8582_v1  ;;  %v4434_v26 = vadd.f32 %v8562_v8, %v8558_v57  ;;  %v9518_v57 = vld [vmem:[#allocation43_spill] sm:$0xff] }
0x11ac   :  { %4921 = vmatpush.msra.mxu2 %v8781_v55 }
0x11ad   :  { %4966 = vmatpush.msrb.mxu3 %v8588_v63  ;;  %v9517_v63 = vld [vmem:[#allocation42_spill] sm:$0xff] }
0x11ae   :  { %v8710_v6 = vpop.f32.mrf.mxu3  ;;  %4922 = vmatpush.msra.mxu2 %v8796_v15  ;;  %v4489_v8 = vadd.f32 %v9518_v57, %v9517_v63  ;;  %v9542_v57 = vld [vmem:[#allocation65_spill] sm:$0xff] }
0x11af   :  { %4967 = vmatpush.msrb.mxu3 %v8594_v34 }
0x11b0   :  { %v8724_v23 = vpop.f32.mrf.mxu2  ;;  %4923 = vmatpush.msra.mxu2 %v8806_v18  ;;  %v4723_v31 = vpop.f32.mrf.mxu1 }
0x11b1   :  { %9504 = vst [vmem:[#allocation82_spill] sm:$0xff] %v8724_v23  ;;  %v8744_v23 = vld [vmem:[#allocation14 + $0x18] sm:$0xff]  ;;  %4968 = vmatpush.msrb.mxu3 %v8608_v12 }
0x11b2   :  { %v4691_v36 = vpop.f32.mrf.mxu0  ;;  %9511 = vst [vmem:[#allocation89_spill] sm:$0xff] %v8744_v23  ;;  %4902 = vmatpush.msra.mxu1 %v8744_v23  ;;  %v4117_v23 = vadd.f32 %v8528_v45, %v8522_v19  ;;  %v4143_v19 = vadd.f32 %v8492_v61, %v4056_v17  ;;  %v8804_v61 = vld [vmem:[#allocation14 + $0x100] sm:$0xff]  ;;  %5024 = vmatpush.msrb.mxu2 %v8602_v56  ;;  %v9522_v17 = vld [vmem:[#allocation49_spill] sm:$0xff] }
0x11b3   :  { %v4692_v52 = vadd.f32 %v4691_v36, %v8710_v6  ;;  %4883 = vmatpush.msra.mxu0 %v8804_v61 }
0x11b4   :  { %4903 = vmatpush.msra.mxu1 %v8760_v14  ;;  %v4204_v44 = vadd.f32 %v8538_v3, %v4117_v23  ;;  %v4172_v48 = vadd.f32 %v8494_v62, %v4143_v19  ;;  %v4425_v3 = vadd.f32 %v8552_v25, %v8546_v10  ;;  %v4175_v62 = vadd.f32 %v8498_v0, %v4146_v50  ;;  %v9530_v50 = vld [vmem:[#allocation52_spill] sm:$0xff] }
0x11b5   :  { %v4689_v25 = vadd.f32 %v8682_v27, %v8656_v16  ;;  %4984 = vmatpush.msrb.mxu0 %v8596_v35  ;;  %v4486_v0 = vadd.f32 %v8570_v54, %v8568_v30  ;;  %v9513_v27 = vld [vmem:[#allocation45_spill] sm:$0xff]  ;;  %v9519_v35 = vld [vmem:[#allocation46_spill] sm:$0xff]  ;;  %v9521_v16 = vld [vmem:[#allocation48_spill] sm:$0xff] }
0x11b6   :  { %v4665_v41 = vpop.f32.mrf.mxu3  ;;  %5004 = vmatpush.msrb.mxu1 %v8576_v9  ;;  %v4496_v10 = vadd.f32 %v4428_v32, %v4172_v48  ;;  %v4233_v36 = vadd.f32 %v8544_v11, %v4204_v44  ;;  %v4494_v2 = vadd.f32 %v4425_v3, %v4169_v29  ;;  %v4498_v58 = vadd.f32 %v4431_v49, %v4175_v62  ;;  %v9514_v11 = vld [vmem:[#allocation38_spill] sm:$0xff]  ;;  %v9516_v30 = vld [vmem:[#allocation41_spill] sm:$0xff]  ;;  %v9529_v48 = vld [vmem:[#allocation44_spill] sm:$0xff] }
0x11b7   :  { %4985 = vmatpush.msrb.mxu0 %v9513_v27  ;;  %v4178_v1 = vadd.f32 %v9514_v11, %v4149_v38  ;;  %4969 = vmatpush.msrb.mxu3 %v9521_v16  ;;  %v4497_v23 = vadd.f32 %v4486_v0, %v4230_v60  ;;  %v4492_v60 = vadd.f32 %v9530_v50, %v9529_v48  ;;  %v9532_v3 = vld [vmem:[#allocation56_spill] sm:$0xff]  ;;  %v9533_v38 = vld [vmem:[#allocation57_spill] sm:$0xff]  ;;  %v9546_v16 = vld [vmem:[#allocation70_spill] sm:$0xff] }
0x11b8   :  { %v4749_v45 = vpop.f32.mrf.mxu2  ;;  %5005 = vmatpush.msrb.mxu1 %v8584_v20  ;;  %v8837_v9 = vadd.f32 %v4692_v52, %v4496_v10  ;;  %v9515_v20 = vld [vmem:[#allocation40_spill] sm:$0xff]  ;;  %v8848_v56 = vadd.f32 %v4689_v25, %v4494_v2  ;;  %v9524_v47 = vld [vmem:[#allocation82_spill] sm:$0xff]  ;;  %v4499_v32 = vadd.f32 %v4489_v8, %v4233_v36  ;;  %v9535_v25 = vld [vmem:[#allocation39_spill] sm:$0xff]  ;;  %v4726_v27 = vpop.f32.mrf.mxu1 }
0x11b9   :  { %v4483_v54 = vadd.f32 %v9516_v30, %v9515_v20  ;;  %v4750_v6 = vadd.f32 %v4749_v45, %v8752_v33  ;;  %4986 = vmatpush.msrb.mxu0 %v9522_v17  ;;  %v4500_v24 = vadd.f32 %v4434_v26, %v4178_v1  ;;  %4970 = vmatpush.msrb.mxu3 %v9527_v39  ;;  %v9528_v45 = vld [vmem:[#allocation54_spill] sm:$0xff]  ;;  %v9537_v36 = vld [vmem:[#allocation60_spill] sm:$0xff]  ;;  %v9538_v2 = vld [vmem:[#allocation61_spill] sm:$0xff] }
0x11ba   :  { %v4694_v51 = vpop.f32.mrf.mxu0  ;;  %5006 = vmatpush.msrb.mxu1 %v8590_v43  ;;  %v4766_v29 = vadd.f32 %v8837_v9, %v8848_v56  ;;  %v9534_v10 = vld [vmem:[#allocation58_spill] sm:$0xff]  ;;  %v9540_v1 = vld [vmem:[#allocation63_spill] sm:$0xff]  ;;  %v9541_v20 = vld [vmem:[#allocation64_spill] sm:$0xff] }
0x11bb   :  { %v4695_v28 = vadd.f32 %v4694_v51, %v4665_v41  ;;  %v4747_v41 = vadd.f32 %v9524_v47, %v9523_v42  ;;  %4987 = vmatpush.msrb.mxu0 %v9528_v45  ;;  %v4495_v44 = vadd.f32 %v4483_v54, %v4227_v22  ;;  %v9531_v51 = vld [vmem:[#allocation55_spill] sm:$0xff]  ;;  %v8867_v49 = vadd.f32 %v4750_v6, %v4497_v23  ;;  %v9543_v8 = vld [vmem:[#allocation66_spill] sm:$0xff]  ;;  %v9548_v23 = vld [vmem:[#allocation72_spill] sm:$0xff] }
0x11bc   :  { %5007 = vmatpush.msrb.mxu1 %v8598_v53  ;;  %v9520_v53 = vld [vmem:[#allocation47_spill] sm:$0xff]  ;;  %4971 = vmatpush.msrb.mxu3 %v9533_v38  ;;  %v4236_v22 = vadd.f32 %v9535_v25, %v4207_v5  ;;  %v9556_v45 = vld [vmem:[#allocation80_spill] sm:$0xff] }
0x11bd   :  { %5025 = vmatpush.msrb.mxu2 %v9520_v53  ;;  %v8851_v12 = vadd.f32 %v4695_v28, %v4498_v58  ;;  %4988 = vmatpush.msrb.mxu0 %v9534_v10  ;;  %v9536_v28 = vld [vmem:[#allocation59_spill] sm:$0xff]  ;;  %v8877_v0 = vadd.f32 %v4747_v41, %v4495_v44  ;;  %v9539_v58 = vld [vmem:[#allocation62_spill] sm:$0xff]  ;;  %v9557_v44 = vld [vmem:[#allocation81_spill] sm:$0xff] }
0x11be   :  { %v4668_v34 = vpop.f32.mrf.mxu3  ;;  %5008 = vmatpush.msrb.mxu1 %v9519_v35  ;;  %4972 = vmatpush.msrb.mxu3 %v9538_v2  ;;  %v4501_v5 = vadd.f32 %v4492_v60, %v4236_v22  ;;  %v9547_v17 = vld [vmem:[#allocation71_spill] sm:$0xff]  ;;  %v9550_v41 = vld [vmem:[#allocation74_spill] sm:$0xff]  ;;  %v9559_v60 = vld [vmem:[#allocation84_spill] sm:$0xff] }
0x11bf   :  { %5026 = vmatpush.msrb.mxu2 %v9526_v7  ;;  %v4767_v52 = vadd.f32 %v4766_v29, %v8851_v12  ;;  %4989 = vmatpush.msrb.mxu0 %v9539_v58  ;;  %v4775_v30 = vadd.f32 %v8867_v49, %v8877_v0  ;;  %v9553_v7 = vld [vmem:[#allocation77_spill] sm:$0xff]  ;;  %v9555_v39 = vld [vmem:[#allocation79_spill] sm:$0xff]  ;;  %v9563_v25 = vld [vmem:[#allocation88_spill] sm:$0xff] }
0x11c0   :  { %v4752_v43 = vpop.f32.mrf.mxu2  ;;  %5009 = vmatpush.msrb.mxu1 %v9525_v59  ;;  %4973 = vmatpush.msrb.mxu3 %v9542_v57  ;;  %v9552_v59 = vld [vmem:[#allocation76_spill] sm:$0xff]  ;;  %v9558_v50 = vld [vmem:[#allocation83_spill] sm:$0xff]  ;;  %v9564_v22 = vld [vmem:[#allocation89_spill] sm:$0xff] }
0x11c1   :  { %v4753_v33 = vadd.f32 %v4752_v43, %v4723_v31  ;;  %5027 = vmatpush.msrb.mxu2 %v9532_v3  ;;  %4990 = vmatpush.msrb.mxu0 %v9543_v8  ;;  %v9544_v43 = vld [vmem:[#allocation67_spill] sm:$0xff]  ;;  %v9561_v3 = vld [vmem:[#allocation86_spill] sm:$0xff] }
0x11c2   :  { %v4697_v37 = vpop.f32.mrf.mxu0  ;;  %5010 = vmatpush.msrb.mxu1 %v9531_v51  ;;  %4974 = vmatpush.msrb.mxu3 %v9546_v16  ;;  %v9560_v51 = vld [vmem:[#allocation85_spill] sm:$0xff]  ;;  %v9562_v10 = vld [vmem:[#allocation87_spill] sm:$0xff] }
0x11c3   :  { %v4698_v19 = vadd.f32 %v4697_v37, %v4668_v34  ;;  %5028 = vmatpush.msrb.mxu2 %v9537_v36  ;;  %v8879_v26 = vadd.f32 %v4753_v33, %v4499_v32  ;;  %v9545_v34 = vld [vmem:[#allocation68_spill] sm:$0xff]  ;;  %4991 = vmatpush.msrb.mxu0 %v9547_v17  ;;  %v9551_v37 = vld [vmem:[#allocation75_spill] sm:$0xff] }
0x11c4   :  { %5011 = vmatpush.msrb.mxu1 %v9536_v28  ;;  %4975 = vmatpush.msrb.mxu3 %v9550_v41  ;;  %v9565_v28 = vld [vmem:[#allocation90_spill] sm:$0xff] }
0x11c5   :  { %v8870_v62 = vadd.f32 %v4698_v19, %v4500_v24  ;;  %5029 = vmatpush.msrb.mxu2 %v9541_v20  ;;  %v4776_v35 = vadd.f32 %v4775_v30, %v8879_v26  ;;  %v9549_v24 = vld [vmem:[#allocation73_spill] sm:$0xff]  ;;  %4992 = vmatpush.msrb.mxu0 %v9551_v37  ;;  %v9554_v19 = vld [vmem:[#allocation78_spill] sm:$0xff] }
0x11c6   :  { %5012 = vmatpush.msrb.mxu1 %v9540_v1  ;;  %4976 = vmatpush.msrb.mxu3 %v9554_v19 }
0x11c7   :  { %v4768_v31 = vadd.f32 %v4767_v52, %v8870_v62  ;;  %5030 = vmatpush.msrb.mxu2 %v9545_v34  ;;  %4993 = vmatpush.msrb.mxu0 %v9555_v39 }
0x11c8   :  { %v4755_v11 = vpop.f32.mrf.mxu2  ;;  %5013 = vmatpush.msrb.mxu1 %v9544_v43  ;;  %4977 = vmatpush.msrb.mxu3 %v9558_v50 }
0x11c9   :  { %v4769_v54 = vrot.slane %v4768_v31, 4  ;;  %v4756_v63 = vadd.f32 %v4755_v11, %v4726_v27  ;;  %5031 = vmatpush.msrb.mxu2 %v9549_v24  ;;  %4994 = vmatpush.msrb.mxu0 %v9559_v60 }
0x11ca   :  { %5014 = vmatpush.msrb.mxu1 %v9548_v23  ;;  %4978 = vmatpush.msrb.mxu3 %v9562_v10 }
0x11cb   :  { %v4770_v53 = vadd.f32 %v4769_v54, %v4768_v31  ;;  %v8893_v6 = vadd.f32 %v4756_v63, %v4501_v5  ;;  %5032 = vmatpush.msrb.mxu2 %v9553_v7  ;;  %4995 = vmatpush.msrb.mxu0 %v9563_v25 }
0x11cc   :  { %5015 = vmatpush.msrb.mxu1 %v9552_v59  ;;  %4979 = vmatpush.msrb.mxu3 %v8756_v13 }
0x11cd   :  { %v4771_v42 = vrot.slane %v4770_v53, 2  ;;  %v4777_v47 = vadd.f32 %v4776_v35, %v8893_v6  ;;  %5033 = vmatpush.msrb.mxu2 %v9557_v44  ;;  %4996 = vmatpush.msrb.mxu0 %v8758_v4 }
0x11ce   :  { %5016 = vmatpush.msrb.mxu1 %v9556_v45 }
0x11cf   :  { %v4772_v29 = vadd.f32 %v4771_v42, %v4770_v53  ;;  %v4778_v33 = vrot.slane %v4777_v47, 4  ;;  %5034 = vmatpush.msrb.mxu2 %v9561_v3  ;;  %4997 = vmatpush.msrb.mxu0 %v8779_v46 }
0x11d0   :  { %5017 = vmatpush.msrb.mxu1 %v9560_v51 }
0x11d1   :  { %v4773_v32 = vrot.slane %v4772_v29, 1  ;;  %v4779_v48 = vadd.f32 %v4778_v33, %v4777_v47  ;;  %5035 = vmatpush.msrb.mxu2 %v9565_v28  ;;  %4998 = vmatpush.msrb.mxu0 %v8794_v21 }
0x11d2   :  { %5018 = vmatpush.msrb.mxu1 %v9564_v22 }
0x11d3   :  { %v4774_v52 = vadd.f32 %v4773_v32, %v4772_v29  ;;  %v4780_v38 = vrot.slane %v4779_v48, 2  ;;  %5036 = vmatpush.msrb.mxu2 %v8770_v40  ;;  %4999 = vmatpush.msrb.mxu0 %v8804_v61 }
0x11d4   :  { %5019 = vmatpush.msrb.mxu1 %v8760_v14 }
0x11d5   :  { %v4781_v36 = vadd.f32 %v4780_v38, %v4779_v48  ;;  %4864 = vmatmul.f32.vlgmr.msra.gmra.mxu3 %v4774_v52  ;;  %4904 = vmatmul.f32.vlgmr.msra.gmra.mxu1 %v4774_v52  ;;  %v5064_v52 = vld [vmem:[%s9566_s26] sm:$0x3] }
0x11d6   :  { %5037 = vmatpush.msrb.mxu2 %v8781_v55  ;;  %v5066_v25 = vperm.slane %v5064_v52, 0 }
0x11d7   :  { %v4782_v31 = vrot.slane %v4781_v36, 1 }
0x11d8   :  { %5038 = vmatpush.msrb.mxu2 %v8796_v15 }
0x11d9   :  { %v4783_v2 = vadd.f32 %v4782_v31, %v4781_v36 }
0x11da   :  { %5039 = vmatpush.msrb.mxu2 %v8806_v18 }
0x11db   :  { %4884 = vmatmul.f32.vlgmr.msra.gmra.mxu0 %v4783_v2  ;;  %4924 = vmatmul.f32.vlgmr.msra.gmra.mxu2 %v4783_v2  ;;  %v5082_v2 = vld [vmem:[%s7103_s24] sm:$0x3]  ;;  %s6060_s24 = sshll.u32 %s7118_s30, 4  ;;  %s6061_s24 = int_to_ptr.hbm [resolvable:$true] %s6060_s24 }
0x11dc   :  { %s6881_s10 = sshra.s32 %s6061_s24, 4  ;;  %s6882_s10 = int_to_ptr.hbm [resolvable:$true] %s6881_s10 }
0x11dd   :  { %s6883_s0 = scalar_lea.hbm %s6882_s10, 64  ;;  %p6886_p13 = scmp.lt.s32.totalorder %s6882_s10, %s7118_s30 }
0x11de   :  { %p6884_p12 = scmp.ne.s32.totalorder %s6882_s10, %s6883_s0  ;;  %p6887_p0 = scmp.lt.s32.totalorder %s6885_s4, %s6883_s0 }
0x11e0   :  { %p6888_p1 = por %p6887_p0, %p6886_p13 }
0x11e2   :  { %p6889_p2 = pnand %p6888_p1, %p6884_p12 }
0x1252   :  { %v4905_v27 = vpop.f32.mrf.mxu1 }
0x1258   :  { %v4865_v4 = vpop.f32.mrf.mxu3  ;;  %v4885_v13 = vpop.f32.mrf.mxu0 }
0x1259   :  { %v4886_v14 = vadd.f32 %v4885_v13, %v4865_v4 }
0x125b   :  { %v4928_v58 = vperm.slane %v4886_v14, 0  ;;  %v5067_v14 = vperm.slane %v5064_v52, 1  ;;  %v6472_v52 = vld [vmem:[%s7113_s14 + $0x130] sm:$0xff] }
0x125d   :  { %v8927_v40 = vsub.f32 %v8848_v56, %v4928_v58  ;;  %v8930_v46 = vsub.f32 %v8837_v9, %v4928_v58  ;;  %v8933_v55 = vsub.f32 %v8851_v12, %v4928_v58  ;;  %v8936_v15 = vsub.f32 %v8870_v62, %v4928_v58 }
0x125e   :  { %v4925_v21 = vpop.f32.mrf.mxu2 }
0x125f   :  { %v4938_v61 = vmul.f32 %v8927_v40, %v8927_v40  ;;  %v4940_v18 = vmul.f32 %v8930_v46, %v8930_v46  ;;  %v4926_v11 = vadd.f32 %v4925_v21, %v4905_v27  ;;  %v4942_v56 = vmul.f32 %v8933_v55, %v8933_v55 }
0x1260   :  { %v4944_v12 = vmul.f32 %v8936_v15, %v8936_v15  ;;  %v5084_v27 = vperm.slane %v5082_v2, 0 }
0x1261   :  { %v4946_v9 = vadd.f32 %v4940_v18, %v4938_v61  ;;  %v4929_v1 = vperm.slane %v4926_v11, 0 }
0x1263   :  { %v4947_v20 = vadd.f32 %v4946_v9, %v4942_v56  ;;  %v8947_v5 = vsub.f32 %v8877_v0, %v4929_v1  ;;  %v8950_v62 = vsub.f32 %v8867_v49, %v4929_v1  ;;  %v8953_v30 = vsub.f32 %v8879_v26, %v4929_v1 }
0x1264   :  { %v8956_v63 = vsub.f32 %v8893_v6, %v4929_v1 }
0x1265   :  { %v4948_v54 = vadd.f32 %v4947_v20, %v4944_v12  ;;  %v4939_v57 = vmul.f32 %v8947_v5, %v8947_v5  ;;  %v4941_v8 = vmul.f32 %v8950_v62, %v8950_v62  ;;  %v4943_v0 = vmul.f32 %v8953_v30, %v8953_v30 }
0x1266   :  { %v4945_v26 = vmul.f32 %v8956_v63, %v8956_v63 }
0x1267   :  { %v4949_v43 = vrot.slane %v4948_v54, 4  ;;  %v4955_v34 = vadd.f32 %v4941_v8, %v4939_v57  ;;  %v5085_v57 = vperm.slane %v5082_v2, 1  ;;  %v6445_v2 = vld [vmem:[%s7108_s8 + $0x58] sm:$0xff] }
0x1269   :  { %v4950_v49 = vadd.f32 %v4949_v43, %v4948_v54  ;;  %v4956_v35 = vadd.f32 %v4955_v34, %v4943_v0 }
0x126b   :  { %v4951_v53 = vrot.slane %v4950_v49, 2  ;;  %v4957_v16 = vadd.f32 %v4956_v35, %v4945_v26 }
0x126d   :  { %v4952_v6 = vadd.f32 %v4951_v53, %v4950_v49  ;;  %v4958_v17 = vrot.slane %v4957_v16, 4  ;;  %v6442_v53 = vld [vmem:[%s7108_s8 + $0x40] sm:$0xff] }
0x126f   :  { %v4953_v23 = vrot.slane %v4952_v6, 1  ;;  %v4959_v24 = vadd.f32 %v4958_v17, %v4957_v16  ;;  %v6481_v16 = vld [vmem:[%s7113_s14 + $0x178] sm:$0xff] }
0x1271   :  { %v4954_v42 = vadd.f32 %v4953_v23, %v4952_v6  ;;  %v4960_v47 = vrot.slane %v4959_v24, 2  ;;  %v6480_v23 = vld [vmem:[%s7113_s14 + $0x170] sm:$0xff] }
0x1273   :  { %4980 = vmatmul.f32.vlgmr.msrb.gmra.mxu3 %v4954_v42  ;;  %5020 = vmatmul.f32.vlgmr.msrb.gmra.mxu1 %v4954_v42  ;;  %v4961_v41 = vadd.f32 %v4960_v47, %v4959_v24  ;;  %v6479_v42 = vld [vmem:[%s7113_s14 + $0x168] sm:$0xff]  ;;  %v6497_v47 = vld [vmem:[%s7113_s14 + $0x1f8] sm:$0xff] }
0x1275   :  { %v4962_v37 = vrot.slane %v4961_v41, 1 }
0x1277   :  { %v4963_v59 = vadd.f32 %v4962_v37, %v4961_v41  ;;  %v5104_v41 = vld [vmem:[%s7108_s8] sm:$0xff] }
0x1278   :  { %v6478_v37 = vld [vmem:[%s7113_s14 + $0x160] sm:$0xff] }
0x1279   :  { %5000 = vmatmul.f32.vlgmr.msrb.gmra.mxu0 %v4963_v59  ;;  %5040 = vmatmul.f32.vlgmr.msrb.gmra.mxu2 %v4963_v59  ;;  %v6496_v59 = vld [vmem:[%s7113_s14 + $0x1f0] sm:$0xff] }
0x12f0   :  { %v5021_v19 = vpop.f32.mrf.mxu1 }
0x12f1   :  { %v5022_v45 = vadd.f32 1e-05, %v5021_v19  ;;  %v6476_v19 = vld [vmem:[%s7113_s14 + $0x150] sm:$0xff] }
0x12f6   :  { %v4981_v7 = vpop.f32.mrf.mxu3  ;;  %v5001_v33 = vpop.f32.mrf.mxu0 }
0x12f7   :  { %v4982_v29 = vadd.f32 1e-05, %v4981_v7  ;;  %v6477_v7 = vld [vmem:[%s7113_s14 + $0x158] sm:$0xff] }
0x12f9   :  { %v5002_v39 = vadd.f32 %v5001_v33, %v4982_v29  ;;  %v6443_v29 = vld [vmem:[%s7108_s8 + $0x48] sm:$0xff] }
0x12fa   :  { %v6495_v33 = vld [vmem:[%s7113_s14 + $0x1e8] sm:$0xff] }
0x12fb   :  { %6673 = vrsqrt.f32 %v5002_v39  ;;  %vm5050_vm5 = vweird.f32 %v5002_v39 }
0x12fc   :  { %v5041_v44 = vpop.f32.mrf.mxu2 }
0x12fd   :  { %v5042_v32 = vadd.f32 %v5041_v44, %v5022_v45  ;;  %v6475_v45 = vld [vmem:[%s7113_s14 + $0x148] sm:$0xff]  ;;  %v6493_v44 = vld [vmem:[%s7113_s14 + $0x1d8] sm:$0xff] }
0x12ff   :  { %6675 = vrsqrt.f32 %v5042_v32  ;;  %vm5060_vm8 = vweird.f32 %v5042_v32 }
0x1301   :  { %v6674_v48 = vpop.eup %6673 }
0x1302   :  { %v5045_v50 = vmul.f32 %v6674_v48, %v5002_v39  ;;  %vm5051_vm10 = vweird.f32 %v6674_v48  ;;  %v6494_v39 = vld [vmem:[%s7113_s14 + $0x1e0] sm:$0xff] }
0x1303   :  { %vm5052_vm6 = vmor %vm5050_vm5, %vm5051_vm10 }
0x1304   :  { %v5046_v60 = vmul.f32 %v6674_v48, %v5045_v50  ;;  %v6492_v50 = vld [vmem:[%s7113_s14 + $0x1d0] sm:$0xff] }
0x1305   :  { %v6676_v51 = vpop.eup %6675 }
0x1306   :  { %v5047_v3 = vmul.f32 0.5, %v5046_v60  ;;  %v5055_v38 = vmul.f32 %v6676_v51, %v5042_v32  ;;  %vm5061_vm7 = vweird.f32 %v6676_v51  ;;  %v5105_v32 = vld [vmem:[%s7108_s8 + $0x8] sm:$0xff]  ;;  %v6473_v60 = vld [vmem:[%s7113_s14 + $0x138] sm:$0xff] }
0x1307   :  { %vm5062_vm9 = vmor %vm5060_vm8, %vm5061_vm7 }
0x1308   :  { %v5048_v10 = vsub.f32 1.5, %v5047_v3  ;;  %v5056_v22 = vmul.f32 %v6676_v51, %v5055_v38  ;;  %v6491_v3 = vld [vmem:[%s7113_s14 + $0x1c8] sm:$0xff]  ;;  %v6490_v38 = vld [vmem:[%s7113_s14 + $0x1c0] sm:$0xff] }
0x130a   :  { %v5049_v28 = vmul.f32 %v6674_v48, %v5048_v10  ;;  %v5057_v36 = vmul.f32 0.5, %v5056_v22  ;;  %v6471_v10 = vld [vmem:[%s7113_s14 + $0x128] sm:$0xff]  ;;  %v5106_v22 = vld [vmem:[%s7108_s8 + $0x10] sm:$0xff] }
0x130c   :  { %v5053_v31 = vsel %vm5052_vm6, %v6674_v48, %v5049_v28  ;;  %v5058_v13 = vsub.f32 1.5, %v5057_v36  ;;  %v6474_v48 = vld [vmem:[%s7113_s14 + $0x140] sm:$0xff]  ;;  %v6488_v36 = vld [vmem:[%s7113_s14 + $0x1b0] sm:$0xff] }
0x130d   :  { %v5070_v4 = vmul.f32 %v5066_v25, %v5053_v31  ;;  %v6489_v25 = vld [vmem:[%s7113_s14 + $0x1b8] sm:$0xff]  ;;  %v6470_v28 = vld [vmem:[%s7113_s14 + $0x120] sm:$0xff] }
0x130e   :  { %v5059_v21 = vmul.f32 %v6676_v51, %v5058_v13  ;;  %v6469_v31 = vld [vmem:[%s7113_s14 + $0x118] sm:$0xff]  ;;  %v6468_v13 = vld [vmem:[%s7113_s14 + $0x110] sm:$0xff] }
0x130f   :  { %v5072_v58 = vperm.slane %v5070_v4, 0  ;;  %v6487_v4 = vld [vmem:[%s7113_s14 + $0x1a8] sm:$0xff] }
0x1310   :  { %v5063_v61 = vsel %vm5062_vm9, %v6676_v51, %v5059_v21  ;;  %v6444_v51 = vld [vmem:[%s7108_s8 + $0x50] sm:$0xff]  ;;  %v6485_v21 = vld [vmem:[%s7113_s14 + $0x198] sm:$0xff] }
0x1311   :  { %v5080_v18 = vmul.f32 %v5072_v58, %v8936_v15  ;;  %v5078_v11 = vmul.f32 %v5072_v58, %v8933_v55  ;;  %v5076_v56 = vmul.f32 %v5072_v58, %v8930_v46  ;;  %v5071_v9 = vmul.f32 %v5067_v14, %v5063_v61  ;;  %v6486_v14 = vld [vmem:[%s7113_s14 + $0x1a0] sm:$0xff] }
0x1312   :  { %v5074_v20 = vmul.f32 %v5072_v58, %v8927_v40  ;;  %v6467_v58 = vld [vmem:[%s7113_s14 + $0x108] sm:$0xff]  ;;  %v6466_v61 = vld [vmem:[%s7113_s14 + $0x100] sm:$0xff] }
0x1313   :  { %v5094_v1 = vadd.f32 %v5084_v27, %v5080_v18  ;;  %v5092_v12 = vadd.f32 %v5084_v27, %v5078_v11  ;;  %v5073_v54 = vperm.slane %v5071_v9, 0  ;;  %v5090_v43 = vadd.f32 %v5084_v27, %v5076_v56  ;;  %v6484_v18 = vld [vmem:[%s7113_s14 + $0x190] sm:$0xff]  ;;  %v6446_v11 = vld [vmem:[%s7108_s8 + $0x60] sm:$0xff]  ;;  %v6483_v56 = vld [vmem:[%s7113_s14 + $0x188] sm:$0xff] }
0x1314   :  { %v5088_v55 = vadd.f32 %v5084_v27, %v5074_v20  ;;  %v5107_v27 = vld [vmem:[%s7108_s8 + $0x18] sm:$0xff]  ;;  %v6482_v9 = vld [vmem:[%s7113_s14 + $0x180] sm:$0xff]  ;;  %v5109_v20 = vld [vmem:[%s7108_s8 + $0x28] sm:$0xff] }
0x1315   :  { %v8972_v8 = vmax.f32 %v5094_v1, 0.0  ;;  %v5081_v0 = vmul.f32 %v5073_v54, %v8956_v63  ;;  %v5079_v34 = vmul.f32 %v5073_v54, %v8953_v30  ;;  %v5077_v15 = vmul.f32 %v5073_v54, %v8950_v62  ;;  %v5108_v1 = vld [vmem:[%s7108_s8 + $0x20] sm:$0xff] }
0x1316   :  { %v8979_v46 = vmax.f32 %v5092_v12, 0.0  ;;  %v5075_v26 = vmul.f32 %v5073_v54, %v8947_v5  ;;  %v8984_v30 = vmax.f32 %v5090_v43, 0.0  ;;  %v8990_v35 = vmax.f32 %v5088_v55, 0.0  ;;  %v6447_v12 = vld [vmem:[%s7108_s8 + $0x68] sm:$0xff]  ;;  %v6448_v54 = vld [vmem:[%s7108_s8 + $0x70] sm:$0xff]  ;;  %v6449_v43 = vld [vmem:[%s7108_s8 + $0x78] sm:$0xff] }
0x1317   :  { %5148 = vmatpush.msra.mxu3 %v8972_v8  ;;  %5295 = vmatpush.msra.mxu1 %v8972_v8  ;;  %v5095_v40 = vadd.f32 %v5085_v57, %v5081_v0  ;;  %v5093_v49 = vadd.f32 %v5085_v57, %v5079_v34  ;;  %v5091_v63 = vadd.f32 %v5085_v57, %v5077_v15  ;;  %v5111_v0 = vld [vmem:[%s7108_s8 + $0x38] sm:$0xff]  ;;  %v5248_v15 = vld [vmem:[%s7113_s14 + $0xf0] sm:$0xff] }
0x1318   :  { %v5089_v6 = vadd.f32 %v5085_v57, %v5075_v26  ;;  %v5110_v57 = vld [vmem:[%s7108_s8 + $0x30] sm:$0xff]  ;;  %v5249_v34 = vld [vmem:[%s7113_s14 + $0xf8] sm:$0xff]  ;;  %v5246_v26 = vld [vmem:[%s7113_s14 + $0xe0] sm:$0xff] }
0x1319   :  { %5149 = vmatpush.msra.mxu3 %v8979_v46  ;;  %5296 = vmatpush.msra.mxu1 %v8979_v46  ;;  %v8986_v62 = vmax.f32 %v5095_v40, 0.0  ;;  %v8994_v5 = vmax.f32 %v5093_v49, 0.0  ;;  %v9002_v17 = vmax.f32 %v5091_v63, 0.0  ;;  %v5233_v55 = vld [vmem:[%s7113_s14 + $0x78] sm:$0xff]  ;;  %v5247_v40 = vld [vmem:[%s7113_s14 + $0xe8] sm:$0xff]  ;;  %v5232_v49 = vld [vmem:[%s7113_s14 + $0x70] sm:$0xff] }
0x131a   :  { %v9008_v24 = vmax.f32 %v5089_v6, 0.0  ;;  %v5231_v63 = vld [vmem:[%s7113_s14 + $0x68] sm:$0xff]  ;;  %v5244_v6 = vld [vmem:[%s7113_s14 + $0xd0] sm:$0xff] }
0x131b   :  { %5150 = vmatpush.msra.mxu3 %v8984_v30  ;;  %5297 = vmatpush.msra.mxu1 %v8984_v30 }
0x131c   :  { %5189 = vmatpush.msra.mxu0 %v8986_v62  ;;  %5336 = vmatpush.msra.mxu2 %v8986_v62 }
0x131d   :  { %5151 = vmatpush.msra.mxu3 %v8990_v35  ;;  %5298 = vmatpush.msra.mxu1 %v8990_v35 }
0x131e   :  { %5190 = vmatpush.msra.mxu0 %v8994_v5  ;;  %5337 = vmatpush.msra.mxu2 %v8994_v5 }
0x131f   :  { %6450 = vmatmul.msk.f32.vlgmr.msra.gmra.mxu1 %vm352_vm0, %v6442_v53  ;;  %5398 = vmatpush.msrb.mxu3 %v6481_v16  ;;  %v5230_v16 = vld [vmem:[%s7113_s14 + $0x60] sm:$0xff] }
0x1320   :  { %5191 = vmatpush.msra.mxu0 %v9002_v17  ;;  %5338 = vmatpush.msra.mxu2 %v9002_v17 }
0x1321   :  { %5399 = vmatpush.msrb.mxu3 %v6480_v23  ;;  %5480 = vmatpush.msrb.mxu1 %v5233_v55  ;;  %v5229_v23 = vld [vmem:[%s7113_s14 + $0x58] sm:$0xff]  ;;  %v6500_v55 = vld [vmem:[%s7108_s8 + $0x90] sm:$0xff] }
0x1322   :  { %5192 = vmatpush.msra.mxu0 %v9008_v24  ;;  %5339 = vmatpush.msra.mxu2 %v9008_v24 }
0x1323   :  { %6458 = vmatmul.msk.f32.vlgmr.msra.gmra.mxu2 %vm352_vm0, %v6442_v53  ;;  %5400 = vmatpush.msrb.mxu3 %v6479_v42  ;;  %v5245_v53 = vld [vmem:[%s7113_s14 + $0xd8] sm:$0xff]  ;;  %v5243_v42 = vld [vmem:[%s7113_s14 + $0xc8] sm:$0xff] }
0x1324   :  { %5439 = vmatpush.msrb.mxu0 %v6497_v47  ;;  %6426 = vmatmul.msk.f32.vlgmr.msra.gmra.mxu3 %vm352_vm0, %v5104_v41  ;;  %v5228_v47 = vld [vmem:[%s7113_s14 + $0x50] sm:$0xff] }
0x1325   :  { %5401 = vmatpush.msrb.mxu3 %v6478_v37  ;;  %6434 = vmatmul.msk.f32.vlgmr.msra.gmra.mxu0 %vm352_vm0, %v5104_v41  ;;  %v5242_v41 = vld [vmem:[%s7113_s14 + $0xc0] sm:$0xff]  ;;  %v5227_v37 = vld [vmem:[%s7113_s14 + $0x48] sm:$0xff] }
0x1326   :  { %5440 = vmatpush.msrb.mxu0 %v6496_v59  ;;  %5521 = vmatpush.msrb.mxu2 %v5249_v34  ;;  %v5241_v59 = vld [vmem:[%s7113_s14 + $0xb8] sm:$0xff] }
0x1327   :  { %5402 = vmatpush.msrb.mxu3 %v6477_v7  ;;  %6451 = vmatmul.msk.f32.gmra.mxu1 %vm352_vm0, %v6443_v29  ;;  %v5226_v7 = vld [vmem:[%s7113_s14 + $0x40] sm:$0xff] }
0x1328   :  { %5441 = vmatpush.msrb.mxu0 %v6495_v33  ;;  %5522 = vmatpush.msrb.mxu2 %v5248_v15  ;;  %v5225_v33 = vld [vmem:[%s7113_s14 + $0x38] sm:$0xff]  ;;  %v6499_v15 = vld [vmem:[%s7108_s8 + $0x88] sm:$0xff] }
0x1329   :  { %5403 = vmatpush.msrb.mxu3 %v6476_v19  ;;  %5481 = vmatpush.msrb.mxu1 %v5232_v49  ;;  %v5239_v19 = vld [vmem:[%s7113_s14 + $0xa8] sm:$0xff]  ;;  %v6502_v49 = vld [vmem:[%s7108_s8 + $0xa0] sm:$0xff] }
0x132a   :  { %5442 = vmatpush.msrb.mxu0 %v6494_v39  ;;  %5523 = vmatpush.msrb.mxu2 %v5247_v40  ;;  %v5224_v39 = vld [vmem:[%s7113_s14 + $0x30] sm:$0xff]  ;;  %v6501_v40 = vld [vmem:[%s7108_s8 + $0x98] sm:$0xff] }
0x132b   :  { %6459 = vmatmul.msk.f32.gmra.mxu2 %vm352_vm0, %v6443_v29  ;;  %5404 = vmatpush.msrb.mxu3 %v6475_v45  ;;  %v5240_v29 = vld [vmem:[%s7113_s14 + $0xb0] sm:$0xff]  ;;  %v5238_v45 = vld [vmem:[%s7113_s14 + $0xa0] sm:$0xff] }
0x132c   :  { %5443 = vmatpush.msrb.mxu0 %v6493_v44  ;;  %6427 = vmatmul.msk.f32.gmra.mxu3 %vm352_vm0, %v5105_v32  ;;  %v5223_v44 = vld [vmem:[%s7113_s14 + $0x28] sm:$0xff] }
0x132d   :  { %5405 = vmatpush.msrb.mxu3 %v6474_v48  ;;  %6435 = vmatmul.msk.f32.gmra.mxu0 %vm352_vm0, %v5105_v32  ;;  %v5237_v32 = vld [vmem:[%s7113_s14 + $0x98] sm:$0xff]  ;;  %v5222_v48 = vld [vmem:[%s7113_s14 + $0x20] sm:$0xff] }
0x132e   :  { %5444 = vmatpush.msrb.mxu0 %v6492_v50  ;;  %5524 = vmatpush.msrb.mxu2 %v5246_v26  ;;  %v5236_v50 = vld [vmem:[%s7113_s14 + $0x90] sm:$0xff]  ;;  %v6503_v26 = vld [vmem:[%s7108_s8 + $0xa8] sm:$0xff] }
0x132f   :  { %5406 = vmatpush.msrb.mxu3 %v6473_v60  ;;  %6452 = vmatmul.msk.f32.gmra.mxu1 %vm352_vm0, %v6444_v51  ;;  %v5221_v60 = vld [vmem:[%s7113_s14 + $0x18] sm:$0xff] }
0x1330   :  { %5445 = vmatpush.msrb.mxu0 %v6491_v3  ;;  %5482 = vmatpush.msrb.mxu1 %v5231_v63  ;;  %v5220_v3 = vld [vmem:[%s7113_s14 + $0x10] sm:$0xff] }
0x1331   :  { %5407 = vmatpush.msrb.mxu3 %v6472_v52  ;;  %5525 = vmatpush.msrb.mxu2 %v5245_v53  ;;  %v5234_v52 = vld [vmem:[%s7113_s14 + $0x80] sm:$0xff]  ;;  %v6504_v63 = vld [vmem:[%s7108_s8 + $0xb0] sm:$0xff]  ;;  %v6505_v53 = vld [vmem:[%s7108_s8 + $0xb8] sm:$0xff] }
0x1332   :  { %5446 = vmatpush.msrb.mxu0 %v6490_v38  ;;  %5483 = vmatpush.msrb.mxu1 %v5230_v16  ;;  %v5219_v38 = vld [vmem:[%s7113_s14 + $0x8] sm:$0xff]  ;;  %v6554_v16 = vld [vmem:[%s7108_s8 + $0xc0] sm:$0xff] }
0x1333   :  { %6460 = vmatmul.msk.f32.gmra.mxu2 %vm352_vm0, %v6444_v51  ;;  %5408 = vmatpush.msrb.mxu3 %v6471_v10  ;;  %v5235_v51 = vld [vmem:[%s7113_s14 + $0x88] sm:$0xff]  ;;  %v5218_v10 = vld [vmem:[%s7113_s14] sm:$0xff] }
0x1334   :  { %5447 = vmatpush.msrb.mxu0 %v6489_v25  ;;  %6428 = vmatmul.msk.f32.gmra.mxu3 %vm352_vm0, %v5106_v22 }
0x1335   :  { %5409 = vmatpush.msrb.mxu3 %v6470_v28  ;;  %6436 = vmatmul.msk.f32.gmra.mxu0 %vm352_vm0, %v5106_v22 }
0x1336   :  { %5448 = vmatpush.msrb.mxu0 %v6488_v36  ;;  %5526 = vmatpush.msrb.mxu2 %v5244_v6  ;;  %v6553_v6 = vld [vmem:[%s7113_s14 + $0x2f8] sm:$0xff] }
0x1337   :  { %5410 = vmatpush.msrb.mxu3 %v6469_v31  ;;  %6453 = vmatmul.msk.f32.gmra.mxu1 %vm352_vm0, %v6445_v2 }
0x1338   :  { %5449 = vmatpush.msrb.mxu0 %v6487_v4  ;;  %5484 = vmatpush.msrb.mxu1 %v5229_v23  ;;  %v6552_v23 = vld [vmem:[%s7113_s14 + $0x2f0] sm:$0xff] }
0x1339   :  { %5411 = vmatpush.msrb.mxu3 %v6468_v13  ;;  %5527 = vmatpush.msrb.mxu2 %v5243_v42 }
0x133a   :  { %5450 = vmatpush.msrb.mxu0 %v6486_v14  ;;  %5485 = vmatpush.msrb.mxu1 %v5228_v47  ;;  %v6555_v47 = vld [vmem:[%s7108_s8 + $0xc8] sm:$0xff] }
0x133b   :  { %6461 = vmatmul.msk.f32.gmra.mxu2 %vm352_vm0, %v6445_v2  ;;  %5412 = vmatpush.msrb.mxu3 %v6467_v58 }
0x133c   :  { %5451 = vmatpush.msrb.mxu0 %v6485_v21  ;;  %6429 = vmatmul.msk.f32.gmra.mxu3 %vm352_vm0, %v5107_v27 }
0x133d   :  { %5413 = vmatpush.msrb.mxu3 %v6466_v61  ;;  %6437 = vmatmul.msk.f32.gmra.mxu0 %vm352_vm0, %v5107_v27 }
0x133e   :  { %5452 = vmatpush.msrb.mxu0 %v6484_v18  ;;  %5528 = vmatpush.msrb.mxu2 %v5242_v41 }
0x133f   :  { %5607 = vmatpush.msra.mxu3 %v8972_v8  ;;  %6454 = vmatmul.msk.f32.gmra.mxu1 %vm352_vm0, %v6446_v11 }
0x1340   :  { %5453 = vmatpush.msrb.mxu0 %v6483_v56  ;;  %5486 = vmatpush.msrb.mxu1 %v5227_v37  ;;  %v6537_v37 = vld [vmem:[%s7113_s14 + $0x278] sm:$0xff] }
0x1341   :  { %5608 = vmatpush.msra.mxu3 %v8979_v46  ;;  %5529 = vmatpush.msrb.mxu2 %v5241_v59  ;;  %v6551_v59 = vld [vmem:[%s7113_s14 + $0x2e8] sm:$0xff] }
0x1342   :  { %5454 = vmatpush.msrb.mxu0 %v6482_v9  ;;  %5487 = vmatpush.msrb.mxu1 %v5226_v7 }
0x1343   :  { %5609 = vmatpush.msra.mxu3 %v8984_v30  ;;  %6462 = vmatmul.msk.f32.gmra.mxu2 %vm352_vm0, %v6446_v11 }
0x1344   :  { %5648 = vmatpush.msra.mxu0 %v8986_v62  ;;  %6430 = vmatmul.msk.f32.gmra.mxu3 %vm352_vm0, %v5108_v1 }
0x1345   :  { %5610 = vmatpush.msra.mxu3 %v8990_v35  ;;  %6438 = vmatmul.msk.f32.gmra.mxu0 %vm352_vm0, %v5108_v1 }
0x1346   :  { %5649 = vmatpush.msra.mxu0 %v8994_v5  ;;  %5530 = vmatpush.msrb.mxu2 %v5240_v29 }
0x1347   :  { %6455 = vmatmul.msk.f32.gmra.mxu1 %vm352_vm0, %v6447_v12 }
0x1348   :  { %5650 = vmatpush.msra.mxu0 %v9002_v17  ;;  %5488 = vmatpush.msrb.mxu1 %v5225_v33 }
0x1349   :  { %5531 = vmatpush.msrb.mxu2 %v5239_v19 }
0x134a   :  { %5651 = vmatpush.msra.mxu0 %v9008_v24  ;;  %5489 = vmatpush.msrb.mxu1 %v5224_v39  ;;  %v6536_v39 = vld [vmem:[%s7113_s14 + $0x270] sm:$0xff] }
0x134b   :  { %6463 = vmatmul.msk.f32.gmra.mxu2 %vm352_vm0, %v6447_v12 }
0x134c   :  { %6431 = vmatmul.msk.f32.gmra.mxu3 %vm352_vm0, %v5109_v20  ;;  %5532 = vmatpush.msrb.mxu2 %v5238_v45  ;;  %v6550_v45 = vld [vmem:[%s7113_s14 + $0x2e0] sm:$0xff] }
0x134d   :  { %6439 = vmatmul.msk.f32.gmra.mxu0 %vm352_vm0, %v5109_v20  ;;  %5490 = vmatpush.msrb.mxu1 %v5223_v44 }
0x134e   :  { %5533 = vmatpush.msrb.mxu2 %v5237_v32 }
0x134f   :  { %6456 = vmatmul.msk.f32.gmra.mxu1 %vm352_vm0, %v6448_v54 }
0x1350   :  { %5491 = vmatpush.msrb.mxu1 %v5222_v48  ;;  %5534 = vmatpush.msrb.mxu2 %v5236_v50  ;;  %v6556_v48 = vld [vmem:[%s7108_s8 + $0xd0] sm:$0xff] }
0x1352   :  { %5492 = vmatpush.msrb.mxu1 %v5221_v60  ;;  %5535 = vmatpush.msrb.mxu2 %v5235_v51  ;;  %v6535_v60 = vld [vmem:[%s7113_s14 + $0x268] sm:$0xff]  ;;  %v6549_v51 = vld [vmem:[%s7113_s14 + $0x2d8] sm:$0xff] }
0x1353   :  { %6464 = vmatmul.msk.f32.gmra.mxu2 %vm352_vm0, %v6448_v54 }
0x1354   :  { %6432 = vmatmul.msk.f32.gmra.mxu3 %vm352_vm0, %v5110_v57  ;;  %5493 = vmatpush.msrb.mxu1 %v5220_v3 }
0x1355   :  { %6440 = vmatmul.msk.f32.gmra.mxu0 %vm352_vm0, %v5110_v57  ;;  %5536 = vmatpush.msrb.mxu2 %v5234_v52  ;;  %v6498_v57 = vld [vmem:[%s7108_s8 + $0x80] sm:$0xff] }
0x1356   :  { %5494 = vmatpush.msrb.mxu1 %v5219_v38 }
0x1357   :  { %6457 = vmatmul.msk.f32.gmra.mxu1 %vm352_vm0, %v6449_v43  ;;  %5751 = vmatpush.msra.mxu2 %v6553_v6 }
0x1358   :  { %5495 = vmatpush.msrb.mxu1 %v5218_v10 }
0x1359   :  { %5752 = vmatpush.msra.mxu2 %v6552_v23  ;;  %v6524_v23 = vld [vmem:[%s7113_s14 + $0x210] sm:$0xff] }
0x135a   :  { %5710 = vmatpush.msra.mxu1 %v6537_v37 }
0x135b   :  { %6465 = vmatmul.msk.f32.gmra.mxu2 %vm352_vm0, %v6449_v43 }
0x135c   :  { %6433 = vmatmul.msk.f32.gmra.mxu3 %vm352_vm0, %v5111_v0  ;;  %5753 = vmatpush.msra.mxu2 %v6551_v59 }
0x135d   :  { %6441 = vmatmul.msk.f32.gmra.mxu0 %vm352_vm0, %v5111_v0  ;;  %5711 = vmatpush.msra.mxu1 %v6536_v39 }
0x135e   :  { %5754 = vmatpush.msra.mxu2 %v6550_v45 }
0x135f   :  { %5712 = vmatpush.msra.mxu1 %v6535_v60 }
0x1360   :  { %5755 = vmatpush.msra.mxu2 %v6549_v51  ;;  %v6561_v51 = vld [vmem:[%s7108_s8 + $0xf8] sm:$0xff] }
0x139c   :  { %v5300_v25 = vpop.f32.mrf.mxu1 }
0x139d   :  { %5414 = vmatmul.f32.vlgmr.msrb.gmra.mxu3 %v5300_v25  ;;  %v6534_v25 = vld [vmem:[%s7113_s14 + $0x260] sm:$0xff] }
0x139e   :  { %5845 = vmatpush.msrb.mxu3 %v8972_v8  ;;  %5713 = vmatpush.msra.mxu1 %v6534_v25 }
0x13a0   :  { %5846 = vmatpush.msrb.mxu3 %v8979_v46 }
0x13a2   :  { %5847 = vmatpush.msrb.mxu3 %v8984_v30  ;;  %v5194_v22 = vpop.f32.mrf.mxu0 }
0x13a3   :  { %5537 = vmatmul.f32.vlgmr.msrb.gmra.mxu2 %v5194_v22  ;;  %v6548_v22 = vld [vmem:[%s7113_s14 + $0x2d0] sm:$0xff] }
0x13a4   :  { %5848 = vmatpush.msrb.mxu3 %v8990_v35  ;;  %v5303_v28 = vpop.f32.mrf.mxu1  ;;  %5756 = vmatpush.msra.mxu2 %v6548_v22 }
0x13a5   :  { %5417 = vmatmul.f32.gmra.mxu3 %v5303_v28  ;;  %v6547_v28 = vld [vmem:[%s7113_s14 + $0x2c8] sm:$0xff] }
0x13a6   :  { %v5341_v36 = vpop.f32.mrf.mxu2  ;;  %5757 = vmatpush.msra.mxu2 %v6547_v28 }
0x13a7   :  { %5455 = vmatmul.f32.vlgmr.msrb.gmra.mxu0 %v5341_v36  ;;  %v5153_v31 = vpop.f32.mrf.mxu3 }
0x13a8   :  { %5886 = vmatpush.msrb.mxu0 %v8986_v62  ;;  %5496 = vmatmul.f32.vlgmr.msrb.gmra.mxu1 %v5153_v31 }
0x13aa   :  { %5887 = vmatpush.msrb.mxu0 %v8994_v5  ;;  %v5197_v2 = vpop.f32.mrf.mxu0 }
0x13ab   :  { %5540 = vmatmul.f32.gmra.mxu2 %v5197_v2  ;;  %v6557_v2 = vld [vmem:[%s7108_s8 + $0xd8] sm:$0xff] }
0x13ac   :  { %5888 = vmatpush.msrb.mxu0 %v9002_v17  ;;  %v5306_v8 = vpop.f32.mrf.mxu1 }
0x13ad   :  { %5420 = vmatmul.f32.gmra.mxu3 %v5306_v8 }
0x13ae   :  { %5889 = vmatpush.msrb.mxu0 %v9008_v24  ;;  %v5344_v46 = vpop.f32.mrf.mxu2 }
0x13af   :  { %5458 = vmatmul.f32.gmra.mxu0 %v5344_v46  ;;  %v5156_v30 = vpop.f32.mrf.mxu3  ;;  %v6533_v46 = vld [vmem:[%s7113_s14 + $0x258] sm:$0xff] }
0x13b0   :  { %5499 = vmatmul.f32.gmra.mxu1 %v5156_v30  ;;  %v6546_v30 = vld [vmem:[%s7113_s14 + $0x2c0] sm:$0xff] }
0x13b1   :  { %5714 = vmatpush.msra.mxu1 %v6533_v46  ;;  %5758 = vmatpush.msra.mxu2 %v6546_v30  ;;  %v6608_v46 = vld [vmem:[%s7113_s14 + $0x3f0] sm:$0xff] }
0x13b2   :  { %v5200_v35 = vpop.f32.mrf.mxu0 }
0x13b3   :  { %5543 = vmatmul.f32.gmra.mxu2 %v5200_v35  ;;  %v6532_v35 = vld [vmem:[%s7113_s14 + $0x250] sm:$0xff] }
0x13b4   :  { %v5309_v4 = vpop.f32.mrf.mxu1  ;;  %5715 = vmatpush.msra.mxu1 %v6532_v35 }
0x13b5   :  { %5423 = vmatmul.f32.gmra.mxu3 %v5309_v4 }
0x13b6   :  { %v5347_v62 = vpop.f32.mrf.mxu2 }
0x13b7   :  { %5461 = vmatmul.f32.gmra.mxu0 %v5347_v62  ;;  %v5159_v13 = vpop.f32.mrf.mxu3 }
0x13b8   :  { %5502 = vmatmul.f32.gmra.mxu1 %v5159_v13  ;;  %v6545_v13 = vld [vmem:[%s7113_s14 + $0x2b8] sm:$0xff] }
0x13b9   :  { %5759 = vmatpush.msra.mxu2 %v6545_v13  ;;  %v6592_v13 = vld [vmem:[%s7113_s14 + $0x370] sm:$0xff] }
0x13ba   :  { %v5203_v5 = vpop.f32.mrf.mxu0 }
0x13bb   :  { %5546 = vmatmul.f32.gmra.mxu2 %v5203_v5 }
0x13bc   :  { %v5312_v14 = vpop.f32.mrf.mxu1 }
0x13bd   :  { %5426 = vmatmul.f32.gmra.mxu3 %v5312_v14 }
0x13be   :  { %v5350_v17 = vpop.f32.mrf.mxu2 }
0x13bf   :  { %5464 = vmatmul.f32.gmra.mxu0 %v5350_v17  ;;  %v5162_v58 = vpop.f32.mrf.mxu3  ;;  %v6531_v17 = vld [vmem:[%s7113_s14 + $0x248] sm:$0xff] }
0x13c0   :  { %5505 = vmatmul.f32.gmra.mxu1 %v5162_v58  ;;  %v6544_v58 = vld [vmem:[%s7113_s14 + $0x2b0] sm:$0xff] }
0x13c1   :  { %5716 = vmatpush.msra.mxu1 %v6531_v17  ;;  %5760 = vmatpush.msra.mxu2 %v6544_v58  ;;  %v6591_v58 = vld [vmem:[%s7113_s14 + $0x368] sm:$0xff] }
0x13c2   :  { %v5206_v24 = vpop.f32.mrf.mxu0 }
0x13c3   :  { %5549 = vmatmul.f32.gmra.mxu2 %v5206_v24 }
0x13c4   :  { %v5315_v21 = vpop.f32.mrf.mxu1 }
0x13c5   :  { %5429 = vmatmul.f32.gmra.mxu3 %v5315_v21  ;;  %v6530_v21 = vld [vmem:[%s7113_s14 + $0x240] sm:$0xff] }
0x13c6   :  { %v5353_v27 = vpop.f32.mrf.mxu2  ;;  %5717 = vmatpush.msra.mxu1 %v6530_v21  ;;  %v6590_v21 = vld [vmem:[%s7113_s14 + $0x360] sm:$0xff] }
0x13c7   :  { %5467 = vmatmul.f32.gmra.mxu0 %v5353_v27  ;;  %v5165_v61 = vpop.f32.mrf.mxu3 }
0x13c8   :  { %5508 = vmatmul.f32.gmra.mxu1 %v5165_v61  ;;  %v6543_v61 = vld [vmem:[%s7113_s14 + $0x2a8] sm:$0xff] }
0x13c9   :  { %5761 = vmatpush.msra.mxu2 %v6543_v61  ;;  %v6604_v61 = vld [vmem:[%s7113_s14 + $0x3d0] sm:$0xff] }
0x13ca   :  { %v5209_v18 = vpop.f32.mrf.mxu0 }
0x13cb   :  { %5552 = vmatmul.f32.gmra.mxu2 %v5209_v18  ;;  %v6558_v18 = vld [vmem:[%s7108_s8 + $0xe0] sm:$0xff] }
0x13cc   :  { %v5318_v11 = vpop.f32.mrf.mxu1 }
0x13cd   :  { %5432 = vmatmul.f32.gmra.mxu3 %v5318_v11 }
0x13ce   :  { %v5356_v56 = vpop.f32.mrf.mxu2 }
0x13cf   :  { %5470 = vmatmul.f32.gmra.mxu0 %v5356_v56  ;;  %v5168_v9 = vpop.f32.mrf.mxu3  ;;  %v6529_v56 = vld [vmem:[%s7113_s14 + $0x238] sm:$0xff] }
0x13d0   :  { %5511 = vmatmul.f32.gmra.mxu1 %v5168_v9  ;;  %v6542_v9 = vld [vmem:[%s7113_s14 + $0x2a0] sm:$0xff] }
0x13d1   :  { %5718 = vmatpush.msra.mxu1 %v6529_v56  ;;  %5762 = vmatpush.msra.mxu2 %v6542_v9  ;;  %v6589_v9 = vld [vmem:[%s7113_s14 + $0x358] sm:$0xff] }
0x13d2   :  { %v5212_v1 = vpop.f32.mrf.mxu0 }
0x13d3   :  { %5555 = vmatmul.f32.gmra.mxu2 %v5212_v1  ;;  %v6528_v1 = vld [vmem:[%s7113_s14 + $0x230] sm:$0xff] }
0x13d4   :  { %v5321_v12 = vpop.f32.mrf.mxu1  ;;  %5719 = vmatpush.msra.mxu1 %v6528_v1  ;;  %v6602_v1 = vld [vmem:[%s7113_s14 + $0x3c0] sm:$0xff] }
0x13d5   :  { %5435 = vmatmul.f32.gmra.mxu3 %v5321_v12 }
0x13d6   :  { %v5359_v20 = vpop.f32.mrf.mxu2 }
0x13d7   :  { %5473 = vmatmul.f32.gmra.mxu0 %v5359_v20  ;;  %v5171_v54 = vpop.f32.mrf.mxu3 }
0x13d8   :  { %5514 = vmatmul.f32.gmra.mxu1 %v5171_v54  ;;  %v6541_v54 = vld [vmem:[%s7113_s14 + $0x298] sm:$0xff] }
0x13d9   :  { %5763 = vmatpush.msra.mxu2 %v6541_v54  ;;  %v6587_v54 = vld [vmem:[%s7113_s14 + $0x348] sm:$0xff] }
0x13da   :  { %v5215_v43 = vpop.f32.mrf.mxu0 }
0x13db   :  { %5558 = vmatmul.f32.gmra.mxu2 %v5215_v43 }
0x13dd   :  { %6506 = vmatmul.msk.f32.vlgmr.msra.gmra.mxu3 %vm352_vm0, %v6498_v57 }
0x13de   :  { %v5362_v0 = vpop.f32.mrf.mxu2 }
0x13df   :  { %5476 = vmatmul.f32.gmra.mxu0 %v5362_v0  ;;  %v5174_v34 = vpop.f32.mrf.mxu3  ;;  %v6527_v0 = vld [vmem:[%s7113_s14 + $0x228] sm:$0xff] }
0x13e0   :  { %5517 = vmatmul.f32.gmra.mxu1 %v5174_v34  ;;  %v6540_v34 = vld [vmem:[%s7113_s14 + $0x290] sm:$0xff] }
0x13e1   :  { %5720 = vmatpush.msra.mxu1 %v6527_v0  ;;  %5764 = vmatpush.msra.mxu2 %v6540_v34  ;;  %v6586_v0 = vld [vmem:[%s7113_s14 + $0x340] sm:$0xff]  ;;  %v6599_v34 = vld [vmem:[%s7113_s14 + $0x3a8] sm:$0xff] }
0x13e5   :  { %6507 = vmatmul.msk.f32.gmra.mxu3 %vm352_vm0, %v6499_v15 }
0x13e7   :  { %6514 = vmatmul.msk.f32.vlgmr.msra.gmra.mxu0 %vm352_vm0, %v6498_v57 }
0x13ed   :  { %6508 = vmatmul.msk.f32.gmra.mxu3 %vm352_vm0, %v6500_v55 }
0x13ef   :  { %6515 = vmatmul.msk.f32.gmra.mxu0 %vm352_vm0, %v6499_v15 }
0x13f5   :  { %6509 = vmatmul.msk.f32.gmra.mxu3 %vm352_vm0, %v6501_v40 }
0x13f7   :  { %6516 = vmatmul.msk.f32.gmra.mxu0 %vm352_vm0, %v6500_v55  ;;  %v6526_v55 = vld [vmem:[%s7113_s14 + $0x220] sm:$0xff] }
0x13f8   :  { %5721 = vmatpush.msra.mxu1 %v6526_v55  ;;  %v6585_v55 = vld [vmem:[%s7113_s14 + $0x338] sm:$0xff] }
0x13fd   :  { %6510 = vmatmul.msk.f32.gmra.mxu3 %vm352_vm0, %v6502_v49 }
0x13ff   :  { %6517 = vmatmul.msk.f32.gmra.mxu0 %vm352_vm0, %v6501_v40 }
0x1405   :  { %6511 = vmatmul.msk.f32.gmra.mxu3 %vm352_vm0, %v6503_v26 }
0x1407   :  { %6518 = vmatmul.msk.f32.gmra.mxu0 %vm352_vm0, %v6502_v49  ;;  %v6539_v49 = vld [vmem:[%s7113_s14 + $0x288] sm:$0xff] }
0x1408   :  { %5765 = vmatpush.msra.mxu2 %v6539_v49  ;;  %v6598_v49 = vld [vmem:[%s7113_s14 + $0x3a0] sm:$0xff] }
0x140d   :  { %6512 = vmatmul.msk.f32.gmra.mxu3 %vm352_vm0, %v6504_v63 }
0x140f   :  { %6519 = vmatmul.msk.f32.gmra.mxu0 %vm352_vm0, %v6503_v26  ;;  %v6559_v26 = vld [vmem:[%s7108_s8 + $0xe8] sm:$0xff] }
0x1415   :  { %6513 = vmatmul.msk.f32.gmra.mxu3 %vm352_vm0, %v6505_v53 }
0x1417   :  { %6520 = vmatmul.msk.f32.gmra.mxu0 %vm352_vm0, %v6504_v63 }
0x141d   :  { %6562 = vmatmul.msk.f32.vlgmr.msrb.gmra.mxu3 %vm352_vm0, %v6554_v16 }
0x141f   :  { %6521 = vmatmul.msk.f32.gmra.mxu0 %vm352_vm0, %v6505_v53  ;;  %v6525_v53 = vld [vmem:[%s7113_s14 + $0x218] sm:$0xff] }
0x1420   :  { %v5415_v42 = vpop.f32.mrf.mxu3  ;;  %5722 = vmatpush.msra.mxu1 %v6525_v53  ;;  %v6583_v53 = vld [vmem:[%s7113_s14 + $0x328] sm:$0xff] }
0x1422   :  { %5723 = vmatpush.msra.mxu1 %v6524_v23  ;;  %v6582_v23 = vld [vmem:[%s7113_s14 + $0x320] sm:$0xff] }
0x1424   :  { %v5456_v41 = vpop.f32.mrf.mxu0 }
0x1425   :  { %v5457_v7 = vadd.f32 %v5456_v41, %v5415_v42  ;;  %6563 = vmatmul.msk.f32.gmra.mxu3 %vm352_vm0, %v6555_v47  ;;  %v5497_v29 = vpop.f32.mrf.mxu1 }
0x1426   :  { %v5538_v33 = vpop.f32.mrf.mxu2 }
0x1427   :  { %6570 = vmatmul.msk.f32.vlgmr.msrb.gmra.mxu0 %vm352_vm0, %v6554_v16  ;;  %v5498_v19 = vadd.f32 %v5497_v29, %v5457_v7  ;;  %v6538_v16 = vld [vmem:[%s7113_s14 + $0x280] sm:$0xff] }
0x1428   :  { %v5418_v44 = vpop.f32.mrf.mxu3  ;;  %5766 = vmatpush.msra.mxu2 %v6538_v16  ;;  %v6522_v7 = vld [vmem:[%s7113_s14 + $0x200] sm:$0xff]  ;;  %v6596_v16 = vld [vmem:[%s7113_s14 + $0x390] sm:$0xff] }
0x1429   :  { %v9171_v32 = vadd.f32 %v5538_v33, %v5498_v19  ;;  %v6560_v33 = vld [vmem:[%s7108_s8 + $0xf0] sm:$0xff]  ;;  %s6949_s8 = smov [#allocation16]  }
0x142c   :  { %v5459_v50 = vpop.f32.mrf.mxu0 }
0x142d   :  { %v5460_v3 = vadd.f32 %v5459_v50, %v5418_v44  ;;  %6564 = vmatmul.msk.f32.gmra.mxu3 %vm352_vm0, %v6556_v48  ;;  %v5500_v52 = vpop.f32.mrf.mxu1 }
0x142e   :  { %v5541_v38 = vpop.f32.mrf.mxu2 }
0x142f   :  { %6571 = vmatmul.msk.f32.gmra.mxu0 %vm352_vm0, %v6555_v47  ;;  %v5501_v10 = vadd.f32 %v5500_v52, %v5460_v3  ;;  %v6523_v47 = vld [vmem:[%s7113_s14 + $0x208] sm:$0xff] }
0x1430   :  { %v5421_v36 = vpop.f32.mrf.mxu3  ;;  %5724 = vmatpush.msra.mxu1 %v6523_v47 }
0x1431   :  { %v9181_v31 = vadd.f32 %v5541_v38, %v5501_v10 }
0x1432   :  { %5725 = vmatpush.msra.mxu1 %v6522_v7  ;;  %v6579_v7 = vld [vmem:[%s7113_s14 + $0x308] sm:$0xff] }
0x1434   :  { %v5462_v8 = vpop.f32.mrf.mxu0 }
0x1435   :  { %v5463_v4 = vadd.f32 %v5462_v8, %v5421_v36  ;;  %6565 = vmatmul.msk.f32.gmra.mxu3 %vm352_vm0, %v6557_v2  ;;  %v5503_v62 = vpop.f32.mrf.mxu1  ;;  %v6609_v8 = vld [vmem:[%s7113_s14 + $0x3f8] sm:$0xff] }
0x1436   :  { %v5544_v5 = vpop.f32.mrf.mxu2  ;;  %5989 = vmatpush.msrb.mxu2 %v6609_v8 }
0x1437   :  { %6572 = vmatmul.msk.f32.gmra.mxu0 %vm352_vm0, %v6556_v48  ;;  %v5504_v14 = vadd.f32 %v5503_v62, %v5463_v4  ;;  %v6593_v4 = vld [vmem:[%s7113_s14 + $0x378] sm:$0xff]  ;;  %v6607_v62 = vld [vmem:[%s7113_s14 + $0x3e8] sm:$0xff] }
0x1438   :  { %v5424_v24 = vpop.f32.mrf.mxu3  ;;  %5990 = vmatpush.msrb.mxu2 %v6608_v46  ;;  %5948 = vmatpush.msrb.mxu1 %v6593_v4 }
0x1439   :  { %v9193_v27 = vadd.f32 %v5544_v5, %v5504_v14  ;;  %v6606_v5 = vld [vmem:[%s7113_s14 + $0x3e0] sm:$0xff] }
0x143a   :  { %5991 = vmatpush.msrb.mxu2 %v6607_v62  ;;  %5949 = vmatpush.msrb.mxu1 %v6592_v13 }
0x143c   :  { %v5465_v11 = vpop.f32.mrf.mxu0  ;;  %5992 = vmatpush.msrb.mxu2 %v6606_v5  ;;  %5950 = vmatpush.msrb.mxu1 %v6591_v58 }
0x143d   :  { %v5466_v12 = vadd.f32 %v5465_v11, %v5424_v24  ;;  %6566 = vmatmul.msk.f32.gmra.mxu3 %vm352_vm0, %v6558_v18  ;;  %v5506_v20 = vpop.f32.mrf.mxu1  ;;  %v6605_v24 = vld [vmem:[%s7113_s14 + $0x3d8] sm:$0xff] }
0x143e   :  { %v5547_v57 = vpop.f32.mrf.mxu2  ;;  %5993 = vmatpush.msrb.mxu2 %v6605_v24  ;;  %5951 = vmatpush.msrb.mxu1 %v6590_v21 }
0x143f   :  { %6573 = vmatmul.msk.f32.gmra.mxu0 %vm352_vm0, %v6557_v2  ;;  %v5507_v43 = vadd.f32 %v5506_v20, %v5466_v12  ;;  %v6588_v12 = vld [vmem:[%s7113_s14 + $0x350] sm:$0xff]  ;;  %v6601_v20 = vld [vmem:[%s7113_s14 + $0x3b8] sm:$0xff] }
0x1440   :  { %v5427_v15 = vpop.f32.mrf.mxu3  ;;  %5994 = vmatpush.msrb.mxu2 %v6604_v61  ;;  %5952 = vmatpush.msrb.mxu1 %v6589_v9 }
0x1441   :  { %v9206_v40 = vadd.f32 %v5547_v57, %v5507_v43  ;;  %v6600_v57 = vld [vmem:[%s7113_s14 + $0x3b0] sm:$0xff] }
0x1442   :  { %5953 = vmatpush.msrb.mxu1 %v6588_v12 }
0x1444   :  { %v5468_v63 = vpop.f32.mrf.mxu0  ;;  %5954 = vmatpush.msrb.mxu1 %v6587_v54 }
0x1445   :  { %v5469_v6 = vadd.f32 %v5468_v63, %v5427_v15  ;;  %6567 = vmatmul.msk.f32.gmra.mxu3 %vm352_vm0, %v6559_v26  ;;  %v5509_v42 = vpop.f32.mrf.mxu1  ;;  %v6597_v63 = vld [vmem:[%s7113_s14 + $0x398] sm:$0xff] }
0x1446   :  { %v5550_v37 = vpop.f32.mrf.mxu2  ;;  %5955 = vmatpush.msrb.mxu1 %v6586_v0 }
0x1447   :  { %6574 = vmatmul.msk.f32.gmra.mxu0 %vm352_vm0, %v6558_v18  ;;  %v5510_v41 = vadd.f32 %v5509_v42, %v5469_v6  ;;  %v6603_v18 = vld [vmem:[%s7113_s14 + $0x3c8] sm:$0xff] }
0x1448   :  { %v5430_v59 = vpop.f32.mrf.mxu3  ;;  %5995 = vmatpush.msrb.mxu2 %v6603_v18  ;;  %5956 = vmatpush.msrb.mxu1 %v6585_v55  ;;  %v6595_v42 = vld [vmem:[%s7113_s14 + $0x388] sm:$0xff] }
0x1449   :  { %v9217_v29 = vadd.f32 %v5550_v37, %v5510_v41  ;;  %v6581_v41 = vld [vmem:[%s7113_s14 + $0x318] sm:$0xff]  ;;  %v6594_v37 = vld [vmem:[%s7113_s14 + $0x380] sm:$0xff] }
0x144a   :  { %5996 = vmatpush.msrb.mxu2 %v6602_v1 }
0x144c   :  { %v5471_v19 = vpop.f32.mrf.mxu0  ;;  %5997 = vmatpush.msrb.mxu2 %v6601_v20 }
0x144d   :  { %v5472_v39 = vadd.f32 %v5471_v19, %v5430_v59  ;;  %6568 = vmatmul.msk.f32.gmra.mxu3 %vm352_vm0, %v6560_v33  ;;  %v5512_v45 = vpop.f32.mrf.mxu1  ;;  %v6580_v59 = vld [vmem:[%s7113_s14 + $0x310] sm:$0xff]  ;;  %v6578_v19 = vld [vmem:[%s7113_s14 + $0x300] sm:$0xff] }
0x144e   :  { %v5553_v48 = vpop.f32.mrf.mxu2  ;;  %5998 = vmatpush.msrb.mxu2 %v6600_v57 }
0x144f   :  { %6575 = vmatmul.msk.f32.gmra.mxu0 %vm352_vm0, %v6559_v26  ;;  %v5513_v44 = vadd.f32 %v5512_v45, %v5472_v39  ;;  %v6584_v26 = vld [vmem:[%s7113_s14 + $0x330] sm:$0xff]  ;;  %s6058_s14 = sshll.u32 %s6949_s8, 4  ;;  %s6059_s14 = int_to_ptr.vmem [resolvable:$true] %s6058_s14 }
0x1450   :  { %v5433_v50 = vpop.f32.mrf.mxu3  ;;  %5999 = vmatpush.msrb.mxu2 %v6599_v34  ;;  %5957 = vmatpush.msrb.mxu1 %v6584_v26 }
0x1451   :  { %v9222_v60 = vadd.f32 %v5553_v48, %v5513_v44 }
0x1452   :  { %6000 = vmatpush.msrb.mxu2 %v6598_v49  ;;  %5958 = vmatpush.msrb.mxu1 %v6583_v53 }
0x1454   :  { %v5474_v3 = vpop.f32.mrf.mxu0  ;;  %6001 = vmatpush.msrb.mxu2 %v6597_v63  ;;  %5959 = vmatpush.msrb.mxu1 %v6582_v23 }
0x1455   :  { %v5475_v52 = vadd.f32 %v5474_v3, %v5433_v50  ;;  %6569 = vmatmul.msk.f32.gmra.mxu3 %vm352_vm0, %v6561_v51  ;;  %v5515_v38 = vpop.f32.mrf.mxu1 }
0x1456   :  { %v5556_v25 = vpop.f32.mrf.mxu2  ;;  %6002 = vmatpush.msrb.mxu2 %v6596_v16  ;;  %5960 = vmatpush.msrb.mxu1 %v6581_v41 }
0x1457   :  { %6576 = vmatmul.msk.f32.gmra.mxu0 %vm352_vm0, %v6560_v33  ;;  %v5516_v10 = vadd.f32 %v5515_v38, %v5475_v52 }
0x1458   :  { %v5436_v22 = vpop.f32.mrf.mxu3  ;;  %6003 = vmatpush.msrb.mxu2 %v6595_v42  ;;  %5961 = vmatpush.msrb.mxu1 %v6580_v59 }
0x1459   :  { %v9227_v28 = vadd.f32 %v5556_v25, %v5516_v10 }
0x145a   :  { %6004 = vmatpush.msrb.mxu2 %v6594_v37  ;;  %5962 = vmatpush.msrb.mxu1 %v6579_v7 }
0x145c   :  { %v5477_v36 = vpop.f32.mrf.mxu0  ;;  %5963 = vmatpush.msrb.mxu1 %v6578_v19 }
0x145d   :  { %v9229_v2 = vadd.f32 %v5477_v36, %v5436_v22  ;;  %v9264_v13 = vpop.f32.mrf.mxu1 }
0x145e   :  { %v9266_v58 = vpop.f32.mrf.mxu2 }
0x145f   :  { %6577 = vmatmul.msk.f32.gmra.mxu0 %vm352_vm0, %v6561_v51 }
0x1460   :  { %v5612_v30 = vpop.f32.mrf.mxu3 }
0x1461   :  { %5726 = vmatmul.f32.vlgmr.msra.gmra.mxu1 %v5612_v30 }
0x1464   :  { %v5653_v35 = vpop.f32.mrf.mxu0 }
0x1465   :  { %5767 = vmatmul.f32.vlgmr.msra.gmra.mxu2 %v5653_v35 }
0x1468   :  { %v5615_v14 = vpop.f32.mrf.mxu3 }
0x1469   :  { %5729 = vmatmul.f32.gmra.mxu1 %v5615_v14 }
0x146c   :  { %v5656_v17 = vpop.f32.mrf.mxu0 }
0x146d   :  { %5770 = vmatmul.f32.gmra.mxu2 %v5656_v17 }
0x1470   :  { %v5618_v11 = vpop.f32.mrf.mxu3 }
0x1471   :  { %5732 = vmatmul.f32.gmra.mxu1 %v5618_v11 }
0x1474   :  { %v5659_v56 = vpop.f32.mrf.mxu0 }
0x1475   :  { %5773 = vmatmul.f32.gmra.mxu2 %v5659_v56 }
0x1478   :  { %v5621_v43 = vpop.f32.mrf.mxu3 }
0x1479   :  { %5735 = vmatmul.f32.gmra.mxu1 %v5621_v43 }
0x147c   :  { %v5662_v15 = vpop.f32.mrf.mxu0 }
0x147d   :  { %5776 = vmatmul.f32.gmra.mxu2 %v5662_v15 }
0x1480   :  { %v5624_v6 = vpop.f32.mrf.mxu3 }
0x1481   :  { %5738 = vmatmul.f32.gmra.mxu1 %v5624_v6 }
0x1484   :  { %v5665_v47 = vpop.f32.mrf.mxu0 }
0x1485   :  { %5779 = vmatmul.f32.gmra.mxu2 %v5665_v47 }
0x1488   :  { %v5627_v33 = vpop.f32.mrf.mxu3 }
0x1489   :  { %5741 = vmatmul.f32.gmra.mxu1 %v5627_v33 }
0x148c   :  { %v5668_v39 = vpop.f32.mrf.mxu0 }
0x148d   :  { %5782 = vmatmul.f32.gmra.mxu2 %v5668_v39 }
0x1490   :  { %v5630_v45 = vpop.f32.mrf.mxu3 }
0x1491   :  { %5744 = vmatmul.f32.gmra.mxu1 %v5630_v45 }
0x1494   :  { %v5671_v44 = vpop.f32.mrf.mxu0 }
0x1495   :  { %5785 = vmatmul.f32.gmra.mxu2 %v5671_v44 }
0x1498   :  { %v5633_v48 = vpop.f32.mrf.mxu3 }
0x1499   :  { %5747 = vmatmul.f32.gmra.mxu1 %v5633_v48 }
0x149c   :  { %v5674_v50 = vpop.f32.mrf.mxu0 }
0x149d   :  { %5788 = vmatmul.f32.gmra.mxu2 %v5674_v50 }
0x14a0   :  { %v5850_v51 = vpop.f32.mrf.mxu3 }
0x14a1   :  { %5964 = vmatmul.f32.vlgmr.msrb.gmra.mxu1 %v5850_v51 }
0x14a4   :  { %v5891_v3 = vpop.f32.mrf.mxu0 }
0x14a5   :  { %6005 = vmatmul.f32.vlgmr.msrb.gmra.mxu2 %v5891_v3 }
0x14a8   :  { %v5853_v52 = vpop.f32.mrf.mxu3 }
0x14a9   :  { %5967 = vmatmul.f32.gmra.mxu1 %v5853_v52 }
0x14ac   :  { %v5894_v38 = vpop.f32.mrf.mxu0 }
0x14ad   :  { %6008 = vmatmul.f32.gmra.mxu2 %v5894_v38 }
0x14b0   :  { %v5856_v10 = vpop.f32.mrf.mxu3 }
0x14b1   :  { %5970 = vmatmul.f32.gmra.mxu1 %v5856_v10 }
0x14b4   :  { %v5897_v25 = vpop.f32.mrf.mxu0 }
0x14b5   :  { %6011 = vmatmul.f32.gmra.mxu2 %v5897_v25 }
0x14b8   :  { %v5859_v22 = vpop.f32.mrf.mxu3 }
0x14b9   :  { %5973 = vmatmul.f32.gmra.mxu1 %v5859_v22 }
0x14bc   :  { %v5900_v36 = vpop.f32.mrf.mxu0 }
0x14bd   :  { %6014 = vmatmul.f32.gmra.mxu2 %v5900_v36 }
0x14c0   :  { %v5862_v8 = vpop.f32.mrf.mxu3 }
0x14c1   :  { %5976 = vmatmul.f32.gmra.mxu1 %v5862_v8 }
0x14c4   :  { %v5903_v46 = vpop.f32.mrf.mxu0 }
0x14c5   :  { %6017 = vmatmul.f32.gmra.mxu2 %v5903_v46 }
0x14c8   :  { %v5865_v30 = vpop.f32.mrf.mxu3 }
0x14c9   :  { %5979 = vmatmul.f32.gmra.mxu1 %v5865_v30 }
0x14cc   :  { %v5906_v35 = vpop.f32.mrf.mxu0 }
0x14cd   :  { %6020 = vmatmul.f32.gmra.mxu2 %v5906_v35 }
0x14d0   :  { %v5868_v4 = vpop.f32.mrf.mxu3 }
0x14d1   :  { %5982 = vmatmul.f32.gmra.mxu1 %v5868_v4 }
0x14d4   :  { %v5909_v62 = vpop.f32.mrf.mxu0 }
0x14d5   :  { %6023 = vmatmul.f32.gmra.mxu2 %v5909_v62 }
0x14d8   :  { %v5871_v5 = vpop.f32.mrf.mxu3 }
0x14d9   :  { %5985 = vmatmul.f32.gmra.mxu1 %v5871_v5 }
0x14dc   :  { %v5912_v14 = vpop.f32.mrf.mxu0 }
0x14dd   :  { %6026 = vmatmul.f32.gmra.mxu2 %v5912_v14 }
0x14de   :  { %v5727_v17 = vpop.f32.mrf.mxu1 }
0x14e6   :  { %v5730_v24 = vpop.f32.mrf.mxu1 }
0x14e8   :  { %v5768_v21 = vpop.f32.mrf.mxu2 }
0x14e9   :  { %v5769_v55 = vadd.f32 %v5768_v21, %v5727_v17 }
0x14eb   :  { %v5792_v63 = vadd.f32 %v5769_v55, %v9171_v32 }
0x14ee   :  { %v5733_v61 = vpop.f32.mrf.mxu1 }
0x14f0   :  { %v5771_v18 = vpop.f32.mrf.mxu2 }
0x14f1   :  { %v5772_v6 = vadd.f32 %v5771_v18, %v5730_v24  ;;  %v5519_v18 = vadd.f32 %v9264_v13, %v9229_v2 }
0x14f3   :  { %v5793_v41 = vadd.f32 %v5772_v6, %v9181_v31 }
0x14f6   :  { %v5736_v11 = vpop.f32.mrf.mxu1 }
0x14f8   :  { %v5774_v56 = vpop.f32.mrf.mxu2 }
0x14f9   :  { %v5775_v7 = vadd.f32 %v5774_v56, %v5733_v61 }
0x14fb   :  { %v5794_v32 = vadd.f32 %v5775_v7, %v9193_v27 }
0x14fe   :  { %v5739_v9 = vpop.f32.mrf.mxu1 }
0x1500   :  { %v5777_v1 = vpop.f32.mrf.mxu2 }
0x1501   :  { %v5778_v48 = vadd.f32 %v5777_v1, %v5736_v11 }
0x1503   :  { %v5795_v31 = vadd.f32 %v5778_v48, %v9206_v40 }
0x1506   :  { %v5742_v12 = vpop.f32.mrf.mxu1 }
0x1508   :  { %v5780_v20 = vpop.f32.mrf.mxu2 }
0x1509   :  { %v5781_v10 = vadd.f32 %v5780_v20, %v5739_v9 }
0x150b   :  { %v5796_v36 = vadd.f32 %v5781_v10, %v9217_v29 }
0x150e   :  { %v5745_v54 = vpop.f32.mrf.mxu1 }
0x1510   :  { %v5783_v57 = vpop.f32.mrf.mxu2 }
0x1511   :  { %v5784_v30 = vadd.f32 %v5783_v57, %v5742_v12 }
0x1513   :  { %v5797_v62 = vadd.f32 %v5784_v30, %v9222_v60  ;;  %v5560_v60 = vadd.f32 %v9266_v58, %v5519_v18 }
0x1516   :  { %v5748_v43 = vpop.f32.mrf.mxu1 }
0x1518   :  { %v5786_v0 = vpop.f32.mrf.mxu2 }
0x1519   :  { %v5787_v17 = vadd.f32 %v5786_v0, %v5745_v54 }
0x151b   :  { %v5798_v29 = vadd.f32 %v5787_v17, %v9227_v28 }
0x151e   :  { %v5965_v34 = vpop.f32.mrf.mxu1 }
0x1520   :  { %v5789_v15 = vpop.f32.mrf.mxu2 }
0x1521   :  { %v5790_v56 = vadd.f32 %v5789_v15, %v5748_v43 }
0x1523   :  { %v5799_v20 = vadd.f32 %v5790_v56, %v5560_v60 }
0x1526   :  { %v5968_v49 = vpop.f32.mrf.mxu1 }
0x1528   :  { %v6006_v26 = vpop.f32.mrf.mxu2 }
0x1529   :  { %v6007_v53 = vadd.f32 %v6006_v26, %v5965_v34 }
0x152b   :  { %v6030_v16 = vadd.f32 %v6007_v53, %v5792_v63 }
0x152d   :  { %v6038_v23 = vmax.f32 %v6030_v16, 0.0 }
0x152e   :  { %v5971_v42 = vpop.f32.mrf.mxu1 }
0x152f   :  { %6046 = vst.msk [vmem:[#allocation16] sm:$0xff] %vm352_vm0, %v6038_v23 }
0x1530   :  { %v6009_v47 = vpop.f32.mrf.mxu2 }
0x1531   :  { %v6010_v37 = vadd.f32 %v6009_v47, %v5968_v49 }
0x1533   :  { %v6031_v59 = vadd.f32 %v6010_v37, %v5793_v41 }
0x1535   :  { %v6039_v33 = vmax.f32 %v6031_v59, 0.0 }
0x1536   :  { %v5974_v19 = vpop.f32.mrf.mxu1 }
0x1537   :  { %6047 = vst.msk [vmem:[#allocation16 + $0x8] sm:$0xff] %vm352_vm0, %v6039_v33 }
0x1538   :  { %v6012_v39 = vpop.f32.mrf.mxu2 }
0x1539   :  { %v6013_v45 = vadd.f32 %v6012_v39, %v5971_v42 }
0x153b   :  { %v6032_v44 = vadd.f32 %v6013_v45, %v5794_v32 }
0x153d   :  { %v6040_v50 = vmax.f32 %v6032_v44, 0.0 }
0x153e   :  { %v5977_v3 = vpop.f32.mrf.mxu1 }
0x153f   :  { %6048 = vst.msk [vmem:[#allocation16 + $0x10] sm:$0xff] %vm352_vm0, %v6040_v50 }
0x1540   :  { %v6015_v51 = vpop.f32.mrf.mxu2 }
0x1541   :  { %v6016_v52 = vadd.f32 %v6015_v51, %v5974_v19 }
0x1543   :  { %v6033_v38 = vadd.f32 %v6016_v52, %v5795_v31 }
0x1545   :  { %v6041_v25 = vmax.f32 %v6033_v38, 0.0 }
0x1546   :  { %v5980_v8 = vpop.f32.mrf.mxu1 }
0x1547   :  { %6049 = vst.msk [vmem:[#allocation16 + $0x18] sm:$0xff] %vm352_vm0, %v6041_v25 }
0x1548   :  { %v6018_v22 = vpop.f32.mrf.mxu2 }
0x1549   :  { %v6019_v27 = vadd.f32 %v6018_v22, %v5977_v3 }
0x154b   :  { %v6034_v46 = vadd.f32 %v6019_v27, %v5796_v36 }
0x154d   :  { %v6042_v35 = vmax.f32 %v6034_v46, 0.0 }
0x154e   :  { %v5983_v14 = vpop.f32.mrf.mxu1 }
0x154f   :  { %6050 = vst.msk [vmem:[#allocation16 + $0x20] sm:$0xff] %vm352_vm0, %v6042_v35 }
0x1550   :  { %v6021_v4 = vpop.f32.mrf.mxu2 }
0x1551   :  { %v6022_v40 = vadd.f32 %v6021_v4, %v5980_v8 }
0x1553   :  { %v6035_v5 = vadd.f32 %v6022_v40, %v5797_v62 }
0x1555   :  { %v6043_v24 = vmax.f32 %v6035_v5, 0.0 }
0x1556   :  { %v5986_v1 = vpop.f32.mrf.mxu1 }
0x1557   :  { %6051 = vst.msk [vmem:[#allocation16 + $0x28] sm:$0xff] %vm352_vm0, %v6043_v24 }
0x1558   :  { %v6024_v21 = vpop.f32.mrf.mxu2 }
0x1559   :  { %v6025_v61 = vadd.f32 %v6024_v21, %v5983_v14 }
0x155b   :  { %v6036_v11 = vadd.f32 %v6025_v61, %v5798_v29 }
0x155d   :  { %v6044_v9 = vmax.f32 %v6036_v11, 0.0 }
0x155f   :  { %6052 = vst.msk [vmem:[#allocation16 + $0x30] sm:$0xff] %vm352_vm0, %v6044_v9 }
0x1560   :  { %v6027_v12 = vpop.f32.mrf.mxu2 }
0x1561   :  { %v6028_v54 = vadd.f32 %v6027_v12, %v5986_v1 }
0x1563   :  { %v6037_v28 = vadd.f32 %v6028_v54, %v5799_v20 }
0x1565   :  { %v6045_v57 = vmax.f32 %v6037_v28, 0.0 }
0x1567   :  { %6053 = vst.msk [vmem:[#allocation16 + $0x38] sm:$0xff] %vm352_vm0, %v6045_v57 }
0x1568   :  { %6892 = shalt.err (!%p6889_p2)
}
0x1569   :  { %6066 = dma.vmem_to_hbm [thread:$0]  %s6059_s14, 1024, %s6061_s24, [#allocation4], %s6938_s15, %s6938_s15, %s6939_s16  }
0x156a   :  { %6903 = dma.done.wait [#allocation4], 1024  }
0x156b   :  { %6904 = vsyncadd [#allocation4], 4294966272 }
0x156c   :  { %6071 = vsyncpa [#allocation3], 1 }
0x156d   :  { %6072 = vsyncpa [#allocation6], 1 }
0x156e   :  { %6073 = vsyncpa [#allocation9], 1 }
0x156f   :  { %6074 = vsyncpa [#allocation12], 1 }
0x1570   :  { %6075 = vsyncpa [#allocation15], 1 }
0x1571   :  { %6076 = vsyncpa [#allocation4], 1 }

</bundles_post_ra>
